<compile_context>
chip_gen: v7x
topology: tpu7x:2x2x1
jax: 0.10.0
libtpu: 0.0.40
codegen_flags: <defaults>
</compile_context>

<pallas_src>
import math

import jax
import jax.numpy as jnp
from jax import lax
from jax.experimental import pallas as pl
from jax.experimental.pallas import tpu as pltpu

BN_EPS = 1e-5
LANE = 128
CPAD = 16          # channel padding granularity (bf16 packs 16 rows / vreg)


def _round_up(x, m):
    return ((x + m - 1) // m) * m


def _cdiv(a, b):
    return -(-a // b)


def _tpu_defaults():
    """Per-generation tiling / VMEM knobs (conservative fallbacks if kind unknown)."""
    try:
        kind = jax.devices()[0].device_kind.lower()
    except Exception:
        kind = ""
    if "v7" in kind:
        # 2 TensorCores / chip, 64 MiB physical VMEM per TC.
        return {"num_tc": 2, "target_lanes": 4096, "vmem_limit": 48 * 1024 * 1024}
    if "v4" in kind or "v5p" in kind:
        # megacore chips: 2 TCs, large VMEM.
        return {"num_tc": 2, "target_lanes": 8192, "vmem_limit": 64 * 1024 * 1024}
    # v5e / v6e: single TensorCore, 128 MiB physical VMEM (raise above 16/32 MiB default).
    return {"num_tc": 1, "target_lanes": 8192, "vmem_limit": 64 * 1024 * 1024}


# --------------------------------------------------------------------------- flat layout glue
class _Geom:
    """Geometry of the channels-major flat layout for one conv segment."""

    def __init__(self, B, H, W, pad, tb):
        self.B, self.H, self.W, self.pad = B, H, W, pad
        self.Hp, self.Wp = H + 2 * pad, W + 2 * pad
        self.TB = tb
        self.G = _cdiv(B, tb)
        self.Bpad = self.G * tb
        self.flat = tb * self.Hp * self.Wp
        self.Np = _round_up(self.flat, LANE)


def _pick_batch_tile(B, Hp, Wp, target_lanes, num_tc):
    """Batch-tile size: big lane axis; only split the batch when there are >1 TensorCores."""
    per_img = Hp * Wp
    tb = max(1, target_lanes // per_img)
    tb = min(tb, B)
    if num_tc > 1 and B >= 2 * num_tc:
        # keep grid length >= num_tc so every TensorCore gets work (megacore sharding)
        tb = min(tb, max(1, B // num_tc))
    return tb


def _to_flat(x_cbhw, g, c_pad):
    """(C, B, H, W) -> (c_pad, G*Np) with zero channel / halo / tail / batch padding."""
    C = x_cbhw.shape[0]
    x = jnp.pad(x_cbhw, ((0, c_pad - C), (0, g.Bpad - g.B),
                         (g.pad, g.pad), (g.pad, g.pad)))
    x = x.reshape(c_pad, g.G, g.flat)
    x = jnp.pad(x, ((0, 0), (0, 0), (0, g.Np - g.flat)))
    return x.reshape(c_pad, g.G * g.Np)


def _from_flat(x_flat, g, c_true):
    """(C_pad, G*Np) -> (c_true, B, H, W) interior (all padding stripped)."""
    C = x_flat.shape[0]
    x = x_flat.reshape(C, g.G, g.Np)[:, :, :g.flat]
    x = x.reshape(C, g.Bpad, g.Hp, g.Wp)
    return x[:c_true, :g.B, g.pad:g.pad + g.H, g.pad:g.pad + g.W]


def _interior_mask(g):
    """(1, Np) f32: 1 on interior pixels, 0 on halo ring and tail padding."""
    m = jnp.zeros((g.TB, g.Hp, g.Wp), jnp.float32)
    m = m.at[:, g.pad:g.pad + g.H, g.pad:g.pad + g.W].set(1.0)
    m = m.reshape(1, g.flat)
    return jnp.pad(m, ((0, 0), (0, g.Np - g.flat)))


def _maxpool_3x3_s2(x_cbhw):
    """nn.MaxPool2d(kernel_size=3, stride=2) on trailing (H, W) dims (XLA glue, bf16)."""
    return lax.reduce_window(x_cbhw, jnp.array(-jnp.inf, x_cbhw.dtype), lax.max,
                             window_dimensions=(1, 1, 3, 3),
                             window_strides=(1, 1, 2, 2),
                             padding="VALID")


# --------------------------------------------------------------------------- Pallas kernels
def _elu(y):
    # nn.ELU(alpha=1): single transcendental per element (EUP-friendly).
    return jnp.where(y > 0.0, y, jnp.exp(jnp.minimum(y, 0.0)) - 1.0)


def _make_chain_kernel(chain_static, Wp, Np):
    """Fused chain of stride-1 convs on the flat channels-major tile.

    chain_static: per layer (ksize, cin_pad, apply_elu, save_residual, add_residual).
    Refs: x (bf16), mask (f32), [w bf16, shift f32] per layer, out (bf16),
          patch scratch (max K*K*Cin, Np) bf16.

    Invariant: `y * mask` re-zeroes halo + tail lanes every layer.  The roll-based tap
    gather relies on halo lanes being exactly zero (zero-padding conv) — do not remove
    or reorder that multiply.
    """
    n = len(chain_static)

    def kernel(*refs):
        x_ref, mask_ref = refs[0], refs[1]
        w_refs = refs[2:2 + 2 * n]
        out_ref = refs[2 + 2 * n]
        patch_ref = refs[3 + 2 * n]

        mask = mask_ref[...]                            # (1, Np) f32
        acc = x_ref[...].astype(jnp.float32)            # running activation, f32
        res = None
        for li, (ksize, cin, apply_elu, save_res, add_res) in enumerate(chain_static):
            w = w_refs[2 * li][...]                     # (Cout, K*K*Cin) bf16, BN folded
            shift = w_refs[2 * li + 1][...]             # (Cout, 1) f32 (bias + BN shift)
            if save_res:
                res = acc
            r = ksize // 2
            # Gather the K*K taps straight into the bf16 VMEM scratch: no concat, no
            # second materialization, no whole-array f32->bf16 cast.  Rolls stay f32
            # (known-good Mosaic lane-rotate path); the cast happens per-tap on the store.
            t = 0
            for dh in range(-r, r + 1):
                for dw in range(-r, r + 1):
                    off = dh * Wp + dw                  # flat-lane offset of this tap
                    if off == 0:
                        tap = acc
                    else:
                        # tap[:, p] == acc[:, p + off]; wrap only touches masked lanes
                        tap = pltpu.roll(acc, shift=(-off) % Np, axis=1)
                    patch_ref[pl.ds(t * cin, cin), :] = tap.astype(jnp.bfloat16)
                    t += 1
            kkc = ksize * ksize * cin
            y = jnp.dot(w, patch_ref[pl.ds(0, kkc), :],
                        preferred_element_type=jnp.float32)     # lane-dense (Cout, Np)
            y = y + shift
            if apply_elu:
                y = _elu(y)
            y = y * mask                                        # re-zero halo & tail
            if add_res:
                y = y + res
            acc = y
        out_ref[...] = acc.astype(out_ref.dtype)

    return kernel


def _run_conv_chain(x_flat, mask, weights, chain_static, geom, vmem_limit):
    """x_flat: (C0, G*Np) bf16; weights: [(w_mat bf16 (Cout,K*K*Cin), shift f32 (Cout,1))]."""
    C0 = x_flat.shape[0]
    c_last = weights[-1][0].shape[0]
    G, Np = geom.G, geom.Np
    max_kkc = max(k * k * cin for (k, cin, _e, _s, _a) in chain_static)

    in_specs = [
        pl.BlockSpec((C0, Np), lambda i: (0, i)),
        pl.BlockSpec((1, Np), lambda i: (0, 0)),
    ]
    inputs = [x_flat, mask]
    for (w_mat, shift) in weights:
        in_specs.append(pl.BlockSpec(w_mat.shape, lambda i: (0, 0)))
        in_specs.append(pl.BlockSpec(shift.shape, lambda i: (0, 0)))
        inputs += [w_mat, shift]

    return pl.pallas_call(
        _make_chain_kernel(chain_static, geom.Wp, Np),
        out_shape=jax.ShapeDtypeStruct((c_last, G * Np), jnp.bfloat16),
        grid=(G,),
        in_specs=in_specs,
        out_specs=pl.BlockSpec((c_last, Np), lambda i: (0, i)),
        scratch_shapes=[pltpu.VMEM((max_kkc, Np), jnp.bfloat16)],
        compiler_params=pltpu.CompilerParams(
            dimension_semantics=("parallel",),
            vmem_limit_bytes=vmem_limit),
    )(*inputs)


def _make_fc_kernel(nlayers):
    def kernel(*refs):
        x_ref = refs[0]
        w_refs = refs[1:1 + 2 * nlayers]
        out_ref = refs[1 + 2 * nlayers]
        h = x_ref[...]
        for li in range(nlayers):
            w = w_refs[2 * li][...]                 # (fin_pad, fout_pad) bf16
            b = w_refs[2 * li + 1][...]             # (1, fout_pad) f32
            y = jnp.dot(h.astype(jnp.bfloat16), w,
                        preferred_element_type=jnp.float32) + b
            h = _elu(y)
        out_ref[...] = h.astype(out_ref.dtype)
    return kernel


def _fc_head(x, layers, h_dim, vmem_limit):
    """Fused (Linear + ELU) x num_fc_layers; fin/fout zero-padded to 128 for lane density."""
    B = x.shape[0]
    fin_pad = layers[0][0].shape[0]
    x = jnp.pad(x, ((0, 0), (0, fin_pad - x.shape[1])))
    bt = min(256, _round_up(B, 8))
    Bpad = _round_up(B, bt)
    xp = jnp.pad(x, ((0, Bpad - B), (0, 0)))

    in_specs = [pl.BlockSpec((bt, fin_pad), lambda i: (i, 0))]
    inputs = [xp]
    for (w, b) in layers:
        in_specs.append(pl.BlockSpec(w.shape, lambda i: (0, 0)))
        in_specs.append(pl.BlockSpec(b.shape, lambda i: (0, 0)))
        inputs += [w, b]
    fout_pad = layers[-1][0].shape[1]

    out = pl.pallas_call(
        _make_fc_kernel(len(layers)),
        out_shape=jax.ShapeDtypeStruct((Bpad, fout_pad), jnp.float32),
        grid=(Bpad // bt,),
        in_specs=in_specs,
        out_specs=pl.BlockSpec((bt, fout_pad), lambda i: (i, 0)),
        compiler_params=pltpu.CompilerParams(
            dimension_semantics=("parallel",),
            vmem_limit_bytes=vmem_limit),
    )(*inputs)
    return out[:B, :h_dim]


# --------------------------------------------------------------------------- parameter init
def _init_conv(key, cout, cin, k):
    kw, kb = jax.random.split(key)
    bound = 1.0 / math.sqrt(cin * k * k)
    w = jax.random.uniform(kw, (cout, cin, k, k), jnp.float32, -bound, bound)
    b = jax.random.uniform(kb, (cout,), jnp.float32, -bound, bound)
    return w, b


def _init_bn(key, c):
    k1, k2, k3, k4 = jax.random.split(key, 4)
    gamma = 1.0 + 0.1 * jax.random.normal(k1, (c,), jnp.float32)
    beta = 0.1 * jax.random.normal(k2, (c,), jnp.float32)
    mean = 0.1 * jax.random.normal(k3, (c,), jnp.float32)
    var = 0.5 + jax.random.uniform(k4, (c,), jnp.float32)
    return gamma, beta, mean, var


def _init_linear(key, fin, fout, fin_pad, fout_pad):
    kw, kb = jax.random.split(key)
    bound = 1.0 / math.sqrt(fin)
    w = jax.random.uniform(kw, (fin, fout), jnp.float32, -bound, bound)
    b = jax.random.uniform(kb, (fout,), jnp.float32, -bound, bound)
    w = jnp.pad(w, ((0, fin_pad - fin), (0, fout_pad - fout)))       # zero pad rows/cols
    b = jnp.pad(b, ((0, fout_pad - fout),))                          # zero pad bias
    return w.astype(jnp.bfloat16), b.reshape(1, fout_pad).astype(jnp.float32)


def _fold_conv_bn(w, b, bn, cin_pad, cout_pad):
    """Fold BN (inference) into the conv and zero-pad channels to sublane-aligned sizes.
    Returns (w_mat bf16 (Cout_pad, K*K*Cin_pad), shift f32 (Cout_pad, 1))."""
    cout, cin, kh, kw = w.shape
    if bn is not None:
        gamma, beta, mean, var = bn
        s = gamma / jnp.sqrt(var + BN_EPS)
        shift = (b - mean) * s + beta
    else:
        s = jnp.ones((cout,), jnp.float32)
        shift = b
    w = w * s[:, None, None, None]
    w = jnp.pad(w, ((0, cout_pad - cout), (0, cin_pad - cin), (0, 0), (0, 0)))
    shift = jnp.pad(shift, ((0, cout_pad - cout),))
    # (Cout, Cin, KH, KW) -> (Cout, KH*KW*Cin): tap-major / Cin-minor (matches patch rows)
    w_mat = jnp.transpose(w, (0, 2, 3, 1)).reshape(cout_pad, kh * kw * cin_pad)
    return w_mat.astype(jnp.bfloat16), shift.reshape(cout_pad, 1).astype(jnp.float32)


# --------------------------------------------------------------------------- the module
class CharColorEncoderResnet:
    def __init__(self, screen_shape, h_dim=512, scale_cnn_channels=1, num_fc_layers=1,
                 char_edim=16, color_edim=16, obs_frame_stack=1, num_res_blocks=2,
                 num_res_layers=2, kernel_size=3, no_max_pool=False, screen_conv_blocks=3,
                 param_key=None):
        self.h, self.w = screen_shape
        self.h_dim = h_dim
        self.num_fc_layers = num_fc_layers
        self.char_edim = char_edim
        self.color_edim = color_edim
        self.no_max_pool = no_max_pool
        self.screen_conv_blocks = screen_conv_blocks

        hw = _tpu_defaults()
        self.num_tc = hw["num_tc"]
        self.target_lanes = hw["target_lanes"]
        self.vmem_limit = hw["vmem_limit"]

        key = jax.random.PRNGKey(42) if param_key is None else param_key
        keys = iter(jax.random.split(key, 512))

        conv_params = [
            [char_edim * obs_frame_stack + color_edim * obs_frame_stack,
             int(16 * scale_cnn_channels), kernel_size, num_res_blocks],
            [int(16 * scale_cnn_channels), int(32 * scale_cnn_channels), kernel_size, num_res_blocks],
            [int(32 * scale_cnn_channels), int(32 * scale_cnn_channels), kernel_size, num_res_blocks],
        ][:screen_conv_blocks]

        # Build the fused execution plan: a list of "segments", each a maximal chain of
        # stride-1 convs at a fixed spatial geometry (one pallas_call each), separated by
        # MaxPool glue.  With pooling this yields:
        #   [head0] pool [res0.., head1] pool [res1.., head2] pool [res2..]
        self.segments = []      # each: {"spatial": (H, W), "layers": [...]}
        self.pool_after = []    # bool per segment
        cur_layers = []
        cur_hw = (self.h, self.w)

        def close_segment(pool, hw_):
            self.segments.append({"spatial": hw_, "layers": list(cur_layers)})
            self.pool_after.append(pool)
            cur_layers.clear()

        def add_conv(cin, cout, fsize, bn, elu, save_res, add_res):
            cin_pad, cout_pad = _round_up(cin, CPAD), _round_up(cout, CPAD)
            w, b = _init_conv(next(keys), cout, cin, fsize)
            cur_layers.append({
                "params": _fold_conv_bn(w, b, bn, cin_pad, cout_pad),
                "ksize": fsize, "cin_pad": cin_pad, "cout": cout,
                "elu": elu, "save_res": save_res, "add_res": add_res,
            })

        for in_ch, out_ch, fsize, n_res in conv_params:
            add_conv(in_ch, out_ch, fsize, None, False, False, False)
            if not self.no_max_pool:
                close_segment(True, cur_hw)
                self.h = math.floor((self.h - 1 * (3 - 1) - 1) / 2 + 1)
                self.w = math.floor((self.w - 1 * (3 - 1) - 1) / 2 + 1)
                cur_hw = (self.h, self.w)
            for _ in range(n_res):
                for li in range(num_res_layers):
                    bn = _init_bn(next(keys), out_ch)
                    add_conv(out_ch, out_ch, fsize, bn, True,
                             li == 0, li == num_res_layers - 1)
        close_segment(False, cur_hw)

        out_channels = conv_params[-1][1]
        self.out_size = self.h * self.w * out_channels

        self.fc = []
        fin = self.out_size
        for _ in range(num_fc_layers):
            self.fc.append(_init_linear(next(keys), fin, h_dim,
                                        _round_up(fin, LANE), _round_up(h_dim, LANE)))
            fin = h_dim

        self.char_embeddings = jax.random.normal(next(keys), (256, char_edim), jnp.float32)
        self.color_embeddings = jax.random.normal(next(keys), (128, color_edim), jnp.float32)

    def __call__(self, chars, colors):
        # _embed + _stack (XLA glue: gather / reshape only — no matmul hot path)
        ce = jnp.take(self.char_embeddings, chars.astype(jnp.int32), axis=0)    # (B,F,H,W,ce)
        co = jnp.take(self.color_embeddings, colors.astype(jnp.int32), axis=0)  # (B,F,H,W,co)
        obs = jnp.concatenate([ce, co], axis=-1)                                # (B,F,H,W,E)
        B, F, H, W, E = obs.shape
        # torch: permute(0,1,4,2,3).flatten(1,2) -> (B, F*E, H, W); keep channels-major (C,B,H,W)
        x = jnp.transpose(obs, (1, 4, 0, 2, 3)).reshape(F * E, B, H, W)
        x = x.astype(jnp.bfloat16)      # inter-segment activations travel in bf16

        # conv_net: fused Pallas segments with maxpool glue in between
        for seg, pool in zip(self.segments, self.pool_after):
            sh, sw = seg["spatial"]
            pad = seg["layers"][0]["ksize"] // 2
            tb = _pick_batch_tile(B, sh + 2 * pad, sw + 2 * pad,
                                  self.target_lanes, self.num_tc)
            g = _Geom(B, sh, sw, pad, tb)
            xf = _to_flat(x, g, seg["layers"][0]["cin_pad"])
            mask = _interior_mask(g)
            weights = [l["params"] for l in seg["layers"]]
            chain_static = [(l["ksize"], l["cin_pad"], l["elu"], l["save_res"], l["add_res"])
                            for l in seg["layers"]]
            yf = _run_conv_chain(xf, mask, weights, chain_static, g, self.vmem_limit)
            x = _from_flat(yf, g, seg["layers"][-1]["cout"])          # (C, B, H, W) bf16
            if pool:
                x = _maxpool_3x3_s2(x)

        # flatten in NCHW (c, h, w) order to match x.view(-1, out_size)
        C, Bc, Hc, Wc = x.shape
        x = jnp.transpose(x, (1, 0, 2, 3)).reshape(Bc, C * Hc * Wc)

        # fc_head: fused Linear + ELU stack
        return _fc_head(x, self.fc, self.h_dim, self.vmem_limit)


# --------------------------------------------------------------------------- main
if __name__ == "__main__":
    B, F, H, W = 2, 1, 16, 16
    key = jax.random.PRNGKey(0)
    k_chars, k_colors = jax.random.split(key)
    chars = jax.random.randint(k_chars, (B, F, H, W), 0, 256, dtype=jnp.int32)
    colors = jax.random.randint(k_colors, (B, F, H, W), 0, 128, dtype=jnp.int32)

    model = CharColorEncoderResnet(
        screen_shape=(H, W),
        h_dim=64,
        num_fc_layers=2,
        char_edim=8,
        color_edim=8,
        obs_frame_stack=F,
        num_res_blocks=2,
        num_res_layers=2,
        kernel_size=3,
        screen_conv_blocks=3,
    )

    forward = jax.jit(model.__call__)
    out = jax.block_until_ready(forward(chars, colors))
    assert out.shape == (B, 64), out.shape
    assert bool(jnp.all(jnp.isfinite(out))), "non-finite output"
    print("KERNEL_OK")
</pallas_src>

<mosaic_0001>
module attributes {stable_mosaic.version = 11 : i64} {
  func.func @kernel(%arg0: i32, %arg1: memref<16x768xbf16, #tpu.memory_space<vmem>>, %arg2: memref<1x768xf32, #tpu.memory_space<vmem>>, %arg3: memref<16x144xbf16, #tpu.memory_space<vmem>>, %arg4: memref<16x1xf32, #tpu.memory_space<vmem>>, %arg5: memref<16x768xbf16, #tpu.memory_space<vmem>>, %arg6: memref<144x768xbf16, #tpu.memory_space<vmem>>) attributes {dimension_semantics = [#tpu.dimension_semantics<parallel>], iteration_bounds = array<i64: 1>, scalar_prefetch = 0 : i64, scratch_operands = 1 : i64, tpu.core_type = #tpu.core_type<tc>, window_params = [{transform_indices = @transform_0, window_bounds = array<i64: 16, 768>}, {pipeline_mode = #tpu.pipeline_mode<synchronous>, transform_indices = @transform_1, window_bounds = array<i64: 1, 768>}, {pipeline_mode = #tpu.pipeline_mode<synchronous>, transform_indices = @transform_2, window_bounds = array<i64: 16, 144>}, {pipeline_mode = #tpu.pipeline_mode<synchronous>, transform_indices = @transform_3, window_bounds = array<i64: 16, 1>}, {transform_indices = @transform_4, window_bounds = array<i64: 16, 768>}]} {
    %c0 = arith.constant 0 : index
    %c0_0 = arith.constant 0 : index
    %0 = vector.load %arg2[%c0, %c0_0] : memref<1x768xf32, #tpu.memory_space<vmem>>, vector<1x768xf32>
    %c0_1 = arith.constant 0 : index
    %c0_2 = arith.constant 0 : index
    %1 = vector.load %arg1[%c0_1, %c0_2] : memref<16x768xbf16, #tpu.memory_space<vmem>>, vector<16x768xbf16>
    %2 = arith.extf %1 : vector<16x768xbf16> to vector<16x768xf32>
    %c0_3 = arith.constant 0 : index
    %c0_4 = arith.constant 0 : index
    %3 = vector.load %arg3[%c0_3, %c0_4] : memref<16x144xbf16, #tpu.memory_space<vmem>>, vector<16x144xbf16>
    %c0_5 = arith.constant 0 : index
    %c0_6 = arith.constant 0 : index
    %4 = vector.load %arg4[%c0_5, %c0_6] : memref<16x1xf32, #tpu.memory_space<vmem>>, vector<16x1xf32>
    %c19_i32 = arith.constant 19 : i32
    %5 = tpu.dynamic_rotate %2 by %c19_i32 dim 1 : vector<16x768xf32>, i32 -> vector<16x768xf32>
    %6 = arith.truncf %5 : vector<16x768xf32> to vector<16x768xbf16>
    %c0_7 = arith.constant 0 : index
    %c0_8 = arith.constant 0 : index
    %7 = vector.load %arg6[%c0_7, %c0_8] : memref<144x768xbf16, #tpu.memory_space<vmem>>, vector<16x768xbf16>
    tpu.vector_store %arg6[%c0_7, %c0_8], %6 {strides = array<i32>} : memref<144x768xbf16, #tpu.memory_space<vmem>>, vector<16x768xbf16>,
    %c18_i32 = arith.constant 18 : i32
    %8 = tpu.dynamic_rotate %2 by %c18_i32 dim 1 : vector<16x768xf32>, i32 -> vector<16x768xf32>
    %9 = arith.truncf %8 : vector<16x768xf32> to vector<16x768xbf16>
    %c16 = arith.constant 16 : index
    %c0_9 = arith.constant 0 : index
    %10 = vector.load %arg6[%c16, %c0_9] : memref<144x768xbf16, #tpu.memory_space<vmem>>, vector<16x768xbf16>
    tpu.vector_store %arg6[%c16, %c0_9], %9 {strides = array<i32>} : memref<144x768xbf16, #tpu.memory_space<vmem>>, vector<16x768xbf16>,
    %c17_i32 = arith.constant 17 : i32
    %11 = tpu.dynamic_rotate %2 by %c17_i32 dim 1 : vector<16x768xf32>, i32 -> vector<16x768xf32>
    %12 = arith.truncf %11 : vector<16x768xf32> to vector<16x768xbf16>
    %c32 = arith.constant 32 : index
    %c0_10 = arith.constant 0 : index
    %13 = vector.load %arg6[%c32, %c0_10] : memref<144x768xbf16, #tpu.memory_space<vmem>>, vector<16x768xbf16>
    tpu.vector_store %arg6[%c32, %c0_10], %12 {strides = array<i32>} : memref<144x768xbf16, #tpu.memory_space<vmem>>, vector<16x768xbf16>,
    %c1_i32 = arith.constant 1 : i32
    %14 = tpu.dynamic_rotate %2 by %c1_i32 dim 1 : vector<16x768xf32>, i32 -> vector<16x768xf32>
    %15 = arith.truncf %14 : vector<16x768xf32> to vector<16x768xbf16>
    %c48 = arith.constant 48 : index
    %c0_11 = arith.constant 0 : index
    %16 = vector.load %arg6[%c48, %c0_11] : memref<144x768xbf16, #tpu.memory_space<vmem>>, vector<16x768xbf16>
    tpu.vector_store %arg6[%c48, %c0_11], %15 {strides = array<i32>} : memref<144x768xbf16, #tpu.memory_space<vmem>>, vector<16x768xbf16>,
    %17 = arith.truncf %2 : vector<16x768xf32> to vector<16x768xbf16>
    %c64 = arith.constant 64 : index
    %c0_12 = arith.constant 0 : index
    %18 = vector.load %arg6[%c64, %c0_12] : memref<144x768xbf16, #tpu.memory_space<vmem>>, vector<16x768xbf16>
    tpu.vector_store %arg6[%c64, %c0_12], %17 {strides = array<i32>} : memref<144x768xbf16, #tpu.memory_space<vmem>>, vector<16x768xbf16>,
    %c767_i32 = arith.constant 767 : i32
    %19 = tpu.dynamic_rotate %2 by %c767_i32 dim 1 : vector<16x768xf32>, i32 -> vector<16x768xf32>
    %20 = arith.truncf %19 : vector<16x768xf32> to vector<16x768xbf16>
    %c80 = arith.constant 80 : index
    %c0_13 = arith.constant 0 : index
    %21 = vector.load %arg6[%c80, %c0_13] : memref<144x768xbf16, #tpu.memory_space<vmem>>, vector<16x768xbf16>
    tpu.vector_store %arg6[%c80, %c0_13], %20 {strides = array<i32>} : memref<144x768xbf16, #tpu.memory_space<vmem>>, vector<16x768xbf16>,
    %c751_i32 = arith.constant 751 : i32
    %22 = tpu.dynamic_rotate %2 by %c751_i32 dim 1 : vector<16x768xf32>, i32 -> vector<16x768xf32>
    %23 = arith.truncf %22 : vector<16x768xf32> to vector<16x768xbf16>
    %c96 = arith.constant 96 : index
    %c0_14 = arith.constant 0 : index
    %24 = vector.load %arg6[%c96, %c0_14] : memref<144x768xbf16, #tpu.memory_space<vmem>>, vector<16x768xbf16>
    tpu.vector_store %arg6[%c96, %c0_14], %23 {strides = array<i32>} : memref<144x768xbf16, #tpu.memory_space<vmem>>, vector<16x768xbf16>,
    %c750_i32 = arith.constant 750 : i32
    %25 = tpu.dynamic_rotate %2 by %c750_i32 dim 1 : vector<16x768xf32>, i32 -> vector<16x768xf32>
    %26 = arith.truncf %25 : vector<16x768xf32> to vector<16x768xbf16>
    %c112 = arith.constant 112 : index
    %c0_15 = arith.constant 0 : index
    %27 = vector.load %arg6[%c112, %c0_15] : memref<144x768xbf16, #tpu.memory_space<vmem>>, vector<16x768xbf16>
    tpu.vector_store %arg6[%c112, %c0_15], %26 {strides = array<i32>} : memref<144x768xbf16, #tpu.memory_space<vmem>>, vector<16x768xbf16>,
    %c749_i32 = arith.constant 749 : i32
    %28 = tpu.dynamic_rotate %2 by %c749_i32 dim 1 : vector<16x768xf32>, i32 -> vector<16x768xf32>
    %29 = arith.truncf %28 : vector<16x768xf32> to vector<16x768xbf16>
    %c128 = arith.constant 128 : index
    %c0_16 = arith.constant 0 : index
    %30 = vector.load %arg6[%c128, %c0_16] : memref<144x768xbf16, #tpu.memory_space<vmem>>, vector<16x768xbf16>
    tpu.vector_store %arg6[%c128, %c0_16], %29 {strides = array<i32>} : memref<144x768xbf16, #tpu.memory_space<vmem>>, vector<16x768xbf16>,
    %c0_17 = arith.constant 0 : index
    %c0_18 = arith.constant 0 : index
    %31 = vector.load %arg6[%c0_17, %c0_18] : memref<144x768xbf16, #tpu.memory_space<vmem>>, vector<144x768xbf16>
    %cst = arith.constant dense<0.000000e+00> : vector<16x768xf32>
    %32 = tpu.matmul %3, %31, %cst {dimension_numbers = #tpu.dot_dimension_numbers<[1], [0], [0], [1], [0, 0, 1, 1], [], []>} : vector<16x144xbf16>, vector<144x768xbf16>, vector<16x768xf32> -> vector<16x768xf32>
    %33 = vector.broadcast %4 : vector<16x1xf32> to vector<16x768xf32>
    %34 = arith.addf %32, %33 : vector<16x768xf32>
    %35 = vector.broadcast %0 : vector<1x768xf32> to vector<16x768xf32>
    %36 = arith.mulf %34, %35 : vector<16x768xf32>
    %37 = arith.truncf %36 : vector<16x768xf32> to vector<16x768xbf16>
    %c0_19 = arith.constant 0 : index
    %c0_20 = arith.constant 0 : index
    %38 = vector.load %arg5[%c0_19, %c0_20] : memref<16x768xbf16, #tpu.memory_space<vmem>>, vector<16x768xbf16>
    tpu.vector_store %arg5[%c0_19, %c0_20], %37 {strides = array<i32>} : memref<16x768xbf16, #tpu.memory_space<vmem>>, vector<16x768xbf16>,
    return
  }
  func.func @transform_0(%arg0: i32) -> (i32, i32) {
    %c0_i32 = arith.constant 0 : i32
    %c0_i32_0 = arith.constant 0 : i32
    return %c0_i32, %arg0 : i32, i32
  }
  func.func @transform_1(%arg0: i32) -> (i32, i32) {
    %c0_i32 = arith.constant 0 : i32
    %c0_i32_0 = arith.constant 0 : i32
    %c0_i32_1 = arith.constant 0 : i32
    return %c0_i32, %c0_i32_0 : i32, i32
  }
  func.func @transform_2(%arg0: i32) -> (i32, i32) {
    %c0_i32 = arith.constant 0 : i32
    %c0_i32_0 = arith.constant 0 : i32
    %c0_i32_1 = arith.constant 0 : i32
    return %c0_i32, %c0_i32_0 : i32, i32
  }
  func.func @transform_3(%arg0: i32) -> (i32, i32) {
    %c0_i32 = arith.constant 0 : i32
    %c0_i32_0 = arith.constant 0 : i32
    %c0_i32_1 = arith.constant 0 : i32
    return %c0_i32, %c0_i32_0 : i32, i32
  }
  func.func @transform_4(%arg0: i32) -> (i32, i32) {
    %c0_i32 = arith.constant 0 : i32
    %c0_i32_0 = arith.constant 0 : i32
    return %c0_i32, %arg0 : i32, i32
  }
}

module attributes {stable_mosaic.version = 11 : i64} {
  func.func @kernel(%arg0: i32, %arg1: memref<16x256xbf16, #tpu.memory_space<vmem>>, %arg2: memref<1x256xf32, #tpu.memory_space<vmem>>, %arg3: memref<16x144xbf16, #tpu.memory_space<vmem>>, %arg4: memref<16x1xf32, #tpu.memory_space<vmem>>, %arg5: memref<16x144xbf16, #tpu.memory_space<vmem>>, %arg6: memref<16x1xf32, #tpu.memory_space<vmem>>, %arg7: memref<16x144xbf16, #tpu.memory_space<vmem>>, %arg8: memref<16x1xf32, #tpu.memory_space<vmem>>, %arg9: memref<16x144xbf16, #tpu.memory_space<vmem>>, %arg10: memref<16x1xf32, #tpu.memory_space<vmem>>, %arg11: memref<32x144xbf16, #tpu.memory_space<vmem>>, %arg12: memref<32x1xf32, #tpu.memory_space<vmem>>, %arg13: memref<32x256xbf16, #tpu.memory_space<vmem>>, %arg14: memref<144x256xbf16, #tpu.memory_space<vmem>>) attributes {dimension_semantics = [#tpu.dimension_semantics<parallel>], iteration_bounds = array<i64: 1>, scalar_prefetch = 0 : i64, scratch_operands = 1 : i64, tpu.core_type = #tpu.core_type<tc>, window_params = [{transform_indices = @transform_0, window_bounds = array<i64: 16, 256>}, {pipeline_mode = #tpu.pipeline_mode<synchronous>, transform_indices = @transform_1, window_bounds = array<i64: 1, 256>}, {pipeline_mode = #tpu.pipeline_mode<synchronous>, transform_indices = @transform_2, window_bounds = array<i64: 16, 144>}, {pipeline_mode = #tpu.pipeline_mode<synchronous>, transform_indices = @transform_3, window_bounds = array<i64: 16, 1>}, {pipeline_mode = #tpu.pipeline_mode<synchronous>, transform_indices = @transform_4, window_bounds = array<i64: 16, 144>}, {pipeline_mode = #tpu.pipeline_mode<synchronous>, transform_indices = @transform_5, window_bounds = array<i64: 16, 1>}, {pipeline_mode = #tpu.pipeline_mode<synchronous>, transform_indices = @transform_6, window_bounds = array<i64: 16, 144>}, {pipeline_mode = #tpu.pipeline_mode<synchronous>, transform_indices = @transform_7, window_bounds = array<i64: 16, 1>}, {pipeline_mode = #tpu.pipeline_mode<synchronous>, transform_indices = @transform_8, window_bounds = array<i64: 16, 144>}, {pipeline_mode = #tpu.pipeline_mode<synchronous>, transform_indices = @transform_9, window_bounds = array<i64: 16, 1>}, {pipeline_mode = #tpu.pipeline_mode<synchronous>, transform_indices = @transform_10, window_bounds = array<i64: 32, 144>}, {pipeline_mode = #tpu.pipeline_mode<synchronous>, transform_indices = @transform_11, window_bounds = array<i64: 32, 1>}, {transform_indices = @transform_12, window_bounds = array<i64: 32, 256>}]} {
    %c0 = arith.constant 0 : index
    %c0_0 = arith.constant 0 : index
    %0 = vector.load %arg2[%c0, %c0_0] : memref<1x256xf32, #tpu.memory_space<vmem>>, vector<1x256xf32>
    %c0_1 = arith.constant 0 : index
    %c0_2 = arith.constant 0 : index
    %1 = vector.load %arg1[%c0_1, %c0_2] : memref<16x256xbf16, #tpu.memory_space<vmem>>, vector<16x256xbf16>
    %2 = arith.extf %1 : vector<16x256xbf16> to vector<16x256xf32>
    %c0_3 = arith.constant 0 : index
    %c0_4 = arith.constant 0 : index
    %3 = vector.load %arg3[%c0_3, %c0_4] : memref<16x144xbf16, #tpu.memory_space<vmem>>, vector<16x144xbf16>
    %c0_5 = arith.constant 0 : index
    %c0_6 = arith.constant 0 : index
    %4 = vector.load %arg4[%c0_5, %c0_6] : memref<16x1xf32, #tpu.memory_space<vmem>>, vector<16x1xf32>
    %c10_i32 = arith.constant 10 : i32
    %5 = tpu.dynamic_rotate %2 by %c10_i32 dim 1 : vector<16x256xf32>, i32 -> vector<16x256xf32>
    %6 = arith.truncf %5 : vector<16x256xf32> to vector<16x256xbf16>
    %c0_7 = arith.constant 0 : index
    %c0_8 = arith.constant 0 : index
    %7 = vector.load %arg14[%c0_7, %c0_8] : memref<144x256xbf16, #tpu.memory_space<vmem>>, vector<16x256xbf16>
    tpu.vector_store %arg14[%c0_7, %c0_8], %6 {strides = array<i32>} : memref<144x256xbf16, #tpu.memory_space<vmem>>, vector<16x256xbf16>,
    %c9_i32 = arith.constant 9 : i32
    %8 = tpu.dynamic_rotate %2 by %c9_i32 dim 1 : vector<16x256xf32>, i32 -> vector<16x256xf32>
    %9 = arith.truncf %8 : vector<16x256xf32> to vector<16x256xbf16>
    %c16 = arith.constant 16 : index
    %c0_9 = arith.constant 0 : index
    %10 = vector.load %arg14[%c16, %c0_9] : memref<144x256xbf16, #tpu.memory_space<vmem>>, vector<16x256xbf16>
    tpu.vector_store %arg14[%c16, %c0_9], %9 {strides = array<i32>} : memref<144x256xbf16, #tpu.memory_space<vmem>>, vector<16x256xbf16>,
    %c8_i32 = arith.constant 8 : i32
    %11 = tpu.dynamic_rotate %2 by %c8_i32 dim 1 : vector<16x256xf32>, i32 -> vector<16x256xf32>
    %12 = arith.truncf %11 : vector<16x256xf32> to vector<16x256xbf16>
    %c32 = arith.constant 32 : index
    %c0_10 = arith.constant 0 : index
    %13 = vector.load %arg14[%c32, %c0_10] : memref<144x256xbf16, #tpu.memory_space<vmem>>, vector<16x256xbf16>
    tpu.vector_store %arg14[%c32, %c0_10], %12 {strides = array<i32>} : memref<144x256xbf16, #tpu.memory_space<vmem>>, vector<16x256xbf16>,
    %c1_i32 = arith.constant 1 : i32
    %14 = tpu.dynamic_rotate %2 by %c1_i32 dim 1 : vector<16x256xf32>, i32 -> vector<16x256xf32>
    %15 = arith.truncf %14 : vector<16x256xf32> to vector<16x256xbf16>
    %c48 = arith.constant 48 : index
    %c0_11 = arith.constant 0 : index
    %16 = vector.load %arg14[%c48, %c0_11] : memref<144x256xbf16, #tpu.memory_space<vmem>>, vector<16x256xbf16>
    tpu.vector_store %arg14[%c48, %c0_11], %15 {strides = array<i32>} : memref<144x256xbf16, #tpu.memory_space<vmem>>, vector<16x256xbf16>,
    %17 = arith.truncf %2 : vector<16x256xf32> to vector<16x256xbf16>
    %c64 = arith.constant 64 : index
    %c0_12 = arith.constant 0 : index
    %18 = vector.load %arg14[%c64, %c0_12] : memref<144x256xbf16, #tpu.memory_space<vmem>>, vector<16x256xbf16>
    tpu.vector_store %arg14[%c64, %c0_12], %17 {strides = array<i32>} : memref<144x256xbf16, #tpu.memory_space<vmem>>, vector<16x256xbf16>,
    %c255_i32 = arith.constant 255 : i32
    %19 = tpu.dynamic_rotate %2 by %c255_i32 dim 1 : vector<16x256xf32>, i32 -> vector<16x256xf32>
    %20 = arith.truncf %19 : vector<16x256xf32> to vector<16x256xbf16>
    %c80 = arith.constant 80 : index
    %c0_13 = arith.constant 0 : index
    %21 = vector.load %arg14[%c80, %c0_13] : memref<144x256xbf16, #tpu.memory_space<vmem>>, vector<16x256xbf16>
    tpu.vector_store %arg14[%c80, %c0_13], %20 {strides = array<i32>} : memref<144x256xbf16, #tpu.memory_space<vmem>>, vector<16x256xbf16>,
    %c248_i32 = arith.constant 248 : i32
    %22 = tpu.dynamic_rotate %2 by %c248_i32 dim 1 : vector<16x256xf32>, i32 -> vector<16x256xf32>
    %23 = arith.truncf %22 : vector<16x256xf32> to vector<16x256xbf16>
    %c96 = arith.constant 96 : index
    %c0_14 = arith.constant 0 : index
    %24 = vector.load %arg14[%c96, %c0_14] : memref<144x256xbf16, #tpu.memory_space<vmem>>, vector<16x256xbf16>
    tpu.vector_store %arg14[%c96, %c0_14], %23 {strides = array<i32>} : memref<144x256xbf16, #tpu.memory_space<vmem>>, vector<16x256xbf16>,
    %c247_i32 = arith.constant 247 : i32
    %25 = tpu.dynamic_rotate %2 by %c247_i32 dim 1 : vector<16x256xf32>, i32 -> vector<16x256xf32>
    %26 = arith.truncf %25 : vector<16x256xf32> to vector<16x256xbf16>
    %c112 = arith.constant 112 : index
    %c0_15 = arith.constant 0 : index
    %27 = vector.load %arg14[%c112, %c0_15] : memref<144x256xbf16, #tpu.memory_space<vmem>>, vector<16x256xbf16>
    tpu.vector_store %arg14[%c112, %c0_15], %26 {strides = array<i32>} : memref<144x256xbf16, #tpu.memory_space<vmem>>, vector<16x256xbf16>,
    %c246_i32 = arith.constant 246 : i32
    %28 = tpu.dynamic_rotate %2 by %c246_i32 dim 1 : vector<16x256xf32>, i32 -> vector<16x256xf32>
    %29 = arith.truncf %28 : vector<16x256xf32> to vector<16x256xbf16>
    %c128 = arith.constant 128 : index
    %c0_16 = arith.constant 0 : index
    %30 = vector.load %arg14[%c128, %c0_16] : memref<144x256xbf16, #tpu.memory_space<vmem>>, vector<16x256xbf16>
    tpu.vector_store %arg14[%c128, %c0_16], %29 {strides = array<i32>} : memref<144x256xbf16, #tpu.memory_space<vmem>>, vector<16x256xbf16>,
    %c0_17 = arith.constant 0 : index
    %c0_18 = arith.constant 0 : index
    %31 = vector.load %arg14[%c0_17, %c0_18] : memref<144x256xbf16, #tpu.memory_space<vmem>>, vector<144x256xbf16>
    %cst = arith.constant dense<0.000000e+00> : vector<16x256xf32>
    %32 = tpu.matmul %3, %31, %cst {dimension_numbers = #tpu.dot_dimension_numbers<[1], [0], [0], [1], [0, 0, 1, 1], [], []>} : vector<16x144xbf16>, vector<144x256xbf16>, vector<16x256xf32> -> vector<16x256xf32>
    %33 = vector.broadcast %4 : vector<16x1xf32> to vector<16x256xf32>
    %34 = arith.addf %32, %33 : vector<16x256xf32>
    %cst_19 = arith.constant 0.000000e+00 : f32
    %35 = vector.broadcast %cst_19 : f32 to vector<16x256xf32>
    %36 = arith.cmpf ogt, %34, %35 : vector<16x256xf32>
    %cst_20 = arith.constant 0.000000e+00 : f32
    %37 = vector.broadcast %cst_20 : f32 to vector<16x256xf32>
    %38 = arith.minimumf %34, %37 : vector<16x256xf32>
    %39 = math.exp %38 : vector<16x256xf32>
    %cst_21 = arith.constant 1.000000e+00 : f32
    %40 = vector.broadcast %cst_21 : f32 to vector<16x256xf32>
    %41 = arith.subf %39, %40 : vector<16x256xf32>
    %42 = arith.select %36, %34, %41 : vector<16x256xi1>, vector<16x256xf32>
    %43 = vector.broadcast %0 : vector<1x256xf32> to vector<16x256xf32>
    %44 = arith.mulf %42, %43 : vector<16x256xf32>
    %c0_22 = arith.constant 0 : index
    %c0_23 = arith.constant 0 : index
    %45 = vector.load %arg5[%c0_22, %c0_23] : memref<16x144xbf16, #tpu.memory_space<vmem>>, vector<16x144xbf16>
    %c0_24 = arith.constant 0 : index
    %c0_25 = arith.constant 0 : index
    %46 = vector.load %arg6[%c0_24, %c0_25] : memref<16x1xf32, #tpu.memory_space<vmem>>, vector<16x1xf32>
    %c10_i32_26 = arith.constant 10 : i32
    %47 = tpu.dynamic_rotate %44 by %c10_i32_26 dim 1 : vector<16x256xf32>, i32 -> vector<16x256xf32>
    %48 = arith.truncf %47 : vector<16x256xf32> to vector<16x256xbf16>
    %c0_27 = arith.constant 0 : index
    %c0_28 = arith.constant 0 : index
    %49 = vector.load %arg14[%c0_27, %c0_28] : memref<144x256xbf16, #tpu.memory_space<vmem>>, vector<16x256xbf16>
    tpu.vector_store %arg14[%c0_27, %c0_28], %48 {strides = array<i32>} : memref<144x256xbf16, #tpu.memory_space<vmem>>, vector<16x256xbf16>,
    %c9_i32_29 = arith.constant 9 : i32
    %50 = tpu.dynamic_rotate %44 by %c9_i32_29 dim 1 : vector<16x256xf32>, i32 -> vector<16x256xf32>
    %51 = arith.truncf %50 : vector<16x256xf32> to vector<16x256xbf16>
    %c16_30 = arith.constant 16 : index
    %c0_31 = arith.constant 0 : index
    %52 = vector.load %arg14[%c16_30, %c0_31] : memref<144x256xbf16, #tpu.memory_space<vmem>>, vector<16x256xbf16>
    tpu.vector_store %arg14[%c16_30, %c0_31], %51 {strides = array<i32>} : memref<144x256xbf16, #tpu.memory_space<vmem>>, vector<16x256xbf16>,
    %c8_i32_32 = arith.constant 8 : i32
    %53 = tpu.dynamic_rotate %44 by %c8_i32_32 dim 1 : vector<16x256xf32>, i32 -> vector<16x256xf32>
    %54 = arith.truncf %53 : vector<16x256xf32> to vector<16x256xbf16>
    %c32_33 = arith.constant 32 : index
    %c0_34 = arith.constant 0 : index
    %55 = vector.load %arg14[%c32_33, %c0_34] : memref<144x256xbf16, #tpu.memory_space<vmem>>, vector<16x256xbf16>
    tpu.vector_store %arg14[%c32_33, %c0_34], %54 {strides = array<i32>} : memref<144x256xbf16, #tpu.memory_space<vmem>>, vector<16x256xbf16>,
    %c1_i32_35 = arith.constant 1 : i32
    %56 = tpu.dynamic_rotate %44 by %c1_i32_35 dim 1 : vector<16x256xf32>, i32 -> vector<16x256xf32>
    %57 = arith.truncf %56 : vector<16x256xf32> to vector<16x256xbf16>
    %c48_36 = arith.constant 48 : index
    %c0_37 = arith.constant 0 : index
    %58 = vector.load %arg14[%c48_36, %c0_37] : memref<144x256xbf16, #tpu.memory_space<vmem>>, vector<16x256xbf16>
    tpu.vector_store %arg14[%c48_36, %c0_37], %57 {strides = array<i32>} : memref<144x256xbf16, #tpu.memory_space<vmem>>, vector<16x256xbf16>,
    %59 = arith.truncf %44 : vector<16x256xf32> to vector<16x256xbf16>
    %c64_38 = arith.constant 64 : index
    %c0_39 = arith.constant 0 : index
    %60 = vector.load %arg14[%c64_38, %c0_39] : memref<144x256xbf16, #tpu.memory_space<vmem>>, vector<16x256xbf16>
    tpu.vector_store %arg14[%c64_38, %c0_39], %59 {strides = array<i32>} : memref<144x256xbf16, #tpu.memory_space<vmem>>, vector<16x256xbf16>,
    %c255_i32_40 = arith.constant 255 : i32
    %61 = tpu.dynamic_rotate %44 by %c255_i32_40 dim 1 : vector<16x256xf32>, i32 -> vector<16x256xf32>
    %62 = arith.truncf %61 : vector<16x256xf32> to vector<16x256xbf16>
    %c80_41 = arith.constant 80 : index
    %c0_42 = arith.constant 0 : index
    %63 = vector.load %arg14[%c80_41, %c0_42] : memref<144x256xbf16, #tpu.memory_space<vmem>>, vector<16x256xbf16>
    tpu.vector_store %arg14[%c80_41, %c0_42], %62 {strides = array<i32>} : memref<144x256xbf16, #tpu.memory_space<vmem>>, vector<16x256xbf16>,
    %c248_i32_43 = arith.constant 248 : i32
    %64 = tpu.dynamic_rotate %44 by %c248_i32_43 dim 1 : vector<16x256xf32>, i32 -> vector<16x256xf32>
    %65 = arith.truncf %64 : vector<16x256xf32> to vector<16x256xbf16>
    %c96_44 = arith.constant 96 : index
    %c0_45 = arith.constant 0 : index
    %66 = vector.load %arg14[%c96_44, %c0_45] : memref<144x256xbf16, #tpu.memory_space<vmem>>, vector<16x256xbf16>
    tpu.vector_store %arg14[%c96_44, %c0_45], %65 {strides = array<i32>} : memref<144x256xbf16, #tpu.memory_space<vmem>>, vector<16x256xbf16>,
    %c247_i32_46 = arith.constant 247 : i32
    %67 = tpu.dynamic_rotate %44 by %c247_i32_46 dim 1 : vector<16x256xf32>, i32 -> vector<16x256xf32>
    %68 = arith.truncf %67 : vector<16x256xf32> to vector<16x256xbf16>
    %c112_47 = arith.constant 112 : index
    %c0_48 = arith.constant 0 : index
    %69 = vector.load %arg14[%c112_47, %c0_48] : memref<144x256xbf16, #tpu.memory_space<vmem>>, vector<16x256xbf16>
    tpu.vector_store %arg14[%c112_47, %c0_48], %68 {strides = array<i32>} : memref<144x256xbf16, #tpu.memory_space<vmem>>, vector<16x256xbf16>,
    %c246_i32_49 = arith.constant 246 : i32
    %70 = tpu.dynamic_rotate %44 by %c246_i32_49 dim 1 : vector<16x256xf32>, i32 -> vector<16x256xf32>
    %71 = arith.truncf %70 : vector<16x256xf32> to vector<16x256xbf16>
    %c128_50 = arith.constant 128 : index
    %c0_51 = arith.constant 0 : index
    %72 = vector.load %arg14[%c128_50, %c0_51] : memref<144x256xbf16, #tpu.memory_space<vmem>>, vector<16x256xbf16>
    tpu.vector_store %arg14[%c128_50, %c0_51], %71 {strides = array<i32>} : memref<144x256xbf16, #tpu.memory_space<vmem>>, vector<16x256xbf16>,
    %c0_52 = arith.constant 0 : index
    %c0_53 = arith.constant 0 : index
    %73 = vector.load %arg14[%c0_52, %c0_53] : memref<144x256xbf16, #tpu.memory_space<vmem>>, vector<144x256xbf16>
    %cst_54 = arith.constant dense<0.000000e+00> : vector<16x256xf32>
    %74 = tpu.matmul %45, %73, %cst_54 {dimension_numbers = #tpu.dot_dimension_numbers<[1], [0], [0], [1], [0, 0, 1, 1], [], []>} : vector<16x144xbf16>, vector<144x256xbf16>, vector<16x256xf32> -> vector<16x256xf32>
    %75 = vector.broadcast %46 : vector<16x1xf32> to vector<16x256xf32>
    %76 = arith.addf %74, %75 : vector<16x256xf32>
    %cst_55 = arith.constant 0.000000e+00 : f32
    %77 = vector.broadcast %cst_55 : f32 to vector<16x256xf32>
    %78 = arith.cmpf ogt, %76, %77 : vector<16x256xf32>
    %cst_56 = arith.constant 0.000000e+00 : f32
    %79 = vector.broadcast %cst_56 : f32 to vector<16x256xf32>
    %80 = arith.minimumf %76, %79 : vector<16x256xf32>
    %81 = math.exp %80 : vector<16x256xf32>
    %cst_57 = arith.constant 1.000000e+00 : f32
    %82 = vector.broadcast %cst_57 : f32 to vector<16x256xf32>
    %83 = arith.subf %81, %82 : vector<16x256xf32>
    %84 = arith.select %78, %76, %83 : vector<16x256xi1>, vector<16x256xf32>
    %85 = vector.broadcast %0 : vector<1x256xf32> to vector<16x256xf32>
    %86 = arith.mulf %84, %85 : vector<16x256xf32>
    %87 = arith.addf %86, %2 : vector<16x256xf32>
    %c0_58 = arith.constant 0 : index
    %c0_59 = arith.constant 0 : index
    %88 = vector.load %arg7[%c0_58, %c0_59] : memref<16x144xbf16, #tpu.memory_space<vmem>>, vector<16x144xbf16>
    %c0_60 = arith.constant 0 : index
    %c0_61 = arith.constant 0 : index
    %89 = vector.load %arg8[%c0_60, %c0_61] : memref<16x1xf32, #tpu.memory_space<vmem>>, vector<16x1xf32>
    %c10_i32_62 = arith.constant 10 : i32
    %90 = tpu.dynamic_rotate %87 by %c10_i32_62 dim 1 : vector<16x256xf32>, i32 -> vector<16x256xf32>
    %91 = arith.truncf %90 : vector<16x256xf32> to vector<16x256xbf16>
    %c0_63 = arith.constant 0 : index
    %c0_64 = arith.constant 0 : index
    %92 = vector.load %arg14[%c0_63, %c0_64] : memref<144x256xbf16, #tpu.memory_space<vmem>>, vector<16x256xbf16>
    tpu.vector_store %arg14[%c0_63, %c0_64], %91 {strides = array<i32>} : memref<144x256xbf16, #tpu.memory_space<vmem>>, vector<16x256xbf16>,
    %c9_i32_65 = arith.constant 9 : i32
    %93 = tpu.dynamic_rotate %87 by %c9_i32_65 dim 1 : vector<16x256xf32>, i32 -> vector<16x256xf32>
    %94 = arith.truncf %93 : vector<16x256xf32> to vector<16x256xbf16>
    %c16_66 = arith.constant 16 : index
    %c0_67 = arith.constant 0 : index
    %95 = vector.load %arg14[%c16_66, %c0_67] : memref<144x256xbf16, #tpu.memory_space<vmem>>, vector<16x256xbf16>
    tpu.vector_store %arg14[%c16_66, %c0_67], %94 {strides = array<i32>} : memref<144x256xbf16, #tpu.memory_space<vmem>>, vector<16x256xbf16>,
    %c8_i32_68 = arith.constant 8 : i32
    %96 = tpu.dynamic_rotate %87 by %c8_i32_68 dim 1 : vector<16x256xf32>, i32 -> vector<16x256xf32>
    %97 = arith.truncf %96 : vector<16x256xf32> to vector<16x256xbf16>
    %c32_69 = arith.constant 32 : index
    %c0_70 = arith.constant 0 : index
    %98 = vector.load %arg14[%c32_69, %c0_70] : memref<144x256xbf16, #tpu.memory_space<vmem>>, vector<16x256xbf16>
    tpu.vector_store %arg14[%c32_69, %c0_70], %97 {strides = array<i32>} : memref<144x256xbf16, #tpu.memory_space<vmem>>, vector<16x256xbf16>,
    %c1_i32_71 = arith.constant 1 : i32
    %99 = tpu.dynamic_rotate %87 by %c1_i32_71 dim 1 : vector<16x256xf32>, i32 -> vector<16x256xf32>
    %100 = arith.truncf %99 : vector<16x256xf32> to vector<16x256xbf16>
    %c48_72 = arith.constant 48 : index
    %c0_73 = arith.constant 0 : index
    %101 = vector.load %arg14[%c48_72, %c0_73] : memref<144x256xbf16, #tpu.memory_space<vmem>>, vector<16x256xbf16>
    tpu.vector_store %arg14[%c48_72, %c0_73], %100 {strides = array<i32>} : memref<144x256xbf16, #tpu.memory_space<vmem>>, vector<16x256xbf16>,
    %102 = arith.truncf %87 : vector<16x256xf32> to vector<16x256xbf16>
    %c64_74 = arith.constant 64 : index
    %c0_75 = arith.constant 0 : index
    %103 = vector.load %arg14[%c64_74, %c0_75] : memref<144x256xbf16, #tpu.memory_space<vmem>>, vector<16x256xbf16>
    tpu.vector_store %arg14[%c64_74, %c0_75], %102 {strides = array<i32>} : memref<144x256xbf16, #tpu.memory_space<vmem>>, vector<16x256xbf16>,
    %c255_i32_76 = arith.constant 255 : i32
    %104 = tpu.dynamic_rotate %87 by %c255_i32_76 dim 1 : vector<16x256xf32>, i32 -> vector<16x256xf32>
    %105 = arith.truncf %104 : vector<16x256xf32> to vector<16x256xbf16>
    %c80_77 = arith.constant 80 : index
    %c0_78 = arith.constant 0 : index
    %106 = vector.load %arg14[%c80_77, %c0_78] : memref<144x256xbf16, #tpu.memory_space<vmem>>, vector<16x256xbf16>
    tpu.vector_store %arg14[%c80_77, %c0_78], %105 {strides = array<i32>} : memref<144x256xbf16, #tpu.memory_space<vmem>>, vector<16x256xbf16>,
    %c248_i32_79 = arith.constant 248 : i32
    %107 = tpu.dynamic_rotate %87 by %c248_i32_79 dim 1 : vector<16x256xf32>, i32 -> vector<16x256xf32>
    %108 = arith.truncf %107 : vector<16x256xf32> to vector<16x256xbf16>
    %c96_80 = arith.constant 96 : index
    %c0_81 = arith.constant 0 : index
    %109 = vector.load %arg14[%c96_80, %c0_81] : memref<144x256xbf16, #tpu.memory_space<vmem>>, vector<16x256xbf16>
    tpu.vector_store %arg14[%c96_80, %c0_81], %108 {strides = array<i32>} : memref<144x256xbf16, #tpu.memory_space<vmem>>, vector<16x256xbf16>,
    %c247_i32_82 = arith.constant 247 : i32
    %110 = tpu.dynamic_rotate %87 by %c247_i32_82 dim 1 : vector<16x256xf32>, i32 -> vector<16x256xf32>
    %111 = arith.truncf %110 : vector<16x256xf32> to vector<16x256xbf16>
    %c112_83 = arith.constant 112 : index
    %c0_84 = arith.constant 0 : index
    %112 = vector.load %arg14[%c112_83, %c0_84] : memref<144x256xbf16, #tpu.memory_space<vmem>>, vector<16x256xbf16>
    tpu.vector_store %arg14[%c112_83, %c0_84], %111 {strides = array<i32>} : memref<144x256xbf16, #tpu.memory_space<vmem>>, vector<16x256xbf16>,
    %c246_i32_85 = arith.constant 246 : i32
    %113 = tpu.dynamic_rotate %87 by %c246_i32_85 dim 1 : vector<16x256xf32>, i32 -> vector<16x256xf32>
    %114 = arith.truncf %113 : vector<16x256xf32> to vector<16x256xbf16>
    %c128_86 = arith.constant 128 : index
    %c0_87 = arith.constant 0 : index
    %115 = vector.load %arg14[%c128_86, %c0_87] : memref<144x256xbf16, #tpu.memory_space<vmem>>, vector<16x256xbf16>
    tpu.vector_store %arg14[%c128_86, %c0_87], %114 {strides = array<i32>} : memref<144x256xbf16, #tpu.memory_space<vmem>>, vector<16x256xbf16>,
    %c0_88 = arith.constant 0 : index
    %c0_89 = arith.constant 0 : index
    %116 = vector.load %arg14[%c0_88, %c0_89] : memref<144x256xbf16, #tpu.memory_space<vmem>>, vector<144x256xbf16>
    %cst_90 = arith.constant dense<0.000000e+00> : vector<16x256xf32>
    %117 = tpu.matmul %88, %116, %cst_90 {dimension_numbers = #tpu.dot_dimension_numbers<[1], [0], [0], [1], [0, 0, 1, 1], [], []>} : vector<16x144xbf16>, vector<144x256xbf16>, vector<16x256xf32> -> vector<16x256xf32>
    %118 = vector.broadcast %89 : vector<16x1xf32> to vector<16x256xf32>
    %119 = arith.addf %117, %118 : vector<16x256xf32>
    %cst_91 = arith.constant 0.000000e+00 : f32
    %120 = vector.broadcast %cst_91 : f32 to vector<16x256xf32>
    %121 = arith.cmpf ogt, %119, %120 : vector<16x256xf32>
    %cst_92 = arith.constant 0.000000e+00 : f32
    %122 = vector.broadcast %cst_92 : f32 to vector<16x256xf32>
    %123 = arith.minimumf %119, %122 : vector<16x256xf32>
    %124 = math.exp %123 : vector<16x256xf32>
    %cst_93 = arith.constant 1.000000e+00 : f32
    %125 = vector.broadcast %cst_93 : f32 to vector<16x256xf32>
    %126 = arith.subf %124, %125 : vector<16x256xf32>
    %127 = arith.select %121, %119, %126 : vector<16x256xi1>, vector<16x256xf32>
    %128 = vector.broadcast %0 : vector<1x256xf32> to vector<16x256xf32>
    %129 = arith.mulf %127, %128 : vector<16x256xf32>
    %c0_94 = arith.constant 0 : index
    %c0_95 = arith.constant 0 : index
    %130 = vector.load %arg9[%c0_94, %c0_95] : memref<16x144xbf16, #tpu.memory_space<vmem>>, vector<16x144xbf16>
    %c0_96 = arith.constant 0 : index
    %c0_97 = arith.constant 0 : index
    %131 = vector.load %arg10[%c0_96, %c0_97] : memref<16x1xf32, #tpu.memory_space<vmem>>, vector<16x1xf32>
    %c10_i32_98 = arith.constant 10 : i32
    %132 = tpu.dynamic_rotate %129 by %c10_i32_98 dim 1 : vector<16x256xf32>, i32 -> vector<16x256xf32>
    %133 = arith.truncf %132 : vector<16x256xf32> to vector<16x256xbf16>
    %c0_99 = arith.constant 0 : index
    %c0_100 = arith.constant 0 : index
    %134 = vector.load %arg14[%c0_99, %c0_100] : memref<144x256xbf16, #tpu.memory_space<vmem>>, vector<16x256xbf16>
    tpu.vector_store %arg14[%c0_99, %c0_100], %133 {strides = array<i32>} : memref<144x256xbf16, #tpu.memory_space<vmem>>, vector<16x256xbf16>,
    %c9_i32_101 = arith.constant 9 : i32
    %135 = tpu.dynamic_rotate %129 by %c9_i32_101 dim 1 : vector<16x256xf32>, i32 -> vector<16x256xf32>
    %136 = arith.truncf %135 : vector<16x256xf32> to vector<16x256xbf16>
    %c16_102 = arith.constant 16 : index
    %c0_103 = arith.constant 0 : index
    %137 = vector.load %arg14[%c16_102, %c0_103] : memref<144x256xbf16, #tpu.memory_space<vmem>>, vector<16x256xbf16>
    tpu.vector_store %arg14[%c16_102, %c0_103], %136 {strides = array<i32>} : memref<144x256xbf16, #tpu.memory_space<vmem>>, vector<16x256xbf16>,
    %c8_i32_104 = arith.constant 8 : i32
    %138 = tpu.dynamic_rotate %129 by %c8_i32_104 dim 1 : vector<16x256xf32>, i32 -> vector<16x256xf32>
    %139 = arith.truncf %138 : vector<16x256xf32> to vector<16x256xbf16>
    %c32_105 = arith.constant 32 : index
    %c0_106 = arith.constant 0 : index
    %140 = vector.load %arg14[%c32_105, %c0_106] : memref<144x256xbf16, #tpu.memory_space<vmem>>, vector<16x256xbf16>
    tpu.vector_store %arg14[%c32_105, %c0_106], %139 {strides = array<i32>} : memref<144x256xbf16, #tpu.memory_space<vmem>>, vector<16x256xbf16>,
    %c1_i32_107 = arith.constant 1 : i32
    %141 = tpu.dynamic_rotate %129 by %c1_i32_107 dim 1 : vector<16x256xf32>, i32 -> vector<16x256xf32>
    %142 = arith.truncf %141 : vector<16x256xf32> to vector<16x256xbf16>
    %c48_108 = arith.constant 48 : index
    %c0_109 = arith.constant 0 : index
    %143 = vector.load %arg14[%c48_108, %c0_109] : memref<144x256xbf16, #tpu.memory_space<vmem>>, vector<16x256xbf16>
    tpu.vector_store %arg14[%c48_108, %c0_109], %142 {strides = array<i32>} : memref<144x256xbf16, #tpu.memory_space<vmem>>, vector<16x256xbf16>,
    %144 = arith.truncf %129 : vector<16x256xf32> to vector<16x256xbf16>
    %c64_110 = arith.constant 64 : index
    %c0_111 = arith.constant 0 : index
    %145 = vector.load %arg14[%c64_110, %c0_111] : memref<144x256xbf16, #tpu.memory_space<vmem>>, vector<16x256xbf16>
    tpu.vector_store %arg14[%c64_110, %c0_111], %144 {strides = array<i32>} : memref<144x256xbf16, #tpu.memory_space<vmem>>, vector<16x256xbf16>,
    %c255_i32_112 = arith.constant 255 : i32
    %146 = tpu.dynamic_rotate %129 by %c255_i32_112 dim 1 : vector<16x256xf32>, i32 -> vector<16x256xf32>
    %147 = arith.truncf %146 : vector<16x256xf32> to vector<16x256xbf16>
    %c80_113 = arith.constant 80 : index
    %c0_114 = arith.constant 0 : index
    %148 = vector.load %arg14[%c80_113, %c0_114] : memref<144x256xbf16, #tpu.memory_space<vmem>>, vector<16x256xbf16>
    tpu.vector_store %arg14[%c80_113, %c0_114], %147 {strides = array<i32>} : memref<144x256xbf16, #tpu.memory_space<vmem>>, vector<16x256xbf16>,
    %c248_i32_115 = arith.constant 248 : i32
    %149 = tpu.dynamic_rotate %129 by %c248_i32_115 dim 1 : vector<16x256xf32>, i32 -> vector<16x256xf32>
    %150 = arith.truncf %149 : vector<16x256xf32> to vector<16x256xbf16>
    %c96_116 = arith.constant 96 : index
    %c0_117 = arith.constant 0 : index
    %151 = vector.load %arg14[%c96_116, %c0_117] : memref<144x256xbf16, #tpu.memory_space<vmem>>, vector<16x256xbf16>
    tpu.vector_store %arg14[%c96_116, %c0_117], %150 {strides = array<i32>} : memref<144x256xbf16, #tpu.memory_space<vmem>>, vector<16x256xbf16>,
    %c247_i32_118 = arith.constant 247 : i32
    %152 = tpu.dynamic_rotate %129 by %c247_i32_118 dim 1 : vector<16x256xf32>, i32 -> vector<16x256xf32>
    %153 = arith.truncf %152 : vector<16x256xf32> to vector<16x256xbf16>
    %c112_119 = arith.constant 112 : index
    %c0_120 = arith.constant 0 : index
    %154 = vector.load %arg14[%c112_119, %c0_120] : memref<144x256xbf16, #tpu.memory_space<vmem>>, vector<16x256xbf16>
    tpu.vector_store %arg14[%c112_119, %c0_120], %153 {strides = array<i32>} : memref<144x256xbf16, #tpu.memory_space<vmem>>, vector<16x256xbf16>,
    %c246_i32_121 = arith.constant 246 : i32
    %155 = tpu.dynamic_rotate %129 by %c246_i32_121 dim 1 : vector<16x256xf32>, i32 -> vector<16x256xf32>
    %156 = arith.truncf %155 : vector<16x256xf32> to vector<16x256xbf16>
    %c128_122 = arith.constant 128 : index
    %c0_123 = arith.constant 0 : index
    %157 = vector.load %arg14[%c128_122, %c0_123] : memref<144x256xbf16, #tpu.memory_space<vmem>>, vector<16x256xbf16>
    tpu.vector_store %arg14[%c128_122, %c0_123], %156 {strides = array<i32>} : memref<144x256xbf16, #tpu.memory_space<vmem>>, vector<16x256xbf16>,
    %c0_124 = arith.constant 0 : index
    %c0_125 = arith.constant 0 : index
    %158 = vector.load %arg14[%c0_124, %c0_125] : memref<144x256xbf16, #tpu.memory_space<vmem>>, vector<144x256xbf16>
    %cst_126 = arith.constant dense<0.000000e+00> : vector<16x256xf32>
    %159 = tpu.matmul %130, %158, %cst_126 {dimension_numbers = #tpu.dot_dimension_numbers<[1], [0], [0], [1], [0, 0, 1, 1], [], []>} : vector<16x144xbf16>, vector<144x256xbf16>, vector<16x256xf32> -> vector<16x256xf32>
    %160 = vector.broadcast %131 : vector<16x1xf32> to vector<16x256xf32>
    %161 = arith.addf %159, %160 : vector<16x256xf32>
    %cst_127 = arith.constant 0.000000e+00 : f32
    %162 = vector.broadcast %cst_127 : f32 to vector<16x256xf32>
    %163 = arith.cmpf ogt, %161, %162 : vector<16x256xf32>
    %cst_128 = arith.constant 0.000000e+00 : f32
    %164 = vector.broadcast %cst_128 : f32 to vector<16x256xf32>
    %165 = arith.minimumf %161, %164 : vector<16x256xf32>
    %166 = math.exp %165 : vector<16x256xf32>
    %cst_129 = arith.constant 1.000000e+00 : f32
    %167 = vector.broadcast %cst_129 : f32 to vector<16x256xf32>
    %168 = arith.subf %166, %167 : vector<16x256xf32>
    %169 = arith.select %163, %161, %168 : vector<16x256xi1>, vector<16x256xf32>
    %170 = vector.broadcast %0 : vector<1x256xf32> to vector<16x256xf32>
    %171 = arith.mulf %169, %170 : vector<16x256xf32>
    %172 = arith.addf %171, %87 : vector<16x256xf32>
    %c0_130 = arith.constant 0 : index
    %c0_131 = arith.constant 0 : index
    %173 = vector.load %arg11[%c0_130, %c0_131] : memref<32x144xbf16, #tpu.memory_space<vmem>>, vector<32x144xbf16>
    %c0_132 = arith.constant 0 : index
    %c0_133 = arith.constant 0 : index
    %174 = vector.load %arg12[%c0_132, %c0_133] : memref<32x1xf32, #tpu.memory_space<vmem>>, vector<32x1xf32>
    %c10_i32_134 = arith.constant 10 : i32
    %175 = tpu.dynamic_rotate %172 by %c10_i32_134 dim 1 : vector<16x256xf32>, i32 -> vector<16x256xf32>
    %176 = arith.truncf %175 : vector<16x256xf32> to vector<16x256xbf16>
    %c0_135 = arith.constant 0 : index
    %c0_136 = arith.constant 0 : index
    %177 = vector.load %arg14[%c0_135, %c0_136] : memref<144x256xbf16, #tpu.memory_space<vmem>>, vector<16x256xbf16>
    tpu.vector_store %arg14[%c0_135, %c0_136], %176 {strides = array<i32>} : memref<144x256xbf16, #tpu.memory_space<vmem>>, vector<16x256xbf16>,
    %c9_i32_137 = arith.constant 9 : i32
    %178 = tpu.dynamic_rotate %172 by %c9_i32_137 dim 1 : vector<16x256xf32>, i32 -> vector<16x256xf32>
    %179 = arith.truncf %178 : vector<16x256xf32> to vector<16x256xbf16>
    %c16_138 = arith.constant 16 : index
    %c0_139 = arith.constant 0 : index
    %180 = vector.load %arg14[%c16_138, %c0_139] : memref<144x256xbf16, #tpu.memory_space<vmem>>, vector<16x256xbf16>
    tpu.vector_store %arg14[%c16_138, %c0_139], %179 {strides = array<i32>} : memref<144x256xbf16, #tpu.memory_space<vmem>>, vector<16x256xbf16>,
    %c8_i32_140 = arith.constant 8 : i32
    %181 = tpu.dynamic_rotate %172 by %c8_i32_140 dim 1 : vector<16x256xf32>, i32 -> vector<16x256xf32>
    %182 = arith.truncf %181 : vector<16x256xf32> to vector<16x256xbf16>
    %c32_141 = arith.constant 32 : index
    %c0_142 = arith.constant 0 : index
    %183 = vector.load %arg14[%c32_141, %c0_142] : memref<144x256xbf16, #tpu.memory_space<vmem>>, vector<16x256xbf16>
    tpu.vector_store %arg14[%c32_141, %c0_142], %182 {strides = array<i32>} : memref<144x256xbf16, #tpu.memory_space<vmem>>, vector<16x256xbf16>,
    %c1_i32_143 = arith.constant 1 : i32
    %184 = tpu.dynamic_rotate %172 by %c1_i32_143 dim 1 : vector<16x256xf32>, i32 -> vector<16x256xf32>
    %185 = arith.truncf %184 : vector<16x256xf32> to vector<16x256xbf16>
    %c48_144 = arith.constant 48 : index
    %c0_145 = arith.constant 0 : index
    %186 = vector.load %arg14[%c48_144, %c0_145] : memref<144x256xbf16, #tpu.memory_space<vmem>>, vector<16x256xbf16>
    tpu.vector_store %arg14[%c48_144, %c0_145], %185 {strides = array<i32>} : memref<144x256xbf16, #tpu.memory_space<vmem>>, vector<16x256xbf16>,
    %187 = arith.truncf %172 : vector<16x256xf32> to vector<16x256xbf16>
    %c64_146 = arith.constant 64 : index
    %c0_147 = arith.constant 0 : index
    %188 = vector.load %arg14[%c64_146, %c0_147] : memref<144x256xbf16, #tpu.memory_space<vmem>>, vector<16x256xbf16>
    tpu.vector_store %arg14[%c64_146, %c0_147], %187 {strides = array<i32>} : memref<144x256xbf16, #tpu.memory_space<vmem>>, vector<16x256xbf16>,
    %c255_i32_148 = arith.constant 255 : i32
    %189 = tpu.dynamic_rotate %172 by %c255_i32_148 dim 1 : vector<16x256xf32>, i32 -> vector<16x256xf32>
    %190 = arith.truncf %189 : vector<16x256xf32> to vector<16x256xbf16>
    %c80_149 = arith.constant 80 : index
    %c0_150 = arith.constant 0 : index
    %191 = vector.load %arg14[%c80_149, %c0_150] : memref<144x256xbf16, #tpu.memory_space<vmem>>, vector<16x256xbf16>
    tpu.vector_store %arg14[%c80_149, %c0_150], %190 {strides = array<i32>} : memref<144x256xbf16, #tpu.memory_space<vmem>>, vector<16x256xbf16>,
    %c248_i32_151 = arith.constant 248 : i32
    %192 = tpu.dynamic_rotate %172 by %c248_i32_151 dim 1 : vector<16x256xf32>, i32 -> vector<16x256xf32>
    %193 = arith.truncf %192 : vector<16x256xf32> to vector<16x256xbf16>
    %c96_152 = arith.constant 96 : index
    %c0_153 = arith.constant 0 : index
    %194 = vector.load %arg14[%c96_152, %c0_153] : memref<144x256xbf16, #tpu.memory_space<vmem>>, vector<16x256xbf16>
    tpu.vector_store %arg14[%c96_152, %c0_153], %193 {strides = array<i32>} : memref<144x256xbf16, #tpu.memory_space<vmem>>, vector<16x256xbf16>,
    %c247_i32_154 = arith.constant 247 : i32
    %195 = tpu.dynamic_rotate %172 by %c247_i32_154 dim 1 : vector<16x256xf32>, i32 -> vector<16x256xf32>
    %196 = arith.truncf %195 : vector<16x256xf32> to vector<16x256xbf16>
    %c112_155 = arith.constant 112 : index
    %c0_156 = arith.constant 0 : index
    %197 = vector.load %arg14[%c112_155, %c0_156] : memref<144x256xbf16, #tpu.memory_space<vmem>>, vector<16x256xbf16>
    tpu.vector_store %arg14[%c112_155, %c0_156], %196 {strides = array<i32>} : memref<144x256xbf16, #tpu.memory_space<vmem>>, vector<16x256xbf16>,
    %c246_i32_157 = arith.constant 246 : i32
    %198 = tpu.dynamic_rotate %172 by %c246_i32_157 dim 1 : vector<16x256xf32>, i32 -> vector<16x256xf32>
    %199 = arith.truncf %198 : vector<16x256xf32> to vector<16x256xbf16>
    %c128_158 = arith.constant 128 : index
    %c0_159 = arith.constant 0 : index
    %200 = vector.load %arg14[%c128_158, %c0_159] : memref<144x256xbf16, #tpu.memory_space<vmem>>, vector<16x256xbf16>
    tpu.vector_store %arg14[%c128_158, %c0_159], %199 {strides = array<i32>} : memref<144x256xbf16, #tpu.memory_space<vmem>>, vector<16x256xbf16>,
    %c0_160 = arith.constant 0 : index
    %c0_161 = arith.constant 0 : index
    %201 = vector.load %arg14[%c0_160, %c0_161] : memref<144x256xbf16, #tpu.memory_space<vmem>>, vector<144x256xbf16>
    %cst_162 = arith.constant dense<0.000000e+00> : vector<32x256xf32>
    %202 = tpu.matmul %173, %201, %cst_162 {dimension_numbers = #tpu.dot_dimension_numbers<[1], [0], [0], [1], [0, 0, 1, 1], [], []>} : vector<32x144xbf16>, vector<144x256xbf16>, vector<32x256xf32> -> vector<32x256xf32>
    %203 = vector.broadcast %174 : vector<32x1xf32> to vector<32x256xf32>
    %204 = arith.addf %202, %203 : vector<32x256xf32>
    %205 = vector.broadcast %0 : vector<1x256xf32> to vector<32x256xf32>
    %206 = arith.mulf %204, %205 : vector<32x256xf32>
    %207 = arith.truncf %206 : vector<32x256xf32> to vector<32x256xbf16>
    %c0_163 = arith.constant 0 : index
    %c0_164 = arith.constant 0 : index
    %208 = vector.load %arg13[%c0_163, %c0_164] : memref<32x256xbf16, #tpu.memory_space<vmem>>, vector<32x256xbf16>
    tpu.vector_store %arg13[%c0_163, %c0_164], %207 {strides = array<i32>} : memref<32x256xbf16, #tpu.memory_space<vmem>>, vector<32x256xbf16>,
    return
  }
  func.func @transform_0(%arg0: i32) -> (i32, i32) {
    %c0_i32 = arith.constant 0 : i32
    %c0_i32_0 = arith.constant 0 : i32
    return %c0_i32, %arg0 : i32, i32
  }
  func.func @transform_1(%arg0: i32) -> (i32, i32) {
    %c0_i32 = arith.constant 0 : i32
    %c0_i32_0 = arith.constant 0 : i32
    %c0_i32_1 = arith.constant 0 : i32
    return %c0_i32, %c0_i32_0 : i32, i32
  }
  func.func @transform_2(%arg0: i32) -> (i32, i32) {
    %c0_i32 = arith.constant 0 : i32
    %c0_i32_0 = arith.constant 0 : i32
    %c0_i32_1 = arith.constant 0 : i32
    return %c0_i32, %c0_i32_0 : i32, i32
  }
  func.func @transform_3(%arg0: i32) -> (i32, i32) {
    %c0_i32 = arith.constant 0 : i32
    %c0_i32_0 = arith.constant 0 : i32
    %c0_i32_1 = arith.constant 0 : i32
    return %c0_i32, %c0_i32_0 : i32, i32
  }
  func.func @transform_4(%arg0: i32) -> (i32, i32) {
    %c0_i32 = arith.constant 0 : i32
    %c0_i32_0 = arith.constant 0 : i32
    %c0_i32_1 = arith.constant 0 : i32
    return %c0_i32, %c0_i32_0 : i32, i32
  }
  func.func @transform_5(%arg0: i32) -> (i32, i32) {
    %c0_i32 = arith.constant 0 : i32
    %c0_i32_0 = arith.constant 0 : i32
    %c0_i32_1 = arith.constant 0 : i32
    return %c0_i32, %c0_i32_0 : i32, i32
  }
  func.func @transform_6(%arg0: i32) -> (i32, i32) {
    %c0_i32 = arith.constant 0 : i32
    %c0_i32_0 = arith.constant 0 : i32
    %c0_i32_1 = arith.constant 0 : i32
    return %c0_i32, %c0_i32_0 : i32, i32
  }
  func.func @transform_7(%arg0: i32) -> (i32, i32) {
    %c0_i32 = arith.constant 0 : i32
    %c0_i32_0 = arith.constant 0 : i32
    %c0_i32_1 = arith.constant 0 : i32
    return %c0_i32, %c0_i32_0 : i32, i32
  }
  func.func @transform_8(%arg0: i32) -> (i32, i32) {
    %c0_i32 = arith.constant 0 : i32
    %c0_i32_0 = arith.constant 0 : i32
    %c0_i32_1 = arith.constant 0 : i32
    return %c0_i32, %c0_i32_0 : i32, i32
  }
  func.func @transform_9(%arg0: i32) -> (i32, i32) {
    %c0_i32 = arith.constant 0 : i32
    %c0_i32_0 = arith.constant 0 : i32
    %c0_i32_1 = arith.constant 0 : i32
    return %c0_i32, %c0_i32_0 : i32, i32
  }
  func.func @transform_10(%arg0: i32) -> (i32, i32) {
    %c0_i32 = arith.constant 0 : i32
    %c0_i32_0 = arith.constant 0 : i32
    %c0_i32_1 = arith.constant 0 : i32
    return %c0_i32, %c0_i32_0 : i32, i32
  }
  func.func @transform_11(%arg0: i32) -> (i32, i32) {
    %c0_i32 = arith.constant 0 : i32
    %c0_i32_0 = arith.constant 0 : i32
    %c0_i32_1 = arith.constant 0 : i32
    return %c0_i32, %c0_i32_0 : i32, i32
  }
  func.func @transform_12(%arg0: i32) -> (i32, i32) {
    %c0_i32 = arith.constant 0 : i32
    %c0_i32_0 = arith.constant 0 : i32
    return %c0_i32, %arg0 : i32, i32
  }
}

module attributes {stable_mosaic.version = 11 : i64} {
  func.func @kernel(%arg0: i32, %arg1: memref<32x128xbf16, #tpu.memory_space<vmem>>, %arg2: memref<1x128xf32, #tpu.memory_space<vmem>>, %arg3: memref<32x288xbf16, #tpu.memory_space<vmem>>, %arg4: memref<32x1xf32, #tpu.memory_space<vmem>>, %arg5: memref<32x288xbf16, #tpu.memory_space<vmem>>, %arg6: memref<32x1xf32, #tpu.memory_space<vmem>>, %arg7: memref<32x288xbf16, #tpu.memory_space<vmem>>, %arg8: memref<32x1xf32, #tpu.memory_space<vmem>>, %arg9: memref<32x288xbf16, #tpu.memory_space<vmem>>, %arg10: memref<32x1xf32, #tpu.memory_space<vmem>>, %arg11: memref<32x288xbf16, #tpu.memory_space<vmem>>, %arg12: memref<32x1xf32, #tpu.memory_space<vmem>>, %arg13: memref<32x128xbf16, #tpu.memory_space<vmem>>, %arg14: memref<288x128xbf16, #tpu.memory_space<vmem>>) attributes {dimension_semantics = [#tpu.dimension_semantics<parallel>], iteration_bounds = array<i64: 1>, scalar_prefetch = 0 : i64, scratch_operands = 1 : i64, tpu.core_type = #tpu.core_type<tc>, window_params = [{transform_indices = @transform_0, window_bounds = array<i64: 32, 128>}, {pipeline_mode = #tpu.pipeline_mode<synchronous>, transform_indices = @transform_1, window_bounds = array<i64: 1, 128>}, {pipeline_mode = #tpu.pipeline_mode<synchronous>, transform_indices = @transform_2, window_bounds = array<i64: 32, 288>}, {pipeline_mode = #tpu.pipeline_mode<synchronous>, transform_indices = @transform_3, window_bounds = array<i64: 32, 1>}, {pipeline_mode = #tpu.pipeline_mode<synchronous>, transform_indices = @transform_4, window_bounds = array<i64: 32, 288>}, {pipeline_mode = #tpu.pipeline_mode<synchronous>, transform_indices = @transform_5, window_bounds = array<i64: 32, 1>}, {pipeline_mode = #tpu.pipeline_mode<synchronous>, transform_indices = @transform_6, window_bounds = array<i64: 32, 288>}, {pipeline_mode = #tpu.pipeline_mode<synchronous>, transform_indices = @transform_7, window_bounds = array<i64: 32, 1>}, {pipeline_mode = #tpu.pipeline_mode<synchronous>, transform_indices = @transform_8, window_bounds = array<i64: 32, 288>}, {pipeline_mode = #tpu.pipeline_mode<synchronous>, transform_indices = @transform_9, window_bounds = array<i64: 32, 1>}, {pipeline_mode = #tpu.pipeline_mode<synchronous>, transform_indices = @transform_10, window_bounds = array<i64: 32, 288>}, {pipeline_mode = #tpu.pipeline_mode<synchronous>, transform_indices = @transform_11, window_bounds = array<i64: 32, 1>}, {transform_indices = @transform_12, window_bounds = array<i64: 32, 128>}]} {
    %c0 = arith.constant 0 : index
    %c0_0 = arith.constant 0 : index
    %0 = vector.load %arg2[%c0, %c0_0] : memref<1x128xf32, #tpu.memory_space<vmem>>, vector<1x128xf32>
    %c0_1 = arith.constant 0 : index
    %c0_2 = arith.constant 0 : index
    %1 = vector.load %arg1[%c0_1, %c0_2] : memref<32x128xbf16, #tpu.memory_space<vmem>>, vector<32x128xbf16>
    %2 = arith.extf %1 : vector<32x128xbf16> to vector<32x128xf32>
    %c0_3 = arith.constant 0 : index
    %c0_4 = arith.constant 0 : index
    %3 = vector.load %arg3[%c0_3, %c0_4] : memref<32x288xbf16, #tpu.memory_space<vmem>>, vector<32x288xbf16>
    %c0_5 = arith.constant 0 : index
    %c0_6 = arith.constant 0 : index
    %4 = vector.load %arg4[%c0_5, %c0_6] : memref<32x1xf32, #tpu.memory_space<vmem>>, vector<32x1xf32>
    %c6_i32 = arith.constant 6 : i32
    %5 = tpu.dynamic_rotate %2 by %c6_i32 dim 1 : vector<32x128xf32>, i32 -> vector<32x128xf32>
    %6 = arith.truncf %5 : vector<32x128xf32> to vector<32x128xbf16>
    %c0_7 = arith.constant 0 : index
    %c0_8 = arith.constant 0 : index
    %7 = vector.load %arg14[%c0_7, %c0_8] : memref<288x128xbf16, #tpu.memory_space<vmem>>, vector<32x128xbf16>
    tpu.vector_store %arg14[%c0_7, %c0_8], %6 {strides = array<i32>} : memref<288x128xbf16, #tpu.memory_space<vmem>>, vector<32x128xbf16>,
    %c5_i32 = arith.constant 5 : i32
    %8 = tpu.dynamic_rotate %2 by %c5_i32 dim 1 : vector<32x128xf32>, i32 -> vector<32x128xf32>
    %9 = arith.truncf %8 : vector<32x128xf32> to vector<32x128xbf16>
    %c32 = arith.constant 32 : index
    %c0_9 = arith.constant 0 : index
    %10 = vector.load %arg14[%c32, %c0_9] : memref<288x128xbf16, #tpu.memory_space<vmem>>, vector<32x128xbf16>
    tpu.vector_store %arg14[%c32, %c0_9], %9 {strides = array<i32>} : memref<288x128xbf16, #tpu.memory_space<vmem>>, vector<32x128xbf16>,
    %c4_i32 = arith.constant 4 : i32
    %11 = tpu.dynamic_rotate %2 by %c4_i32 dim 1 : vector<32x128xf32>, i32 -> vector<32x128xf32>
    %12 = arith.truncf %11 : vector<32x128xf32> to vector<32x128xbf16>
    %c64 = arith.constant 64 : index
    %c0_10 = arith.constant 0 : index
    %13 = vector.load %arg14[%c64, %c0_10] : memref<288x128xbf16, #tpu.memory_space<vmem>>, vector<32x128xbf16>
    tpu.vector_store %arg14[%c64, %c0_10], %12 {strides = array<i32>} : memref<288x128xbf16, #tpu.memory_space<vmem>>, vector<32x128xbf16>,
    %c1_i32 = arith.constant 1 : i32
    %14 = tpu.dynamic_rotate %2 by %c1_i32 dim 1 : vector<32x128xf32>, i32 -> vector<32x128xf32>
    %15 = arith.truncf %14 : vector<32x128xf32> to vector<32x128xbf16>
    %c96 = arith.constant 96 : index
    %c0_11 = arith.constant 0 : index
    %16 = vector.load %arg14[%c96, %c0_11] : memref<288x128xbf16, #tpu.memory_space<vmem>>, vector<32x128xbf16>
    tpu.vector_store %arg14[%c96, %c0_11], %15 {strides = array<i32>} : memref<288x128xbf16, #tpu.memory_space<vmem>>, vector<32x128xbf16>,
    %17 = arith.truncf %2 : vector<32x128xf32> to vector<32x128xbf16>
    %c128 = arith.constant 128 : index
    %c0_12 = arith.constant 0 : index
    %18 = vector.load %arg14[%c128, %c0_12] : memref<288x128xbf16, #tpu.memory_space<vmem>>, vector<32x128xbf16>
    tpu.vector_store %arg14[%c128, %c0_12], %17 {strides = array<i32>} : memref<288x128xbf16, #tpu.memory_space<vmem>>, vector<32x128xbf16>,
    %c127_i32 = arith.constant 127 : i32
    %19 = tpu.dynamic_rotate %2 by %c127_i32 dim 1 : vector<32x128xf32>, i32 -> vector<32x128xf32>
    %20 = arith.truncf %19 : vector<32x128xf32> to vector<32x128xbf16>
    %c160 = arith.constant 160 : index
    %c0_13 = arith.constant 0 : index
    %21 = vector.load %arg14[%c160, %c0_13] : memref<288x128xbf16, #tpu.memory_space<vmem>>, vector<32x128xbf16>
    tpu.vector_store %arg14[%c160, %c0_13], %20 {strides = array<i32>} : memref<288x128xbf16, #tpu.memory_space<vmem>>, vector<32x128xbf16>,
    %c124_i32 = arith.constant 124 : i32
    %22 = tpu.dynamic_rotate %2 by %c124_i32 dim 1 : vector<32x128xf32>, i32 -> vector<32x128xf32>
    %23 = arith.truncf %22 : vector<32x128xf32> to vector<32x128xbf16>
    %c192 = arith.constant 192 : index
    %c0_14 = arith.constant 0 : index
    %24 = vector.load %arg14[%c192, %c0_14] : memref<288x128xbf16, #tpu.memory_space<vmem>>, vector<32x128xbf16>
    tpu.vector_store %arg14[%c192, %c0_14], %23 {strides = array<i32>} : memref<288x128xbf16, #tpu.memory_space<vmem>>, vector<32x128xbf16>,
    %c123_i32 = arith.constant 123 : i32
    %25 = tpu.dynamic_rotate %2 by %c123_i32 dim 1 : vector<32x128xf32>, i32 -> vector<32x128xf32>
    %26 = arith.truncf %25 : vector<32x128xf32> to vector<32x128xbf16>
    %c224 = arith.constant 224 : index
    %c0_15 = arith.constant 0 : index
    %27 = vector.load %arg14[%c224, %c0_15] : memref<288x128xbf16, #tpu.memory_space<vmem>>, vector<32x128xbf16>
    tpu.vector_store %arg14[%c224, %c0_15], %26 {strides = array<i32>} : memref<288x128xbf16, #tpu.memory_space<vmem>>, vector<32x128xbf16>,
    %c122_i32 = arith.constant 122 : i32
    %28 = tpu.dynamic_rotate %2 by %c122_i32 dim 1 : vector<32x128xf32>, i32 -> vector<32x128xf32>
    %29 = arith.truncf %28 : vector<32x128xf32> to vector<32x128xbf16>
    %c256 = arith.constant 256 : index
    %c0_16 = arith.constant 0 : index
    %30 = vector.load %arg14[%c256, %c0_16] : memref<288x128xbf16, #tpu.memory_space<vmem>>, vector<32x128xbf16>
    tpu.vector_store %arg14[%c256, %c0_16], %29 {strides = array<i32>} : memref<288x128xbf16, #tpu.memory_space<vmem>>, vector<32x128xbf16>,
    %c0_17 = arith.constant 0 : index
    %c0_18 = arith.constant 0 : index
    %31 = vector.load %arg14[%c0_17, %c0_18] : memref<288x128xbf16, #tpu.memory_space<vmem>>, vector<288x128xbf16>
    %cst = arith.constant dense<0.000000e+00> : vector<32x128xf32>
    %32 = tpu.matmul %3, %31, %cst {dimension_numbers = #tpu.dot_dimension_numbers<[1], [0], [0], [1], [0, 0, 1, 1], [], []>} : vector<32x288xbf16>, vector<288x128xbf16>, vector<32x128xf32> -> vector<32x128xf32>
    %33 = vector.broadcast %4 : vector<32x1xf32> to vector<32x128xf32>
    %34 = arith.addf %32, %33 : vector<32x128xf32>
    %cst_19 = arith.constant 0.000000e+00 : f32
    %35 = vector.broadcast %cst_19 : f32 to vector<32x128xf32>
    %36 = arith.cmpf ogt, %34, %35 : vector<32x128xf32>
    %cst_20 = arith.constant 0.000000e+00 : f32
    %37 = vector.broadcast %cst_20 : f32 to vector<32x128xf32>
    %38 = arith.minimumf %34, %37 : vector<32x128xf32>
    %39 = math.exp %38 : vector<32x128xf32>
    %cst_21 = arith.constant 1.000000e+00 : f32
    %40 = vector.broadcast %cst_21 : f32 to vector<32x128xf32>
    %41 = arith.subf %39, %40 : vector<32x128xf32>
    %42 = arith.select %36, %34, %41 : vector<32x128xi1>, vector<32x128xf32>
    %43 = vector.broadcast %0 : vector<1x128xf32> to vector<32x128xf32>
    %44 = arith.mulf %42, %43 : vector<32x128xf32>
    %c0_22 = arith.constant 0 : index
    %c0_23 = arith.constant 0 : index
    %45 = vector.load %arg5[%c0_22, %c0_23] : memref<32x288xbf16, #tpu.memory_space<vmem>>, vector<32x288xbf16>
    %c0_24 = arith.constant 0 : index
    %c0_25 = arith.constant 0 : index
    %46 = vector.load %arg6[%c0_24, %c0_25] : memref<32x1xf32, #tpu.memory_space<vmem>>, vector<32x1xf32>
    %c6_i32_26 = arith.constant 6 : i32
    %47 = tpu.dynamic_rotate %44 by %c6_i32_26 dim 1 : vector<32x128xf32>, i32 -> vector<32x128xf32>
    %48 = arith.truncf %47 : vector<32x128xf32> to vector<32x128xbf16>
    %c0_27 = arith.constant 0 : index
    %c0_28 = arith.constant 0 : index
    %49 = vector.load %arg14[%c0_27, %c0_28] : memref<288x128xbf16, #tpu.memory_space<vmem>>, vector<32x128xbf16>
    tpu.vector_store %arg14[%c0_27, %c0_28], %48 {strides = array<i32>} : memref<288x128xbf16, #tpu.memory_space<vmem>>, vector<32x128xbf16>,
    %c5_i32_29 = arith.constant 5 : i32
    %50 = tpu.dynamic_rotate %44 by %c5_i32_29 dim 1 : vector<32x128xf32>, i32 -> vector<32x128xf32>
    %51 = arith.truncf %50 : vector<32x128xf32> to vector<32x128xbf16>
    %c32_30 = arith.constant 32 : index
    %c0_31 = arith.constant 0 : index
    %52 = vector.load %arg14[%c32_30, %c0_31] : memref<288x128xbf16, #tpu.memory_space<vmem>>, vector<32x128xbf16>
    tpu.vector_store %arg14[%c32_30, %c0_31], %51 {strides = array<i32>} : memref<288x128xbf16, #tpu.memory_space<vmem>>, vector<32x128xbf16>,
    %c4_i32_32 = arith.constant 4 : i32
    %53 = tpu.dynamic_rotate %44 by %c4_i32_32 dim 1 : vector<32x128xf32>, i32 -> vector<32x128xf32>
    %54 = arith.truncf %53 : vector<32x128xf32> to vector<32x128xbf16>
    %c64_33 = arith.constant 64 : index
    %c0_34 = arith.constant 0 : index
    %55 = vector.load %arg14[%c64_33, %c0_34] : memref<288x128xbf16, #tpu.memory_space<vmem>>, vector<32x128xbf16>
    tpu.vector_store %arg14[%c64_33, %c0_34], %54 {strides = array<i32>} : memref<288x128xbf16, #tpu.memory_space<vmem>>, vector<32x128xbf16>,
    %c1_i32_35 = arith.constant 1 : i32
    %56 = tpu.dynamic_rotate %44 by %c1_i32_35 dim 1 : vector<32x128xf32>, i32 -> vector<32x128xf32>
    %57 = arith.truncf %56 : vector<32x128xf32> to vector<32x128xbf16>
    %c96_36 = arith.constant 96 : index
    %c0_37 = arith.constant 0 : index
    %58 = vector.load %arg14[%c96_36, %c0_37] : memref<288x128xbf16, #tpu.memory_space<vmem>>, vector<32x128xbf16>
    tpu.vector_store %arg14[%c96_36, %c0_37], %57 {strides = array<i32>} : memref<288x128xbf16, #tpu.memory_space<vmem>>, vector<32x128xbf16>,
    %59 = arith.truncf %44 : vector<32x128xf32> to vector<32x128xbf16>
    %c128_38 = arith.constant 128 : index
    %c0_39 = arith.constant 0 : index
    %60 = vector.load %arg14[%c128_38, %c0_39] : memref<288x128xbf16, #tpu.memory_space<vmem>>, vector<32x128xbf16>
    tpu.vector_store %arg14[%c128_38, %c0_39], %59 {strides = array<i32>} : memref<288x128xbf16, #tpu.memory_space<vmem>>, vector<32x128xbf16>,
    %c127_i32_40 = arith.constant 127 : i32
    %61 = tpu.dynamic_rotate %44 by %c127_i32_40 dim 1 : vector<32x128xf32>, i32 -> vector<32x128xf32>
    %62 = arith.truncf %61 : vector<32x128xf32> to vector<32x128xbf16>
    %c160_41 = arith.constant 160 : index
    %c0_42 = arith.constant 0 : index
    %63 = vector.load %arg14[%c160_41, %c0_42] : memref<288x128xbf16, #tpu.memory_space<vmem>>, vector<32x128xbf16>
    tpu.vector_store %arg14[%c160_41, %c0_42], %62 {strides = array<i32>} : memref<288x128xbf16, #tpu.memory_space<vmem>>, vector<32x128xbf16>,
    %c124_i32_43 = arith.constant 124 : i32
    %64 = tpu.dynamic_rotate %44 by %c124_i32_43 dim 1 : vector<32x128xf32>, i32 -> vector<32x128xf32>
    %65 = arith.truncf %64 : vector<32x128xf32> to vector<32x128xbf16>
    %c192_44 = arith.constant 192 : index
    %c0_45 = arith.constant 0 : index
    %66 = vector.load %arg14[%c192_44, %c0_45] : memref<288x128xbf16, #tpu.memory_space<vmem>>, vector<32x128xbf16>
    tpu.vector_store %arg14[%c192_44, %c0_45], %65 {strides = array<i32>} : memref<288x128xbf16, #tpu.memory_space<vmem>>, vector<32x128xbf16>,
    %c123_i32_46 = arith.constant 123 : i32
    %67 = tpu.dynamic_rotate %44 by %c123_i32_46 dim 1 : vector<32x128xf32>, i32 -> vector<32x128xf32>
    %68 = arith.truncf %67 : vector<32x128xf32> to vector<32x128xbf16>
    %c224_47 = arith.constant 224 : index
    %c0_48 = arith.constant 0 : index
    %69 = vector.load %arg14[%c224_47, %c0_48] : memref<288x128xbf16, #tpu.memory_space<vmem>>, vector<32x128xbf16>
    tpu.vector_store %arg14[%c224_47, %c0_48], %68 {strides = array<i32>} : memref<288x128xbf16, #tpu.memory_space<vmem>>, vector<32x128xbf16>,
    %c122_i32_49 = arith.constant 122 : i32
    %70 = tpu.dynamic_rotate %44 by %c122_i32_49 dim 1 : vector<32x128xf32>, i32 -> vector<32x128xf32>
    %71 = arith.truncf %70 : vector<32x128xf32> to vector<32x128xbf16>
    %c256_50 = arith.constant 256 : index
    %c0_51 = arith.constant 0 : index
    %72 = vector.load %arg14[%c256_50, %c0_51] : memref<288x128xbf16, #tpu.memory_space<vmem>>, vector<32x128xbf16>
    tpu.vector_store %arg14[%c256_50, %c0_51], %71 {strides = array<i32>} : memref<288x128xbf16, #tpu.memory_space<vmem>>, vector<32x128xbf16>,
    %c0_52 = arith.constant 0 : index
    %c0_53 = arith.constant 0 : index
    %73 = vector.load %arg14[%c0_52, %c0_53] : memref<288x128xbf16, #tpu.memory_space<vmem>>, vector<288x128xbf16>
    %cst_54 = arith.constant dense<0.000000e+00> : vector<32x128xf32>
    %74 = tpu.matmul %45, %73, %cst_54 {dimension_numbers = #tpu.dot_dimension_numbers<[1], [0], [0], [1], [0, 0, 1, 1], [], []>} : vector<32x288xbf16>, vector<288x128xbf16>, vector<32x128xf32> -> vector<32x128xf32>
    %75 = vector.broadcast %46 : vector<32x1xf32> to vector<32x128xf32>
    %76 = arith.addf %74, %75 : vector<32x128xf32>
    %cst_55 = arith.constant 0.000000e+00 : f32
    %77 = vector.broadcast %cst_55 : f32 to vector<32x128xf32>
    %78 = arith.cmpf ogt, %76, %77 : vector<32x128xf32>
    %cst_56 = arith.constant 0.000000e+00 : f32
    %79 = vector.broadcast %cst_56 : f32 to vector<32x128xf32>
    %80 = arith.minimumf %76, %79 : vector<32x128xf32>
    %81 = math.exp %80 : vector<32x128xf32>
    %cst_57 = arith.constant 1.000000e+00 : f32
    %82 = vector.broadcast %cst_57 : f32 to vector<32x128xf32>
    %83 = arith.subf %81, %82 : vector<32x128xf32>
    %84 = arith.select %78, %76, %83 : vector<32x128xi1>, vector<32x128xf32>
    %85 = vector.broadcast %0 : vector<1x128xf32> to vector<32x128xf32>
    %86 = arith.mulf %84, %85 : vector<32x128xf32>
    %87 = arith.addf %86, %2 : vector<32x128xf32>
    %c0_58 = arith.constant 0 : index
    %c0_59 = arith.constant 0 : index
    %88 = vector.load %arg7[%c0_58, %c0_59] : memref<32x288xbf16, #tpu.memory_space<vmem>>, vector<32x288xbf16>
    %c0_60 = arith.constant 0 : index
    %c0_61 = arith.constant 0 : index
    %89 = vector.load %arg8[%c0_60, %c0_61] : memref<32x1xf32, #tpu.memory_space<vmem>>, vector<32x1xf32>
    %c6_i32_62 = arith.constant 6 : i32
    %90 = tpu.dynamic_rotate %87 by %c6_i32_62 dim 1 : vector<32x128xf32>, i32 -> vector<32x128xf32>
    %91 = arith.truncf %90 : vector<32x128xf32> to vector<32x128xbf16>
    %c0_63 = arith.constant 0 : index
    %c0_64 = arith.constant 0 : index
    %92 = vector.load %arg14[%c0_63, %c0_64] : memref<288x128xbf16, #tpu.memory_space<vmem>>, vector<32x128xbf16>
    tpu.vector_store %arg14[%c0_63, %c0_64], %91 {strides = array<i32>} : memref<288x128xbf16, #tpu.memory_space<vmem>>, vector<32x128xbf16>,
    %c5_i32_65 = arith.constant 5 : i32
    %93 = tpu.dynamic_rotate %87 by %c5_i32_65 dim 1 : vector<32x128xf32>, i32 -> vector<32x128xf32>
    %94 = arith.truncf %93 : vector<32x128xf32> to vector<32x128xbf16>
    %c32_66 = arith.constant 32 : index
    %c0_67 = arith.constant 0 : index
    %95 = vector.load %arg14[%c32_66, %c0_67] : memref<288x128xbf16, #tpu.memory_space<vmem>>, vector<32x128xbf16>
    tpu.vector_store %arg14[%c32_66, %c0_67], %94 {strides = array<i32>} : memref<288x128xbf16, #tpu.memory_space<vmem>>, vector<32x128xbf16>,
    %c4_i32_68 = arith.constant 4 : i32
    %96 = tpu.dynamic_rotate %87 by %c4_i32_68 dim 1 : vector<32x128xf32>, i32 -> vector<32x128xf32>
    %97 = arith.truncf %96 : vector<32x128xf32> to vector<32x128xbf16>
    %c64_69 = arith.constant 64 : index
    %c0_70 = arith.constant 0 : index
    %98 = vector.load %arg14[%c64_69, %c0_70] : memref<288x128xbf16, #tpu.memory_space<vmem>>, vector<32x128xbf16>
    tpu.vector_store %arg14[%c64_69, %c0_70], %97 {strides = array<i32>} : memref<288x128xbf16, #tpu.memory_space<vmem>>, vector<32x128xbf16>,
    %c1_i32_71 = arith.constant 1 : i32
    %99 = tpu.dynamic_rotate %87 by %c1_i32_71 dim 1 : vector<32x128xf32>, i32 -> vector<32x128xf32>
    %100 = arith.truncf %99 : vector<32x128xf32> to vector<32x128xbf16>
    %c96_72 = arith.constant 96 : index
    %c0_73 = arith.constant 0 : index
    %101 = vector.load %arg14[%c96_72, %c0_73] : memref<288x128xbf16, #tpu.memory_space<vmem>>, vector<32x128xbf16>
    tpu.vector_store %arg14[%c96_72, %c0_73], %100 {strides = array<i32>} : memref<288x128xbf16, #tpu.memory_space<vmem>>, vector<32x128xbf16>,
    %102 = arith.truncf %87 : vector<32x128xf32> to vector<32x128xbf16>
    %c128_74 = arith.constant 128 : index
    %c0_75 = arith.constant 0 : index
    %103 = vector.load %arg14[%c128_74, %c0_75] : memref<288x128xbf16, #tpu.memory_space<vmem>>, vector<32x128xbf16>
    tpu.vector_store %arg14[%c128_74, %c0_75], %102 {strides = array<i32>} : memref<288x128xbf16, #tpu.memory_space<vmem>>, vector<32x128xbf16>,
    %c127_i32_76 = arith.constant 127 : i32
    %104 = tpu.dynamic_rotate %87 by %c127_i32_76 dim 1 : vector<32x128xf32>, i32 -> vector<32x128xf32>
    %105 = arith.truncf %104 : vector<32x128xf32> to vector<32x128xbf16>
    %c160_77 = arith.constant 160 : index
    %c0_78 = arith.constant 0 : index
    %106 = vector.load %arg14[%c160_77, %c0_78] : memref<288x128xbf16, #tpu.memory_space<vmem>>, vector<32x128xbf16>
    tpu.vector_store %arg14[%c160_77, %c0_78], %105 {strides = array<i32>} : memref<288x128xbf16, #tpu.memory_space<vmem>>, vector<32x128xbf16>,
    %c124_i32_79 = arith.constant 124 : i32
    %107 = tpu.dynamic_rotate %87 by %c124_i32_79 dim 1 : vector<32x128xf32>, i32 -> vector<32x128xf32>
    %108 = arith.truncf %107 : vector<32x128xf32> to vector<32x128xbf16>
    %c192_80 = arith.constant 192 : index
    %c0_81 = arith.constant 0 : index
    %109 = vector.load %arg14[%c192_80, %c0_81] : memref<288x128xbf16, #tpu.memory_space<vmem>>, vector<32x128xbf16>
    tpu.vector_store %arg14[%c192_80, %c0_81], %108 {strides = array<i32>} : memref<288x128xbf16, #tpu.memory_space<vmem>>, vector<32x128xbf16>,
    %c123_i32_82 = arith.constant 123 : i32
    %110 = tpu.dynamic_rotate %87 by %c123_i32_82 dim 1 : vector<32x128xf32>, i32 -> vector<32x128xf32>
    %111 = arith.truncf %110 : vector<32x128xf32> to vector<32x128xbf16>
    %c224_83 = arith.constant 224 : index
    %c0_84 = arith.constant 0 : index
    %112 = vector.load %arg14[%c224_83, %c0_84] : memref<288x128xbf16, #tpu.memory_space<vmem>>, vector<32x128xbf16>
    tpu.vector_store %arg14[%c224_83, %c0_84], %111 {strides = array<i32>} : memref<288x128xbf16, #tpu.memory_space<vmem>>, vector<32x128xbf16>,
    %c122_i32_85 = arith.constant 122 : i32
    %113 = tpu.dynamic_rotate %87 by %c122_i32_85 dim 1 : vector<32x128xf32>, i32 -> vector<32x128xf32>
    %114 = arith.truncf %113 : vector<32x128xf32> to vector<32x128xbf16>
    %c256_86 = arith.constant 256 : index
    %c0_87 = arith.constant 0 : index
    %115 = vector.load %arg14[%c256_86, %c0_87] : memref<288x128xbf16, #tpu.memory_space<vmem>>, vector<32x128xbf16>
    tpu.vector_store %arg14[%c256_86, %c0_87], %114 {strides = array<i32>} : memref<288x128xbf16, #tpu.memory_space<vmem>>, vector<32x128xbf16>,
    %c0_88 = arith.constant 0 : index
    %c0_89 = arith.constant 0 : index
    %116 = vector.load %arg14[%c0_88, %c0_89] : memref<288x128xbf16, #tpu.memory_space<vmem>>, vector<288x128xbf16>
    %cst_90 = arith.constant dense<0.000000e+00> : vector<32x128xf32>
    %117 = tpu.matmul %88, %116, %cst_90 {dimension_numbers = #tpu.dot_dimension_numbers<[1], [0], [0], [1], [0, 0, 1, 1], [], []>} : vector<32x288xbf16>, vector<288x128xbf16>, vector<32x128xf32> -> vector<32x128xf32>
    %118 = vector.broadcast %89 : vector<32x1xf32> to vector<32x128xf32>
    %119 = arith.addf %117, %118 : vector<32x128xf32>
    %cst_91 = arith.constant 0.000000e+00 : f32
    %120 = vector.broadcast %cst_91 : f32 to vector<32x128xf32>
    %121 = arith.cmpf ogt, %119, %120 : vector<32x128xf32>
    %cst_92 = arith.constant 0.000000e+00 : f32
    %122 = vector.broadcast %cst_92 : f32 to vector<32x128xf32>
    %123 = arith.minimumf %119, %122 : vector<32x128xf32>
    %124 = math.exp %123 : vector<32x128xf32>
    %cst_93 = arith.constant 1.000000e+00 : f32
    %125 = vector.broadcast %cst_93 : f32 to vector<32x128xf32>
    %126 = arith.subf %124, %125 : vector<32x128xf32>
    %127 = arith.select %121, %119, %126 : vector<32x128xi1>, vector<32x128xf32>
    %128 = vector.broadcast %0 : vector<1x128xf32> to vector<32x128xf32>
    %129 = arith.mulf %127, %128 : vector<32x128xf32>
    %c0_94 = arith.constant 0 : index
    %c0_95 = arith.constant 0 : index
    %130 = vector.load %arg9[%c0_94, %c0_95] : memref<32x288xbf16, #tpu.memory_space<vmem>>, vector<32x288xbf16>
    %c0_96 = arith.constant 0 : index
    %c0_97 = arith.constant 0 : index
    %131 = vector.load %arg10[%c0_96, %c0_97] : memref<32x1xf32, #tpu.memory_space<vmem>>, vector<32x1xf32>
    %c6_i32_98 = arith.constant 6 : i32
    %132 = tpu.dynamic_rotate %129 by %c6_i32_98 dim 1 : vector<32x128xf32>, i32 -> vector<32x128xf32>
    %133 = arith.truncf %132 : vector<32x128xf32> to vector<32x128xbf16>
    %c0_99 = arith.constant 0 : index
    %c0_100 = arith.constant 0 : index
    %134 = vector.load %arg14[%c0_99, %c0_100] : memref<288x128xbf16, #tpu.memory_space<vmem>>, vector<32x128xbf16>
    tpu.vector_store %arg14[%c0_99, %c0_100], %133 {strides = array<i32>} : memref<288x128xbf16, #tpu.memory_space<vmem>>, vector<32x128xbf16>,
    %c5_i32_101 = arith.constant 5 : i32
    %135 = tpu.dynamic_rotate %129 by %c5_i32_101 dim 1 : vector<32x128xf32>, i32 -> vector<32x128xf32>
    %136 = arith.truncf %135 : vector<32x128xf32> to vector<32x128xbf16>
    %c32_102 = arith.constant 32 : index
    %c0_103 = arith.constant 0 : index
    %137 = vector.load %arg14[%c32_102, %c0_103] : memref<288x128xbf16, #tpu.memory_space<vmem>>, vector<32x128xbf16>
    tpu.vector_store %arg14[%c32_102, %c0_103], %136 {strides = array<i32>} : memref<288x128xbf16, #tpu.memory_space<vmem>>, vector<32x128xbf16>,
    %c4_i32_104 = arith.constant 4 : i32
    %138 = tpu.dynamic_rotate %129 by %c4_i32_104 dim 1 : vector<32x128xf32>, i32 -> vector<32x128xf32>
    %139 = arith.truncf %138 : vector<32x128xf32> to vector<32x128xbf16>
    %c64_105 = arith.constant 64 : index
    %c0_106 = arith.constant 0 : index
    %140 = vector.load %arg14[%c64_105, %c0_106] : memref<288x128xbf16, #tpu.memory_space<vmem>>, vector<32x128xbf16>
    tpu.vector_store %arg14[%c64_105, %c0_106], %139 {strides = array<i32>} : memref<288x128xbf16, #tpu.memory_space<vmem>>, vector<32x128xbf16>,
    %c1_i32_107 = arith.constant 1 : i32
    %141 = tpu.dynamic_rotate %129 by %c1_i32_107 dim 1 : vector<32x128xf32>, i32 -> vector<32x128xf32>
    %142 = arith.truncf %141 : vector<32x128xf32> to vector<32x128xbf16>
    %c96_108 = arith.constant 96 : index
    %c0_109 = arith.constant 0 : index
    %143 = vector.load %arg14[%c96_108, %c0_109] : memref<288x128xbf16, #tpu.memory_space<vmem>>, vector<32x128xbf16>
    tpu.vector_store %arg14[%c96_108, %c0_109], %142 {strides = array<i32>} : memref<288x128xbf16, #tpu.memory_space<vmem>>, vector<32x128xbf16>,
    %144 = arith.truncf %129 : vector<32x128xf32> to vector<32x128xbf16>
    %c128_110 = arith.constant 128 : index
    %c0_111 = arith.constant 0 : index
    %145 = vector.load %arg14[%c128_110, %c0_111] : memref<288x128xbf16, #tpu.memory_space<vmem>>, vector<32x128xbf16>
    tpu.vector_store %arg14[%c128_110, %c0_111], %144 {strides = array<i32>} : memref<288x128xbf16, #tpu.memory_space<vmem>>, vector<32x128xbf16>,
    %c127_i32_112 = arith.constant 127 : i32
    %146 = tpu.dynamic_rotate %129 by %c127_i32_112 dim 1 : vector<32x128xf32>, i32 -> vector<32x128xf32>
    %147 = arith.truncf %146 : vector<32x128xf32> to vector<32x128xbf16>
    %c160_113 = arith.constant 160 : index
    %c0_114 = arith.constant 0 : index
    %148 = vector.load %arg14[%c160_113, %c0_114] : memref<288x128xbf16, #tpu.memory_space<vmem>>, vector<32x128xbf16>
    tpu.vector_store %arg14[%c160_113, %c0_114], %147 {strides = array<i32>} : memref<288x128xbf16, #tpu.memory_space<vmem>>, vector<32x128xbf16>,
    %c124_i32_115 = arith.constant 124 : i32
    %149 = tpu.dynamic_rotate %129 by %c124_i32_115 dim 1 : vector<32x128xf32>, i32 -> vector<32x128xf32>
    %150 = arith.truncf %149 : vector<32x128xf32> to vector<32x128xbf16>
    %c192_116 = arith.constant 192 : index
    %c0_117 = arith.constant 0 : index
    %151 = vector.load %arg14[%c192_116, %c0_117] : memref<288x128xbf16, #tpu.memory_space<vmem>>, vector<32x128xbf16>
    tpu.vector_store %arg14[%c192_116, %c0_117], %150 {strides = array<i32>} : memref<288x128xbf16, #tpu.memory_space<vmem>>, vector<32x128xbf16>,
    %c123_i32_118 = arith.constant 123 : i32
    %152 = tpu.dynamic_rotate %129 by %c123_i32_118 dim 1 : vector<32x128xf32>, i32 -> vector<32x128xf32>
    %153 = arith.truncf %152 : vector<32x128xf32> to vector<32x128xbf16>
    %c224_119 = arith.constant 224 : index
    %c0_120 = arith.constant 0 : index
    %154 = vector.load %arg14[%c224_119, %c0_120] : memref<288x128xbf16, #tpu.memory_space<vmem>>, vector<32x128xbf16>
    tpu.vector_store %arg14[%c224_119, %c0_120], %153 {strides = array<i32>} : memref<288x128xbf16, #tpu.memory_space<vmem>>, vector<32x128xbf16>,
    %c122_i32_121 = arith.constant 122 : i32
    %155 = tpu.dynamic_rotate %129 by %c122_i32_121 dim 1 : vector<32x128xf32>, i32 -> vector<32x128xf32>
    %156 = arith.truncf %155 : vector<32x128xf32> to vector<32x128xbf16>
    %c256_122 = arith.constant 256 : index
    %c0_123 = arith.constant 0 : index
    %157 = vector.load %arg14[%c256_122, %c0_123] : memref<288x128xbf16, #tpu.memory_space<vmem>>, vector<32x128xbf16>
    tpu.vector_store %arg14[%c256_122, %c0_123], %156 {strides = array<i32>} : memref<288x128xbf16, #tpu.memory_space<vmem>>, vector<32x128xbf16>,
    %c0_124 = arith.constant 0 : index
    %c0_125 = arith.constant 0 : index
    %158 = vector.load %arg14[%c0_124, %c0_125] : memref<288x128xbf16, #tpu.memory_space<vmem>>, vector<288x128xbf16>
    %cst_126 = arith.constant dense<0.000000e+00> : vector<32x128xf32>
    %159 = tpu.matmul %130, %158, %cst_126 {dimension_numbers = #tpu.dot_dimension_numbers<[1], [0], [0], [1], [0, 0, 1, 1], [], []>} : vector<32x288xbf16>, vector<288x128xbf16>, vector<32x128xf32> -> vector<32x128xf32>
    %160 = vector.broadcast %131 : vector<32x1xf32> to vector<32x128xf32>
    %161 = arith.addf %159, %160 : vector<32x128xf32>
    %cst_127 = arith.constant 0.000000e+00 : f32
    %162 = vector.broadcast %cst_127 : f32 to vector<32x128xf32>
    %163 = arith.cmpf ogt, %161, %162 : vector<32x128xf32>
    %cst_128 = arith.constant 0.000000e+00 : f32
    %164 = vector.broadcast %cst_128 : f32 to vector<32x128xf32>
    %165 = arith.minimumf %161, %164 : vector<32x128xf32>
    %166 = math.exp %165 : vector<32x128xf32>
    %cst_129 = arith.constant 1.000000e+00 : f32
    %167 = vector.broadcast %cst_129 : f32 to vector<32x128xf32>
    %168 = arith.subf %166, %167 : vector<32x128xf32>
    %169 = arith.select %163, %161, %168 : vector<32x128xi1>, vector<32x128xf32>
    %170 = vector.broadcast %0 : vector<1x128xf32> to vector<32x128xf32>
    %171 = arith.mulf %169, %170 : vector<32x128xf32>
    %172 = arith.addf %171, %87 : vector<32x128xf32>
    %c0_130 = arith.constant 0 : index
    %c0_131 = arith.constant 0 : index
    %173 = vector.load %arg11[%c0_130, %c0_131] : memref<32x288xbf16, #tpu.memory_space<vmem>>, vector<32x288xbf16>
    %c0_132 = arith.constant 0 : index
    %c0_133 = arith.constant 0 : index
    %174 = vector.load %arg12[%c0_132, %c0_133] : memref<32x1xf32, #tpu.memory_space<vmem>>, vector<32x1xf32>
    %c6_i32_134 = arith.constant 6 : i32
    %175 = tpu.dynamic_rotate %172 by %c6_i32_134 dim 1 : vector<32x128xf32>, i32 -> vector<32x128xf32>
    %176 = arith.truncf %175 : vector<32x128xf32> to vector<32x128xbf16>
    %c0_135 = arith.constant 0 : index
    %c0_136 = arith.constant 0 : index
    %177 = vector.load %arg14[%c0_135, %c0_136] : memref<288x128xbf16, #tpu.memory_space<vmem>>, vector<32x128xbf16>
    tpu.vector_store %arg14[%c0_135, %c0_136], %176 {strides = array<i32>} : memref<288x128xbf16, #tpu.memory_space<vmem>>, vector<32x128xbf16>,
    %c5_i32_137 = arith.constant 5 : i32
    %178 = tpu.dynamic_rotate %172 by %c5_i32_137 dim 1 : vector<32x128xf32>, i32 -> vector<32x128xf32>
    %179 = arith.truncf %178 : vector<32x128xf32> to vector<32x128xbf16>
    %c32_138 = arith.constant 32 : index
    %c0_139 = arith.constant 0 : index
    %180 = vector.load %arg14[%c32_138, %c0_139] : memref<288x128xbf16, #tpu.memory_space<vmem>>, vector<32x128xbf16>
    tpu.vector_store %arg14[%c32_138, %c0_139], %179 {strides = array<i32>} : memref<288x128xbf16, #tpu.memory_space<vmem>>, vector<32x128xbf16>,
    %c4_i32_140 = arith.constant 4 : i32
    %181 = tpu.dynamic_rotate %172 by %c4_i32_140 dim 1 : vector<32x128xf32>, i32 -> vector<32x128xf32>
    %182 = arith.truncf %181 : vector<32x128xf32> to vector<32x128xbf16>
    %c64_141 = arith.constant 64 : index
    %c0_142 = arith.constant 0 : index
    %183 = vector.load %arg14[%c64_141, %c0_142] : memref<288x128xbf16, #tpu.memory_space<vmem>>, vector<32x128xbf16>
    tpu.vector_store %arg14[%c64_141, %c0_142], %182 {strides = array<i32>} : memref<288x128xbf16, #tpu.memory_space<vmem>>, vector<32x128xbf16>,
    %c1_i32_143 = arith.constant 1 : i32
    %184 = tpu.dynamic_rotate %172 by %c1_i32_143 dim 1 : vector<32x128xf32>, i32 -> vector<32x128xf32>
    %185 = arith.truncf %184 : vector<32x128xf32> to vector<32x128xbf16>
    %c96_144 = arith.constant 96 : index
    %c0_145 = arith.constant 0 : index
    %186 = vector.load %arg14[%c96_144, %c0_145] : memref<288x128xbf16, #tpu.memory_space<vmem>>, vector<32x128xbf16>
    tpu.vector_store %arg14[%c96_144, %c0_145], %185 {strides = array<i32>} : memref<288x128xbf16, #tpu.memory_space<vmem>>, vector<32x128xbf16>,
    %187 = arith.truncf %172 : vector<32x128xf32> to vector<32x128xbf16>
    %c128_146 = arith.constant 128 : index
    %c0_147 = arith.constant 0 : index
    %188 = vector.load %arg14[%c128_146, %c0_147] : memref<288x128xbf16, #tpu.memory_space<vmem>>, vector<32x128xbf16>
    tpu.vector_store %arg14[%c128_146, %c0_147], %187 {strides = array<i32>} : memref<288x128xbf16, #tpu.memory_space<vmem>>, vector<32x128xbf16>,
    %c127_i32_148 = arith.constant 127 : i32
    %189 = tpu.dynamic_rotate %172 by %c127_i32_148 dim 1 : vector<32x128xf32>, i32 -> vector<32x128xf32>
    %190 = arith.truncf %189 : vector<32x128xf32> to vector<32x128xbf16>
    %c160_149 = arith.constant 160 : index
    %c0_150 = arith.constant 0 : index
    %191 = vector.load %arg14[%c160_149, %c0_150] : memref<288x128xbf16, #tpu.memory_space<vmem>>, vector<32x128xbf16>
    tpu.vector_store %arg14[%c160_149, %c0_150], %190 {strides = array<i32>} : memref<288x128xbf16, #tpu.memory_space<vmem>>, vector<32x128xbf16>,
    %c124_i32_151 = arith.constant 124 : i32
    %192 = tpu.dynamic_rotate %172 by %c124_i32_151 dim 1 : vector<32x128xf32>, i32 -> vector<32x128xf32>
    %193 = arith.truncf %192 : vector<32x128xf32> to vector<32x128xbf16>
    %c192_152 = arith.constant 192 : index
    %c0_153 = arith.constant 0 : index
    %194 = vector.load %arg14[%c192_152, %c0_153] : memref<288x128xbf16, #tpu.memory_space<vmem>>, vector<32x128xbf16>
    tpu.vector_store %arg14[%c192_152, %c0_153], %193 {strides = array<i32>} : memref<288x128xbf16, #tpu.memory_space<vmem>>, vector<32x128xbf16>,
    %c123_i32_154 = arith.constant 123 : i32
    %195 = tpu.dynamic_rotate %172 by %c123_i32_154 dim 1 : vector<32x128xf32>, i32 -> vector<32x128xf32>
    %196 = arith.truncf %195 : vector<32x128xf32> to vector<32x128xbf16>
    %c224_155 = arith.constant 224 : index
    %c0_156 = arith.constant 0 : index
    %197 = vector.load %arg14[%c224_155, %c0_156] : memref<288x128xbf16, #tpu.memory_space<vmem>>, vector<32x128xbf16>
    tpu.vector_store %arg14[%c224_155, %c0_156], %196 {strides = array<i32>} : memref<288x128xbf16, #tpu.memory_space<vmem>>, vector<32x128xbf16>,
    %c122_i32_157 = arith.constant 122 : i32
    %198 = tpu.dynamic_rotate %172 by %c122_i32_157 dim 1 : vector<32x128xf32>, i32 -> vector<32x128xf32>
    %199 = arith.truncf %198 : vector<32x128xf32> to vector<32x128xbf16>
    %c256_158 = arith.constant 256 : index
    %c0_159 = arith.constant 0 : index
    %200 = vector.load %arg14[%c256_158, %c0_159] : memref<288x128xbf16, #tpu.memory_space<vmem>>, vector<32x128xbf16>
    tpu.vector_store %arg14[%c256_158, %c0_159], %199 {strides = array<i32>} : memref<288x128xbf16, #tpu.memory_space<vmem>>, vector<32x128xbf16>,
    %c0_160 = arith.constant 0 : index
    %c0_161 = arith.constant 0 : index
    %201 = vector.load %arg14[%c0_160, %c0_161] : memref<288x128xbf16, #tpu.memory_space<vmem>>, vector<288x128xbf16>
    %cst_162 = arith.constant dense<0.000000e+00> : vector<32x128xf32>
    %202 = tpu.matmul %173, %201, %cst_162 {dimension_numbers = #tpu.dot_dimension_numbers<[1], [0], [0], [1], [0, 0, 1, 1], [], []>} : vector<32x288xbf16>, vector<288x128xbf16>, vector<32x128xf32> -> vector<32x128xf32>
    %203 = vector.broadcast %174 : vector<32x1xf32> to vector<32x128xf32>
    %204 = arith.addf %202, %203 : vector<32x128xf32>
    %205 = vector.broadcast %0 : vector<1x128xf32> to vector<32x128xf32>
    %206 = arith.mulf %204, %205 : vector<32x128xf32>
    %207 = arith.truncf %206 : vector<32x128xf32> to vector<32x128xbf16>
    %c0_163 = arith.constant 0 : index
    %c0_164 = arith.constant 0 : index
    %208 = vector.load %arg13[%c0_163, %c0_164] : memref<32x128xbf16, #tpu.memory_space<vmem>>, vector<32x128xbf16>
    tpu.vector_store %arg13[%c0_163, %c0_164], %207 {strides = array<i32>} : memref<32x128xbf16, #tpu.memory_space<vmem>>, vector<32x128xbf16>,
    return
  }
  func.func @transform_0(%arg0: i32) -> (i32, i32) {
    %c0_i32 = arith.constant 0 : i32
    %c0_i32_0 = arith.constant 0 : i32
    return %c0_i32, %arg0 : i32, i32
  }
  func.func @transform_1(%arg0: i32) -> (i32, i32) {
    %c0_i32 = arith.constant 0 : i32
    %c0_i32_0 = arith.constant 0 : i32
    %c0_i32_1 = arith.constant 0 : i32
    return %c0_i32, %c0_i32_0 : i32, i32
  }
  func.func @transform_2(%arg0: i32) -> (i32, i32) {
    %c0_i32 = arith.constant 0 : i32
    %c0_i32_0 = arith.constant 0 : i32
    %c0_i32_1 = arith.constant 0 : i32
    return %c0_i32, %c0_i32_0 : i32, i32
  }
  func.func @transform_3(%arg0: i32) -> (i32, i32) {
    %c0_i32 = arith.constant 0 : i32
    %c0_i32_0 = arith.constant 0 : i32
    %c0_i32_1 = arith.constant 0 : i32
    return %c0_i32, %c0_i32_0 : i32, i32
  }
  func.func @transform_4(%arg0: i32) -> (i32, i32) {
    %c0_i32 = arith.constant 0 : i32
    %c0_i32_0 = arith.constant 0 : i32
    %c0_i32_1 = arith.constant 0 : i32
    return %c0_i32, %c0_i32_0 : i32, i32
  }
  func.func @transform_5(%arg0: i32) -> (i32, i32) {
    %c0_i32 = arith.constant 0 : i32
    %c0_i32_0 = arith.constant 0 : i32
    %c0_i32_1 = arith.constant 0 : i32
    return %c0_i32, %c0_i32_0 : i32, i32
  }
  func.func @transform_6(%arg0: i32) -> (i32, i32) {
    %c0_i32 = arith.constant 0 : i32
    %c0_i32_0 = arith.constant 0 : i32
    %c0_i32_1 = arith.constant 0 : i32
    return %c0_i32, %c0_i32_0 : i32, i32
  }
  func.func @transform_7(%arg0: i32) -> (i32, i32) {
    %c0_i32 = arith.constant 0 : i32
    %c0_i32_0 = arith.constant 0 : i32
    %c0_i32_1 = arith.constant 0 : i32
    return %c0_i32, %c0_i32_0 : i32, i32
  }
  func.func @transform_8(%arg0: i32) -> (i32, i32) {
    %c0_i32 = arith.constant 0 : i32
    %c0_i32_0 = arith.constant 0 : i32
    %c0_i32_1 = arith.constant 0 : i32
    return %c0_i32, %c0_i32_0 : i32, i32
  }
  func.func @transform_9(%arg0: i32) -> (i32, i32) {
    %c0_i32 = arith.constant 0 : i32
    %c0_i32_0 = arith.constant 0 : i32
    %c0_i32_1 = arith.constant 0 : i32
    return %c0_i32, %c0_i32_0 : i32, i32
  }
  func.func @transform_10(%arg0: i32) -> (i32, i32) {
    %c0_i32 = arith.constant 0 : i32
    %c0_i32_0 = arith.constant 0 : i32
    %c0_i32_1 = arith.constant 0 : i32
    return %c0_i32, %c0_i32_0 : i32, i32
  }
  func.func @transform_11(%arg0: i32) -> (i32, i32) {
    %c0_i32 = arith.constant 0 : i32
    %c0_i32_0 = arith.constant 0 : i32
    %c0_i32_1 = arith.constant 0 : i32
    return %c0_i32, %c0_i32_0 : i32, i32
  }
  func.func @transform_12(%arg0: i32) -> (i32, i32) {
    %c0_i32 = arith.constant 0 : i32
    %c0_i32_0 = arith.constant 0 : i32
    return %c0_i32, %arg0 : i32, i32
  }
}

module attributes {stable_mosaic.version = 11 : i64} {
  func.func @kernel(%arg0: i32, %arg1: memref<32x128xbf16, #tpu.memory_space<vmem>>, %arg2: memref<1x128xf32, #tpu.memory_space<vmem>>, %arg3: memref<32x288xbf16, #tpu.memory_space<vmem>>, %arg4: memref<32x1xf32, #tpu.memory_space<vmem>>, %arg5: memref<32x288xbf16, #tpu.memory_space<vmem>>, %arg6: memref<32x1xf32, #tpu.memory_space<vmem>>, %arg7: memref<32x288xbf16, #tpu.memory_space<vmem>>, %arg8: memref<32x1xf32, #tpu.memory_space<vmem>>, %arg9: memref<32x288xbf16, #tpu.memory_space<vmem>>, %arg10: memref<32x1xf32, #tpu.memory_space<vmem>>, %arg11: memref<32x128xbf16, #tpu.memory_space<vmem>>, %arg12: memref<288x128xbf16, #tpu.memory_space<vmem>>) attributes {dimension_semantics = [#tpu.dimension_semantics<parallel>], iteration_bounds = array<i64: 1>, scalar_prefetch = 0 : i64, scratch_operands = 1 : i64, tpu.core_type = #tpu.core_type<tc>, window_params = [{transform_indices = @transform_0, window_bounds = array<i64: 32, 128>}, {pipeline_mode = #tpu.pipeline_mode<synchronous>, transform_indices = @transform_1, window_bounds = array<i64: 1, 128>}, {pipeline_mode = #tpu.pipeline_mode<synchronous>, transform_indices = @transform_2, window_bounds = array<i64: 32, 288>}, {pipeline_mode = #tpu.pipeline_mode<synchronous>, transform_indices = @transform_3, window_bounds = array<i64: 32, 1>}, {pipeline_mode = #tpu.pipeline_mode<synchronous>, transform_indices = @transform_4, window_bounds = array<i64: 32, 288>}, {pipeline_mode = #tpu.pipeline_mode<synchronous>, transform_indices = @transform_5, window_bounds = array<i64: 32, 1>}, {pipeline_mode = #tpu.pipeline_mode<synchronous>, transform_indices = @transform_6, window_bounds = array<i64: 32, 288>}, {pipeline_mode = #tpu.pipeline_mode<synchronous>, transform_indices = @transform_7, window_bounds = array<i64: 32, 1>}, {pipeline_mode = #tpu.pipeline_mode<synchronous>, transform_indices = @transform_8, window_bounds = array<i64: 32, 288>}, {pipeline_mode = #tpu.pipeline_mode<synchronous>, transform_indices = @transform_9, window_bounds = array<i64: 32, 1>}, {transform_indices = @transform_10, window_bounds = array<i64: 32, 128>}]} {
    %c0 = arith.constant 0 : index
    %c0_0 = arith.constant 0 : index
    %0 = vector.load %arg2[%c0, %c0_0] : memref<1x128xf32, #tpu.memory_space<vmem>>, vector<1x128xf32>
    %c0_1 = arith.constant 0 : index
    %c0_2 = arith.constant 0 : index
    %1 = vector.load %arg1[%c0_1, %c0_2] : memref<32x128xbf16, #tpu.memory_space<vmem>>, vector<32x128xbf16>
    %2 = arith.extf %1 : vector<32x128xbf16> to vector<32x128xf32>
    %c0_3 = arith.constant 0 : index
    %c0_4 = arith.constant 0 : index
    %3 = vector.load %arg3[%c0_3, %c0_4] : memref<32x288xbf16, #tpu.memory_space<vmem>>, vector<32x288xbf16>
    %c0_5 = arith.constant 0 : index
    %c0_6 = arith.constant 0 : index
    %4 = vector.load %arg4[%c0_5, %c0_6] : memref<32x1xf32, #tpu.memory_space<vmem>>, vector<32x1xf32>
    %c4_i32 = arith.constant 4 : i32
    %5 = tpu.dynamic_rotate %2 by %c4_i32 dim 1 : vector<32x128xf32>, i32 -> vector<32x128xf32>
    %6 = arith.truncf %5 : vector<32x128xf32> to vector<32x128xbf16>
    %c0_7 = arith.constant 0 : index
    %c0_8 = arith.constant 0 : index
    %7 = vector.load %arg12[%c0_7, %c0_8] : memref<288x128xbf16, #tpu.memory_space<vmem>>, vector<32x128xbf16>
    tpu.vector_store %arg12[%c0_7, %c0_8], %6 {strides = array<i32>} : memref<288x128xbf16, #tpu.memory_space<vmem>>, vector<32x128xbf16>,
    %c3_i32 = arith.constant 3 : i32
    %8 = tpu.dynamic_rotate %2 by %c3_i32 dim 1 : vector<32x128xf32>, i32 -> vector<32x128xf32>
    %9 = arith.truncf %8 : vector<32x128xf32> to vector<32x128xbf16>
    %c32 = arith.constant 32 : index
    %c0_9 = arith.constant 0 : index
    %10 = vector.load %arg12[%c32, %c0_9] : memref<288x128xbf16, #tpu.memory_space<vmem>>, vector<32x128xbf16>
    tpu.vector_store %arg12[%c32, %c0_9], %9 {strides = array<i32>} : memref<288x128xbf16, #tpu.memory_space<vmem>>, vector<32x128xbf16>,
    %c2_i32 = arith.constant 2 : i32
    %11 = tpu.dynamic_rotate %2 by %c2_i32 dim 1 : vector<32x128xf32>, i32 -> vector<32x128xf32>
    %12 = arith.truncf %11 : vector<32x128xf32> to vector<32x128xbf16>
    %c64 = arith.constant 64 : index
    %c0_10 = arith.constant 0 : index
    %13 = vector.load %arg12[%c64, %c0_10] : memref<288x128xbf16, #tpu.memory_space<vmem>>, vector<32x128xbf16>
    tpu.vector_store %arg12[%c64, %c0_10], %12 {strides = array<i32>} : memref<288x128xbf16, #tpu.memory_space<vmem>>, vector<32x128xbf16>,
    %c1_i32 = arith.constant 1 : i32
    %14 = tpu.dynamic_rotate %2 by %c1_i32 dim 1 : vector<32x128xf32>, i32 -> vector<32x128xf32>
    %15 = arith.truncf %14 : vector<32x128xf32> to vector<32x128xbf16>
    %c96 = arith.constant 96 : index
    %c0_11 = arith.constant 0 : index
    %16 = vector.load %arg12[%c96, %c0_11] : memref<288x128xbf16, #tpu.memory_space<vmem>>, vector<32x128xbf16>
    tpu.vector_store %arg12[%c96, %c0_11], %15 {strides = array<i32>} : memref<288x128xbf16, #tpu.memory_space<vmem>>, vector<32x128xbf16>,
    %17 = arith.truncf %2 : vector<32x128xf32> to vector<32x128xbf16>
    %c128 = arith.constant 128 : index
    %c0_12 = arith.constant 0 : index
    %18 = vector.load %arg12[%c128, %c0_12] : memref<288x128xbf16, #tpu.memory_space<vmem>>, vector<32x128xbf16>
    tpu.vector_store %arg12[%c128, %c0_12], %17 {strides = array<i32>} : memref<288x128xbf16, #tpu.memory_space<vmem>>, vector<32x128xbf16>,
    %c127_i32 = arith.constant 127 : i32
    %19 = tpu.dynamic_rotate %2 by %c127_i32 dim 1 : vector<32x128xf32>, i32 -> vector<32x128xf32>
    %20 = arith.truncf %19 : vector<32x128xf32> to vector<32x128xbf16>
    %c160 = arith.constant 160 : index
    %c0_13 = arith.constant 0 : index
    %21 = vector.load %arg12[%c160, %c0_13] : memref<288x128xbf16, #tpu.memory_space<vmem>>, vector<32x128xbf16>
    tpu.vector_store %arg12[%c160, %c0_13], %20 {strides = array<i32>} : memref<288x128xbf16, #tpu.memory_space<vmem>>, vector<32x128xbf16>,
    %c126_i32 = arith.constant 126 : i32
    %22 = tpu.dynamic_rotate %2 by %c126_i32 dim 1 : vector<32x128xf32>, i32 -> vector<32x128xf32>
    %23 = arith.truncf %22 : vector<32x128xf32> to vector<32x128xbf16>
    %c192 = arith.constant 192 : index
    %c0_14 = arith.constant 0 : index
    %24 = vector.load %arg12[%c192, %c0_14] : memref<288x128xbf16, #tpu.memory_space<vmem>>, vector<32x128xbf16>
    tpu.vector_store %arg12[%c192, %c0_14], %23 {strides = array<i32>} : memref<288x128xbf16, #tpu.memory_space<vmem>>, vector<32x128xbf16>,
    %c125_i32 = arith.constant 125 : i32
    %25 = tpu.dynamic_rotate %2 by %c125_i32 dim 1 : vector<32x128xf32>, i32 -> vector<32x128xf32>
    %26 = arith.truncf %25 : vector<32x128xf32> to vector<32x128xbf16>
    %c224 = arith.constant 224 : index
    %c0_15 = arith.constant 0 : index
    %27 = vector.load %arg12[%c224, %c0_15] : memref<288x128xbf16, #tpu.memory_space<vmem>>, vector<32x128xbf16>
    tpu.vector_store %arg12[%c224, %c0_15], %26 {strides = array<i32>} : memref<288x128xbf16, #tpu.memory_space<vmem>>, vector<32x128xbf16>,
    %c124_i32 = arith.constant 124 : i32
    %28 = tpu.dynamic_rotate %2 by %c124_i32 dim 1 : vector<32x128xf32>, i32 -> vector<32x128xf32>
    %29 = arith.truncf %28 : vector<32x128xf32> to vector<32x128xbf16>
    %c256 = arith.constant 256 : index
    %c0_16 = arith.constant 0 : index
    %30 = vector.load %arg12[%c256, %c0_16] : memref<288x128xbf16, #tpu.memory_space<vmem>>, vector<32x128xbf16>
    tpu.vector_store %arg12[%c256, %c0_16], %29 {strides = array<i32>} : memref<288x128xbf16, #tpu.memory_space<vmem>>, vector<32x128xbf16>,
    %c0_17 = arith.constant 0 : index
    %c0_18 = arith.constant 0 : index
    %31 = vector.load %arg12[%c0_17, %c0_18] : memref<288x128xbf16, #tpu.memory_space<vmem>>, vector<288x128xbf16>
    %cst = arith.constant dense<0.000000e+00> : vector<32x128xf32>
    %32 = tpu.matmul %3, %31, %cst {dimension_numbers = #tpu.dot_dimension_numbers<[1], [0], [0], [1], [0, 0, 1, 1], [], []>} : vector<32x288xbf16>, vector<288x128xbf16>, vector<32x128xf32> -> vector<32x128xf32>
    %33 = vector.broadcast %4 : vector<32x1xf32> to vector<32x128xf32>
    %34 = arith.addf %32, %33 : vector<32x128xf32>
    %cst_19 = arith.constant 0.000000e+00 : f32
    %35 = vector.broadcast %cst_19 : f32 to vector<32x128xf32>
    %36 = arith.cmpf ogt, %34, %35 : vector<32x128xf32>
    %cst_20 = arith.constant 0.000000e+00 : f32
    %37 = vector.broadcast %cst_20 : f32 to vector<32x128xf32>
    %38 = arith.minimumf %34, %37 : vector<32x128xf32>
    %39 = math.exp %38 : vector<32x128xf32>
    %cst_21 = arith.constant 1.000000e+00 : f32
    %40 = vector.broadcast %cst_21 : f32 to vector<32x128xf32>
    %41 = arith.subf %39, %40 : vector<32x128xf32>
    %42 = arith.select %36, %34, %41 : vector<32x128xi1>, vector<32x128xf32>
    %43 = vector.broadcast %0 : vector<1x128xf32> to vector<32x128xf32>
    %44 = arith.mulf %42, %43 : vector<32x128xf32>
    %c0_22 = arith.constant 0 : index
    %c0_23 = arith.constant 0 : index
    %45 = vector.load %arg5[%c0_22, %c0_23] : memref<32x288xbf16, #tpu.memory_space<vmem>>, vector<32x288xbf16>
    %c0_24 = arith.constant 0 : index
    %c0_25 = arith.constant 0 : index
    %46 = vector.load %arg6[%c0_24, %c0_25] : memref<32x1xf32, #tpu.memory_space<vmem>>, vector<32x1xf32>
    %c4_i32_26 = arith.constant 4 : i32
    %47 = tpu.dynamic_rotate %44 by %c4_i32_26 dim 1 : vector<32x128xf32>, i32 -> vector<32x128xf32>
    %48 = arith.truncf %47 : vector<32x128xf32> to vector<32x128xbf16>
    %c0_27 = arith.constant 0 : index
    %c0_28 = arith.constant 0 : index
    %49 = vector.load %arg12[%c0_27, %c0_28] : memref<288x128xbf16, #tpu.memory_space<vmem>>, vector<32x128xbf16>
    tpu.vector_store %arg12[%c0_27, %c0_28], %48 {strides = array<i32>} : memref<288x128xbf16, #tpu.memory_space<vmem>>, vector<32x128xbf16>,
    %c3_i32_29 = arith.constant 3 : i32
    %50 = tpu.dynamic_rotate %44 by %c3_i32_29 dim 1 : vector<32x128xf32>, i32 -> vector<32x128xf32>
    %51 = arith.truncf %50 : vector<32x128xf32> to vector<32x128xbf16>
    %c32_30 = arith.constant 32 : index
    %c0_31 = arith.constant 0 : index
    %52 = vector.load %arg12[%c32_30, %c0_31] : memref<288x128xbf16, #tpu.memory_space<vmem>>, vector<32x128xbf16>
    tpu.vector_store %arg12[%c32_30, %c0_31], %51 {strides = array<i32>} : memref<288x128xbf16, #tpu.memory_space<vmem>>, vector<32x128xbf16>,
    %c2_i32_32 = arith.constant 2 : i32
    %53 = tpu.dynamic_rotate %44 by %c2_i32_32 dim 1 : vector<32x128xf32>, i32 -> vector<32x128xf32>
    %54 = arith.truncf %53 : vector<32x128xf32> to vector<32x128xbf16>
    %c64_33 = arith.constant 64 : index
    %c0_34 = arith.constant 0 : index
    %55 = vector.load %arg12[%c64_33, %c0_34] : memref<288x128xbf16, #tpu.memory_space<vmem>>, vector<32x128xbf16>
    tpu.vector_store %arg12[%c64_33, %c0_34], %54 {strides = array<i32>} : memref<288x128xbf16, #tpu.memory_space<vmem>>, vector<32x128xbf16>,
    %c1_i32_35 = arith.constant 1 : i32
    %56 = tpu.dynamic_rotate %44 by %c1_i32_35 dim 1 : vector<32x128xf32>, i32 -> vector<32x128xf32>
    %57 = arith.truncf %56 : vector<32x128xf32> to vector<32x128xbf16>
    %c96_36 = arith.constant 96 : index
    %c0_37 = arith.constant 0 : index
    %58 = vector.load %arg12[%c96_36, %c0_37] : memref<288x128xbf16, #tpu.memory_space<vmem>>, vector<32x128xbf16>
    tpu.vector_store %arg12[%c96_36, %c0_37], %57 {strides = array<i32>} : memref<288x128xbf16, #tpu.memory_space<vmem>>, vector<32x128xbf16>,
    %59 = arith.truncf %44 : vector<32x128xf32> to vector<32x128xbf16>
    %c128_38 = arith.constant 128 : index
    %c0_39 = arith.constant 0 : index
    %60 = vector.load %arg12[%c128_38, %c0_39] : memref<288x128xbf16, #tpu.memory_space<vmem>>, vector<32x128xbf16>
    tpu.vector_store %arg12[%c128_38, %c0_39], %59 {strides = array<i32>} : memref<288x128xbf16, #tpu.memory_space<vmem>>, vector<32x128xbf16>,
    %c127_i32_40 = arith.constant 127 : i32
    %61 = tpu.dynamic_rotate %44 by %c127_i32_40 dim 1 : vector<32x128xf32>, i32 -> vector<32x128xf32>
    %62 = arith.truncf %61 : vector<32x128xf32> to vector<32x128xbf16>
    %c160_41 = arith.constant 160 : index
    %c0_42 = arith.constant 0 : index
    %63 = vector.load %arg12[%c160_41, %c0_42] : memref<288x128xbf16, #tpu.memory_space<vmem>>, vector<32x128xbf16>
    tpu.vector_store %arg12[%c160_41, %c0_42], %62 {strides = array<i32>} : memref<288x128xbf16, #tpu.memory_space<vmem>>, vector<32x128xbf16>,
    %c126_i32_43 = arith.constant 126 : i32
    %64 = tpu.dynamic_rotate %44 by %c126_i32_43 dim 1 : vector<32x128xf32>, i32 -> vector<32x128xf32>
    %65 = arith.truncf %64 : vector<32x128xf32> to vector<32x128xbf16>
    %c192_44 = arith.constant 192 : index
    %c0_45 = arith.constant 0 : index
    %66 = vector.load %arg12[%c192_44, %c0_45] : memref<288x128xbf16, #tpu.memory_space<vmem>>, vector<32x128xbf16>
    tpu.vector_store %arg12[%c192_44, %c0_45], %65 {strides = array<i32>} : memref<288x128xbf16, #tpu.memory_space<vmem>>, vector<32x128xbf16>,
    %c125_i32_46 = arith.constant 125 : i32
    %67 = tpu.dynamic_rotate %44 by %c125_i32_46 dim 1 : vector<32x128xf32>, i32 -> vector<32x128xf32>
    %68 = arith.truncf %67 : vector<32x128xf32> to vector<32x128xbf16>
    %c224_47 = arith.constant 224 : index
    %c0_48 = arith.constant 0 : index
    %69 = vector.load %arg12[%c224_47, %c0_48] : memref<288x128xbf16, #tpu.memory_space<vmem>>, vector<32x128xbf16>
    tpu.vector_store %arg12[%c224_47, %c0_48], %68 {strides = array<i32>} : memref<288x128xbf16, #tpu.memory_space<vmem>>, vector<32x128xbf16>,
    %c124_i32_49 = arith.constant 124 : i32
    %70 = tpu.dynamic_rotate %44 by %c124_i32_49 dim 1 : vector<32x128xf32>, i32 -> vector<32x128xf32>
    %71 = arith.truncf %70 : vector<32x128xf32> to vector<32x128xbf16>
    %c256_50 = arith.constant 256 : index
    %c0_51 = arith.constant 0 : index
    %72 = vector.load %arg12[%c256_50, %c0_51] : memref<288x128xbf16, #tpu.memory_space<vmem>>, vector<32x128xbf16>
    tpu.vector_store %arg12[%c256_50, %c0_51], %71 {strides = array<i32>} : memref<288x128xbf16, #tpu.memory_space<vmem>>, vector<32x128xbf16>,
    %c0_52 = arith.constant 0 : index
    %c0_53 = arith.constant 0 : index
    %73 = vector.load %arg12[%c0_52, %c0_53] : memref<288x128xbf16, #tpu.memory_space<vmem>>, vector<288x128xbf16>
    %cst_54 = arith.constant dense<0.000000e+00> : vector<32x128xf32>
    %74 = tpu.matmul %45, %73, %cst_54 {dimension_numbers = #tpu.dot_dimension_numbers<[1], [0], [0], [1], [0, 0, 1, 1], [], []>} : vector<32x288xbf16>, vector<288x128xbf16>, vector<32x128xf32> -> vector<32x128xf32>
    %75 = vector.broadcast %46 : vector<32x1xf32> to vector<32x128xf32>
    %76 = arith.addf %74, %75 : vector<32x128xf32>
    %cst_55 = arith.constant 0.000000e+00 : f32
    %77 = vector.broadcast %cst_55 : f32 to vector<32x128xf32>
    %78 = arith.cmpf ogt, %76, %77 : vector<32x128xf32>
    %cst_56 = arith.constant 0.000000e+00 : f32
    %79 = vector.broadcast %cst_56 : f32 to vector<32x128xf32>
    %80 = arith.minimumf %76, %79 : vector<32x128xf32>
    %81 = math.exp %80 : vector<32x128xf32>
    %cst_57 = arith.constant 1.000000e+00 : f32
    %82 = vector.broadcast %cst_57 : f32 to vector<32x128xf32>
    %83 = arith.subf %81, %82 : vector<32x128xf32>
    %84 = arith.select %78, %76, %83 : vector<32x128xi1>, vector<32x128xf32>
    %85 = vector.broadcast %0 : vector<1x128xf32> to vector<32x128xf32>
    %86 = arith.mulf %84, %85 : vector<32x128xf32>
    %87 = arith.addf %86, %2 : vector<32x128xf32>
    %c0_58 = arith.constant 0 : index
    %c0_59 = arith.constant 0 : index
    %88 = vector.load %arg7[%c0_58, %c0_59] : memref<32x288xbf16, #tpu.memory_space<vmem>>, vector<32x288xbf16>
    %c0_60 = arith.constant 0 : index
    %c0_61 = arith.constant 0 : index
    %89 = vector.load %arg8[%c0_60, %c0_61] : memref<32x1xf32, #tpu.memory_space<vmem>>, vector<32x1xf32>
    %c4_i32_62 = arith.constant 4 : i32
    %90 = tpu.dynamic_rotate %87 by %c4_i32_62 dim 1 : vector<32x128xf32>, i32 -> vector<32x128xf32>
    %91 = arith.truncf %90 : vector<32x128xf32> to vector<32x128xbf16>
    %c0_63 = arith.constant 0 : index
    %c0_64 = arith.constant 0 : index
    %92 = vector.load %arg12[%c0_63, %c0_64] : memref<288x128xbf16, #tpu.memory_space<vmem>>, vector<32x128xbf16>
    tpu.vector_store %arg12[%c0_63, %c0_64], %91 {strides = array<i32>} : memref<288x128xbf16, #tpu.memory_space<vmem>>, vector<32x128xbf16>,
    %c3_i32_65 = arith.constant 3 : i32
    %93 = tpu.dynamic_rotate %87 by %c3_i32_65 dim 1 : vector<32x128xf32>, i32 -> vector<32x128xf32>
    %94 = arith.truncf %93 : vector<32x128xf32> to vector<32x128xbf16>
    %c32_66 = arith.constant 32 : index
    %c0_67 = arith.constant 0 : index
    %95 = vector.load %arg12[%c32_66, %c0_67] : memref<288x128xbf16, #tpu.memory_space<vmem>>, vector<32x128xbf16>
    tpu.vector_store %arg12[%c32_66, %c0_67], %94 {strides = array<i32>} : memref<288x128xbf16, #tpu.memory_space<vmem>>, vector<32x128xbf16>,
    %c2_i32_68 = arith.constant 2 : i32
    %96 = tpu.dynamic_rotate %87 by %c2_i32_68 dim 1 : vector<32x128xf32>, i32 -> vector<32x128xf32>
    %97 = arith.truncf %96 : vector<32x128xf32> to vector<32x128xbf16>
    %c64_69 = arith.constant 64 : index
    %c0_70 = arith.constant 0 : index
    %98 = vector.load %arg12[%c64_69, %c0_70] : memref<288x128xbf16, #tpu.memory_space<vmem>>, vector<32x128xbf16>
    tpu.vector_store %arg12[%c64_69, %c0_70], %97 {strides = array<i32>} : memref<288x128xbf16, #tpu.memory_space<vmem>>, vector<32x128xbf16>,
    %c1_i32_71 = arith.constant 1 : i32
    %99 = tpu.dynamic_rotate %87 by %c1_i32_71 dim 1 : vector<32x128xf32>, i32 -> vector<32x128xf32>
    %100 = arith.truncf %99 : vector<32x128xf32> to vector<32x128xbf16>
    %c96_72 = arith.constant 96 : index
    %c0_73 = arith.constant 0 : index
    %101 = vector.load %arg12[%c96_72, %c0_73] : memref<288x128xbf16, #tpu.memory_space<vmem>>, vector<32x128xbf16>
    tpu.vector_store %arg12[%c96_72, %c0_73], %100 {strides = array<i32>} : memref<288x128xbf16, #tpu.memory_space<vmem>>, vector<32x128xbf16>,
    %102 = arith.truncf %87 : vector<32x128xf32> to vector<32x128xbf16>
    %c128_74 = arith.constant 128 : index
    %c0_75 = arith.constant 0 : index
    %103 = vector.load %arg12[%c128_74, %c0_75] : memref<288x128xbf16, #tpu.memory_space<vmem>>, vector<32x128xbf16>
    tpu.vector_store %arg12[%c128_74, %c0_75], %102 {strides = array<i32>} : memref<288x128xbf16, #tpu.memory_space<vmem>>, vector<32x128xbf16>,
    %c127_i32_76 = arith.constant 127 : i32
    %104 = tpu.dynamic_rotate %87 by %c127_i32_76 dim 1 : vector<32x128xf32>, i32 -> vector<32x128xf32>
    %105 = arith.truncf %104 : vector<32x128xf32> to vector<32x128xbf16>
    %c160_77 = arith.constant 160 : index
    %c0_78 = arith.constant 0 : index
    %106 = vector.load %arg12[%c160_77, %c0_78] : memref<288x128xbf16, #tpu.memory_space<vmem>>, vector<32x128xbf16>
    tpu.vector_store %arg12[%c160_77, %c0_78], %105 {strides = array<i32>} : memref<288x128xbf16, #tpu.memory_space<vmem>>, vector<32x128xbf16>,
    %c126_i32_79 = arith.constant 126 : i32
    %107 = tpu.dynamic_rotate %87 by %c126_i32_79 dim 1 : vector<32x128xf32>, i32 -> vector<32x128xf32>
    %108 = arith.truncf %107 : vector<32x128xf32> to vector<32x128xbf16>
    %c192_80 = arith.constant 192 : index
    %c0_81 = arith.constant 0 : index
    %109 = vector.load %arg12[%c192_80, %c0_81] : memref<288x128xbf16, #tpu.memory_space<vmem>>, vector<32x128xbf16>
    tpu.vector_store %arg12[%c192_80, %c0_81], %108 {strides = array<i32>} : memref<288x128xbf16, #tpu.memory_space<vmem>>, vector<32x128xbf16>,
    %c125_i32_82 = arith.constant 125 : i32
    %110 = tpu.dynamic_rotate %87 by %c125_i32_82 dim 1 : vector<32x128xf32>, i32 -> vector<32x128xf32>
    %111 = arith.truncf %110 : vector<32x128xf32> to vector<32x128xbf16>
    %c224_83 = arith.constant 224 : index
    %c0_84 = arith.constant 0 : index
    %112 = vector.load %arg12[%c224_83, %c0_84] : memref<288x128xbf16, #tpu.memory_space<vmem>>, vector<32x128xbf16>
    tpu.vector_store %arg12[%c224_83, %c0_84], %111 {strides = array<i32>} : memref<288x128xbf16, #tpu.memory_space<vmem>>, vector<32x128xbf16>,
    %c124_i32_85 = arith.constant 124 : i32
    %113 = tpu.dynamic_rotate %87 by %c124_i32_85 dim 1 : vector<32x128xf32>, i32 -> vector<32x128xf32>
    %114 = arith.truncf %113 : vector<32x128xf32> to vector<32x128xbf16>
    %c256_86 = arith.constant 256 : index
    %c0_87 = arith.constant 0 : index
    %115 = vector.load %arg12[%c256_86, %c0_87] : memref<288x128xbf16, #tpu.memory_space<vmem>>, vector<32x128xbf16>
    tpu.vector_store %arg12[%c256_86, %c0_87], %114 {strides = array<i32>} : memref<288x128xbf16, #tpu.memory_space<vmem>>, vector<32x128xbf16>,
    %c0_88 = arith.constant 0 : index
    %c0_89 = arith.constant 0 : index
    %116 = vector.load %arg12[%c0_88, %c0_89] : memref<288x128xbf16, #tpu.memory_space<vmem>>, vector<288x128xbf16>
    %cst_90 = arith.constant dense<0.000000e+00> : vector<32x128xf32>
    %117 = tpu.matmul %88, %116, %cst_90 {dimension_numbers = #tpu.dot_dimension_numbers<[1], [0], [0], [1], [0, 0, 1, 1], [], []>} : vector<32x288xbf16>, vector<288x128xbf16>, vector<32x128xf32> -> vector<32x128xf32>
    %118 = vector.broadcast %89 : vector<32x1xf32> to vector<32x128xf32>
    %119 = arith.addf %117, %118 : vector<32x128xf32>
    %cst_91 = arith.constant 0.000000e+00 : f32
    %120 = vector.broadcast %cst_91 : f32 to vector<32x128xf32>
    %121 = arith.cmpf ogt, %119, %120 : vector<32x128xf32>
    %cst_92 = arith.constant 0.000000e+00 : f32
    %122 = vector.broadcast %cst_92 : f32 to vector<32x128xf32>
    %123 = arith.minimumf %119, %122 : vector<32x128xf32>
    %124 = math.exp %123 : vector<32x128xf32>
    %cst_93 = arith.constant 1.000000e+00 : f32
    %125 = vector.broadcast %cst_93 : f32 to vector<32x128xf32>
    %126 = arith.subf %124, %125 : vector<32x128xf32>
    %127 = arith.select %121, %119, %126 : vector<32x128xi1>, vector<32x128xf32>
    %128 = vector.broadcast %0 : vector<1x128xf32> to vector<32x128xf32>
    %129 = arith.mulf %127, %128 : vector<32x128xf32>
    %c0_94 = arith.constant 0 : index
    %c0_95 = arith.constant 0 : index
    %130 = vector.load %arg9[%c0_94, %c0_95] : memref<32x288xbf16, #tpu.memory_space<vmem>>, vector<32x288xbf16>
    %c0_96 = arith.constant 0 : index
    %c0_97 = arith.constant 0 : index
    %131 = vector.load %arg10[%c0_96, %c0_97] : memref<32x1xf32, #tpu.memory_space<vmem>>, vector<32x1xf32>
    %c4_i32_98 = arith.constant 4 : i32
    %132 = tpu.dynamic_rotate %129 by %c4_i32_98 dim 1 : vector<32x128xf32>, i32 -> vector<32x128xf32>
    %133 = arith.truncf %132 : vector<32x128xf32> to vector<32x128xbf16>
    %c0_99 = arith.constant 0 : index
    %c0_100 = arith.constant 0 : index
    %134 = vector.load %arg12[%c0_99, %c0_100] : memref<288x128xbf16, #tpu.memory_space<vmem>>, vector<32x128xbf16>
    tpu.vector_store %arg12[%c0_99, %c0_100], %133 {strides = array<i32>} : memref<288x128xbf16, #tpu.memory_space<vmem>>, vector<32x128xbf16>,
    %c3_i32_101 = arith.constant 3 : i32
    %135 = tpu.dynamic_rotate %129 by %c3_i32_101 dim 1 : vector<32x128xf32>, i32 -> vector<32x128xf32>
    %136 = arith.truncf %135 : vector<32x128xf32> to vector<32x128xbf16>
    %c32_102 = arith.constant 32 : index
    %c0_103 = arith.constant 0 : index
    %137 = vector.load %arg12[%c32_102, %c0_103] : memref<288x128xbf16, #tpu.memory_space<vmem>>, vector<32x128xbf16>
    tpu.vector_store %arg12[%c32_102, %c0_103], %136 {strides = array<i32>} : memref<288x128xbf16, #tpu.memory_space<vmem>>, vector<32x128xbf16>,
    %c2_i32_104 = arith.constant 2 : i32
    %138 = tpu.dynamic_rotate %129 by %c2_i32_104 dim 1 : vector<32x128xf32>, i32 -> vector<32x128xf32>
    %139 = arith.truncf %138 : vector<32x128xf32> to vector<32x128xbf16>
    %c64_105 = arith.constant 64 : index
    %c0_106 = arith.constant 0 : index
    %140 = vector.load %arg12[%c64_105, %c0_106] : memref<288x128xbf16, #tpu.memory_space<vmem>>, vector<32x128xbf16>
    tpu.vector_store %arg12[%c64_105, %c0_106], %139 {strides = array<i32>} : memref<288x128xbf16, #tpu.memory_space<vmem>>, vector<32x128xbf16>,
    %c1_i32_107 = arith.constant 1 : i32
    %141 = tpu.dynamic_rotate %129 by %c1_i32_107 dim 1 : vector<32x128xf32>, i32 -> vector<32x128xf32>
    %142 = arith.truncf %141 : vector<32x128xf32> to vector<32x128xbf16>
    %c96_108 = arith.constant 96 : index
    %c0_109 = arith.constant 0 : index
    %143 = vector.load %arg12[%c96_108, %c0_109] : memref<288x128xbf16, #tpu.memory_space<vmem>>, vector<32x128xbf16>
    tpu.vector_store %arg12[%c96_108, %c0_109], %142 {strides = array<i32>} : memref<288x128xbf16, #tpu.memory_space<vmem>>, vector<32x128xbf16>,
    %144 = arith.truncf %129 : vector<32x128xf32> to vector<32x128xbf16>
    %c128_110 = arith.constant 128 : index
    %c0_111 = arith.constant 0 : index
    %145 = vector.load %arg12[%c128_110, %c0_111] : memref<288x128xbf16, #tpu.memory_space<vmem>>, vector<32x128xbf16>
    tpu.vector_store %arg12[%c128_110, %c0_111], %144 {strides = array<i32>} : memref<288x128xbf16, #tpu.memory_space<vmem>>, vector<32x128xbf16>,
    %c127_i32_112 = arith.constant 127 : i32
    %146 = tpu.dynamic_rotate %129 by %c127_i32_112 dim 1 : vector<32x128xf32>, i32 -> vector<32x128xf32>
    %147 = arith.truncf %146 : vector<32x128xf32> to vector<32x128xbf16>
    %c160_113 = arith.constant 160 : index
    %c0_114 = arith.constant 0 : index
    %148 = vector.load %arg12[%c160_113, %c0_114] : memref<288x128xbf16, #tpu.memory_space<vmem>>, vector<32x128xbf16>
    tpu.vector_store %arg12[%c160_113, %c0_114], %147 {strides = array<i32>} : memref<288x128xbf16, #tpu.memory_space<vmem>>, vector<32x128xbf16>,
    %c126_i32_115 = arith.constant 126 : i32
    %149 = tpu.dynamic_rotate %129 by %c126_i32_115 dim 1 : vector<32x128xf32>, i32 -> vector<32x128xf32>
    %150 = arith.truncf %149 : vector<32x128xf32> to vector<32x128xbf16>
    %c192_116 = arith.constant 192 : index
    %c0_117 = arith.constant 0 : index
    %151 = vector.load %arg12[%c192_116, %c0_117] : memref<288x128xbf16, #tpu.memory_space<vmem>>, vector<32x128xbf16>
    tpu.vector_store %arg12[%c192_116, %c0_117], %150 {strides = array<i32>} : memref<288x128xbf16, #tpu.memory_space<vmem>>, vector<32x128xbf16>,
    %c125_i32_118 = arith.constant 125 : i32
    %152 = tpu.dynamic_rotate %129 by %c125_i32_118 dim 1 : vector<32x128xf32>, i32 -> vector<32x128xf32>
    %153 = arith.truncf %152 : vector<32x128xf32> to vector<32x128xbf16>
    %c224_119 = arith.constant 224 : index
    %c0_120 = arith.constant 0 : index
    %154 = vector.load %arg12[%c224_119, %c0_120] : memref<288x128xbf16, #tpu.memory_space<vmem>>, vector<32x128xbf16>
    tpu.vector_store %arg12[%c224_119, %c0_120], %153 {strides = array<i32>} : memref<288x128xbf16, #tpu.memory_space<vmem>>, vector<32x128xbf16>,
    %c124_i32_121 = arith.constant 124 : i32
    %155 = tpu.dynamic_rotate %129 by %c124_i32_121 dim 1 : vector<32x128xf32>, i32 -> vector<32x128xf32>
    %156 = arith.truncf %155 : vector<32x128xf32> to vector<32x128xbf16>
    %c256_122 = arith.constant 256 : index
    %c0_123 = arith.constant 0 : index
    %157 = vector.load %arg12[%c256_122, %c0_123] : memref<288x128xbf16, #tpu.memory_space<vmem>>, vector<32x128xbf16>
    tpu.vector_store %arg12[%c256_122, %c0_123], %156 {strides = array<i32>} : memref<288x128xbf16, #tpu.memory_space<vmem>>, vector<32x128xbf16>,
    %c0_124 = arith.constant 0 : index
    %c0_125 = arith.constant 0 : index
    %158 = vector.load %arg12[%c0_124, %c0_125] : memref<288x128xbf16, #tpu.memory_space<vmem>>, vector<288x128xbf16>
    %cst_126 = arith.constant dense<0.000000e+00> : vector<32x128xf32>
    %159 = tpu.matmul %130, %158, %cst_126 {dimension_numbers = #tpu.dot_dimension_numbers<[1], [0], [0], [1], [0, 0, 1, 1], [], []>} : vector<32x288xbf16>, vector<288x128xbf16>, vector<32x128xf32> -> vector<32x128xf32>
    %160 = vector.broadcast %131 : vector<32x1xf32> to vector<32x128xf32>
    %161 = arith.addf %159, %160 : vector<32x128xf32>
    %cst_127 = arith.constant 0.000000e+00 : f32
    %162 = vector.broadcast %cst_127 : f32 to vector<32x128xf32>
    %163 = arith.cmpf ogt, %161, %162 : vector<32x128xf32>
    %cst_128 = arith.constant 0.000000e+00 : f32
    %164 = vector.broadcast %cst_128 : f32 to vector<32x128xf32>
    %165 = arith.minimumf %161, %164 : vector<32x128xf32>
    %166 = math.exp %165 : vector<32x128xf32>
    %cst_129 = arith.constant 1.000000e+00 : f32
    %167 = vector.broadcast %cst_129 : f32 to vector<32x128xf32>
    %168 = arith.subf %166, %167 : vector<32x128xf32>
    %169 = arith.select %163, %161, %168 : vector<32x128xi1>, vector<32x128xf32>
    %170 = vector.broadcast %0 : vector<1x128xf32> to vector<32x128xf32>
    %171 = arith.mulf %169, %170 : vector<32x128xf32>
    %172 = arith.addf %171, %87 : vector<32x128xf32>
    %173 = arith.truncf %172 : vector<32x128xf32> to vector<32x128xbf16>
    %c0_130 = arith.constant 0 : index
    %c0_131 = arith.constant 0 : index
    %174 = vector.load %arg11[%c0_130, %c0_131] : memref<32x128xbf16, #tpu.memory_space<vmem>>, vector<32x128xbf16>
    tpu.vector_store %arg11[%c0_130, %c0_131], %173 {strides = array<i32>} : memref<32x128xbf16, #tpu.memory_space<vmem>>, vector<32x128xbf16>,
    return
  }
  func.func @transform_0(%arg0: i32) -> (i32, i32) {
    %c0_i32 = arith.constant 0 : i32
    %c0_i32_0 = arith.constant 0 : i32
    return %c0_i32, %arg0 : i32, i32
  }
  func.func @transform_1(%arg0: i32) -> (i32, i32) {
    %c0_i32 = arith.constant 0 : i32
    %c0_i32_0 = arith.constant 0 : i32
    %c0_i32_1 = arith.constant 0 : i32
    return %c0_i32, %c0_i32_0 : i32, i32
  }
  func.func @transform_2(%arg0: i32) -> (i32, i32) {
    %c0_i32 = arith.constant 0 : i32
    %c0_i32_0 = arith.constant 0 : i32
    %c0_i32_1 = arith.constant 0 : i32
    return %c0_i32, %c0_i32_0 : i32, i32
  }
  func.func @transform_3(%arg0: i32) -> (i32, i32) {
    %c0_i32 = arith.constant 0 : i32
    %c0_i32_0 = arith.constant 0 : i32
    %c0_i32_1 = arith.constant 0 : i32
    return %c0_i32, %c0_i32_0 : i32, i32
  }
  func.func @transform_4(%arg0: i32) -> (i32, i32) {
    %c0_i32 = arith.constant 0 : i32
    %c0_i32_0 = arith.constant 0 : i32
    %c0_i32_1 = arith.constant 0 : i32
    return %c0_i32, %c0_i32_0 : i32, i32
  }
  func.func @transform_5(%arg0: i32) -> (i32, i32) {
    %c0_i32 = arith.constant 0 : i32
    %c0_i32_0 = arith.constant 0 : i32
    %c0_i32_1 = arith.constant 0 : i32
    return %c0_i32, %c0_i32_0 : i32, i32
  }
  func.func @transform_6(%arg0: i32) -> (i32, i32) {
    %c0_i32 = arith.constant 0 : i32
    %c0_i32_0 = arith.constant 0 : i32
    %c0_i32_1 = arith.constant 0 : i32
    return %c0_i32, %c0_i32_0 : i32, i32
  }
  func.func @transform_7(%arg0: i32) -> (i32, i32) {
    %c0_i32 = arith.constant 0 : i32
    %c0_i32_0 = arith.constant 0 : i32
    %c0_i32_1 = arith.constant 0 : i32
    return %c0_i32, %c0_i32_0 : i32, i32
  }
  func.func @transform_8(%arg0: i32) -> (i32, i32) {
    %c0_i32 = arith.constant 0 : i32
    %c0_i32_0 = arith.constant 0 : i32
    %c0_i32_1 = arith.constant 0 : i32
    return %c0_i32, %c0_i32_0 : i32, i32
  }
  func.func @transform_9(%arg0: i32) -> (i32, i32) {
    %c0_i32 = arith.constant 0 : i32
    %c0_i32_0 = arith.constant 0 : i32
    %c0_i32_1 = arith.constant 0 : i32
    return %c0_i32, %c0_i32_0 : i32, i32
  }
  func.func @transform_10(%arg0: i32) -> (i32, i32) {
    %c0_i32 = arith.constant 0 : i32
    %c0_i32_0 = arith.constant 0 : i32
    return %c0_i32, %arg0 : i32, i32
  }
}

module attributes {stable_mosaic.version = 11 : i64} {
  func.func @kernel(%arg0: i32, %arg1: memref<8x128xbf16, #tpu.memory_space<vmem>>, %arg2: memref<128x128xbf16, #tpu.memory_space<vmem>>, %arg3: memref<1x128xf32, #tpu.memory_space<vmem>>, %arg4: memref<128x128xbf16, #tpu.memory_space<vmem>>, %arg5: memref<1x128xf32, #tpu.memory_space<vmem>>, %arg6: memref<8x128xf32, #tpu.memory_space<vmem>>) attributes {dimension_semantics = [#tpu.dimension_semantics<parallel>], iteration_bounds = array<i64: 1>, scalar_prefetch = 0 : i64, scratch_operands = 0 : i64, tpu.core_type = #tpu.core_type<tc>, window_params = [{transform_indices = @transform_0, window_bounds = array<i64: 8, 128>}, {pipeline_mode = #tpu.pipeline_mode<synchronous>, transform_indices = @transform_1, window_bounds = array<i64: 128, 128>}, {pipeline_mode = #tpu.pipeline_mode<synchronous>, transform_indices = @transform_2, window_bounds = array<i64: 1, 128>}, {pipeline_mode = #tpu.pipeline_mode<synchronous>, transform_indices = @transform_3, window_bounds = array<i64: 128, 128>}, {pipeline_mode = #tpu.pipeline_mode<synchronous>, transform_indices = @transform_4, window_bounds = array<i64: 1, 128>}, {transform_indices = @transform_5, window_bounds = array<i64: 8, 128>}]} {
    %c0 = arith.constant 0 : index
    %c0_0 = arith.constant 0 : index
    %0 = vector.load %arg1[%c0, %c0_0] : memref<8x128xbf16, #tpu.memory_space<vmem>>, vector<8x128xbf16>
    %c0_1 = arith.constant 0 : index
    %c0_2 = arith.constant 0 : index
    %1 = vector.load %arg2[%c0_1, %c0_2] : memref<128x128xbf16, #tpu.memory_space<vmem>>, vector<128x128xbf16>
    %c0_3 = arith.constant 0 : index
    %c0_4 = arith.constant 0 : index
    %2 = vector.load %arg3[%c0_3, %c0_4] : memref<1x128xf32, #tpu.memory_space<vmem>>, vector<1x128xf32>
    %cst = arith.constant dense<0.000000e+00> : vector<8x128xf32>
    %3 = tpu.matmul %0, %1, %cst {dimension_numbers = #tpu.dot_dimension_numbers<[1], [0], [0], [1], [0, 0, 1, 1], [], []>} : vector<8x128xbf16>, vector<128x128xbf16>, vector<8x128xf32> -> vector<8x128xf32>
    %4 = vector.broadcast %2 : vector<1x128xf32> to vector<8x128xf32>
    %5 = arith.addf %3, %4 : vector<8x128xf32>
    %cst_5 = arith.constant 0.000000e+00 : f32
    %6 = vector.broadcast %cst_5 : f32 to vector<8x128xf32>
    %7 = arith.cmpf ogt, %5, %6 : vector<8x128xf32>
    %cst_6 = arith.constant 0.000000e+00 : f32
    %8 = vector.broadcast %cst_6 : f32 to vector<8x128xf32>
    %9 = arith.minimumf %5, %8 : vector<8x128xf32>
    %10 = math.exp %9 : vector<8x128xf32>
    %cst_7 = arith.constant 1.000000e+00 : f32
    %11 = vector.broadcast %cst_7 : f32 to vector<8x128xf32>
    %12 = arith.subf %10, %11 : vector<8x128xf32>
    %13 = arith.select %7, %5, %12 : vector<8x128xi1>, vector<8x128xf32>
    %c0_8 = arith.constant 0 : index
    %c0_9 = arith.constant 0 : index
    %14 = vector.load %arg4[%c0_8, %c0_9] : memref<128x128xbf16, #tpu.memory_space<vmem>>, vector<128x128xbf16>
    %c0_10 = arith.constant 0 : index
    %c0_11 = arith.constant 0 : index
    %15 = vector.load %arg5[%c0_10, %c0_11] : memref<1x128xf32, #tpu.memory_space<vmem>>, vector<1x128xf32>
    %16 = arith.truncf %13 : vector<8x128xf32> to vector<8x128xbf16>
    %cst_12 = arith.constant dense<0.000000e+00> : vector<8x128xf32>
    %17 = tpu.matmul %16, %14, %cst_12 {dimension_numbers = #tpu.dot_dimension_numbers<[1], [0], [0], [1], [0, 0, 1, 1], [], []>} : vector<8x128xbf16>, vector<128x128xbf16>, vector<8x128xf32> -> vector<8x128xf32>
    %18 = vector.broadcast %15 : vector<1x128xf32> to vector<8x128xf32>
    %19 = arith.addf %17, %18 : vector<8x128xf32>
    %cst_13 = arith.constant 0.000000e+00 : f32
    %20 = vector.broadcast %cst_13 : f32 to vector<8x128xf32>
    %21 = arith.cmpf ogt, %19, %20 : vector<8x128xf32>
    %cst_14 = arith.constant 0.000000e+00 : f32
    %22 = vector.broadcast %cst_14 : f32 to vector<8x128xf32>
    %23 = arith.minimumf %19, %22 : vector<8x128xf32>
    %24 = math.exp %23 : vector<8x128xf32>
    %cst_15 = arith.constant 1.000000e+00 : f32
    %25 = vector.broadcast %cst_15 : f32 to vector<8x128xf32>
    %26 = arith.subf %24, %25 : vector<8x128xf32>
    %27 = arith.select %21, %19, %26 : vector<8x128xi1>, vector<8x128xf32>
    %c0_16 = arith.constant 0 : index
    %c0_17 = arith.constant 0 : index
    %28 = vector.load %arg6[%c0_16, %c0_17] : memref<8x128xf32, #tpu.memory_space<vmem>>, vector<8x128xf32>
    tpu.vector_store %arg6[%c0_16, %c0_17], %27 {strides = array<i32>} : memref<8x128xf32, #tpu.memory_space<vmem>>, vector<8x128xf32>,
    return
  }
  func.func @transform_0(%arg0: i32) -> (i32, i32) {
    %c0_i32 = arith.constant 0 : i32
    %c0_i32_0 = arith.constant 0 : i32
    return %arg0, %c0_i32 : i32, i32
  }
  func.func @transform_1(%arg0: i32) -> (i32, i32) {
    %c0_i32 = arith.constant 0 : i32
    %c0_i32_0 = arith.constant 0 : i32
    %c0_i32_1 = arith.constant 0 : i32
    return %c0_i32, %c0_i32_0 : i32, i32
  }
  func.func @transform_2(%arg0: i32) -> (i32, i32) {
    %c0_i32 = arith.constant 0 : i32
    %c0_i32_0 = arith.constant 0 : i32
    %c0_i32_1 = arith.constant 0 : i32
    return %c0_i32, %c0_i32_0 : i32, i32
  }
  func.func @transform_3(%arg0: i32) -> (i32, i32) {
    %c0_i32 = arith.constant 0 : i32
    %c0_i32_0 = arith.constant 0 : i32
    %c0_i32_1 = arith.constant 0 : i32
    return %c0_i32, %c0_i32_0 : i32, i32
  }
  func.func @transform_4(%arg0: i32) -> (i32, i32) {
    %c0_i32 = arith.constant 0 : i32
    %c0_i32_0 = arith.constant 0 : i32
    %c0_i32_1 = arith.constant 0 : i32
    return %c0_i32, %c0_i32_0 : i32, i32
  }
  func.func @transform_5(%arg0: i32) -> (i32, i32) {
    %c0_i32 = arith.constant 0 : i32
    %c0_i32_0 = arith.constant 0 : i32
    return %arg0, %c0_i32 : i32, i32
  }
}

</mosaic_0001>

<bundles_post_ra>
// kernel: a_call__.5
= control target key start
LH: loop header
LB: loop body
LE: loop exit
PB: predicated region body
PF: predicated region fallthrough
CT: control target
= control target key end

     0   :  { %9 = vsyncpa [#allocation4], 0  ;;  %s1870_s0 = inlined_call_operand.hbm [shape: bf16[16,768], index: 0, kind: input, shape index: {}]   ;;  %s1871_s1 = inlined_call_operand.hbm [shape: f32[1,768], index: 1, kind: input, shape index: {}]   ;;  %s1872_s2 = inlined_call_operand.hbm [shape: bf16[16,144], index: 2, kind: input, shape index: {}]   ;;  %s1873_s3 = inlined_call_operand.hbm [shape: f32[16,1], index: 3, kind: input, shape index: {}]   ;;  %s1874_s4 = inlined_call_operand.hbm [shape: bf16[16,768], index: 4, kind: output, shape index: {}]  }
   0x1   :  { %10 = vsyncpa [#allocation7], 0 }
   0x2   :  { %11 = vsyncpa [#allocation10], 0 }
   0x3   :  { %12 = vsyncpa [#allocation5], 0  ;;  %s1245_s15 = smov [#allocation6]   ;;  %s1246_s17 = smov [#allocation3]  }
   0x4   :  { %s31_s16 = sshll.u32 %s1245_s15, 4  ;;  %s18_s18 = sshll.u32 %s1246_s17, 4  ;;  %s32_s16 = int_to_ptr.vmem [resolvable:$true] %s31_s16  ;;  %s1288_s18 = int_to_ptr.vmem [resolvable:$true] %s18_s18 }
   0x5   :  { %s1127_s21 = scalar_lea.hbm %s1871_s1, 96 }
   0x6   :  { %p1128_p0 = scmp.ne.s32.totalorder %s1871_s1, %s1127_s21  ;;  %p1131_p1 = scmp.lt.u32.totalorder %s1127_s21, %s1871_s1 }
   0x8   :  { %p1133_p2 = pnand %p1131_p1, %p1128_p0 }
   0xa   :  { %1136 = shalt.err (!%p1133_p2)
}
   0xb   :  { %s1137_s26 = scalar_lea.vmem %s32_s16, 96  ;;  %p1142_p4 = scmp.lt.s32.totalorder %s32_s16, %s32_s16 }
   0xc   :  { %p1138_p3 = scmp.ne.s32.totalorder %s32_s16, %s1137_s26  ;;  %p1143_p5 = scmp.lt.s32.totalorder %s1137_s26, %s1137_s26 }
   0xe   :  { %p1144_p6 = por %p1143_p5, %p1142_p4 }
  0x10   :  { %p1145_p7 = pnand %p1144_p6, %p1138_p3 }
  0x12   :  { %1148 = shalt.err (!%p1145_p7)
}
  0x13   :  { %34 = dma.hbm_to_vmem [thread:$0]  %s1871_s1, 96, %s32_s16, [#allocation7]  }
  0x14   :  { %s1149_s5 = scalar_lea.hbm %s1870_s0, 768 }
  0x15   :  { %p1150_p8 = scmp.ne.s32.totalorder %s1870_s0, %s1149_s5  ;;  %p1153_p9 = scmp.lt.u32.totalorder %s1149_s5, %s1870_s0 }
  0x17   :  { %p1155_p10 = pnand %p1153_p9, %p1150_p8 }
  0x19   :  { %1158 = shalt.err (!%p1155_p10)
}
  0x1a   :  { %s1159_s10 = scalar_lea.vmem %s1288_s18, 768  ;;  %p1164_p12 = scmp.lt.s32.totalorder %s1288_s18, %s1288_s18 }
  0x1b   :  { %p1160_p11 = scmp.ne.s32.totalorder %s1288_s18, %s1159_s10  ;;  %p1165_p13 = scmp.lt.s32.totalorder %s1159_s10, %s1159_s10 }
  0x1d   :  { %p1166_p0 = por %p1165_p13, %p1164_p12 }
  0x1f   :  { %p1167_p1 = pnand %p1166_p0, %p1160_p11 }
  0x21   :  { %1170 = shalt.err (!%p1167_p1)
}
  0x22   :  { %s1247_s1 = smov 384   ;;  %s1248_s11 = smov 24  }
  0x23   :  { %24 = dma.hbm_to_vmem [thread:$0]  %s1870_s0, 768, %s1288_s18, [#allocation4], %s1247_s1, %s1247_s1, %s1248_s11  }
  0x24   :  { %s1249_s14 = smov [#allocation8]   ;;  %s1171_s19 = scalar_lea.hbm %s1872_s2, 256 }
  0x25   :  { %s40_s15 = sshll.u32 %s1249_s14, 4  ;;  %p1172_p2 = scmp.ne.s32.totalorder %s1872_s2, %s1171_s19  ;;  %s41_s15 = int_to_ptr.vmem [resolvable:$true] %s40_s15 }
  0x26   :  { %p1175_p3 = scmp.lt.u32.totalorder %s1171_s19, %s1872_s2 }
  0x28   :  { %p1177_p4 = pnand %p1175_p3, %p1172_p2 }
  0x2a   :  { %1180 = shalt.err (!%p1177_p4)
}
  0x2b   :  { %s1181_s24 = scalar_lea.vmem %s41_s15, 256  ;;  %p1186_p6 = scmp.lt.s32.totalorder %s41_s15, %s41_s15 }
  0x2c   :  { %p1182_p5 = scmp.ne.s32.totalorder %s41_s15, %s1181_s24  ;;  %p1187_p7 = scmp.lt.s32.totalorder %s1181_s24, %s1181_s24 }
  0x2e   :  { %p1188_p8 = por %p1187_p7, %p1186_p6 }
  0x30   :  { %p1189_p9 = pnand %p1188_p8, %p1182_p5 }
  0x32   :  { %1192 = shalt.err (!%p1189_p9)
}
  0x33   :  { %s1250_s0 = smov 128   ;;  %s1251_s18 = smov 8  }
  0x34   :  { %46 = dma.hbm_to_vmem [thread:$0]  %s1872_s2, 256, %s41_s15, [#allocation7], %s1250_s0, %s1250_s0, %s1251_s18  }
  0x35   :  { %s1252_s27 = smov [#allocation9]   ;;  %s1193_s5 = scalar_lea.hbm %s1873_s3, 256 }
  0x36   :  { %s52_s28 = sshll.u32 %s1252_s27, 4  ;;  %p1194_p10 = scmp.ne.s32.totalorder %s1873_s3, %s1193_s5  ;;  %s53_s28 = int_to_ptr.vmem [resolvable:$true] %s52_s28 }
  0x37   :  { %p1197_p11 = scmp.lt.u32.totalorder %s1193_s5, %s1873_s3 }
  0x39   :  { %p1199_p12 = pnand %p1197_p11, %p1194_p10 }
  0x3b   :  { %1202 = shalt.err (!%p1199_p12)
}
  0x3c   :  { %s1203_s10 = scalar_lea.vmem %s53_s28, 256  ;;  %p1208_p0 = scmp.lt.s32.totalorder %s53_s28, %s53_s28 }
  0x3d   :  { %p1204_p13 = scmp.ne.s32.totalorder %s53_s28, %s1203_s10  ;;  %p1209_p1 = scmp.lt.s32.totalorder %s1203_s10, %s1203_s10 }
  0x3f   :  { %p1210_p2 = por %p1209_p1, %p1208_p0 }
  0x41   :  { %p1211_p3 = pnand %p1210_p2, %p1204_p13 }
  0x43   :  { %1214 = shalt.err (!%p1211_p3)
}
  0x44   :  { %58 = dma.hbm_to_vmem [thread:$0]  %s1873_s3, 256, %s53_s28, [#allocation10], %s1250_s0, %s1250_s0, %s1251_s18  }
  0x45   :  { %1237 = dma.done.wait [#allocation4], 768  }
  0x46   :  { %1238 = vsyncadd [#allocation4], 4294966528 }
  0x47   :  { %1239 = dma.done.wait [#allocation7], 352  }
  0x48   :  { %1240 = vsyncadd [#allocation7], 4294966944 }
  0x49   :  { %1241 = dma.done.wait [#allocation10], 256  }
  0x4a   :  { %1242 = vsyncadd [#allocation10], 4294967040  ;;  %v1346_v0 = vld [vmem:[#allocation3 + $0x10] sm:$0xff]  ;;  %v1348_v1 = vld [vmem:[#allocation3 + $0x28] sm:$0xff]  ;;  %s1253_s3 = smov 19   ;;  %s1254_s13 = smov 18   ;;  %v1875_v30 = vlaneseq }
  0x4b   :  { %v1350_v2 = vld [vmem:[#allocation3] sm:$0xff]  ;;  %v84_v3 = vunpack.c.h.bf16 %v1346_v0  ;;  %v90_v4 = vunpack.c.h.bf16 %v1348_v1  ;;  %v1354_v5 = vld [vmem:[#allocation3 + $0x18] sm:$0xff]  ;;  %s1255_s14 = smov 17   ;;  %v1372_v13 = vld [vmem:[#allocation3 + $0x8] sm:$0xff]  ;;  %s1256_s15 = smov 1   ;;  %vm598_vm0 = vcmask 130048   ;;  %v83_v24 = vunpack.c.l.bf16 %v1346_v0 }
  0x4c   :  { %v79_v6 = vunpack.c.l.bf16 %v1350_v2  ;;  %v85_v7 = vunpack.c.l.bf16 %v1354_v5  ;;  %v80_v8 = vunpack.c.h.bf16 %v1350_v2  ;;  %v86_v9 = vunpack.c.h.bf16 %v1354_v5  ;;  %v1374_v14 = vld [vmem:[#allocation3 + $0x20] sm:$0xff]  ;;  %s1257_s16 = smov 127   ;;  %s1258_s17 = smov 111   ;;  %v94_v28 = vld [vmem:[#allocation9 + $0x8] sm:$0xff] }
  0x4d   :  { %v1360_v10 = vpack.i.bf16 %v90_v4, %v84_v3  ;;  %v836_v15 = vcombine.high %v1350_v2, %v1354_v5  ;;  %v81_v16 = vunpack.c.l.bf16 %v1372_v13  ;;  %v87_v17 = vunpack.c.l.bf16 %v1374_v14  ;;  %s1259_s19 = smov 110   ;;  %s1260_s20 = smov 109   ;;  %v1400_v22 = vld [vmem:[#allocation8 + $0x4] ss:$8 sps:$4 sm:$0xff]   ;;  %v93_v29 = vld [vmem:[#allocation9] sm:$0xff] }
  0x4e   :  { %v876_v11 = vpack.i.bf16 %v85_v7, %v79_v6  ;;  %v881_v12 = vpack.i.bf16 %v86_v9, %v80_v8  ;;  %v835_v18 = vcombine.low %v1350_v2, %v1354_v5  ;;  %v82_v20 = vunpack.c.h.bf16 %v1372_v13  ;;  %843 = vmatprep.mubr.msk.bf16.mxu0 %vm598_vm0, %v1400_v22  ;;  %844 = vmatprep.mubr.msk.bf16.mxu1 %vm598_vm0, %v1400_v22  ;;  %s1262_s21 = smov [#allocation11]  }
  0x4f   :  { %887 = vrot.lane.b32.xlu1 %v1360_v10, %s1253_s3  ;;  %v941_v19 = vpack.i.bf16 %v87_v17, %v81_v16  ;;  %v88_v21 = vunpack.c.h.bf16 %v1374_v14  ;;  %v89_v25 = vunpack.c.l.bf16 %v1348_v1  ;;  %v1261_v27 = vmov 0   ;;  %s821_s22 = sshll.u32 %s1262_s21, 4  ;;  %s822_s22 = int_to_ptr.vmem [resolvable:$true] %s821_s22 }
  0x50   :  { %877 = vrot.lane.b32.xlu0 %v876_v11, %s1253_s3  ;;  %1117 = vset.pattern.permute.xlu1 %v1261_v27  ;;  %v1441_v32 = vand.u32 127, %v1875_v30  ;;  %s1215_s23 = scalar_lea.vmem %s822_s22, 768  ;;  %p1220_p5 = scmp.lt.s32.totalorder %s822_s22, %s822_s22 }
  0x51   :  { %v1001_v23 = vpack.i.bf16 %v88_v21, %v82_v20  ;;  %v1006_v26 = vpack.i.bf16 %v89_v25, %v83_v24  ;;  %1116 = vset.pattern.permute.xlu0 %v1261_v27  ;;  %p1216_p4 = scmp.ne.s32.totalorder %s822_s22, %s1215_s23  ;;  %p1221_p6 = scmp.lt.s32.totalorder %s1215_s23, %s1215_s23 }
  0x52   :  { %vm121_vm1 = vcmp.lt.s32.totalorder %v1441_v32, 19  ;;  %vm170_vm2 = vcmp.lt.s32.totalorder %v1441_v32, 18  ;;  %vm219_vm3 = vcmp.lt.s32.totalorder %v1441_v32, 17  ;;  %vm268_vm4 = vcmp.lt.s32.totalorder %v1441_v32, 1 }
  0x53   :  { %892 = vrot.lane.b32.xlu1 %v876_v11, %s1254_s13  ;;  %vm353_vm5 = vcmp.lt.s32.totalorder %v1441_v32, 127  ;;  %vm402_vm6 = vcmp.lt.s32.totalorder %v1441_v32, 111  ;;  %vm451_vm7 = vcmp.lt.s32.totalorder %v1441_v32, 110  ;;  %vm500_vm8 = vcmp.lt.s32.totalorder %v1441_v32, 109  ;;  %p1222_p7 = por %p1221_p6, %p1220_p5 }
  0x54   :  { %882 = vrot.lane.b32.xlu0 %v881_v12, %s1253_s3 }
  0x55   :  { %p1223_p8 = pnand %p1222_p7, %p1216_p4 }
  0x57   :  { %902 = vrot.lane.b32.xlu1 %v1360_v10, %s1254_s13 }
  0x58   :  { %897 = vrot.lane.b32.xlu0 %v881_v12, %s1254_s13 }
  0x5b   :  { %912 = vrot.lane.b32.xlu1 %v881_v12, %s1255_s14 }
  0x5c   :  { %907 = vrot.lane.b32.xlu0 %v876_v11, %s1255_s14 }
  0x5f   :  { %922 = vrot.lane.b32.xlu1 %v876_v11, %s1256_s15 }
  0x60   :  { %917 = vrot.lane.b32.xlu0 %v1360_v10, %s1255_s14 }
  0x63   :  { %932 = vrot.lane.b32.xlu1 %v1360_v10, %s1256_s15 }
  0x64   :  { %927 = vrot.lane.b32.xlu0 %v881_v12, %s1256_s15 }
  0x67   :  { %942 = vrot.lane.b32.xlu1 %v941_v19, %s1257_s16 }
  0x68   :  { %937 = vrot.lane.b32.xlu0 %v881_v12, %s1257_s16 }
  0x6b   :  { %952 = vrot.lane.b32.xlu1 %v881_v12, %s1258_s17 }
  0x6c   :  { %947 = vrot.lane.b32.xlu0 %v876_v11, %s1257_s16 }
  0x6f   :  { %962 = vrot.lane.b32.xlu1 %v876_v11, %s1258_s17 }
  0x70   :  { %957 = vrot.lane.b32.xlu0 %v941_v19, %s1258_s17 }
  0x73   :  { %972 = vrot.lane.b32.xlu1 %v941_v19, %s1259_s19 }
  0x74   :  { %967 = vrot.lane.b32.xlu0 %v881_v12, %s1259_s19 }
  0x77   :  { %982 = vrot.lane.b32.xlu1 %v881_v12, %s1260_s20 }
  0x78   :  { %977 = vrot.lane.b32.xlu0 %v876_v11, %s1259_s19 }
  0x7b   :  { %992 = vrot.lane.b32.xlu1 %v876_v11, %s1260_s20 }
  0x7c   :  { %987 = vrot.lane.b32.xlu0 %v941_v19, %s1260_s20 }
  0x7f   :  { %1002 = vrot.lane.b32.xlu1 %v1001_v23, %s1253_s3 }
  0x80   :  { %997 = vrot.lane.b32.xlu0 %v941_v19, %s1253_s3 }
  0x83   :  { %1012 = vrot.lane.b32.xlu1 %v941_v19, %s1254_s13 }
  0x84   :  { %1007 = vrot.lane.b32.xlu0 %v1006_v26, %s1253_s3 }
  0x87   :  { %1022 = vrot.lane.b32.xlu1 %v1006_v26, %s1254_s13 }
  0x88   :  { %1017 = vrot.lane.b32.xlu0 %v1001_v23, %s1254_s13 }
  0x8b   :  { %1032 = vrot.lane.b32.xlu1 %v1001_v23, %s1255_s14 }
  0x8c   :  { %1027 = vrot.lane.b32.xlu0 %v941_v19, %s1255_s14 }
  0x8f   :  { %1042 = vrot.lane.b32.xlu1 %v941_v19, %s1256_s15 }
  0x90   :  { %1037 = vrot.lane.b32.xlu0 %v1006_v26, %s1255_s14 }
  0x93   :  { %1052 = vrot.lane.b32.xlu1 %v1006_v26, %s1256_s15 }
  0x94   :  { %1047 = vrot.lane.b32.xlu0 %v1001_v23, %s1256_s15 }
  0x97   :  { %1062 = vrot.lane.b32.xlu1 %v1006_v26, %s1257_s16 }
  0x98   :  { %1057 = vrot.lane.b32.xlu0 %v1001_v23, %s1257_s16 }
  0x9b   :  { %1072 = vrot.lane.b32.xlu1 %v1001_v23, %s1258_s17 }
  0x9c   :  { %1067 = vrot.lane.b32.xlu0 %v1360_v10, %s1257_s16 }
  0x9f   :  { %1082 = vrot.lane.b32.xlu1 %v1360_v10, %s1258_s17 }
  0xa0   :  { %1077 = vrot.lane.b32.xlu0 %v1006_v26, %s1258_s17 }
  0xa3   :  { %1092 = vrot.lane.b32.xlu1 %v1006_v26, %s1259_s19 }
  0xa4   :  { %1087 = vrot.lane.b32.xlu0 %v1001_v23, %s1259_s19 }
  0xa7   :  { %1102 = vrot.lane.b32.xlu1 %v1001_v23, %s1260_s20 }
  0xa8   :  { %1097 = vrot.lane.b32.xlu0 %v1360_v10, %s1259_s19 }
  0xab   :  { %1112 = vrot.lane.b32.xlu1 %v1360_v10, %s1260_s20 }
  0xac   :  { %1107 = vrot.lane.b32.xlu0 %v1006_v26, %s1260_s20 }
  0xaf   :  { %586 = vperm.xlu1 %1117, %v94_v28  }
  0xb0   :  { %581 = vperm.xlu0 %1116, %v93_v29  }
  0xc1   :  { %v1438_v31 = vpop.permute.xlu1 %887 }
  0xc2   :  { %v878_v33 = vpop.permute.xlu0 %877  ;;  %v890_v34 = vunpack.i.h.bf16 %v1438_v31  ;;  %v889_v35 = vunpack.i.l.bf16 %v1438_v31 }
  0xc3   :  { %v880_v36 = vunpack.i.h.bf16 %v878_v33  ;;  %v879_v37 = vunpack.i.l.bf16 %v878_v33 }
  0xc5   :  { %v893_v38 = vpop.permute.xlu1 %892  ;;  %v132_v42 = vsel %vm121_vm1, %v889_v35, %v879_v37  ;;  %v133_v43 = vsel %vm121_vm1, %v890_v34, %v880_v36 }
  0xc6   :  { %v1446_v39 = vpop.permute.xlu0 %882  ;;  %v895_v44 = vunpack.i.h.bf16 %v893_v38  ;;  %v894_v48 = vunpack.i.l.bf16 %v893_v38  ;;  %v134_v55 = vpack.c.bf16 %v133_v43, %v132_v42 }
  0xc7   :  { %v885_v40 = vunpack.i.h.bf16 %v1446_v39  ;;  %v884_v41 = vunpack.i.l.bf16 %v1446_v39 }
  0xc9   :  { %v1458_v45 = vpop.permute.xlu1 %902  ;;  %v130_v46 = vsel %vm121_vm1, %v879_v37, %v884_v41  ;;  %v131_v47 = vsel %vm121_vm1, %v880_v36, %v885_v40 }
  0xca   :  { %v905_v49 = vunpack.i.h.bf16 %v1458_v45  ;;  %v904_v50 = vunpack.i.l.bf16 %v1458_v45  ;;  %v1471_v51 = vpop.permute.xlu0 %897  ;;  %v135_v52 = vpack.c.bf16 %v131_v47, %v130_v46 }
  0xcb   :  { %v900_v53 = vunpack.i.h.bf16 %v1471_v51  ;;  %v899_v54 = vunpack.i.l.bf16 %v1471_v51 }
  0xcc   :  { %602 = vmatprep.subr.bf16.mxu0 %v135_v52  ;;  %v181_v56 = vsel %vm170_vm2, %v904_v50, %v894_v48  ;;  %v182_v57 = vsel %vm170_vm2, %v905_v49, %v895_v44 }
  0xcd   :  { %603 = vmatpush1.bf16.msra.mxu0 %v134_v55  ;;  %v1483_v58 = vpop.permute.xlu1 %912  ;;  %v179_v59 = vsel %vm170_vm2, %v894_v48, %v899_v54  ;;  %v180_v60 = vsel %vm170_vm2, %v895_v44, %v900_v53  ;;  %v183_v61 = vpack.c.bf16 %v182_v57, %v181_v56 }
  0xce   :  { %v915_v62 = vunpack.i.h.bf16 %v1483_v58  ;;  %v914_v63 = vunpack.i.l.bf16 %v1483_v58  ;;  %v908_v3 = vpop.permute.xlu0 %907  ;;  %v184_v4 = vpack.c.bf16 %v180_v60, %v179_v59 }
  0xcf   :  { %v910_v6 = vunpack.i.h.bf16 %v908_v3  ;;  %v909_v7 = vunpack.i.l.bf16 %v908_v3 }
  0xd0   :  { %604 = vmatprep.subr.bf16.mxu0 %v184_v4 }
  0xd1   :  { %605 = vmatpush1.bf16.msra.mxu0 %v183_v61  ;;  %v923_v8 = vpop.permute.xlu1 %922  ;;  %v228_v9 = vsel %vm219_vm3, %v909_v7, %v914_v63  ;;  %v229_v10 = vsel %vm219_vm3, %v910_v6, %v915_v62 }
  0xd2   :  { %v1504_v11 = vpop.permute.xlu0 %917  ;;  %v233_v12 = vpack.c.bf16 %v229_v10, %v228_v9  ;;  %v925_v19 = vunpack.i.h.bf16 %v923_v8  ;;  %v924_v24 = vunpack.i.l.bf16 %v923_v8 }
  0xd3   :  { %v920_v16 = vunpack.i.h.bf16 %v1504_v11  ;;  %v919_v17 = vunpack.i.l.bf16 %v1504_v11 }
  0xd4   :  { %606 = vmatprep.subr.bf16.mxu0 %v233_v12 }
  0xd5   :  { %v1508_v20 = vpop.permute.xlu1 %932  ;;  %v230_v21 = vsel %vm219_vm3, %v919_v17, %v909_v7  ;;  %v231_v23 = vsel %vm219_vm3, %v920_v16, %v910_v6 }
  0xd6   :  { %v935_v25 = vunpack.i.h.bf16 %v1508_v20  ;;  %v934_v26 = vunpack.i.l.bf16 %v1508_v20  ;;  %v1521_v27 = vpop.permute.xlu0 %927  ;;  %v232_v28 = vpack.c.bf16 %v231_v23, %v230_v21 }
  0xd7   :  { %v930_v29 = vunpack.i.h.bf16 %v1521_v27  ;;  %v929_v33 = vunpack.i.l.bf16 %v1521_v27 }
  0xd8   :  { %607 = vmatpush1.bf16.msra.mxu0 %v232_v28  ;;  %v279_v36 = vsel %vm268_vm4, %v934_v26, %v924_v24  ;;  %v280_v37 = vsel %vm268_vm4, %v935_v25, %v925_v19 }
  0xd9   :  { %v1533_v38 = vpop.permute.xlu1 %942  ;;  %v277_v42 = vsel %vm268_vm4, %v924_v24, %v929_v33  ;;  %v278_v43 = vsel %vm268_vm4, %v925_v19, %v930_v29  ;;  %v281_v44 = vpack.c.bf16 %v280_v37, %v279_v36 }
  0xda   :  { %v945_v46 = vunpack.i.h.bf16 %v1533_v38  ;;  %v944_v47 = vunpack.i.l.bf16 %v1533_v38  ;;  %v938_v48 = vpop.permute.xlu0 %937  ;;  %v282_v52 = vpack.c.bf16 %v278_v43, %v277_v42 }
  0xdb   :  { %v940_v55 = vunpack.i.h.bf16 %v938_v48  ;;  %v939_v56 = vunpack.i.l.bf16 %v938_v48 }
  0xdc   :  { %608 = vmatprep.subr.bf16.mxu0 %v282_v52 }
  0xdd   :  { %609 = vmatpush1.bf16.msra.mxu0 %v281_v44  ;;  %v953_v57 = vpop.permute.xlu1 %952  ;;  %v360_v59 = vsel %vm353_vm5, %v939_v56, %v944_v47  ;;  %v361_v60 = vsel %vm353_vm5, %v940_v55, %v945_v46 }
  0xde   :  { %v1554_v61 = vpop.permute.xlu0 %947  ;;  %610 = vmatprep.subr.bf16.mxu0 %v836_v15  ;;  %v367_v6 = vpack.c.bf16 %v361_v60, %v360_v59  ;;  %v955_v7 = vunpack.i.h.bf16 %v953_v57  ;;  %v954_v10 = vunpack.i.l.bf16 %v953_v57 }
  0xdf   :  { %v950_v3 = vunpack.i.h.bf16 %v1554_v61  ;;  %v949_v4 = vunpack.i.l.bf16 %v1554_v61 }
  0xe1   :  { %611 = vmatpush1.bf16.msra.mxu0 %v835_v18  ;;  %v1564_v8 = vpop.permute.xlu1 %962  ;;  %v362_v9 = vsel %vm353_vm5, %v949_v4, %v939_v56  ;;  %v363_v15 = vsel %vm353_vm5, %v950_v3, %v940_v55 }
  0xe2   :  { %v965_v12 = vunpack.i.h.bf16 %v1564_v8  ;;  %v964_v2 = vunpack.i.l.bf16 %v1564_v8  ;;  %v1577_v5 = vpop.permute.xlu0 %957  ;;  %612 = vmatprep.subr.bf16.mxu0 %v367_v6  ;;  %v366_v18 = vpack.c.bf16 %v363_v15, %v362_v9 }
  0xe3   :  { %v960_v19 = vunpack.i.h.bf16 %v1577_v5  ;;  %v959_v21 = vunpack.i.l.bf16 %v1577_v5 }
  0xe4   :  { %v411_v23 = vsel %vm402_vm6, %v964_v2, %v954_v10  ;;  %v412_v24 = vsel %vm402_vm6, %v965_v12, %v955_v7 }
  0xe5   :  { %613 = vmatpush1.bf16.msra.mxu0 %v366_v18  ;;  %v1589_v28 = vpop.permute.xlu1 %972  ;;  %v409_v36 = vsel %vm402_vm6, %v954_v10, %v959_v21  ;;  %v410_v37 = vsel %vm402_vm6, %v955_v7, %v960_v19  ;;  %v415_v42 = vpack.c.bf16 %v412_v24, %v411_v23 }
  0xe6   :  { %v1879_v43 = vunpack.i.h.bf16 %v1589_v28  ;;  %v1881_v44 = vunpack.i.l.bf16 %v1589_v28  ;;  %v968_v48 = vpop.permute.xlu0 %967  ;;  %v416_v52 = vpack.c.bf16 %v410_v37, %v409_v36 }
  0xe7   :  { %v970_v55 = vunpack.i.h.bf16 %v968_v48  ;;  %v969_v56 = vunpack.i.l.bf16 %v968_v48 }
  0xe8   :  { %614 = vmatprep.subr.bf16.mxu0 %v416_v52 }
  0xe9   :  { %615 = vmatpush1.bf16.msra.mxu0 %v415_v42  ;;  %v983_v57 = vpop.permute.xlu1 %982  ;;  %v458_v59 = vsel %vm451_vm7, %v969_v56, %v1881_v44  ;;  %v459_v60 = vsel %vm451_vm7, %v970_v55, %v1879_v43 }
  0xea   :  { %v1610_v6 = vpop.permute.xlu0 %977  ;;  %v465_v7 = vpack.c.bf16 %v459_v60, %v458_v59  ;;  %v985_v10 = vunpack.i.h.bf16 %v983_v57  ;;  %v984_v36 = vunpack.i.l.bf16 %v983_v57 }
  0xeb   :  { %v1877_v9 = vunpack.i.h.bf16 %v1610_v6  ;;  %v1878_v15 = vunpack.i.l.bf16 %v1610_v6 }
  0xec   :  { %616 = vmatprep.subr.bf16.mxu0 %v465_v7 }
  0xed   :  { %v1614_v18 = vpop.permute.xlu1 %992  ;;  %v460_v23 = vsel %vm451_vm7, %v1878_v15, %v969_v56  ;;  %v461_v24 = vsel %vm451_vm7, %v1877_v9, %v970_v55 }
  0xee   :  { %v1880_v37 = vunpack.i.h.bf16 %v1614_v18  ;;  %v1876_v42 = vunpack.i.l.bf16 %v1614_v18  ;;  %v1627_v48 = vpop.permute.xlu0 %987  ;;  %v464_v52 = vpack.c.bf16 %v461_v24, %v460_v23 }
  0xef   :  { %v1883_v59 = vunpack.i.h.bf16 %v1627_v48  ;;  %v1882_v60 = vunpack.i.l.bf16 %v1627_v48 }
  0xf0   :  { %617 = vmatpush1.bf16.msra.mxu0 %v464_v52  ;;  %v509_v55 = vsel %vm500_vm8, %v1876_v42, %v984_v36  ;;  %v510_v56 = vsel %vm500_vm8, %v1880_v37, %v985_v10  ;;  %v1647_v37 = vld [vmem:[#allocation8] ss:$8 sps:$4 sm:$0xff]  }
  0xf1   :  { %v1003_v57 = vpop.permute.xlu1 %1002  ;;  %v507_v7 = vsel %vm500_vm8, %v984_v36, %v1882_v60  ;;  %v508_v23 = vsel %vm500_vm8, %v985_v10, %v1883_v59  ;;  %v513_v24 = vpack.c.bf16 %v510_v56, %v509_v55 }
  0xf2   :  { %v1005_v52 = vunpack.i.h.bf16 %v1003_v57  ;;  %v1004_v30 = vunpack.i.l.bf16 %v1003_v57  ;;  %v998_v42 = vpop.permute.xlu0 %997  ;;  %v514_v9 = vpack.c.bf16 %v508_v23, %v507_v7 }
  0xf3   :  { %v1000_v15 = vunpack.i.h.bf16 %v998_v42  ;;  %v999_v43 = vunpack.i.l.bf16 %v998_v42 }
  0xf4   :  { %618 = vmatprep.subr.bf16.mxu0 %v514_v9 }
  0xf5   :  { %619 = vmatpush1.bf16.msra.mxu0 %v513_v24  ;;  %v1013_v44 = vpop.permute.xlu1 %1012  ;;  %v126_v36 = vsel %vm121_vm1, %v999_v43, %v1004_v30  ;;  %v127_v60 = vsel %vm121_vm1, %v1000_v15, %v1005_v52  ;;  %v128_v10 = vsel %vm121_vm1, %v884_v41, %v999_v43  ;;  %v129_v9 = vsel %vm121_vm1, %v885_v40, %v1000_v15 }
  0xf6   :  { %v1008_v42 = vpop.permute.xlu0 %1007  ;;  %v137_v55 = vpack.c.bf16 %v127_v60, %v126_v36  ;;  %v136_v56 = vpack.c.bf16 %v129_v9, %v128_v10  ;;  %v1015_v23 = vunpack.i.h.bf16 %v1013_v44  ;;  %v1014_v24 = vunpack.i.l.bf16 %v1013_v44 }
  0xf7   :  { %v1010_v57 = vunpack.i.h.bf16 %v1008_v42  ;;  %v1009_v7 = vunpack.i.l.bf16 %v1008_v42 }
  0xf8   :  { %645 = vmatprep.subr.bf16.mxu1 %v137_v55  ;;  %635 = vmatmul.mubr.bf16.vlgmr.msra.gmra.mrb[0].mxu0 %v1647_v37 }
  0xf9   :  { %v125_v59 = vsel %vm121_vm1, %v1005_v52, %v1010_v57  ;;  %v124_v41 = vsel %vm121_vm1, %v1004_v30, %v1009_v7  ;;  %646 = vmatpush1.bf16.msra.mxu1 %v136_v56  ;;  %v1023_v39 = vpop.permute.xlu1 %1022  ;;  %v122_v40 = vsel %vm121_vm1, %v1009_v7, %v889_v35  ;;  %v123_v43 = vsel %vm121_vm1, %v1010_v57, %v890_v34 }
  0xfa   :  { %v138_v44 = vpack.c.bf16 %v125_v59, %v124_v41  ;;  %v1025_v15 = vunpack.i.h.bf16 %v1023_v39  ;;  %v1024_v60 = vunpack.i.l.bf16 %v1023_v39  ;;  %v1018_v36 = vpop.permute.xlu0 %1017  ;;  %v139_v52 = vpack.c.bf16 %v123_v43, %v122_v40  ;;  %845 = vmatprep.mubr.msk.bf16.mxu0 %vm598_vm0, %v1400_v22 }
  0xfb   :  { %v1020_v30 = vunpack.i.h.bf16 %v1018_v36  ;;  %v1019_v10 = vunpack.i.l.bf16 %v1018_v36  ;;  %v177_v34 = vsel %vm170_vm2, %v899_v54, %v1014_v24  ;;  %v178_v22 = vsel %vm170_vm2, %v900_v53, %v1015_v23 }
  0xfc   :  { %688 = vmatprep.subr.bf16.mxu0 %v139_v52  ;;  %v171_v35 = vsel %vm170_vm2, %v1024_v60, %v904_v50  ;;  %v172_v31 = vsel %vm170_vm2, %v1025_v15, %v905_v49  ;;  %v185_v41 = vpack.c.bf16 %v178_v22, %v177_v34 }
  0xfd   :  { %v174_v59 = vsel %vm170_vm2, %v1020_v30, %v1025_v15  ;;  %v173_v50 = vsel %vm170_vm2, %v1019_v10, %v1024_v60  ;;  %689 = vmatpush1.bf16.msra.mxu0 %v138_v44  ;;  %v1033_v45 = vpop.permute.xlu1 %1032  ;;  %v175_v49 = vsel %vm170_vm2, %v1014_v24, %v1019_v10  ;;  %v176_v9 = vsel %vm170_vm2, %v1015_v23, %v1020_v30 }
  0xfe   :  { %v187_v54 = vpack.c.bf16 %v174_v59, %v173_v50  ;;  %v1035_v42 = vunpack.i.h.bf16 %v1033_v45  ;;  %v1034_v51 = vunpack.i.l.bf16 %v1033_v45  ;;  %v1028_v55 = vpop.permute.xlu0 %1027  ;;  %v186_v56 = vpack.c.bf16 %v176_v9, %v175_v49 }
  0xff   :  { %v1030_v53 = vunpack.i.h.bf16 %v1028_v55  ;;  %v1029_v57 = vunpack.i.l.bf16 %v1028_v55  ;;  %v188_v7 = vpack.c.bf16 %v172_v31, %v171_v35 }
 0x100   :  { %647 = vmatprep.subr.bf16.mxu1 %v186_v56 }
 0x101   :  { %690 = vmatprep.subr.bf16.mxu0 %v188_v7  ;;  %648 = vmatpush1.bf16.msra.mxu1 %v185_v41  ;;  %v1043_v39 = vpop.permute.xlu1 %1042  ;;  %v224_v40 = vsel %vm219_vm3, %v1029_v57, %v1034_v51  ;;  %v225_v24 = vsel %vm219_vm3, %v1030_v53, %v1035_v42  ;;  %v226_v23 = vsel %vm219_vm3, %v914_v63, %v1029_v57 }
 0x102   :  { %691 = vmatpush1.bf16.msra.mxu0 %v187_v54  ;;  %v1038_v43 = vpop.permute.xlu0 %1037  ;;  %v235_v44 = vpack.c.bf16 %v225_v24, %v224_v40  ;;  %v227_v15 = vsel %vm219_vm3, %v915_v62, %v1030_v53  ;;  %v1045_v30 = vunpack.i.h.bf16 %v1043_v39  ;;  %v1044_v10 = vunpack.i.l.bf16 %v1043_v39 }
 0x103   :  { %v1040_v60 = vunpack.i.h.bf16 %v1038_v43  ;;  %v1039_v36 = vunpack.i.l.bf16 %v1038_v43  ;;  %v234_v52 = vpack.c.bf16 %v227_v15, %v226_v23  ;;  %v838_v54 = vcombine.high %v1372_v13, %v1374_v14 }
 0x104   :  { %649 = vmatprep.subr.bf16.mxu1 %v235_v44  ;;  %v837_v23 = vcombine.low %v1372_v13, %v1374_v14 }
 0x105   :  { %v223_v35 = vsel %vm219_vm3, %v1035_v42, %v1040_v60  ;;  %v222_v63 = vsel %vm219_vm3, %v1034_v51, %v1039_v36  ;;  %650 = vmatpush1.bf16.msra.mxu1 %v234_v52  ;;  %v1053_v31 = vpop.permute.xlu1 %1052  ;;  %v220_v58 = vsel %vm219_vm3, %v1039_v36, %v919_v17  ;;  %v221_v62 = vsel %vm219_vm3, %v1040_v60, %v920_v16 }
 0x106   :  { %v236_v34 = vpack.c.bf16 %v223_v35, %v222_v63  ;;  %v1055_v22 = vunpack.i.h.bf16 %v1053_v31  ;;  %v1054_v59 = vunpack.i.l.bf16 %v1053_v31  ;;  %v1048_v50 = vpop.permute.xlu0 %1047  ;;  %v237_v45 = vpack.c.bf16 %v221_v62, %v220_v58 }
 0x107   :  { %v1050_v49 = vunpack.i.h.bf16 %v1048_v50  ;;  %v1049_v9 = vunpack.i.l.bf16 %v1048_v50  ;;  %v840_v42 = vcombine.high %v1346_v0, %v1348_v1  ;;  %v275_v17 = vsel %vm268_vm4, %v929_v33, %v1044_v10 }
 0x108   :  { %692 = vmatprep.subr.bf16.mxu0 %v237_v45  ;;  %v269_v11 = vsel %vm268_vm4, %v1054_v59, %v934_v26  ;;  %v270_v16 = vsel %vm268_vm4, %v1055_v22, %v935_v25  ;;  %v276_v51 = vsel %vm268_vm4, %v930_v29, %v1045_v30  ;;  %v839_v60 = vcombine.low %v1346_v0, %v1348_v1 }
 0x109   :  { %v272_v55 = vsel %vm268_vm4, %v1050_v49, %v1055_v22  ;;  %v271_v26 = vsel %vm268_vm4, %v1049_v9, %v1054_v59  ;;  %693 = vmatpush1.bf16.msra.mxu0 %v236_v34  ;;  %v1063_v20 = vpop.permute.xlu1 %1062  ;;  %v273_v25 = vsel %vm268_vm4, %v1044_v10, %v1049_v9  ;;  %v274_v56 = vsel %vm268_vm4, %v1045_v30, %v1050_v49 }
 0x10a   :  { %v285_v33 = vpack.c.bf16 %v272_v55, %v271_v26  ;;  %v1065_v53 = vunpack.i.h.bf16 %v1063_v20  ;;  %v1064_v27 = vunpack.i.l.bf16 %v1063_v20  ;;  %v1058_v57 = vpop.permute.xlu0 %1057  ;;  %v284_v7 = vpack.c.bf16 %v274_v56, %v273_v25 }
 0x10b   :  { %v1060_v29 = vunpack.i.h.bf16 %v1058_v57  ;;  %v1059_v41 = vunpack.i.l.bf16 %v1058_v57  ;;  %v286_v39 = vpack.c.bf16 %v270_v16, %v269_v11  ;;  %v283_v40 = vpack.c.bf16 %v276_v51, %v275_v17 }
 0x10c   :  { %651 = vmatprep.subr.bf16.mxu1 %v284_v7  ;;  %v1884_v25 = vunpack.i.l.bf16 %v1589_v28 }
 0x10d   :  { %694 = vmatprep.subr.bf16.mxu0 %v286_v39  ;;  %652 = vmatpush1.bf16.msra.mxu1 %v283_v40  ;;  %v1073_v24 = vpop.permute.xlu1 %1072  ;;  %v356_v43 = vsel %vm353_vm5, %v1059_v41, %v1064_v27  ;;  %v357_v44 = vsel %vm353_vm5, %v1060_v29, %v1065_v53  ;;  %v358_v13 = vsel %vm353_vm5, %v944_v47, %v1059_v41 }
 0x10e   :  { %695 = vmatpush1.bf16.msra.mxu0 %v285_v33  ;;  %v1068_v15 = vpop.permute.xlu0 %1067  ;;  %653 = vmatprep.subr.bf16.mxu1 %v838_v54  ;;  %v1075_v14 = vunpack.i.h.bf16 %v1073_v24  ;;  %v1074_v30 = vunpack.i.l.bf16 %v1073_v24  ;;  %v369_v10 = vpack.c.bf16 %v357_v44, %v356_v43  ;;  %v359_v35 = vsel %vm353_vm5, %v945_v46, %v1060_v29 }
 0x10f   :  { %v1070_v36 = vunpack.i.h.bf16 %v1068_v15  ;;  %v1069_v52 = vunpack.i.l.bf16 %v1068_v15  ;;  %696 = vmatprep.subr.bf16.mxu0 %v840_v42  ;;  %v368_v50 = vpack.c.bf16 %v359_v35, %v358_v13  ;;  %v1886_v44 = vunpack.i.l.bf16 %v1610_v6 }
 0x110   :  { %v408_v45 = vsel %vm402_vm6, %v960_v19, %v1075_v14  ;;  %v1887_v15 = vunpack.i.h.bf16 %v1610_v6 }
 0x111   :  { %v355_v63 = vsel %vm353_vm5, %v1065_v53, %v1070_v36  ;;  %v354_v0 = vsel %vm353_vm5, %v1064_v27, %v1069_v52  ;;  %654 = vmatpush1.bf16.msra.mxu1 %v837_v23  ;;  %v1083_v1 = vpop.permute.xlu1 %1082  ;;  %v364_v47 = vsel %vm353_vm5, %v1069_v52, %v949_v4  ;;  %v365_v38 = vsel %vm353_vm5, %v1070_v36, %v950_v3 }
 0x112   :  { %v370_v31 = vpack.c.bf16 %v355_v63, %v354_v0  ;;  %697 = vmatpush1.bf16.msra.mxu0 %v839_v60  ;;  %v1085_v46 = vunpack.i.h.bf16 %v1083_v1  ;;  %v1084_v58 = vunpack.i.l.bf16 %v1083_v1  ;;  %v1078_v62 = vpop.permute.xlu0 %1077  ;;  %655 = vmatprep.subr.bf16.mxu1 %v369_v10  ;;  %v371_v34 = vpack.c.bf16 %v365_v38, %v364_v47 }
 0x113   :  { %v1080_v22 = vunpack.i.h.bf16 %v1078_v62  ;;  %v1079_v59 = vunpack.i.l.bf16 %v1078_v62  ;;  %v407_v3 = vsel %vm402_vm6, %v959_v21, %v1074_v30  ;;  %v1885_v27 = vunpack.i.h.bf16 %v1589_v28 }
 0x114   :  { %698 = vmatprep.subr.bf16.mxu0 %v371_v34  ;;  %v413_v4 = vsel %vm402_vm6, %v1084_v58, %v964_v2  ;;  %v414_v61 = vsel %vm402_vm6, %v1085_v46, %v965_v12  ;;  %v417_v51 = vpack.c.bf16 %v408_v45, %v407_v3  ;;  %v1888_v63 = vunpack.i.l.bf16 %v1614_v18  ;;  %v72_v45 = vld [vmem:[#allocation6] sm:$0x3f] }
 0x115   :  { %v404_v49 = vsel %vm402_vm6, %v1080_v22, %v1085_v46  ;;  %v403_v2 = vsel %vm402_vm6, %v1079_v59, %v1084_v58  ;;  %656 = vmatpush1.bf16.msra.mxu1 %v368_v50  ;;  %v1093_v8 = vpop.permute.xlu1 %1092  ;;  %v405_v12 = vsel %vm402_vm6, %v1074_v30, %v1079_v59  ;;  %v406_v9 = vsel %vm402_vm6, %v1075_v14, %v1080_v22 }
 0x116   :  { %v419_v21 = vpack.c.bf16 %v404_v49, %v403_v2  ;;  %699 = vmatpush1.bf16.msra.mxu0 %v370_v31  ;;  %v1095_v5 = vunpack.i.h.bf16 %v1093_v8  ;;  %v1094_v54 = vunpack.i.l.bf16 %v1093_v8  ;;  %v1088_v42 = vpop.permute.xlu0 %1087  ;;  %v418_v19 = vpack.c.bf16 %v406_v9, %v405_v12 }
 0x117   :  { %v1090_v11 = vunpack.i.h.bf16 %v1088_v42  ;;  %v1089_v16 = vunpack.i.l.bf16 %v1088_v42  ;;  %v420_v17 = vpack.c.bf16 %v414_v61, %v413_v4  ;;  %v1889_v1 = vunpack.i.h.bf16 %v1614_v18 }
 0x118   :  { %657 = vmatprep.subr.bf16.mxu1 %v418_v19  ;;  %v1890_v47 = vunpack.i.l.bf16 %v1627_v48  ;;  %v1891_v31 = vunpack.i.h.bf16 %v1627_v48  ;;  %v1892_v4 = vlaneseq }
 0x119   :  { %700 = vmatprep.subr.bf16.mxu0 %v420_v17  ;;  %658 = vmatpush1.bf16.msra.mxu1 %v417_v51  ;;  %v1103_v55 = vpop.permute.xlu1 %1102  ;;  %v454_v26 = vsel %vm451_vm7, %v1089_v16, %v1094_v54  ;;  %v455_v20 = vsel %vm451_vm7, %v1090_v11, %v1095_v5  ;;  %v456_v56 = vsel %vm451_vm7, %v1884_v25, %v1089_v16 }
 0x11a   :  { %701 = vmatpush1.bf16.msra.mxu0 %v419_v21  ;;  %v1098_v33 = vpop.permute.xlu0 %1097  ;;  %v467_v53 = vpack.c.bf16 %v455_v20, %v454_v26  ;;  %v457_v57 = vsel %vm451_vm7, %v1885_v27, %v1090_v11  ;;  %v1105_v39 = vunpack.i.h.bf16 %v1103_v55  ;;  %v1104_v40 = vunpack.i.l.bf16 %v1103_v55 }
 0x11b   :  { %v1100_v7 = vunpack.i.h.bf16 %v1098_v33  ;;  %v1099_v29 = vunpack.i.l.bf16 %v1098_v33  ;;  %v466_v41 = vpack.c.bf16 %v457_v57, %v456_v56  ;;  %v733_v61 = vshrl.u32 %v1892_v4, 7 }
 0x11c   :  { %659 = vmatprep.subr.bf16.mxu1 %v467_v53  ;;  %v505_v38 = vsel %vm500_vm8, %v1890_v47, %v1104_v40  ;;  %v506_v46 = vsel %vm500_vm8, %v1891_v31, %v1105_v39 }
 0x11d   :  { %v453_v24 = vsel %vm451_vm7, %v1095_v5, %v1100_v7  ;;  %v452_v23 = vsel %vm451_vm7, %v1094_v54, %v1099_v29  ;;  %660 = vmatpush1.bf16.msra.mxu1 %v466_v41  ;;  %v1113_v43 = vpop.permute.xlu1 %1112  ;;  %v462_v28 = vsel %vm451_vm7, %v1099_v29, %v1886_v44  ;;  %v463_v60 = vsel %vm451_vm7, %v1100_v7, %v1887_v15 }
 0x11e   :  { %v468_v36 = vpack.c.bf16 %v453_v24, %v452_v23  ;;  %v1115_v52 = vunpack.i.h.bf16 %v1113_v43  ;;  %v1114_v13 = vunpack.i.l.bf16 %v1113_v43  ;;  %v1108_v14 = vpop.permute.xlu0 %1107  ;;  %v469_v30 = vpack.c.bf16 %v463_v60, %v462_v28 }
 0x11f   :  { %v1110_v10 = vunpack.i.h.bf16 %v1108_v14  ;;  %v1109_v35 = vunpack.i.l.bf16 %v1108_v14  ;;  %v515_v48 = vpack.c.bf16 %v506_v46, %v505_v38  ;;  %v734_v3 = vsub.s32 0, %v733_v61 }
 0x120   :  { %702 = vmatprep.subr.bf16.mxu0 %v469_v30  ;;  %v511_v0 = vsel %vm500_vm8, %v1114_v13, %v1888_v63  ;;  %v512_v6 = vsel %vm500_vm8, %v1115_v52, %v1889_v1  ;;  %v738_v49 = vsub.s32 1, %v733_v61  ;;  %v742_v25 = vsub.s32 2, %v733_v61 }
 0x121   :  { %v502_v58 = vsel %vm500_vm8, %v1110_v10, %v1115_v52  ;;  %v501_v62 = vsel %vm500_vm8, %v1109_v35, %v1114_v13  ;;  %703 = vmatpush1.bf16.msra.mxu0 %v468_v36  ;;  %v503_v18 = vsel %vm500_vm8, %v1104_v40, %v1109_v35  ;;  %v504_v34 = vsel %vm500_vm8, %v1105_v39, %v1110_v10 }
 0x122   :  { %v517_v22 = vpack.c.bf16 %v502_v58, %v501_v62  ;;  %v516_v59 = vpack.c.bf16 %v504_v34, %v503_v18  ;;  %v518_v50 = vpack.c.bf16 %v512_v6, %v511_v0  ;;  %v735_v32 = vrot.slane %v72_v45, %v734_v3 }
 0x123   :  { %v739_v9 = vrot.slane %v72_v45, %v738_v49  ;;  %v750_v56 = vsub.s32 4, %v733_v61  ;;  %v746_v33 = vsub.s32 3, %v733_v61  ;;  %v754_v53 = vsub.s32 5, %v733_v61 }
 0x124   :  { %661 = vmatprep.subr.bf16.mxu1 %v516_v59  ;;  %704 = vmatprep.subr.bf16.mxu0 %v518_v50  ;;  %v743_v27 = vrot.slane %v72_v45, %v742_v25 }
 0x125   :  { %662 = vmatpush1.bf16.msra.mxu1 %v515_v48  ;;  %705 = vmatpush1.bf16.msra.mxu0 %v517_v22  ;;  %v751_v57 = vrot.slane %v72_v45, %v750_v56  ;;  %v747_v41 = vrot.slane %v72_v45, %v746_v33  ;;  %v755_v39 = vrot.slane %v72_v45, %v754_v53 }
 0x128   :  { %678 = vmatmul.mubr.bf16.vlgmr.msra.gmra.mrb[0].mxu1 %v1647_v37  ;;  %721 = vmatmul.mubr.bf16.vlgmr.msra.gmra.mrb[4].mxu0 %v1647_v37 }
 0x12e   :  { %v587_v12 = vpop.permute.xlu1 %586 }
 0x12f   :  { %v582_v2 = vpop.permute.xlu0 %581 }
 0x1cb   :  { %v636_v8 = vpop.f32.mrb[0].mxu0 }
 0x1cc   :  { %v638_v21 = vpop.f32.mrb[1].mxu0  ;;  %v637_v5 = vadd.f32 %v636_v8, %v582_v2 }
 0x1cd   :  { %v640_v54 = vpop.f32.mrb[2].mxu0  ;;  %v639_v42 = vadd.f32 %v638_v21, %v582_v2 }
 0x1ce   :  { %v641_v19 = vadd.f32 %v640_v54, %v587_v12  ;;  %v642_v11 = vpop.f32.mrb[3].mxu0  ;;  %v762_v16 = vmul.f32 %v735_v32, %v637_v5 }
 0x1cf   :  { %v643_v17 = vadd.f32 %v642_v11, %v587_v12  ;;  %v763_v51 = vmul.f32 %v739_v9, %v639_v42 }
 0x1d0   :  { %v768_v37 = vmul.f32 %v735_v32, %v641_v19 }
 0x1d1   :  { %v769_v55 = vmul.f32 %v739_v9, %v643_v17  ;;  %v852_v26 = vpack.c.bf16 %v763_v51, %v762_v16 }
 0x1d3   :  { %v855_v20 = vpack.c.bf16 %v769_v55, %v768_v37  ;;  %810 = vst [vmem:[#allocation11] sm:$0xff] %v852_v26 }
 0x1d5   :  { %813 = vst [vmem:[#allocation11 + $0x18] sm:$0xff] %v855_v20 }
 0x1fb   :  { %v679_v7 = vpop.f32.mrb[0].mxu1  ;;  %v722_v29 = vpop.f32.mrb[4].mxu0 }
 0x1fc   :  { %v680_v40 = vadd.f32 %v679_v7, %v582_v2  ;;  %v723_v24 = vadd.f32 %v722_v29, %v582_v2  ;;  %v681_v23 = vpop.f32.mrb[1].mxu1  ;;  %v724_v43 = vpop.f32.mrb[5].mxu0 }
 0x1fd   :  { %v682_v44 = vadd.f32 %v681_v23, %v582_v2  ;;  %v725_v28 = vadd.f32 %v724_v43, %v582_v2  ;;  %v683_v15 = vpop.f32.mrb[2].mxu1  ;;  %v726_v60 = vpop.f32.mrb[6].mxu0 }
 0x1fe   :  { %v764_v36 = vmul.f32 %v743_v27, %v680_v40  ;;  %v766_v52 = vmul.f32 %v751_v57, %v723_v24  ;;  %v684_v13 = vadd.f32 %v683_v15, %v587_v12  ;;  %v727_v14 = vadd.f32 %v726_v60, %v587_v12  ;;  %v685_v30 = vpop.f32.mrb[3].mxu1  ;;  %v728_v10 = vpop.f32.mrb[7].mxu0 }
 0x1ff   :  { %v765_v35 = vmul.f32 %v747_v41, %v682_v44  ;;  %v767_v63 = vmul.f32 %v755_v39, %v725_v28  ;;  %v686_v0 = vadd.f32 %v685_v30, %v587_v12  ;;  %v729_v1 = vadd.f32 %v728_v10, %v587_v12 }
 0x200   :  { %v770_v6 = vmul.f32 %v743_v27, %v684_v13  ;;  %v772_v47 = vmul.f32 %v751_v57, %v727_v14 }
 0x201   :  { %v853_v38 = vpack.c.bf16 %v765_v35, %v764_v36  ;;  %v854_v31 = vpack.c.bf16 %v767_v63, %v766_v52  ;;  %v771_v46 = vmul.f32 %v747_v41, %v686_v0  ;;  %v773_v58 = vmul.f32 %v755_v39, %v729_v1 }
 0x203   :  { %811 = vst [vmem:[#allocation11 + $0x8] sm:$0xff] %v853_v38  ;;  %812 = vst [vmem:[#allocation11 + $0x10] sm:$0xff] %v854_v31  ;;  %v856_v62 = vpack.c.bf16 %v771_v46, %v770_v6  ;;  %v857_v18 = vpack.c.bf16 %v773_v58, %v772_v47 }
 0x205   :  { %814 = vst [vmem:[#allocation11 + $0x20] sm:$0xff] %v856_v62  ;;  %815 = vst [vmem:[#allocation11 + $0x28] sm:$0xff] %v857_v18 }
 0x206   :  { %1226 = shalt.err (!%p1223_p8)
}
 0x207   :  { %s1227_s18 = scalar_lea.hbm %s1874_s4, 768 }
 0x208   :  { %p1228_p9 = scmp.ne.s32.totalorder %s1874_s4, %s1227_s18  ;;  %p1231_p10 = scmp.lt.u32.totalorder %s1227_s18, %s1874_s4 }
 0x20a   :  { %p1233_p11 = pnand %p1231_p10, %p1228_p9 }
 0x20c   :  { %1236 = shalt.err (!%p1233_p11)
}
 0x20d   :  { %827 = dma.vmem_to_hbm [thread:$0]  %s822_s22, 768, %s1874_s4, [#allocation5], %s1247_s1, %s1247_s1, %s1248_s11  }
 0x20e   :  { %1243 = dma.done.wait [#allocation5], 768  }
 0x20f   :  { %1244 = vsyncadd [#allocation5], 4294966528 }
 0x210   :  { %831 = vsyncpa [#allocation4], 1 }
 0x211   :  { %832 = vsyncpa [#allocation7], 1 }
 0x212   :  { %833 = vsyncpa [#allocation10], 1 }
 0x213   :  { %834 = vsyncpa [#allocation5], 1 }

// kernel: a_call__.6
= control target key start
LH: loop header
LB: loop body
LE: loop exit
PB: predicated region body
PF: predicated region fallthrough
CT: control target
= control target key end

     0   :  { %17 = vsyncpa [#allocation4], 0  ;;  %s3220_s0 = inlined_call_operand.hbm [shape: bf16[16,256], index: 0, kind: input, shape index: {}]   ;;  %s3221_s1 = inlined_call_operand.hbm [shape: f32[1,256], index: 1, kind: input, shape index: {}]   ;;  %s3222_s2 = inlined_call_operand.hbm [shape: bf16[16,144], index: 2, kind: input, shape index: {}]   ;;  %s3223_s3 = inlined_call_operand.hbm [shape: f32[16,1], index: 3, kind: input, shape index: {}]   ;;  %s3224_s4 = inlined_call_operand.hbm [shape: bf16[16,144], index: 4, kind: input, shape index: {}]   ;;  %s3225_s5 = inlined_call_operand.hbm [shape: f32[16,1], index: 5, kind: input, shape index: {}]   ;;  %s3226_s6 = inlined_call_operand.hbm [shape: bf16[16,144], index: 6, kind: input, shape index: {}]   ;;  %s3227_s7 = inlined_call_operand.hbm [shape: f32[16,1], index: 7, kind: input, shape index: {}]   ;;  %s3228_s8 = inlined_call_operand.hbm [shape: bf16[16,144], index: 8, kind: input, shape index: {}]   ;;  %s3229_s9 = inlined_call_operand.hbm [shape: f32[16,1], index: 9, kind: input, shape index: {}]   ;;  %s3230_s10 = inlined_call_operand.hbm [shape: bf16[32,144], index: 10, kind: input, shape index: {}]   ;;  %s3231_s11 = inlined_call_operand.hbm [shape: f32[32,1], index: 11, kind: input, shape index: {}]   ;;  %s3232_s12 = inlined_call_operand.hbm [shape: bf16[32,256], index: 12, kind: output, shape index: {}]  }
   0x1   :  { %18 = vsyncpa [#allocation7], 0 }
   0x2   :  { %19 = vsyncpa [#allocation10], 0 }
   0x3   :  { %20 = vsyncpa [#allocation13], 0 }
   0x4   :  { %21 = vsyncpa [#allocation16], 0 }
   0x5   :  { %22 = vsyncpa [#allocation19], 0 }
   0x6   :  { %23 = vsyncpa [#allocation22], 0 }
   0x7   :  { %24 = vsyncpa [#allocation5], 0  ;;  %s2374_s21 = smov [#allocation6]   ;;  %s2072_s25 = scalar_lea.hbm %s3221_s1, 32 }
   0x8   :  { %s43_s22 = sshll.u32 %s2374_s21, 4  ;;  %p2073_p0 = scmp.ne.s32.totalorder %s3221_s1, %s2072_s25  ;;  %s44_s22 = int_to_ptr.vmem [resolvable:$true] %s43_s22 }
   0x9   :  { %p2076_p1 = scmp.lt.u32.totalorder %s2072_s25, %s3221_s1 }
   0xb   :  { %p2078_p2 = pnand %p2076_p1, %p2073_p0 }
   0xd   :  { %2081 = shalt.err (!%p2078_p2)
}
   0xe   :  { %s2082_s30 = scalar_lea.vmem %s44_s22, 32  ;;  %p2087_p4 = scmp.lt.s32.totalorder %s44_s22, %s44_s22 }
   0xf   :  { %p2083_p3 = scmp.ne.s32.totalorder %s44_s22, %s2082_s30  ;;  %p2088_p5 = scmp.lt.s32.totalorder %s2082_s30, %s2082_s30 }
  0x11   :  { %p2089_p6 = por %p2088_p5, %p2087_p4 }
  0x13   :  { %p2090_p7 = pnand %p2089_p6, %p2083_p3 }
  0x15   :  { %2093 = shalt.err (!%p2090_p7)
}
  0x16   :  { %46 = dma.hbm_to_vmem [thread:$0]  %s3221_s1, 32, %s44_s22, [#allocation7]  }
  0x17   :  { %s2375_s15 = smov [#allocation9]   ;;  %s2376_s17 = smov [#allocation12]  }
  0x18   :  { %s64_s16 = sshll.u32 %s2375_s15, 4  ;;  %s88_s18 = sshll.u32 %s2376_s17, 4  ;;  %s65_s16 = int_to_ptr.vmem [resolvable:$true] %s64_s16  ;;  %s89_s18 = int_to_ptr.vmem [resolvable:$true] %s88_s18 }
  0x19   :  { %s2094_s21 = scalar_lea.hbm %s3223_s3, 256 }
  0x1a   :  { %p2095_p8 = scmp.ne.s32.totalorder %s3223_s3, %s2094_s21  ;;  %p2098_p9 = scmp.lt.u32.totalorder %s2094_s21, %s3223_s3 }
  0x1c   :  { %p2100_p10 = pnand %p2098_p9, %p2095_p8 }
  0x1e   :  { %2103 = shalt.err (!%p2100_p10)
}
  0x1f   :  { %s2104_s1 = scalar_lea.vmem %s65_s16, 256  ;;  %p2109_p12 = scmp.lt.s32.totalorder %s65_s16, %s65_s16 }
  0x20   :  { %p2105_p11 = scmp.ne.s32.totalorder %s65_s16, %s2104_s1  ;;  %p2110_p13 = scmp.lt.s32.totalorder %s2104_s1, %s2104_s1 }
  0x22   :  { %p2111_p0 = por %p2110_p13, %p2109_p12 }
  0x24   :  { %p2112_p1 = pnand %p2111_p0, %p2105_p11 }
  0x26   :  { %2115 = shalt.err (!%p2112_p1)
}
  0x27   :  { %s2377_s22 = smov 128   ;;  %s2378_s27 = smov 8  }
  0x28   :  { %70 = dma.hbm_to_vmem [thread:$0]  %s3223_s3, 256, %s65_s16, [#allocation10], %s2377_s22, %s2377_s22, %s2378_s27  }
  0x29   :  { %s2116_s14 = scalar_lea.hbm %s3225_s5, 256 }
  0x2a   :  { %p2117_p2 = scmp.ne.s32.totalorder %s3225_s5, %s2116_s14  ;;  %p2120_p3 = scmp.lt.u32.totalorder %s2116_s14, %s3225_s5 }
  0x2c   :  { %p2122_p4 = pnand %p2120_p3, %p2117_p2 }
  0x2e   :  { %2125 = shalt.err (!%p2122_p4)
}
  0x2f   :  { %s2126_s21 = scalar_lea.vmem %s89_s18, 256  ;;  %p2131_p6 = scmp.lt.s32.totalorder %s89_s18, %s89_s18 }
  0x30   :  { %p2127_p5 = scmp.ne.s32.totalorder %s89_s18, %s2126_s21  ;;  %p2132_p7 = scmp.lt.s32.totalorder %s2126_s21, %s2126_s21 }
  0x32   :  { %p2133_p8 = por %p2132_p7, %p2131_p6 }
  0x34   :  { %p2134_p9 = pnand %p2133_p8, %p2127_p5 }
  0x36   :  { %2137 = shalt.err (!%p2134_p9)
}
  0x37   :  { %94 = dma.hbm_to_vmem [thread:$0]  %s3225_s5, 256, %s89_s18, [#allocation13], %s2377_s22, %s2377_s22, %s2378_s27  }
  0x38   :  { %s2379_s23 = smov [#allocation15]   ;;  %s2380_s25 = smov [#allocation18]  }
  0x39   :  { %s112_s24 = sshll.u32 %s2379_s23, 4  ;;  %s136_s26 = sshll.u32 %s2380_s25, 4  ;;  %s113_s24 = int_to_ptr.vmem [resolvable:$true] %s112_s24  ;;  %s137_s26 = int_to_ptr.vmem [resolvable:$true] %s136_s26 }
  0x3a   :  { %s2138_s29 = scalar_lea.hbm %s3227_s7, 256 }
  0x3b   :  { %p2139_p10 = scmp.ne.s32.totalorder %s3227_s7, %s2138_s29  ;;  %p2142_p11 = scmp.lt.u32.totalorder %s2138_s29, %s3227_s7 }
  0x3d   :  { %p2144_p12 = pnand %p2142_p11, %p2139_p10 }
  0x3f   :  { %2147 = shalt.err (!%p2144_p12)
}
  0x40   :  { %s2148_s5 = scalar_lea.vmem %s113_s24, 256  ;;  %p2153_p0 = scmp.lt.s32.totalorder %s113_s24, %s113_s24 }
  0x41   :  { %p2149_p13 = scmp.ne.s32.totalorder %s113_s24, %s2148_s5  ;;  %p2154_p1 = scmp.lt.s32.totalorder %s2148_s5, %s2148_s5 }
  0x43   :  { %p2155_p2 = por %p2154_p1, %p2153_p0 }
  0x45   :  { %p2156_p3 = pnand %p2155_p2, %p2149_p13 }
  0x47   :  { %2159 = shalt.err (!%p2156_p3)
}
  0x48   :  { %118 = dma.hbm_to_vmem [thread:$0]  %s3227_s7, 256, %s113_s24, [#allocation16], %s2377_s22, %s2377_s22, %s2378_s27  }
  0x49   :  { %s2160_s21 = scalar_lea.hbm %s3229_s9, 256 }
  0x4a   :  { %p2161_p4 = scmp.ne.s32.totalorder %s3229_s9, %s2160_s21  ;;  %p2164_p5 = scmp.lt.u32.totalorder %s2160_s21, %s3229_s9 }
  0x4c   :  { %p2166_p6 = pnand %p2164_p5, %p2161_p4 }
  0x4e   :  { %2169 = shalt.err (!%p2166_p6)
}
  0x4f   :  { %s2170_s1 = scalar_lea.vmem %s137_s26, 256  ;;  %p2175_p8 = scmp.lt.s32.totalorder %s137_s26, %s137_s26 }
  0x50   :  { %p2171_p7 = scmp.ne.s32.totalorder %s137_s26, %s2170_s1  ;;  %p2176_p9 = scmp.lt.s32.totalorder %s2170_s1, %s2170_s1 }
  0x52   :  { %p2177_p10 = por %p2176_p9, %p2175_p8 }
  0x54   :  { %p2178_p11 = pnand %p2177_p10, %p2171_p7 }
  0x56   :  { %2181 = shalt.err (!%p2178_p11)
}
  0x57   :  { %142 = dma.hbm_to_vmem [thread:$0]  %s3229_s9, 256, %s137_s26, [#allocation19], %s2377_s22, %s2377_s22, %s2378_s27  }
  0x58   :  { %s2381_s28 = smov [#allocation3]   ;;  %s2382_s30 = smov [#allocation8]  }
  0x59   :  { %s30_s29 = sshll.u32 %s2381_s28, 4  ;;  %s52_s13 = sshll.u32 %s2382_s30, 4  ;;  %s31_s29 = int_to_ptr.vmem [resolvable:$true] %s30_s29  ;;  %s53_s13 = int_to_ptr.vmem [resolvable:$true] %s52_s13 }
  0x5a   :  { %s2182_s5 = scalar_lea.hbm %s3220_s0, 256 }
  0x5b   :  { %p2183_p12 = scmp.ne.s32.totalorder %s3220_s0, %s2182_s5  ;;  %p2186_p13 = scmp.lt.u32.totalorder %s2182_s5, %s3220_s0 }
  0x5d   :  { %p2188_p0 = pnand %p2186_p13, %p2183_p12 }
  0x5f   :  { %2191 = shalt.err (!%p2188_p0)
}
  0x60   :  { %s2192_s9 = scalar_lea.vmem %s31_s29, 256  ;;  %p2197_p2 = scmp.lt.s32.totalorder %s31_s29, %s31_s29 }
  0x61   :  { %p2193_p1 = scmp.ne.s32.totalorder %s31_s29, %s2192_s9  ;;  %p2198_p3 = scmp.lt.s32.totalorder %s2192_s9, %s2192_s9 }
  0x63   :  { %p2199_p4 = por %p2198_p3, %p2197_p2 }
  0x65   :  { %p2200_p5 = pnand %p2199_p4, %p2193_p1 }
  0x67   :  { %2203 = shalt.err (!%p2200_p5)
}
  0x68   :  { %36 = dma.hbm_to_vmem [thread:$0]  %s3220_s0, 256, %s31_s29, [#allocation4], %s2377_s22, %s2377_s22, %s2378_s27  }
  0x69   :  { %s2204_s23 = scalar_lea.hbm %s3222_s2, 256 }
  0x6a   :  { %p2205_p6 = scmp.ne.s32.totalorder %s3222_s2, %s2204_s23  ;;  %p2208_p7 = scmp.lt.u32.totalorder %s2204_s23, %s3222_s2 }
  0x6c   :  { %p2210_p8 = pnand %p2208_p7, %p2205_p6 }
  0x6e   :  { %2213 = shalt.err (!%p2210_p8)
}
  0x6f   :  { %s2214_s28 = scalar_lea.vmem %s53_s13, 256  ;;  %p2219_p10 = scmp.lt.s32.totalorder %s53_s13, %s53_s13 }
  0x70   :  { %p2215_p9 = scmp.ne.s32.totalorder %s53_s13, %s2214_s28  ;;  %p2220_p11 = scmp.lt.s32.totalorder %s2214_s28, %s2214_s28 }
  0x72   :  { %p2221_p12 = por %p2220_p11, %p2219_p10 }
  0x74   :  { %p2222_p13 = pnand %p2221_p12, %p2215_p9 }
  0x76   :  { %2225 = shalt.err (!%p2222_p13)
}
  0x77   :  { %58 = dma.hbm_to_vmem [thread:$0]  %s3222_s2, 256, %s53_s13, [#allocation7], %s2377_s22, %s2377_s22, %s2378_s27  }
  0x78   :  { %s2383_s30 = smov [#allocation11]   ;;  %s2384_s15 = smov [#allocation14]  }
  0x79   :  { %s76_s14 = sshll.u32 %s2383_s30, 4  ;;  %s100_s5 = sshll.u32 %s2384_s15, 4  ;;  %s77_s14 = int_to_ptr.vmem [resolvable:$true] %s76_s14  ;;  %s101_s5 = int_to_ptr.vmem [resolvable:$true] %s100_s5 }
  0x7a   :  { %s2226_s19 = scalar_lea.hbm %s3224_s4, 256 }
  0x7b   :  { %p2227_p0 = scmp.ne.s32.totalorder %s3224_s4, %s2226_s19  ;;  %p2230_p1 = scmp.lt.u32.totalorder %s2226_s19, %s3224_s4 }
  0x7d   :  { %p2232_p2 = pnand %p2230_p1, %p2227_p0 }
  0x7f   :  { %2235 = shalt.err (!%p2232_p2)
}
  0x80   :  { %s2236_s2 = scalar_lea.vmem %s77_s14, 256  ;;  %p2241_p4 = scmp.lt.s32.totalorder %s77_s14, %s77_s14 }
  0x81   :  { %p2237_p3 = scmp.ne.s32.totalorder %s77_s14, %s2236_s2  ;;  %p2242_p5 = scmp.lt.s32.totalorder %s2236_s2, %s2236_s2 }
  0x83   :  { %p2243_p6 = por %p2242_p5, %p2241_p4 }
  0x85   :  { %p2244_p7 = pnand %p2243_p6, %p2237_p3 }
  0x87   :  { %2247 = shalt.err (!%p2244_p7)
}
  0x88   :  { %82 = dma.hbm_to_vmem [thread:$0]  %s3224_s4, 256, %s77_s14, [#allocation10], %s2377_s22, %s2377_s22, %s2378_s27  }
  0x89   :  { %s2248_s25 = scalar_lea.hbm %s3226_s6, 256 }
  0x8a   :  { %p2249_p8 = scmp.ne.s32.totalorder %s3226_s6, %s2248_s25  ;;  %p2252_p9 = scmp.lt.u32.totalorder %s2248_s25, %s3226_s6 }
  0x8c   :  { %p2254_p10 = pnand %p2252_p9, %p2249_p8 }
  0x8e   :  { %2257 = shalt.err (!%p2254_p10)
}
  0x8f   :  { %s2258_s0 = scalar_lea.vmem %s101_s5, 256  ;;  %p2263_p12 = scmp.lt.s32.totalorder %s101_s5, %s101_s5 }
  0x90   :  { %p2259_p11 = scmp.ne.s32.totalorder %s101_s5, %s2258_s0  ;;  %p2264_p13 = scmp.lt.s32.totalorder %s2258_s0, %s2258_s0 }
  0x92   :  { %p2265_p0 = por %p2264_p13, %p2263_p12 }
  0x94   :  { %p2266_p1 = pnand %p2265_p0, %p2259_p11 }
  0x96   :  { %2269 = shalt.err (!%p2266_p1)
}
  0x97   :  { %106 = dma.hbm_to_vmem [thread:$0]  %s3226_s6, 256, %s101_s5, [#allocation13], %s2377_s22, %s2377_s22, %s2378_s27  }
  0x98   :  { %s2385_s30 = smov [#allocation17]   ;;  %s2386_s15 = smov [#allocation20]  }
  0x99   :  { %s124_s14 = sshll.u32 %s2385_s30, 4  ;;  %s148_s18 = sshll.u32 %s2386_s15, 4  ;;  %s125_s14 = int_to_ptr.vmem [resolvable:$true] %s124_s14  ;;  %s149_s18 = int_to_ptr.vmem [resolvable:$true] %s148_s18 }
  0x9a   :  { %s2270_s20 = scalar_lea.hbm %s3228_s8, 256 }
  0x9b   :  { %p2271_p2 = scmp.ne.s32.totalorder %s3228_s8, %s2270_s20  ;;  %p2274_p3 = scmp.lt.u32.totalorder %s2270_s20, %s3228_s8 }
  0x9d   :  { %p2276_p4 = pnand %p2274_p3, %p2271_p2 }
  0x9f   :  { %2279 = shalt.err (!%p2276_p4)
}
  0xa0   :  { %s2280_s6 = scalar_lea.vmem %s125_s14, 256  ;;  %p2285_p6 = scmp.lt.s32.totalorder %s125_s14, %s125_s14 }
  0xa1   :  { %p2281_p5 = scmp.ne.s32.totalorder %s125_s14, %s2280_s6  ;;  %p2286_p7 = scmp.lt.s32.totalorder %s2280_s6, %s2280_s6 }
  0xa3   :  { %p2287_p8 = por %p2286_p7, %p2285_p6 }
  0xa5   :  { %p2288_p9 = pnand %p2287_p8, %p2281_p5 }
  0xa7   :  { %2291 = shalt.err (!%p2288_p9)
}
  0xa8   :  { %130 = dma.hbm_to_vmem [thread:$0]  %s3228_s8, 256, %s125_s14, [#allocation16], %s2377_s22, %s2377_s22, %s2378_s27  }
  0xa9   :  { %s2292_s23 = scalar_lea.hbm %s3230_s10, 512 }
  0xaa   :  { %p2293_p10 = scmp.ne.s32.totalorder %s3230_s10, %s2292_s23  ;;  %p2296_p11 = scmp.lt.u32.totalorder %s2292_s23, %s3230_s10 }
  0xac   :  { %p2298_p12 = pnand %p2296_p11, %p2293_p10 }
  0xae   :  { %2301 = shalt.err (!%p2298_p12)
}
  0xaf   :  { %s2302_s28 = scalar_lea.vmem %s149_s18, 512  ;;  %p2307_p0 = scmp.lt.s32.totalorder %s149_s18, %s149_s18 }
  0xb0   :  { %p2303_p13 = scmp.ne.s32.totalorder %s149_s18, %s2302_s28  ;;  %p2308_p1 = scmp.lt.s32.totalorder %s2302_s28, %s2302_s28 }
  0xb2   :  { %p2309_p2 = por %p2308_p1, %p2307_p0 }
  0xb4   :  { %p2310_p3 = pnand %p2309_p2, %p2303_p13 }
  0xb6   :  { %2313 = shalt.err (!%p2310_p3)
}
  0xb7   :  { %154 = dma.hbm_to_vmem [thread:$0]  %s3230_s10, 512, %s149_s18, [#allocation19], %s2377_s22, %s2377_s22, %s2378_s27  }
  0xb8   :  { %s2387_s4 = smov [#allocation21]   ;;  %s2314_s15 = scalar_lea.hbm %s3231_s11, 512 }
  0xb9   :  { %s160_s29 = sshll.u32 %s2387_s4, 4  ;;  %p2315_p4 = scmp.ne.s32.totalorder %s3231_s11, %s2314_s15  ;;  %s161_s29 = int_to_ptr.vmem [resolvable:$true] %s160_s29 }
  0xba   :  { %p2318_p5 = scmp.lt.u32.totalorder %s2314_s15, %s3231_s11 }
  0xbc   :  { %p2320_p6 = pnand %p2318_p5, %p2315_p4 }
  0xbe   :  { %2323 = shalt.err (!%p2320_p6)
}
  0xbf   :  { %s2324_s26 = scalar_lea.vmem %s161_s29, 512  ;;  %p2329_p8 = scmp.lt.s32.totalorder %s161_s29, %s161_s29 }
  0xc0   :  { %p2325_p7 = scmp.ne.s32.totalorder %s161_s29, %s2324_s26  ;;  %p2330_p9 = scmp.lt.s32.totalorder %s2324_s26, %s2324_s26 }
  0xc2   :  { %p2331_p10 = por %p2330_p9, %p2329_p8 }
  0xc4   :  { %p2332_p11 = pnand %p2331_p10, %p2325_p7 }
  0xc6   :  { %2335 = shalt.err (!%p2332_p11)
}
  0xc7   :  { %166 = dma.hbm_to_vmem [thread:$0]  %s3231_s11, 512, %s161_s29, [#allocation22], %s2377_s22, %s2377_s22, %s2378_s27  }
  0xc8   :  { %2358 = dma.done.wait [#allocation4], 256  }
  0xc9   :  { %2359 = vsyncadd [#allocation4], 4294967040 }
  0xca   :  { %2360 = dma.done.wait [#allocation7], 288  }
  0xcb   :  { %2361 = vsyncadd [#allocation7], 4294967008 }
  0xcc   :  { %2362 = dma.done.wait [#allocation10], 512  }
  0xcd   :  { %2363 = vsyncadd [#allocation10], 4294966784 }
  0xce   :  { %2364 = dma.done.wait [#allocation13], 512  }
  0xcf   :  { %2365 = vsyncadd [#allocation13], 4294966784 }
  0xd0   :  { %2366 = dma.done.wait [#allocation16], 512  }
  0xd1   :  { %2367 = vsyncadd [#allocation16], 4294966784 }
  0xd2   :  { %2368 = dma.done.wait [#allocation19], 768  }
  0xd3   :  { %2369 = vsyncadd [#allocation19], 4294966528 }
  0xd4   :  { %2370 = dma.done.wait [#allocation22], 512  }
  0xd5   :  { %2371 = vsyncadd [#allocation22], 4294966784  ;;  %v2639_v0 = vld [vmem:[#allocation3] sm:$0xff]  ;;  %v2641_v1 = vld [vmem:[#allocation3 + $0x8] sm:$0xff]  ;;  %s2388_s11 = smov 9   ;;  %s2389_s21 = smov 10   ;;  %v223_v14 = vlaneseq }
  0xd6   :  { %v207_v2 = vunpack.c.l.bf16 %v2639_v0  ;;  %v209_v3 = vunpack.c.l.bf16 %v2641_v1  ;;  %v208_v4 = vunpack.c.h.bf16 %v2639_v0  ;;  %v210_v5 = vunpack.c.h.bf16 %v2641_v1  ;;  %s2390_s2 = smov 1   ;;  %s2391_s6 = smov 127   ;;  %v2024_v10 = vld [vmem:[#allocation8 + $0x4] ss:$8 sps:$4 sm:$0xff]   ;;  %v213_v11 = vld [vmem:[#allocation9] sm:$0xff]  ;;  %v214_v12 = vld [vmem:[#allocation9 + $0x8] sm:$0xff] }
  0xd7   :  { %v1552_v8 = vcombine.high %v2639_v0, %v2641_v1  ;;  %v1551_v9 = vcombine.low %v2639_v0, %v2641_v1  ;;  %s2392_s5 = smov 120   ;;  %s2393_s13 = smov 119   ;;  %vm402_vm0 = vcmask 130048   ;;  %v2395_v13 = vmov 0   ;;  %v2030_v0 = vld [vmem:[#allocation14 + $0x4] ss:$8 sps:$4 sm:$0xff]  }
  0xd8   :  { %v1628_v6 = vpack.i.bf16 %v209_v3, %v207_v2  ;;  %v1633_v7 = vpack.i.bf16 %v210_v5, %v208_v4  ;;  %s2394_s3 = smov 118   ;;  %1555 = vmatprep.mubr.msk.bf16.mxu1 %vm402_vm0, %v2024_v10  ;;  %1698 = vset.pattern.permute.xlu0 %v2395_v13  ;;  %v2677_v15 = vand.u32 127, %v223_v14  ;;  %v741_v1 = vld [vmem:[#allocation15] sm:$0xff]  ;;  %s2396_s16 = smov [#allocation23]  }
  0xd9   :  { %1699 = vset.pattern.permute.xlu1 %v2395_v13  ;;  %1569 = vmatprep.mubr.msk.bf16.mxu0 %vm402_vm0, %v2030_v0  ;;  %s1533_s23 = sshll.u32 %s2396_s16, 4  ;;  %s1534_s23 = int_to_ptr.vmem [resolvable:$true] %s1533_s23 }
  0xda   :  { %1629 = vrot.lane.b32.xlu1 %v1628_v6, %s2388_s11  ;;  %1619 = vrot.lane.b32.xlu0 %v1628_v6, %s2389_s21  ;;  %vm225_vm1 = vcmp.lt.s32.totalorder %v2677_v15, 10  ;;  %vm242_vm2 = vcmp.lt.s32.totalorder %v2677_v15, 9  ;;  %vm259_vm3 = vcmp.lt.s32.totalorder %v2677_v15, 8  ;;  %vm276_vm4 = vcmp.lt.s32.totalorder %v2677_v15, 1  ;;  %s2336_s25 = scalar_lea.vmem %s1534_s23, 512  ;;  %p2341_p13 = scmp.lt.s32.totalorder %s1534_s23, %s1534_s23 }
  0xdb   :  { %vm305_vm5 = vcmp.lt.s32.totalorder %v2677_v15, 127  ;;  %vm322_vm6 = vcmp.lt.s32.totalorder %v2677_v15, 120  ;;  %vm339_vm7 = vcmp.lt.s32.totalorder %v2677_v15, 119  ;;  %vm356_vm8 = vcmp.lt.s32.totalorder %v2677_v15, 118  ;;  %p2337_p12 = scmp.ne.s32.totalorder %s1534_s23, %s2336_s25  ;;  %p2342_p0 = scmp.lt.s32.totalorder %s2336_s25, %s2336_s25 }
  0xdd   :  { %p2343_p1 = por %p2342_p0, %p2341_p13 }
  0xde   :  { %1634 = vrot.lane.b32.xlu1 %v1633_v7, %s2388_s11  ;;  %1624 = vrot.lane.b32.xlu0 %v1633_v7, %s2389_s21 }
  0xdf   :  { %p2344_p2 = pnand %p2343_p1, %p2337_p12 }
  0xe2   :  { %1644 = vrot.lane.b32.xlu1 %v1633_v7, %s2378_s27  ;;  %1639 = vrot.lane.b32.xlu0 %v1628_v6, %s2378_s27 }
  0xe6   :  { %1654 = vrot.lane.b32.xlu1 %v1633_v7, %s2390_s2  ;;  %1649 = vrot.lane.b32.xlu0 %v1628_v6, %s2390_s2 }
  0xea   :  { %1664 = vrot.lane.b32.xlu1 %v1633_v7, %s2391_s6  ;;  %1659 = vrot.lane.b32.xlu0 %v1628_v6, %s2391_s6 }
  0xee   :  { %1674 = vrot.lane.b32.xlu1 %v1633_v7, %s2392_s5  ;;  %1669 = vrot.lane.b32.xlu0 %v1628_v6, %s2392_s5 }
  0xf2   :  { %1684 = vrot.lane.b32.xlu1 %v1633_v7, %s2393_s13  ;;  %1679 = vrot.lane.b32.xlu0 %v1628_v6, %s2393_s13 }
  0xf6   :  { %1694 = vrot.lane.b32.xlu1 %v1633_v7, %s2394_s3  ;;  %1689 = vrot.lane.b32.xlu0 %v1628_v6, %s2394_s3 }
  0xfa   :  { %385 = vperm.xlu0 %1698, %v213_v11   ;;  %390 = vperm.xlu1 %1699, %v214_v12  }
 0x14c   :  { %v1630_v16 = vpop.permute.xlu1 %1629  ;;  %v1620_v17 = vpop.permute.xlu0 %1619 }
 0x14d   :  { %v1632_v18 = vunpack.i.h.bf16 %v1630_v16  ;;  %v1631_v19 = vunpack.i.l.bf16 %v1630_v16  ;;  %v1622_v20 = vunpack.i.h.bf16 %v1620_v17  ;;  %v1621_v21 = vunpack.i.l.bf16 %v1620_v17 }
 0x150   :  { %v1635_v22 = vpop.permute.xlu1 %1634  ;;  %v1625_v23 = vpop.permute.xlu0 %1624 }
 0x151   :  { %v1637_v24 = vunpack.i.h.bf16 %v1635_v22  ;;  %v1636_v25 = vunpack.i.l.bf16 %v1635_v22  ;;  %v1627_v26 = vunpack.i.h.bf16 %v1625_v23  ;;  %v1626_v27 = vunpack.i.l.bf16 %v1625_v23 }
 0x153   :  { %v226_v28 = vsel %vm225_vm1, %v1621_v21, %v1626_v27  ;;  %v227_v29 = vsel %vm225_vm1, %v1622_v20, %v1627_v26  ;;  %v228_v30 = vsel %vm225_vm1, %v1626_v27, %v1621_v21  ;;  %v229_v31 = vsel %vm225_vm1, %v1627_v26, %v1622_v20 }
 0x154   :  { %v231_v32 = vpack.c.bf16 %v227_v29, %v226_v28  ;;  %v230_v33 = vpack.c.bf16 %v229_v31, %v228_v30  ;;  %v1645_v34 = vpop.permute.xlu1 %1644  ;;  %v1640_v35 = vpop.permute.xlu0 %1639  ;;  %v243_v36 = vsel %vm242_vm2, %v1631_v19, %v1636_v25  ;;  %v244_v37 = vsel %vm242_vm2, %v1632_v18, %v1637_v24 }
 0x155   :  { %v1647_v38 = vunpack.i.h.bf16 %v1645_v34  ;;  %v1646_v39 = vunpack.i.l.bf16 %v1645_v34  ;;  %v1642_v40 = vunpack.i.h.bf16 %v1640_v35  ;;  %v1641_v41 = vunpack.i.l.bf16 %v1640_v35 }
 0x156   :  { %406 = vmatprep.subr.bf16.mxu1 %v231_v32  ;;  %v248_v42 = vpack.c.bf16 %v244_v37, %v243_v36  ;;  %v245_v43 = vsel %vm242_vm2, %v1636_v25, %v1631_v19  ;;  %v246_v44 = vsel %vm242_vm2, %v1637_v24, %v1632_v18 }
 0x157   :  { %407 = vmatpush1.bf16.msra.mxu1 %v230_v33  ;;  %v260_v45 = vsel %vm259_vm3, %v1641_v41, %v1646_v39  ;;  %v261_v46 = vsel %vm259_vm3, %v1642_v40, %v1647_v38  ;;  %v247_v47 = vpack.c.bf16 %v246_v44, %v245_v43  ;;  %v262_v51 = vsel %vm259_vm3, %v1646_v39, %v1641_v41 }
 0x158   :  { %408 = vmatprep.subr.bf16.mxu1 %v248_v42  ;;  %v1655_v48 = vpop.permute.xlu1 %1654  ;;  %v1650_v49 = vpop.permute.xlu0 %1649  ;;  %v265_v50 = vpack.c.bf16 %v261_v46, %v260_v45  ;;  %v263_v52 = vsel %vm259_vm3, %v1647_v38, %v1642_v40 }
 0x159   :  { %v1657_v53 = vunpack.i.h.bf16 %v1655_v48  ;;  %v1656_v54 = vunpack.i.l.bf16 %v1655_v48  ;;  %v1652_v55 = vunpack.i.h.bf16 %v1650_v49  ;;  %v1651_v56 = vunpack.i.l.bf16 %v1650_v49 }
 0x15a   :  { %v264_v57 = vpack.c.bf16 %v263_v52, %v262_v51 }
 0x15b   :  { %409 = vmatpush1.bf16.msra.mxu1 %v247_v47  ;;  %v277_v58 = vsel %vm276_vm4, %v1651_v56, %v1656_v54  ;;  %v278_v59 = vsel %vm276_vm4, %v1652_v55, %v1657_v53  ;;  %v279_v61 = vsel %vm276_vm4, %v1656_v54, %v1651_v56  ;;  %v280_v62 = vsel %vm276_vm4, %v1657_v53, %v1652_v55  ;;  %v2022_v56 = vld [vmem:[#allocation8] ss:$8 sps:$4 sm:$0xff]  }
 0x15c   :  { %410 = vmatprep.subr.bf16.mxu1 %v265_v50  ;;  %v282_v60 = vpack.c.bf16 %v278_v59, %v277_v58  ;;  %v1665_v63 = vpop.permute.xlu1 %1664  ;;  %v1660_v6 = vpop.permute.xlu0 %1659  ;;  %v281_v13 = vpack.c.bf16 %v280_v62, %v279_v61 }
 0x15d   :  { %v1667_v7 = vunpack.i.h.bf16 %v1665_v63  ;;  %v1666_v10 = vunpack.i.l.bf16 %v1665_v63  ;;  %v1662_v11 = vunpack.i.h.bf16 %v1660_v6  ;;  %v1661_v12 = vunpack.i.l.bf16 %v1660_v6 }
 0x15f   :  { %411 = vmatpush1.bf16.msra.mxu1 %v264_v57  ;;  %v308_v18 = vsel %vm305_vm5, %v1666_v10, %v1661_v12  ;;  %v309_v19 = vsel %vm305_vm5, %v1667_v7, %v1662_v11  ;;  %v306_v24 = vsel %vm305_vm5, %v1661_v12, %v1666_v10  ;;  %v307_v26 = vsel %vm305_vm5, %v1662_v11, %v1667_v7 }
 0x160   :  { %412 = vmatprep.subr.bf16.mxu1 %v282_v60  ;;  %v1675_v16 = vpop.permute.xlu1 %1674  ;;  %v1670_v17 = vpop.permute.xlu0 %1669  ;;  %v311_v25 = vpack.c.bf16 %v309_v19, %v308_v18 }
 0x161   :  { %v1677_v20 = vunpack.i.h.bf16 %v1675_v16  ;;  %v1676_v21 = vunpack.i.l.bf16 %v1675_v16  ;;  %v1672_v22 = vunpack.i.h.bf16 %v1670_v17  ;;  %v1671_v23 = vunpack.i.l.bf16 %v1670_v17 }
 0x163   :  { %413 = vmatpush1.bf16.msra.mxu1 %v281_v13  ;;  %v325_v29 = vsel %vm322_vm6, %v1676_v21, %v1671_v23  ;;  %v326_v30 = vsel %vm322_vm6, %v1677_v20, %v1672_v22  ;;  %v323_v35 = vsel %vm322_vm6, %v1671_v23, %v1676_v21  ;;  %v324_v37 = vsel %vm322_vm6, %v1672_v22, %v1677_v20  ;;  %v204_v23 = vld [vmem:[#allocation6] sm:$0x3] }
 0x164   :  { %414 = vmatprep.subr.bf16.mxu1 %v1552_v8  ;;  %v1685_v27 = vpop.permute.xlu1 %1684  ;;  %v1680_v28 = vpop.permute.xlu0 %1679  ;;  %v310_v8 = vpack.c.bf16 %v307_v26, %v306_v24  ;;  %v328_v36 = vpack.c.bf16 %v326_v30, %v325_v29  ;;  %v327_v45 = vpack.c.bf16 %v324_v37, %v323_v35  ;;  %v475_v21 = vshrl.u32 %v223_v14, 7 }
 0x165   :  { %v1687_v31 = vunpack.i.h.bf16 %v1685_v27  ;;  %v1686_v32 = vunpack.i.l.bf16 %v1685_v27  ;;  %v1682_v33 = vunpack.i.h.bf16 %v1680_v28  ;;  %v1681_v34 = vunpack.i.l.bf16 %v1680_v28 }
 0x166   :  { %v476_v22 = vsub.s32 0, %v475_v21  ;;  %v480_v24 = vsub.s32 1, %v475_v21 }
 0x167   :  { %415 = vmatpush1.bf16.msra.mxu1 %v1551_v9  ;;  %v342_v40 = vsel %vm339_vm7, %v1686_v32, %v1681_v34  ;;  %v343_v41 = vsel %vm339_vm7, %v1687_v31, %v1682_v33  ;;  %v340_v47 = vsel %vm339_vm7, %v1681_v34, %v1686_v32  ;;  %v341_v48 = vsel %vm339_vm7, %v1682_v33, %v1687_v31 }
 0x168   :  { %416 = vmatprep.subr.bf16.mxu1 %v311_v25  ;;  %v1695_v38 = vpop.permute.xlu1 %1694  ;;  %v1690_v39 = vpop.permute.xlu0 %1689  ;;  %v345_v46 = vpack.c.bf16 %v343_v41, %v342_v40  ;;  %v344_v51 = vpack.c.bf16 %v341_v48, %v340_v47  ;;  %v2758_v29 = vrot.slane %v204_v23, %v476_v22  ;;  %v2760_v33 = vrot.slane %v204_v23, %v480_v24 }
 0x169   :  { %v1697_v42 = vunpack.i.h.bf16 %v1695_v38  ;;  %v1696_v43 = vunpack.i.l.bf16 %v1695_v38  ;;  %v1692_v9 = vunpack.i.h.bf16 %v1690_v39  ;;  %v1691_v44 = vunpack.i.l.bf16 %v1690_v39 }
 0x16b   :  { %417 = vmatpush1.bf16.msra.mxu1 %v310_v8  ;;  %v359_v49 = vsel %vm356_vm8, %v1696_v43, %v1691_v44  ;;  %v360_v50 = vsel %vm356_vm8, %v1697_v42, %v1692_v9  ;;  %v357_v53 = vsel %vm356_vm8, %v1691_v44, %v1696_v43  ;;  %v358_v54 = vsel %vm356_vm8, %v1692_v9, %v1697_v42  ;;  %v2025_v44 = vld [vmem:[#allocation11 + $0x4] ss:$8 sps:$4 sm:$0xff]  }
 0x16c   :  { %418 = vmatprep.subr.bf16.mxu1 %v328_v36  ;;  %v362_v52 = vpack.c.bf16 %v360_v50, %v359_v49  ;;  %v361_v55 = vpack.c.bf16 %v358_v54, %v357_v53 }
 0x16f   :  { %419 = vmatpush1.bf16.msra.mxu1 %v327_v45  ;;  %v490_v45 = vld [vmem:[#allocation12] sm:$0xff] }
 0x170   :  { %420 = vmatprep.subr.bf16.mxu1 %v345_v46  ;;  %v491_v46 = vld [vmem:[#allocation12 + $0x8] sm:$0xff] }
 0x173   :  { %421 = vmatpush1.bf16.msra.mxu1 %v344_v51 }
 0x174   :  { %422 = vmatprep.subr.bf16.mxu1 %v362_v52 }
 0x177   :  { %423 = vmatpush1.bf16.msra.mxu1 %v361_v55 }
 0x179   :  { %v386_v57 = vpop.permute.xlu0 %385  ;;  %v391_v59 = vpop.permute.xlu1 %390 }
 0x17a   :  { %439 = vmatmul.mubr.bf16.vlgmr.msra.gmra.mrb[0].mxu1 %v2022_v56 }
 0x17b   :  { %1562 = vmatprep.mubr.msk.bf16.mxu1 %vm402_vm0, %v2025_v44 }
 0x24d   :  { %v440_v58 = vpop.f32.mrb[0].mxu1 }
 0x24e   :  { %v441_v60 = vadd.f32 %v440_v58, %v386_v57  ;;  %v442_v61 = vpop.f32.mrb[1].mxu1 }
 0x24f   :  { %v443_v62 = vadd.f32 %v442_v61, %v386_v57  ;;  %v444_v63 = vpop.f32.mrb[2].mxu1 }
 0x250   :  { %v453_v6 = vmin.f32 %v441_v60, 0.0  ;;  %v445_v7 = vadd.f32 %v444_v63, %v391_v59  ;;  %v446_v10 = vpop.f32.mrb[3].mxu1  ;;  %vm449_vm9 = vcmp.gt.f32.partialorder %v441_v60, 0.0 }
 0x251   :  { %v454_v11 = vmin.f32 %v443_v62, 0.0  ;;  %v447_v12 = vadd.f32 %v446_v10, %v391_v59  ;;  %vm450_vm10 = vcmp.gt.f32.partialorder %v443_v62, 0.0 }
 0x252   :  { %v457_v13 = vmul.f32 1.442695, %v453_v6  ;;  %v455_v16 = vmin.f32 %v445_v7, 0.0  ;;  %vm451_vm11 = vcmp.gt.f32.partialorder %v445_v7, 0.0 }
 0x253   :  { %v459_v17 = vmul.f32 1.442695, %v454_v11  ;;  %v456_v18 = vmin.f32 %v447_v12, 0.0  ;;  %vm452_vm12 = vcmp.gt.f32.partialorder %v447_v12, 0.0 }
 0x254   :  { %2040 = vpow2.f32 %v457_v13  ;;  %v461_v19 = vmul.f32 1.442695, %v455_v16 }
 0x255   :  { %2042 = vpow2.f32 %v459_v17  ;;  %v463_v20 = vmul.f32 1.442695, %v456_v18 }
 0x256   :  { %2044 = vpow2.f32 %v461_v19 }
 0x257   :  { %2046 = vpow2.f32 %v463_v20 }
 0x25e   :  { %v2041_v25 = vpop.eup %2040 }
 0x25f   :  { %v2043_v26 = vpop.eup %2042  ;;  %v1556_v27 = vadd.f32 -1.0, %v2041_v25 }
 0x260   :  { %v2045_v28 = vpop.eup %2044  ;;  %v1557_v30 = vadd.f32 -1.0, %v2043_v26 }
 0x261   :  { %v2047_v31 = vpop.eup %2046  ;;  %v469_v32 = vsel %vm449_vm9, %v441_v60, %v1556_v27  ;;  %v1558_v34 = vadd.f32 -1.0, %v2045_v28 }
 0x262   :  { %v470_v8 = vsel %vm450_vm10, %v443_v62, %v1557_v30  ;;  %v1559_v14 = vadd.f32 -1.0, %v2047_v31  ;;  %v2763_v36 = vmul.f32 %v2758_v29, %v469_v32 }
 0x263   :  { %v471_v35 = vsel %vm451_vm11, %v445_v7, %v1558_v34  ;;  %v2769_v39 = vmul.f32 %v2760_v33, %v470_v8 }
 0x264   :  { %v2766_v37 = vmul.f32 %v2758_v29, %v471_v35  ;;  %v472_v38 = vsel %vm452_vm12, %v447_v12, %v1559_v14 }
 0x265   :  { %v2772_v40 = vmul.f32 %v2760_v33, %v472_v38 }
 0x266   :  { %v1700_v41 = vpack.i.bf16 %v2766_v37, %v2763_v36  ;;  %v556_v9 = vpack.c.bf16 %v2766_v37, %v2763_v36 }
 0x267   :  { %v1720_v42 = vpack.i.bf16 %v2772_v40, %v2769_v39  ;;  %v557_v43 = vpack.c.bf16 %v2772_v40, %v2769_v39 }
 0x268   :  { %1701 = vrot.lane.b32.xlu1 %v1700_v41, %s2389_s21 }
 0x269   :  { %1721 = vrot.lane.b32.xlu0 %v1720_v42, %s2389_s21 }
 0x26c   :  { %1706 = vrot.lane.b32.xlu1 %v1700_v41, %s2388_s11 }
 0x26d   :  { %1726 = vrot.lane.b32.xlu0 %v1720_v42, %s2388_s11 }
 0x270   :  { %1711 = vrot.lane.b32.xlu1 %v1700_v41, %s2378_s27 }
 0x271   :  { %1731 = vrot.lane.b32.xlu0 %v1720_v42, %s2378_s27 }
 0x274   :  { %1716 = vrot.lane.b32.xlu1 %v1700_v41, %s2390_s2 }
 0x275   :  { %1736 = vrot.lane.b32.xlu0 %v1720_v42, %s2390_s2 }
 0x278   :  { %1741 = vrot.lane.b32.xlu1 %v1700_v41, %s2391_s6 }
 0x279   :  { %1761 = vrot.lane.b32.xlu0 %v1720_v42, %s2391_s6 }
 0x27c   :  { %1746 = vrot.lane.b32.xlu1 %v1700_v41, %s2392_s5 }
 0x27d   :  { %1766 = vrot.lane.b32.xlu0 %v1720_v42, %s2392_s5 }
 0x280   :  { %1751 = vrot.lane.b32.xlu1 %v1700_v41, %s2393_s13 }
 0x281   :  { %1771 = vrot.lane.b32.xlu0 %v1720_v42, %s2393_s13 }
 0x284   :  { %1756 = vrot.lane.b32.xlu1 %v1700_v41, %s2394_s3 }
 0x285   :  { %1776 = vrot.lane.b32.xlu0 %v1720_v42, %s2394_s3 }
 0x288   :  { %644 = vperm.xlu1 %1699, %v490_v45  }
 0x289   :  { %649 = vperm.xlu0 %1698, %v491_v46  }
 0x2da   :  { %v1702_v47 = vpop.permute.xlu1 %1701 }
 0x2db   :  { %v1704_v48 = vunpack.i.h.bf16 %v1702_v47  ;;  %v1703_v49 = vunpack.i.l.bf16 %v1702_v47  ;;  %v1722_v50 = vpop.permute.xlu0 %1721 }
 0x2dc   :  { %v1724_v51 = vunpack.i.h.bf16 %v1722_v50  ;;  %v1723_v52 = vunpack.i.l.bf16 %v1722_v50 }
 0x2de   :  { %v502_v53 = vsel %vm225_vm1, %v1723_v52, %v1703_v49  ;;  %v503_v54 = vsel %vm225_vm1, %v1724_v51, %v1704_v48  ;;  %v1707_v55 = vpop.permute.xlu1 %1706  ;;  %v500_v56 = vsel %vm225_vm1, %v1703_v49, %v1723_v52  ;;  %v501_v57 = vsel %vm225_vm1, %v1704_v48, %v1724_v51 }
 0x2df   :  { %v504_v58 = vpack.c.bf16 %v503_v54, %v502_v53  ;;  %v1709_v59 = vunpack.i.h.bf16 %v1707_v55  ;;  %v1708_v60 = vunpack.i.l.bf16 %v1707_v55  ;;  %v1727_v61 = vpop.permute.xlu0 %1726  ;;  %v505_v62 = vpack.c.bf16 %v501_v57, %v500_v56 }
 0x2e0   :  { %v1729_v63 = vunpack.i.h.bf16 %v1727_v61  ;;  %v1728_v6 = vunpack.i.l.bf16 %v1727_v61 }
 0x2e1   :  { %664 = vmatprep.subr.bf16.mxu1 %v505_v62 }
 0x2e2   :  { %v518_v7 = vsel %vm242_vm2, %v1728_v6, %v1708_v60  ;;  %v519_v10 = vsel %vm242_vm2, %v1729_v63, %v1709_v59  ;;  %v1712_v11 = vpop.permute.xlu1 %1711  ;;  %665 = vmatpush1.bf16.msra.mxu1 %v504_v58  ;;  %v516_v12 = vsel %vm242_vm2, %v1708_v60, %v1728_v6  ;;  %v517_v13 = vsel %vm242_vm2, %v1709_v59, %v1729_v63 }
 0x2e3   :  { %v520_v16 = vpack.c.bf16 %v519_v10, %v518_v7  ;;  %v1714_v17 = vunpack.i.h.bf16 %v1712_v11  ;;  %v1713_v18 = vunpack.i.l.bf16 %v1712_v11  ;;  %v1732_v19 = vpop.permute.xlu0 %1731  ;;  %v521_v20 = vpack.c.bf16 %v517_v13, %v516_v12 }
 0x2e4   :  { %v1734_v21 = vunpack.i.h.bf16 %v1732_v19  ;;  %v1733_v22 = vunpack.i.l.bf16 %v1732_v19 }
 0x2e5   :  { %666 = vmatprep.subr.bf16.mxu1 %v521_v20 }
 0x2e6   :  { %v534_v23 = vsel %vm259_vm3, %v1733_v22, %v1713_v18  ;;  %v535_v24 = vsel %vm259_vm3, %v1734_v21, %v1714_v17  ;;  %v1717_v25 = vpop.permute.xlu1 %1716  ;;  %667 = vmatpush1.bf16.msra.mxu1 %v520_v16  ;;  %v532_v26 = vsel %vm259_vm3, %v1713_v18, %v1733_v22  ;;  %v533_v27 = vsel %vm259_vm3, %v1714_v17, %v1734_v21 }
 0x2e7   :  { %v536_v28 = vpack.c.bf16 %v535_v24, %v534_v23  ;;  %v1719_v30 = vunpack.i.h.bf16 %v1717_v25  ;;  %v1718_v31 = vunpack.i.l.bf16 %v1717_v25  ;;  %v1737_v32 = vpop.permute.xlu0 %1736  ;;  %v537_v34 = vpack.c.bf16 %v533_v27, %v532_v26 }
 0x2e8   :  { %v1739_v8 = vunpack.i.h.bf16 %v1737_v32  ;;  %v1738_v14 = vunpack.i.l.bf16 %v1737_v32 }
 0x2e9   :  { %668 = vmatprep.subr.bf16.mxu1 %v537_v34 }
 0x2ea   :  { %v550_v35 = vsel %vm276_vm4, %v1738_v14, %v1718_v31  ;;  %v551_v38 = vsel %vm276_vm4, %v1739_v8, %v1719_v30  ;;  %v1742_v41 = vpop.permute.xlu1 %1741  ;;  %669 = vmatpush1.bf16.msra.mxu1 %v536_v28  ;;  %v548_v42 = vsel %vm276_vm4, %v1718_v31, %v1738_v14  ;;  %v549_v44 = vsel %vm276_vm4, %v1719_v30, %v1739_v8  ;;  %v2027_v14 = vld [vmem:[#allocation11] ss:$8 sps:$4 sm:$0xff]  }
 0x2eb   :  { %v552_v45 = vpack.c.bf16 %v551_v38, %v550_v35  ;;  %v1744_v46 = vunpack.i.h.bf16 %v1742_v41  ;;  %v1743_v47 = vunpack.i.l.bf16 %v1742_v41  ;;  %v1762_v48 = vpop.permute.xlu0 %1761  ;;  %v553_v49 = vpack.c.bf16 %v549_v44, %v548_v42 }
 0x2ec   :  { %v1764_v50 = vunpack.i.h.bf16 %v1762_v48  ;;  %v1763_v51 = vunpack.i.l.bf16 %v1762_v48 }
 0x2ed   :  { %670 = vmatprep.subr.bf16.mxu1 %v553_v49 }
 0x2ee   :  { %v1747_v52 = vpop.permute.xlu1 %1746  ;;  %671 = vmatpush1.bf16.msra.mxu1 %v552_v45  ;;  %v570_v53 = vsel %vm305_vm5, %v1763_v51, %v1743_v47  ;;  %v571_v54 = vsel %vm305_vm5, %v1764_v50, %v1744_v46  ;;  %v568_v60 = vsel %vm305_vm5, %v1743_v47, %v1763_v51  ;;  %v569_v61 = vsel %vm305_vm5, %v1744_v46, %v1764_v50 }
 0x2ef   :  { %v1749_v55 = vunpack.i.h.bf16 %v1747_v52  ;;  %v1748_v56 = vunpack.i.l.bf16 %v1747_v52  ;;  %v1767_v57 = vpop.permute.xlu0 %1766  ;;  %672 = vmatprep.subr.bf16.mxu1 %v557_v43  ;;  %v573_v62 = vpack.c.bf16 %v571_v54, %v570_v53  ;;  %v572_v10 = vpack.c.bf16 %v569_v61, %v568_v60 }
 0x2f0   :  { %v1769_v58 = vunpack.i.h.bf16 %v1767_v57  ;;  %v1768_v59 = vunpack.i.l.bf16 %v1767_v57 }
 0x2f2   :  { %v1752_v63 = vpop.permute.xlu1 %1751  ;;  %673 = vmatpush1.bf16.msra.mxu1 %v556_v9  ;;  %v586_v6 = vsel %vm322_vm6, %v1768_v59, %v1748_v56  ;;  %v587_v39 = vsel %vm322_vm6, %v1769_v58, %v1749_v55  ;;  %v584_v13 = vsel %vm322_vm6, %v1748_v56, %v1768_v59  ;;  %v585_v36 = vsel %vm322_vm6, %v1749_v55, %v1769_v58 }
 0x2f3   :  { %v1754_v40 = vunpack.i.h.bf16 %v1752_v63  ;;  %v1753_v43 = vunpack.i.l.bf16 %v1752_v63  ;;  %v1772_v7 = vpop.permute.xlu0 %1771  ;;  %674 = vmatprep.subr.bf16.mxu1 %v573_v62  ;;  %v589_v37 = vpack.c.bf16 %v587_v39, %v586_v6  ;;  %v588_v21 = vpack.c.bf16 %v585_v36, %v584_v13 }
 0x2f4   :  { %v1774_v11 = vunpack.i.h.bf16 %v1772_v7  ;;  %v1773_v12 = vunpack.i.l.bf16 %v1772_v7 }
 0x2f6   :  { %v1757_v9 = vpop.permute.xlu1 %1756  ;;  %675 = vmatpush1.bf16.msra.mxu1 %v572_v10  ;;  %v602_v16 = vsel %vm339_vm7, %v1773_v12, %v1753_v43  ;;  %v603_v17 = vsel %vm339_vm7, %v1774_v11, %v1754_v40  ;;  %v600_v24 = vsel %vm339_vm7, %v1753_v43, %v1773_v12  ;;  %v601_v25 = vsel %vm339_vm7, %v1754_v40, %v1774_v11 }
 0x2f7   :  { %v1759_v18 = vunpack.i.h.bf16 %v1757_v9  ;;  %v1758_v19 = vunpack.i.l.bf16 %v1757_v9  ;;  %v1777_v20 = vpop.permute.xlu0 %1776  ;;  %676 = vmatprep.subr.bf16.mxu1 %v589_v37  ;;  %v605_v26 = vpack.c.bf16 %v603_v17, %v602_v16  ;;  %v604_v30 = vpack.c.bf16 %v601_v25, %v600_v24 }
 0x2f8   :  { %v1779_v22 = vunpack.i.h.bf16 %v1777_v20  ;;  %v1778_v23 = vunpack.i.l.bf16 %v1777_v20 }
 0x2fa   :  { %677 = vmatpush1.bf16.msra.mxu1 %v588_v21  ;;  %v618_v27 = vsel %vm356_vm8, %v1778_v23, %v1758_v19  ;;  %v619_v28 = vsel %vm356_vm8, %v1779_v22, %v1759_v18  ;;  %v616_v31 = vsel %vm356_vm8, %v1758_v19, %v1778_v23  ;;  %v617_v32 = vsel %vm356_vm8, %v1759_v18, %v1779_v22 }
 0x2fb   :  { %678 = vmatprep.subr.bf16.mxu1 %v605_v26  ;;  %v621_v34 = vpack.c.bf16 %v619_v28, %v618_v27  ;;  %v620_v8 = vpack.c.bf16 %v617_v32, %v616_v31 }
 0x2fe   :  { %679 = vmatpush1.bf16.msra.mxu1 %v604_v30 }
 0x2ff   :  { %680 = vmatprep.subr.bf16.mxu1 %v621_v34 }
 0x302   :  { %681 = vmatpush1.bf16.msra.mxu1 %v620_v8 }
 0x305   :  { %697 = vmatmul.mubr.bf16.vlgmr.msra.gmra.mrb[4].mxu1 %v2027_v14 }
 0x307   :  { %v645_v35 = vpop.permute.xlu1 %644 }
 0x308   :  { %v650_v44 = vpop.permute.xlu0 %649 }
 0x3d8   :  { %v698_v38 = vpop.f32.mrb[4].mxu1 }
 0x3d9   :  { %v699_v41 = vadd.f32 %v698_v38, %v645_v35  ;;  %v700_v42 = vpop.f32.mrb[5].mxu1 }
 0x3da   :  { %v701_v45 = vadd.f32 %v700_v42, %v645_v35  ;;  %v702_v46 = vpop.f32.mrb[6].mxu1 }
 0x3db   :  { %v711_v47 = vmin.f32 %v699_v41, 0.0  ;;  %v703_v48 = vadd.f32 %v702_v46, %v650_v44  ;;  %v704_v49 = vpop.f32.mrb[7].mxu1  ;;  %vm707_vm13 = vcmp.gt.f32.partialorder %v699_v41, 0.0 }
 0x3dc   :  { %v712_v50 = vmin.f32 %v701_v45, 0.0  ;;  %v705_v51 = vadd.f32 %v704_v49, %v650_v44  ;;  %vm708_vm14 = vcmp.gt.f32.partialorder %v701_v45, 0.0 }
 0x3dd   :  { %v715_v52 = vmul.f32 1.442695, %v711_v47  ;;  %v713_v53 = vmin.f32 %v703_v48, 0.0  ;;  %vm709_vm15 = vcmp.gt.f32.partialorder %v703_v48, 0.0 }
 0x3de   :  { %v717_v54 = vmul.f32 1.442695, %v712_v50  ;;  %v714_v55 = vmin.f32 %v705_v51, 0.0  ;;  %vm710_vm9 = vcmp.gt.f32.partialorder %v705_v51, 0.0 }
 0x3df   :  { %2048 = vpow2.f32 %v715_v52  ;;  %v719_v56 = vmul.f32 1.442695, %v713_v53 }
 0x3e0   :  { %2050 = vpow2.f32 %v717_v54  ;;  %v721_v57 = vmul.f32 1.442695, %v714_v55 }
 0x3e1   :  { %2052 = vpow2.f32 %v719_v56 }
 0x3e2   :  { %2054 = vpow2.f32 %v721_v57 }
 0x3e9   :  { %v2049_v58 = vpop.eup %2048 }
 0x3ea   :  { %v2051_v59 = vpop.eup %2050  ;;  %v1563_v60 = vadd.f32 -1.0, %v2049_v58 }
 0x3eb   :  { %v2053_v61 = vpop.eup %2052  ;;  %v1564_v62 = vadd.f32 -1.0, %v2051_v59 }
 0x3ec   :  { %v2055_v63 = vpop.eup %2054  ;;  %v727_v6 = vsel %vm707_vm13, %v699_v41, %v1563_v60  ;;  %v1565_v39 = vadd.f32 -1.0, %v2053_v61 }
 0x3ed   :  { %v731_v40 = vmul.f32 %v727_v6, %v2758_v29  ;;  %v728_v43 = vsel %vm708_vm14, %v701_v45, %v1564_v62  ;;  %v1566_v7 = vadd.f32 -1.0, %v2055_v63 }
 0x3ee   :  { %v732_v10 = vmul.f32 %v728_v43, %v2760_v33  ;;  %v729_v11 = vsel %vm709_vm15, %v703_v48, %v1565_v39 }
 0x3ef   :  { %v733_v12 = vmul.f32 %v729_v11, %v2758_v29  ;;  %v730_v13 = vsel %vm710_vm9, %v705_v51, %v1566_v7  ;;  %v2875_v37 = vadd.f32 %v731_v40, %v207_v2  ;;  %v742_v2 = vld [vmem:[#allocation15 + $0x8] sm:$0xff] }
 0x3f0   :  { %v734_v36 = vmul.f32 %v730_v13, %v2760_v33  ;;  %v2883_v16 = vadd.f32 %v732_v10, %v208_v4 }
 0x3f1   :  { %v2879_v9 = vadd.f32 %v733_v12, %v209_v3 }
 0x3f2   :  { %v2887_v17 = vadd.f32 %v734_v36, %v210_v5 }
 0x3f3   :  { %v1780_v18 = vpack.i.bf16 %v2879_v9, %v2875_v37 }
 0x3f4   :  { %v1800_v19 = vpack.i.bf16 %v2887_v17, %v2883_v16  ;;  %v808_v0 = vpack.c.bf16 %v2887_v17, %v2883_v16 }
 0x3f5   :  { %1781 = vrot.lane.b32.xlu1 %v1780_v18, %s2389_s21 }
 0x3f6   :  { %1801 = vrot.lane.b32.xlu0 %v1800_v19, %s2389_s21 }
 0x3f9   :  { %1786 = vrot.lane.b32.xlu1 %v1780_v18, %s2388_s11 }
 0x3fa   :  { %1806 = vrot.lane.b32.xlu0 %v1800_v19, %s2388_s11 }
 0x3fd   :  { %1791 = vrot.lane.b32.xlu1 %v1780_v18, %s2378_s27 }
 0x3fe   :  { %1811 = vrot.lane.b32.xlu0 %v1800_v19, %s2378_s27 }
 0x401   :  { %1796 = vrot.lane.b32.xlu1 %v1780_v18, %s2390_s2 }
 0x402   :  { %1816 = vrot.lane.b32.xlu0 %v1800_v19, %s2390_s2 }
 0x405   :  { %1821 = vrot.lane.b32.xlu1 %v1780_v18, %s2391_s6 }
 0x406   :  { %1841 = vrot.lane.b32.xlu0 %v1800_v19, %s2391_s6 }
 0x409   :  { %1826 = vrot.lane.b32.xlu1 %v1780_v18, %s2392_s5 }
 0x40a   :  { %1846 = vrot.lane.b32.xlu0 %v1800_v19, %s2392_s5 }
 0x40d   :  { %1831 = vrot.lane.b32.xlu1 %v1780_v18, %s2393_s13 }
 0x40e   :  { %1851 = vrot.lane.b32.xlu0 %v1800_v19, %s2393_s13 }
 0x411   :  { %1836 = vrot.lane.b32.xlu1 %v1780_v18, %s2394_s3 }
 0x412   :  { %1856 = vrot.lane.b32.xlu0 %v1800_v19, %s2394_s3 }
 0x415   :  { %895 = vperm.xlu1 %1699, %v741_v1  }
 0x416   :  { %900 = vperm.xlu0 %1698, %v742_v2  }
 0x467   :  { %v1782_v3 = vpop.permute.xlu1 %1781 }
 0x468   :  { %v1784_v4 = vunpack.i.h.bf16 %v1782_v3  ;;  %v1783_v5 = vunpack.i.l.bf16 %v1782_v3  ;;  %v1802_v20 = vpop.permute.xlu0 %1801 }
 0x469   :  { %v1804_v21 = vunpack.i.h.bf16 %v1802_v20  ;;  %v1803_v22 = vunpack.i.l.bf16 %v1802_v20 }
 0x46b   :  { %v1787_v23 = vpop.permute.xlu1 %1786  ;;  %v751_v24 = vsel %vm225_vm1, %v1783_v5, %v1803_v22  ;;  %v752_v25 = vsel %vm225_vm1, %v1784_v4, %v1804_v21  ;;  %v753_v26 = vsel %vm225_vm1, %v1803_v22, %v1783_v5  ;;  %v754_v27 = vsel %vm225_vm1, %v1804_v21, %v1784_v4 }
 0x46c   :  { %v1789_v28 = vunpack.i.h.bf16 %v1787_v23  ;;  %v1788_v30 = vunpack.i.l.bf16 %v1787_v23  ;;  %v1807_v31 = vpop.permute.xlu0 %1806  ;;  %v756_v32 = vpack.c.bf16 %v752_v25, %v751_v24  ;;  %v755_v34 = vpack.c.bf16 %v754_v27, %v753_v26 }
 0x46d   :  { %v1809_v8 = vunpack.i.h.bf16 %v1807_v31  ;;  %v1808_v14 = vunpack.i.l.bf16 %v1807_v31  ;;  %v807_v23 = vpack.c.bf16 %v2879_v9, %v2875_v37 }
 0x46e   :  { %915 = vmatprep.subr.bf16.mxu0 %v756_v32 }
 0x46f   :  { %v1792_v35 = vpop.permute.xlu1 %1791  ;;  %916 = vmatpush1.bf16.msra.mxu0 %v755_v34  ;;  %v767_v38 = vsel %vm242_vm2, %v1788_v30, %v1808_v14  ;;  %v768_v41 = vsel %vm242_vm2, %v1789_v28, %v1809_v8  ;;  %v769_v42 = vsel %vm242_vm2, %v1808_v14, %v1788_v30  ;;  %v770_v44 = vsel %vm242_vm2, %v1809_v8, %v1789_v28 }
 0x470   :  { %v1794_v45 = vunpack.i.h.bf16 %v1792_v35  ;;  %v1793_v46 = vunpack.i.l.bf16 %v1792_v35  ;;  %v1812_v47 = vpop.permute.xlu0 %1811  ;;  %v772_v48 = vpack.c.bf16 %v768_v41, %v767_v38  ;;  %v771_v49 = vpack.c.bf16 %v770_v44, %v769_v42 }
 0x471   :  { %v1814_v50 = vunpack.i.h.bf16 %v1812_v47  ;;  %v1813_v51 = vunpack.i.l.bf16 %v1812_v47 }
 0x472   :  { %917 = vmatprep.subr.bf16.mxu0 %v772_v48 }
 0x473   :  { %v1797_v52 = vpop.permute.xlu1 %1796  ;;  %918 = vmatpush1.bf16.msra.mxu0 %v771_v49  ;;  %v783_v53 = vsel %vm259_vm3, %v1793_v46, %v1813_v51  ;;  %v784_v54 = vsel %vm259_vm3, %v1794_v45, %v1814_v50  ;;  %v785_v55 = vsel %vm259_vm3, %v1813_v51, %v1793_v46  ;;  %v786_v56 = vsel %vm259_vm3, %v1814_v50, %v1794_v45 }
 0x474   :  { %v1799_v57 = vunpack.i.h.bf16 %v1797_v52  ;;  %v1798_v58 = vunpack.i.l.bf16 %v1797_v52  ;;  %v1817_v59 = vpop.permute.xlu0 %1816  ;;  %v788_v60 = vpack.c.bf16 %v784_v54, %v783_v53  ;;  %v787_v61 = vpack.c.bf16 %v786_v56, %v785_v55 }
 0x475   :  { %v1819_v62 = vunpack.i.h.bf16 %v1817_v59  ;;  %v1818_v63 = vunpack.i.l.bf16 %v1817_v59 }
 0x476   :  { %919 = vmatprep.subr.bf16.mxu0 %v788_v60 }
 0x477   :  { %v1822_v6 = vpop.permute.xlu1 %1821  ;;  %920 = vmatpush1.bf16.msra.mxu0 %v787_v61  ;;  %v799_v39 = vsel %vm276_vm4, %v1798_v58, %v1818_v63  ;;  %v800_v40 = vsel %vm276_vm4, %v1799_v57, %v1819_v62  ;;  %v801_v43 = vsel %vm276_vm4, %v1818_v63, %v1798_v58  ;;  %v802_v7 = vsel %vm276_vm4, %v1819_v62, %v1799_v57  ;;  %v2028_v63 = vld [vmem:[#allocation14] ss:$8 sps:$4 sm:$0xff]  }
 0x478   :  { %v1824_v10 = vunpack.i.h.bf16 %v1822_v6  ;;  %v1823_v11 = vunpack.i.l.bf16 %v1822_v6  ;;  %v1842_v12 = vpop.permute.xlu0 %1841  ;;  %v804_v13 = vpack.c.bf16 %v800_v40, %v799_v39  ;;  %v803_v36 = vpack.c.bf16 %v802_v7, %v801_v43 }
 0x479   :  { %v1844_v18 = vunpack.i.h.bf16 %v1842_v12  ;;  %v1843_v19 = vunpack.i.l.bf16 %v1842_v12 }
 0x47a   :  { %921 = vmatprep.subr.bf16.mxu0 %v804_v13 }
 0x47b   :  { %v1827_v1 = vpop.permute.xlu1 %1826  ;;  %922 = vmatpush1.bf16.msra.mxu0 %v803_v36  ;;  %v821_v2 = vsel %vm305_vm5, %v1843_v19, %v1823_v11  ;;  %v822_v3 = vsel %vm305_vm5, %v1844_v18, %v1824_v10  ;;  %v819_v25 = vsel %vm305_vm5, %v1823_v11, %v1843_v19  ;;  %v820_v26 = vsel %vm305_vm5, %v1824_v10, %v1844_v18 }
 0x47c   :  { %v1829_v4 = vunpack.i.h.bf16 %v1827_v1  ;;  %v1828_v5 = vunpack.i.l.bf16 %v1827_v1  ;;  %v1847_v20 = vpop.permute.xlu0 %1846  ;;  %923 = vmatprep.subr.bf16.mxu0 %v808_v0  ;;  %v824_v24 = vpack.c.bf16 %v822_v3, %v821_v2  ;;  %v823_v35 = vpack.c.bf16 %v820_v26, %v819_v25 }
 0x47d   :  { %v1849_v21 = vunpack.i.h.bf16 %v1847_v20  ;;  %v1848_v22 = vunpack.i.l.bf16 %v1847_v20 }
 0x47f   :  { %v1832_v27 = vpop.permute.xlu1 %1831  ;;  %924 = vmatpush1.bf16.msra.mxu0 %v807_v23  ;;  %v837_v28 = vsel %vm322_vm6, %v1848_v22, %v1828_v5  ;;  %v838_v30 = vsel %vm322_vm6, %v1849_v21, %v1829_v4  ;;  %v835_v41 = vsel %vm322_vm6, %v1828_v5, %v1848_v22  ;;  %v836_v42 = vsel %vm322_vm6, %v1829_v4, %v1849_v21 }
 0x480   :  { %v1834_v31 = vunpack.i.h.bf16 %v1832_v27  ;;  %v1833_v32 = vunpack.i.l.bf16 %v1832_v27  ;;  %v1852_v34 = vpop.permute.xlu0 %1851  ;;  %925 = vmatprep.subr.bf16.mxu0 %v824_v24  ;;  %v840_v38 = vpack.c.bf16 %v838_v30, %v837_v28  ;;  %v839_v52 = vpack.c.bf16 %v836_v42, %v835_v41 }
 0x481   :  { %v1854_v8 = vunpack.i.h.bf16 %v1852_v34  ;;  %v1853_v14 = vunpack.i.l.bf16 %v1852_v34 }
 0x483   :  { %v1837_v44 = vpop.permute.xlu1 %1836  ;;  %926 = vmatpush1.bf16.msra.mxu0 %v823_v35  ;;  %v853_v45 = vsel %vm339_vm7, %v1853_v14, %v1833_v32  ;;  %v854_v46 = vsel %vm339_vm7, %v1854_v8, %v1834_v31  ;;  %v851_v54 = vsel %vm339_vm7, %v1833_v32, %v1853_v14  ;;  %v852_v55 = vsel %vm339_vm7, %v1834_v31, %v1854_v8 }
 0x484   :  { %v1839_v47 = vunpack.i.h.bf16 %v1837_v44  ;;  %v1838_v48 = vunpack.i.l.bf16 %v1837_v44  ;;  %v1857_v49 = vpop.permute.xlu0 %1856  ;;  %927 = vmatprep.subr.bf16.mxu0 %v840_v38  ;;  %v856_v53 = vpack.c.bf16 %v854_v46, %v853_v45  ;;  %v855_v58 = vpack.c.bf16 %v852_v55, %v851_v54  ;;  %v2031_v45 = vld [vmem:[#allocation17 + $0x4] ss:$8 sps:$4 sm:$0xff]   ;;  %v988_v46 = vld [vmem:[#allocation18] sm:$0xff] }
 0x485   :  { %v1859_v50 = vunpack.i.h.bf16 %v1857_v49  ;;  %v1858_v51 = vunpack.i.l.bf16 %v1857_v49  ;;  %1576 = vmatprep.mubr.msk.bf16.mxu1 %vm402_vm0, %v2031_v45 }
 0x487   :  { %928 = vmatpush1.bf16.msra.mxu0 %v839_v52  ;;  %v869_v56 = vsel %vm356_vm8, %v1858_v51, %v1838_v48  ;;  %v870_v57 = vsel %vm356_vm8, %v1859_v50, %v1839_v47  ;;  %v867_v60 = vsel %vm356_vm8, %v1838_v48, %v1858_v51  ;;  %v868_v61 = vsel %vm356_vm8, %v1839_v47, %v1859_v50  ;;  %v989_v47 = vld [vmem:[#allocation18 + $0x8] sm:$0xff] }
 0x488   :  { %929 = vmatprep.subr.bf16.mxu0 %v856_v53  ;;  %v872_v59 = vpack.c.bf16 %v870_v57, %v869_v56  ;;  %v871_v62 = vpack.c.bf16 %v868_v61, %v867_v60 }
 0x48b   :  { %930 = vmatpush1.bf16.msra.mxu0 %v855_v58 }
 0x48c   :  { %931 = vmatprep.subr.bf16.mxu0 %v872_v59 }
 0x48f   :  { %932 = vmatpush1.bf16.msra.mxu0 %v871_v62 }
 0x492   :  { %948 = vmatmul.mubr.bf16.vlgmr.msra.gmra.mrb[0].mxu0 %v2028_v63 }
 0x494   :  { %v896_v6 = vpop.permute.xlu1 %895 }
 0x495   :  { %v901_v7 = vpop.permute.xlu0 %900 }
 0x565   :  { %v949_v39 = vpop.f32.mrb[0].mxu0 }
 0x566   :  { %v950_v40 = vadd.f32 %v949_v39, %v896_v6  ;;  %v951_v43 = vpop.f32.mrb[1].mxu0 }
 0x567   :  { %v952_v10 = vadd.f32 %v951_v43, %v896_v6  ;;  %v953_v11 = vpop.f32.mrb[2].mxu0 }
 0x568   :  { %v962_v12 = vmin.f32 %v950_v40, 0.0  ;;  %v954_v13 = vadd.f32 %v953_v11, %v901_v7  ;;  %v955_v36 = vpop.f32.mrb[3].mxu0  ;;  %vm958_vm10 = vcmp.gt.f32.partialorder %v950_v40, 0.0 }
 0x569   :  { %v963_v18 = vmin.f32 %v952_v10, 0.0  ;;  %v956_v19 = vadd.f32 %v955_v36, %v901_v7  ;;  %vm959_vm11 = vcmp.gt.f32.partialorder %v952_v10, 0.0 }
 0x56a   :  { %v966_v0 = vmul.f32 1.442695, %v962_v12  ;;  %v964_v1 = vmin.f32 %v954_v13, 0.0  ;;  %vm960_vm12 = vcmp.gt.f32.partialorder %v954_v13, 0.0 }
 0x56b   :  { %v968_v2 = vmul.f32 1.442695, %v963_v18  ;;  %v965_v3 = vmin.f32 %v956_v19, 0.0  ;;  %vm961_vm13 = vcmp.gt.f32.partialorder %v956_v19, 0.0 }
 0x56c   :  { %2056 = vpow2.f32 %v966_v0  ;;  %v970_v4 = vmul.f32 1.442695, %v964_v1 }
 0x56d   :  { %2058 = vpow2.f32 %v968_v2  ;;  %v972_v5 = vmul.f32 1.442695, %v965_v3 }
 0x56e   :  { %2060 = vpow2.f32 %v970_v4 }
 0x56f   :  { %2062 = vpow2.f32 %v972_v5 }
 0x576   :  { %v2057_v20 = vpop.eup %2056 }
 0x577   :  { %v2059_v21 = vpop.eup %2058  ;;  %v1570_v22 = vadd.f32 -1.0, %v2057_v20 }
 0x578   :  { %v2061_v23 = vpop.eup %2060  ;;  %v1571_v24 = vadd.f32 -1.0, %v2059_v21 }
 0x579   :  { %v2063_v25 = vpop.eup %2062  ;;  %v978_v26 = vsel %vm958_vm10, %v950_v40, %v1570_v22  ;;  %v1572_v27 = vadd.f32 -1.0, %v2061_v23 }
 0x57a   :  { %v979_v28 = vsel %vm959_vm11, %v952_v10, %v1571_v24  ;;  %v1573_v30 = vadd.f32 -1.0, %v2063_v25  ;;  %v2979_v32 = vmul.f32 %v978_v26, %v2758_v29 }
 0x57b   :  { %v980_v31 = vsel %vm960_vm12, %v954_v13, %v1572_v27  ;;  %v2985_v14 = vmul.f32 %v979_v28, %v2760_v33 }
 0x57c   :  { %v2982_v34 = vmul.f32 %v980_v31, %v2758_v29  ;;  %v981_v8 = vsel %vm961_vm13, %v956_v19, %v1573_v30 }
 0x57d   :  { %v2988_v35 = vmul.f32 %v981_v8, %v2760_v33 }
 0x57e   :  { %v1860_v38 = vpack.i.bf16 %v2982_v34, %v2979_v32  ;;  %v1054_v44 = vpack.c.bf16 %v2982_v34, %v2979_v32 }
 0x57f   :  { %v1880_v41 = vpack.i.bf16 %v2988_v35, %v2985_v14  ;;  %v1055_v42 = vpack.c.bf16 %v2988_v35, %v2985_v14 }
 0x580   :  { %1861 = vrot.lane.b32.xlu1 %v1860_v38, %s2389_s21 }
 0x581   :  { %1881 = vrot.lane.b32.xlu0 %v1880_v41, %s2389_s21 }
 0x584   :  { %1866 = vrot.lane.b32.xlu1 %v1860_v38, %s2388_s11 }
 0x585   :  { %1886 = vrot.lane.b32.xlu0 %v1880_v41, %s2388_s11 }
 0x588   :  { %1871 = vrot.lane.b32.xlu1 %v1860_v38, %s2378_s27 }
 0x589   :  { %1891 = vrot.lane.b32.xlu0 %v1880_v41, %s2378_s27 }
 0x58c   :  { %1876 = vrot.lane.b32.xlu1 %v1860_v38, %s2390_s2 }
 0x58d   :  { %1896 = vrot.lane.b32.xlu0 %v1880_v41, %s2390_s2 }
 0x590   :  { %1901 = vrot.lane.b32.xlu1 %v1860_v38, %s2391_s6 }
 0x591   :  { %1921 = vrot.lane.b32.xlu0 %v1880_v41, %s2391_s6 }
 0x594   :  { %1906 = vrot.lane.b32.xlu1 %v1860_v38, %s2392_s5 }
 0x595   :  { %1926 = vrot.lane.b32.xlu0 %v1880_v41, %s2392_s5 }
 0x598   :  { %1911 = vrot.lane.b32.xlu1 %v1860_v38, %s2393_s13 }
 0x599   :  { %1931 = vrot.lane.b32.xlu0 %v1880_v41, %s2393_s13 }
 0x59c   :  { %1916 = vrot.lane.b32.xlu1 %v1860_v38, %s2394_s3 }
 0x59d   :  { %1936 = vrot.lane.b32.xlu0 %v1880_v41, %s2394_s3 }
 0x5a0   :  { %1142 = vperm.xlu1 %1699, %v988_v46  }
 0x5a1   :  { %1147 = vperm.xlu0 %1698, %v989_v47  }
 0x5f2   :  { %v1862_v48 = vpop.permute.xlu1 %1861 }
 0x5f3   :  { %v1864_v49 = vunpack.i.h.bf16 %v1862_v48  ;;  %v1863_v50 = vunpack.i.l.bf16 %v1862_v48  ;;  %v1882_v51 = vpop.permute.xlu0 %1881 }
 0x5f4   :  { %v1884_v52 = vunpack.i.h.bf16 %v1882_v51  ;;  %v1883_v53 = vunpack.i.l.bf16 %v1882_v51 }
 0x5f6   :  { %v1000_v54 = vsel %vm225_vm1, %v1883_v53, %v1863_v50  ;;  %v1001_v55 = vsel %vm225_vm1, %v1884_v52, %v1864_v49  ;;  %v1867_v56 = vpop.permute.xlu1 %1866  ;;  %v998_v57 = vsel %vm225_vm1, %v1863_v50, %v1883_v53  ;;  %v999_v58 = vsel %vm225_vm1, %v1864_v49, %v1884_v52 }
 0x5f7   :  { %v1002_v59 = vpack.c.bf16 %v1001_v55, %v1000_v54  ;;  %v1869_v60 = vunpack.i.h.bf16 %v1867_v56  ;;  %v1868_v61 = vunpack.i.l.bf16 %v1867_v56  ;;  %v1887_v62 = vpop.permute.xlu0 %1886  ;;  %v1003_v63 = vpack.c.bf16 %v999_v58, %v998_v57 }
 0x5f8   :  { %v1889_v6 = vunpack.i.h.bf16 %v1887_v62  ;;  %v1888_v39 = vunpack.i.l.bf16 %v1887_v62 }
 0x5f9   :  { %1162 = vmatprep.subr.bf16.mxu1 %v1003_v63 }
 0x5fa   :  { %v1016_v40 = vsel %vm242_vm2, %v1888_v39, %v1868_v61  ;;  %v1017_v43 = vsel %vm242_vm2, %v1889_v6, %v1869_v60  ;;  %v1872_v7 = vpop.permute.xlu1 %1871  ;;  %1163 = vmatpush1.bf16.msra.mxu1 %v1002_v59  ;;  %v1014_v10 = vsel %vm242_vm2, %v1868_v61, %v1888_v39  ;;  %v1015_v11 = vsel %vm242_vm2, %v1869_v60, %v1889_v6 }
 0x5fb   :  { %v1018_v12 = vpack.c.bf16 %v1017_v43, %v1016_v40  ;;  %v1874_v13 = vunpack.i.h.bf16 %v1872_v7  ;;  %v1873_v36 = vunpack.i.l.bf16 %v1872_v7  ;;  %v1892_v18 = vpop.permute.xlu0 %1891  ;;  %v1019_v19 = vpack.c.bf16 %v1015_v11, %v1014_v10 }
 0x5fc   :  { %v1894_v0 = vunpack.i.h.bf16 %v1892_v18  ;;  %v1893_v1 = vunpack.i.l.bf16 %v1892_v18 }
 0x5fd   :  { %1164 = vmatprep.subr.bf16.mxu1 %v1019_v19 }
 0x5fe   :  { %v1032_v2 = vsel %vm259_vm3, %v1893_v1, %v1873_v36  ;;  %v1033_v3 = vsel %vm259_vm3, %v1894_v0, %v1874_v13  ;;  %v1877_v4 = vpop.permute.xlu1 %1876  ;;  %1165 = vmatpush1.bf16.msra.mxu1 %v1018_v12  ;;  %v1030_v5 = vsel %vm259_vm3, %v1873_v36, %v1893_v1  ;;  %v1031_v20 = vsel %vm259_vm3, %v1874_v13, %v1894_v0 }
 0x5ff   :  { %v1034_v21 = vpack.c.bf16 %v1033_v3, %v1032_v2  ;;  %v1879_v22 = vunpack.i.h.bf16 %v1877_v4  ;;  %v1878_v23 = vunpack.i.l.bf16 %v1877_v4  ;;  %v1897_v24 = vpop.permute.xlu0 %1896  ;;  %v1035_v25 = vpack.c.bf16 %v1031_v20, %v1030_v5 }
 0x600   :  { %v1899_v26 = vunpack.i.h.bf16 %v1897_v24  ;;  %v1898_v27 = vunpack.i.l.bf16 %v1897_v24 }
 0x601   :  { %1166 = vmatprep.subr.bf16.mxu1 %v1035_v25  ;;  %v2033_v25 = vld [vmem:[#allocation17] ss:$8 sps:$4 sm:$0xff]  }
 0x602   :  { %v1048_v28 = vsel %vm276_vm4, %v1898_v27, %v1878_v23  ;;  %v1049_v30 = vsel %vm276_vm4, %v1899_v26, %v1879_v22  ;;  %v1902_v31 = vpop.permute.xlu1 %1901  ;;  %1167 = vmatpush1.bf16.msra.mxu1 %v1034_v21  ;;  %v1046_v8 = vsel %vm276_vm4, %v1878_v23, %v1898_v27  ;;  %v1047_v38 = vsel %vm276_vm4, %v1879_v22, %v1899_v26 }
 0x603   :  { %v1050_v41 = vpack.c.bf16 %v1049_v30, %v1048_v28  ;;  %v1904_v45 = vunpack.i.h.bf16 %v1902_v31  ;;  %v1903_v46 = vunpack.i.l.bf16 %v1902_v31  ;;  %v1922_v47 = vpop.permute.xlu0 %1921  ;;  %v1051_v48 = vpack.c.bf16 %v1047_v38, %v1046_v8 }
 0x604   :  { %v1924_v49 = vunpack.i.h.bf16 %v1922_v47  ;;  %v1923_v50 = vunpack.i.l.bf16 %v1922_v47 }
 0x605   :  { %1168 = vmatprep.subr.bf16.mxu1 %v1051_v48 }
 0x606   :  { %v1907_v51 = vpop.permute.xlu1 %1906  ;;  %1169 = vmatpush1.bf16.msra.mxu1 %v1050_v41  ;;  %v1068_v52 = vsel %vm305_vm5, %v1923_v50, %v1903_v46  ;;  %v1069_v53 = vsel %vm305_vm5, %v1924_v49, %v1904_v45  ;;  %v1066_v59 = vsel %vm305_vm5, %v1903_v46, %v1923_v50  ;;  %v1067_v60 = vsel %vm305_vm5, %v1904_v45, %v1924_v49 }
 0x607   :  { %v1909_v54 = vunpack.i.h.bf16 %v1907_v51  ;;  %v1908_v55 = vunpack.i.l.bf16 %v1907_v51  ;;  %v1927_v56 = vpop.permute.xlu0 %1926  ;;  %1170 = vmatprep.subr.bf16.mxu1 %v1055_v42  ;;  %v1071_v61 = vpack.c.bf16 %v1069_v53, %v1068_v52  ;;  %v1070_v39 = vpack.c.bf16 %v1067_v60, %v1066_v59 }
 0x608   :  { %v1929_v57 = vunpack.i.h.bf16 %v1927_v56  ;;  %v1928_v58 = vunpack.i.l.bf16 %v1927_v56 }
 0x60a   :  { %v1912_v62 = vpop.permute.xlu1 %1911  ;;  %1171 = vmatpush1.bf16.msra.mxu1 %v1054_v44  ;;  %v1084_v63 = vsel %vm322_vm6, %v1928_v58, %v1908_v55  ;;  %v1085_v14 = vsel %vm322_vm6, %v1929_v57, %v1909_v54  ;;  %v1082_v7 = vsel %vm322_vm6, %v1908_v55, %v1928_v58  ;;  %v1083_v32 = vsel %vm322_vm6, %v1909_v54, %v1929_v57 }
 0x60b   :  { %v1914_v35 = vunpack.i.h.bf16 %v1912_v62  ;;  %v1913_v42 = vunpack.i.l.bf16 %v1912_v62  ;;  %v1932_v6 = vpop.permute.xlu0 %1931  ;;  %1172 = vmatprep.subr.bf16.mxu1 %v1071_v61  ;;  %v1087_v34 = vpack.c.bf16 %v1085_v14, %v1084_v63  ;;  %v1086_v18 = vpack.c.bf16 %v1083_v32, %v1082_v7 }
 0x60c   :  { %v1934_v40 = vunpack.i.h.bf16 %v1932_v6  ;;  %v1933_v43 = vunpack.i.l.bf16 %v1932_v6 }
 0x60e   :  { %v1917_v44 = vpop.permute.xlu1 %1916  ;;  %1173 = vmatpush1.bf16.msra.mxu1 %v1070_v39  ;;  %v1100_v10 = vsel %vm339_vm7, %v1933_v43, %v1913_v42  ;;  %v1101_v11 = vsel %vm339_vm7, %v1934_v40, %v1914_v35  ;;  %v1098_v1 = vsel %vm339_vm7, %v1913_v42, %v1933_v43  ;;  %v1099_v2 = vsel %vm339_vm7, %v1914_v35, %v1934_v40 }
 0x60f   :  { %v1919_v12 = vunpack.i.h.bf16 %v1917_v44  ;;  %v1918_v13 = vunpack.i.l.bf16 %v1917_v44  ;;  %v1937_v36 = vpop.permute.xlu0 %1936  ;;  %1174 = vmatprep.subr.bf16.mxu1 %v1087_v34  ;;  %v1103_v3 = vpack.c.bf16 %v1101_v11, %v1100_v10  ;;  %v1102_v20 = vpack.c.bf16 %v1099_v2, %v1098_v1 }
 0x610   :  { %v1939_v19 = vunpack.i.h.bf16 %v1937_v36  ;;  %v1938_v0 = vunpack.i.l.bf16 %v1937_v36  ;;  %v1244_v36 = vld [vmem:[#allocation21 + $0x18] sm:$0xff] }
 0x612   :  { %1175 = vmatpush1.bf16.msra.mxu1 %v1086_v18  ;;  %v1116_v4 = vsel %vm356_vm8, %v1938_v0, %v1918_v13  ;;  %v1117_v5 = vsel %vm356_vm8, %v1939_v19, %v1919_v12  ;;  %v1114_v21 = vsel %vm356_vm8, %v1918_v13, %v1938_v0  ;;  %v1115_v22 = vsel %vm356_vm8, %v1919_v12, %v1939_v19  ;;  %v1242_v12 = vld [vmem:[#allocation21 + $0x8] sm:$0xff]  ;;  %v1243_v13 = vld [vmem:[#allocation21 + $0x10] sm:$0xff] }
 0x613   :  { %1176 = vmatprep.subr.bf16.mxu1 %v1103_v3  ;;  %v1119_v23 = vpack.c.bf16 %v1117_v5, %v1116_v4  ;;  %v1118_v24 = vpack.c.bf16 %v1115_v22, %v1114_v21 }
 0x616   :  { %1177 = vmatpush1.bf16.msra.mxu1 %v1102_v20 }
 0x617   :  { %1178 = vmatprep.subr.bf16.mxu1 %v1119_v23 }
 0x61a   :  { %1179 = vmatpush1.bf16.msra.mxu1 %v1118_v24 }
 0x61d   :  { %1195 = vmatmul.mubr.bf16.vlgmr.msra.gmra.mrb[8].mxu1 %v2033_v25 }
 0x61f   :  { %v1143_v26 = vpop.permute.xlu1 %1142 }
 0x620   :  { %v1148_v31 = vpop.permute.xlu0 %1147 }
 0x6f0   :  { %v1196_v27 = vpop.f32.mrb[8].mxu1 }
 0x6f1   :  { %v1197_v28 = vadd.f32 %v1196_v27, %v1143_v26  ;;  %v1198_v30 = vpop.f32.mrb[9].mxu1 }
 0x6f2   :  { %v1199_v8 = vadd.f32 %v1198_v30, %v1143_v26  ;;  %v1200_v38 = vpop.f32.mrb[10].mxu1 }
 0x6f3   :  { %v1209_v41 = vmin.f32 %v1197_v28, 0.0  ;;  %v1201_v45 = vadd.f32 %v1200_v38, %v1148_v31  ;;  %v1202_v46 = vpop.f32.mrb[11].mxu1  ;;  %vm1205_vm14 = vcmp.gt.f32.partialorder %v1197_v28, 0.0 }
 0x6f4   :  { %v1210_v47 = vmin.f32 %v1199_v8, 0.0  ;;  %v1203_v48 = vadd.f32 %v1202_v46, %v1148_v31  ;;  %vm1206_vm15 = vcmp.gt.f32.partialorder %v1199_v8, 0.0 }
 0x6f5   :  { %v1213_v49 = vmul.f32 1.442695, %v1209_v41  ;;  %v1211_v50 = vmin.f32 %v1201_v45, 0.0  ;;  %vm1207_vm9 = vcmp.gt.f32.partialorder %v1201_v45, 0.0 }
 0x6f6   :  { %v1215_v51 = vmul.f32 1.442695, %v1210_v47  ;;  %v1212_v52 = vmin.f32 %v1203_v48, 0.0  ;;  %vm1208_vm10 = vcmp.gt.f32.partialorder %v1203_v48, 0.0 }
 0x6f7   :  { %2064 = vpow2.f32 %v1213_v49  ;;  %v1217_v53 = vmul.f32 1.442695, %v1211_v50 }
 0x6f8   :  { %2066 = vpow2.f32 %v1215_v51  ;;  %v1219_v54 = vmul.f32 1.442695, %v1212_v52 }
 0x6f9   :  { %2068 = vpow2.f32 %v1217_v53 }
 0x6fa   :  { %2070 = vpow2.f32 %v1219_v54 }
 0x701   :  { %v2065_v55 = vpop.eup %2064 }
 0x702   :  { %v2067_v56 = vpop.eup %2066  ;;  %v1577_v57 = vadd.f32 -1.0, %v2065_v55 }
 0x703   :  { %v2069_v58 = vpop.eup %2068  ;;  %v1578_v59 = vadd.f32 -1.0, %v2067_v56 }
 0x704   :  { %v2071_v60 = vpop.eup %2070  ;;  %v1225_v61 = vsel %vm1205_vm14, %v1197_v28, %v1577_v57  ;;  %v1579_v62 = vadd.f32 -1.0, %v2069_v58 }
 0x705   :  { %v1229_v63 = vmul.f32 %v1225_v61, %v2758_v29  ;;  %v1226_v14 = vsel %vm1206_vm15, %v1199_v8, %v1578_v59  ;;  %v1580_v35 = vadd.f32 -1.0, %v2071_v60 }
 0x706   :  { %v1230_v42 = vmul.f32 %v1226_v14, %v2760_v33  ;;  %v1227_v6 = vsel %vm1207_vm9, %v1201_v45, %v1579_v62 }
 0x707   :  { %v1231_v39 = vmul.f32 %v1227_v6, %v2758_v29  ;;  %v1228_v40 = vsel %vm1208_vm10, %v1203_v48, %v1580_v35  ;;  %v3090_v7 = vadd.f32 %v1229_v63, %v2875_v37 }
 0x708   :  { %v1232_v43 = vmul.f32 %v1228_v40, %v2760_v33  ;;  %v3096_v34 = vadd.f32 %v1230_v42, %v2883_v16  ;;  %v2034_v16 = vld [vmem:[#allocation20 + $0x4] ss:$8 sps:$4 sm:$0xff]  }
 0x709   :  { %v3093_v32 = vadd.f32 %v1231_v39, %v2879_v9  ;;  %1585 = vmatprep.mubr.msk.bf16.mxu0 %vm402_vm0, %v2034_v16 }
 0x70a   :  { %v3099_v44 = vadd.f32 %v1232_v43, %v2887_v17  ;;  %v1241_v17 = vld [vmem:[#allocation21] sm:$0xff] }
 0x70b   :  { %v1940_v10 = vpack.i.bf16 %v3093_v32, %v3090_v7  ;;  %v1309_v9 = vpack.c.bf16 %v3093_v32, %v3090_v7 }
 0x70c   :  { %v1960_v11 = vpack.i.bf16 %v3099_v44, %v3096_v34  ;;  %v1310_v37 = vpack.c.bf16 %v3099_v44, %v3096_v34 }
 0x70d   :  { %1941 = vrot.lane.b32.xlu1 %v1940_v10, %s2389_s21 }
 0x70e   :  { %1961 = vrot.lane.b32.xlu0 %v1960_v11, %s2389_s21 }
 0x711   :  { %1946 = vrot.lane.b32.xlu1 %v1940_v10, %s2388_s11 }
 0x712   :  { %1966 = vrot.lane.b32.xlu0 %v1960_v11, %s2388_s11 }
 0x715   :  { %1951 = vrot.lane.b32.xlu1 %v1940_v10, %s2378_s27 }
 0x716   :  { %1971 = vrot.lane.b32.xlu0 %v1960_v11, %s2378_s27 }
 0x719   :  { %1956 = vrot.lane.b32.xlu1 %v1940_v10, %s2390_s2 }
 0x71a   :  { %1976 = vrot.lane.b32.xlu0 %v1960_v11, %s2390_s2 }
 0x71d   :  { %1981 = vrot.lane.b32.xlu1 %v1940_v10, %s2391_s6 }
 0x71e   :  { %2001 = vrot.lane.b32.xlu0 %v1960_v11, %s2391_s6 }
 0x721   :  { %1986 = vrot.lane.b32.xlu1 %v1940_v10, %s2392_s5 }
 0x722   :  { %2006 = vrot.lane.b32.xlu0 %v1960_v11, %s2392_s5 }
 0x725   :  { %1991 = vrot.lane.b32.xlu1 %v1940_v10, %s2393_s13 }
 0x726   :  { %2011 = vrot.lane.b32.xlu0 %v1960_v11, %s2393_s13 }
 0x729   :  { %1996 = vrot.lane.b32.xlu1 %v1940_v10, %s2394_s3 }
 0x72a   :  { %2016 = vrot.lane.b32.xlu0 %v1960_v11, %s2394_s3 }
 0x72d   :  { %1397 = vperm.xlu1 %1699, %v1241_v17  }
 0x72e   :  { %1402 = vperm.xlu0 %1698, %v1242_v12  }
 0x731   :  { %1407 = vperm.xlu1 %1699, %v1243_v13  }
 0x732   :  { %1412 = vperm.xlu0 %1698, %v1244_v36  }
 0x77f   :  { %v1942_v18 = vpop.permute.xlu1 %1941 }
 0x780   :  { %v1944_v19 = vunpack.i.h.bf16 %v1942_v18  ;;  %v1943_v0 = vunpack.i.l.bf16 %v1942_v18  ;;  %v1962_v1 = vpop.permute.xlu0 %1961 }
 0x781   :  { %v1964_v2 = vunpack.i.h.bf16 %v1962_v1  ;;  %v1963_v3 = vunpack.i.l.bf16 %v1962_v1 }
 0x783   :  { %v1255_v4 = vsel %vm225_vm1, %v1963_v3, %v1943_v0  ;;  %v1256_v5 = vsel %vm225_vm1, %v1964_v2, %v1944_v19  ;;  %v1947_v20 = vpop.permute.xlu1 %1946  ;;  %v1253_v21 = vsel %vm225_vm1, %v1943_v0, %v1963_v3  ;;  %v1254_v22 = vsel %vm225_vm1, %v1944_v19, %v1964_v2 }
 0x784   :  { %v1257_v23 = vpack.c.bf16 %v1256_v5, %v1255_v4  ;;  %v1949_v24 = vunpack.i.h.bf16 %v1947_v20  ;;  %v1948_v25 = vunpack.i.l.bf16 %v1947_v20  ;;  %v1967_v26 = vpop.permute.xlu0 %1966  ;;  %v1258_v27 = vpack.c.bf16 %v1254_v22, %v1253_v21 }
 0x785   :  { %v1969_v28 = vunpack.i.h.bf16 %v1967_v26  ;;  %v1968_v30 = vunpack.i.l.bf16 %v1967_v26 }
 0x786   :  { %1439 = vmatprep.subr.bf16.mxu0 %v1258_v27 }
 0x787   :  { %v1271_v31 = vsel %vm242_vm2, %v1968_v30, %v1948_v25  ;;  %v1272_v8 = vsel %vm242_vm2, %v1969_v28, %v1949_v24  ;;  %v1952_v38 = vpop.permute.xlu1 %1951  ;;  %1440 = vmatpush1.bf16.msra.mxu0 %v1257_v23  ;;  %v1269_v41 = vsel %vm242_vm2, %v1948_v25, %v1968_v30  ;;  %v1270_v45 = vsel %vm242_vm2, %v1949_v24, %v1969_v28 }
 0x788   :  { %v1273_v46 = vpack.c.bf16 %v1272_v8, %v1271_v31  ;;  %v1954_v47 = vunpack.i.h.bf16 %v1952_v38  ;;  %v1953_v48 = vunpack.i.l.bf16 %v1952_v38  ;;  %v1972_v49 = vpop.permute.xlu0 %1971  ;;  %v1274_v50 = vpack.c.bf16 %v1270_v45, %v1269_v41 }
 0x789   :  { %v1974_v51 = vunpack.i.h.bf16 %v1972_v49  ;;  %v1973_v52 = vunpack.i.l.bf16 %v1972_v49 }
 0x78a   :  { %1441 = vmatprep.subr.bf16.mxu0 %v1274_v50 }
 0x78b   :  { %v1287_v53 = vsel %vm259_vm3, %v1973_v52, %v1953_v48  ;;  %v1288_v54 = vsel %vm259_vm3, %v1974_v51, %v1954_v47  ;;  %v1957_v55 = vpop.permute.xlu1 %1956  ;;  %1442 = vmatpush1.bf16.msra.mxu0 %v1273_v46  ;;  %v1285_v56 = vsel %vm259_vm3, %v1953_v48, %v1973_v52  ;;  %v1286_v57 = vsel %vm259_vm3, %v1954_v47, %v1974_v51 }
 0x78c   :  { %v1289_v58 = vpack.c.bf16 %v1288_v54, %v1287_v53  ;;  %v1959_v59 = vunpack.i.h.bf16 %v1957_v55  ;;  %v1958_v60 = vunpack.i.l.bf16 %v1957_v55  ;;  %v1977_v61 = vpop.permute.xlu0 %1976  ;;  %v1290_v62 = vpack.c.bf16 %v1286_v57, %v1285_v56 }
 0x78d   :  { %v1979_v63 = vunpack.i.h.bf16 %v1977_v61  ;;  %v1978_v14 = vunpack.i.l.bf16 %v1977_v61 }
 0x78e   :  { %1443 = vmatprep.subr.bf16.mxu0 %v1290_v62 }
 0x78f   :  { %v1303_v35 = vsel %vm276_vm4, %v1978_v14, %v1958_v60  ;;  %v1304_v42 = vsel %vm276_vm4, %v1979_v63, %v1959_v59  ;;  %v1982_v6 = vpop.permute.xlu1 %1981  ;;  %1444 = vmatpush1.bf16.msra.mxu0 %v1289_v58  ;;  %v1301_v39 = vsel %vm276_vm4, %v1958_v60, %v1978_v14  ;;  %v1302_v40 = vsel %vm276_vm4, %v1959_v59, %v1979_v63  ;;  %v2036_v58 = vld [vmem:[#allocation20] ss:$8 sps:$4 sm:$0xff]   ;;  %v2037_v59 = vld [vmem:[#allocation20 + $0x14] ss:$8 sps:$4 sm:$0xff]   ;;  %v2039_v60 = vld [vmem:[#allocation20 + $0x10] ss:$8 sps:$4 sm:$0xff]  }
 0x790   :  { %v1305_v43 = vpack.c.bf16 %v1304_v42, %v1303_v35  ;;  %v1984_v10 = vunpack.i.h.bf16 %v1982_v6  ;;  %v1983_v11 = vunpack.i.l.bf16 %v1982_v6  ;;  %v2002_v16 = vpop.permute.xlu0 %2001  ;;  %v1306_v17 = vpack.c.bf16 %v1302_v40, %v1301_v39 }
 0x791   :  { %v2004_v12 = vunpack.i.h.bf16 %v2002_v16  ;;  %v2003_v13 = vunpack.i.l.bf16 %v2002_v16 }
 0x792   :  { %1445 = vmatprep.subr.bf16.mxu0 %v1306_v17 }
 0x793   :  { %v1987_v36 = vpop.permute.xlu1 %1986  ;;  %1446 = vmatpush1.bf16.msra.mxu0 %v1305_v43  ;;  %v1323_v18 = vsel %vm305_vm5, %v2003_v13, %v1983_v11  ;;  %v1324_v19 = vsel %vm305_vm5, %v2004_v12, %v1984_v10  ;;  %v1321_v5 = vsel %vm305_vm5, %v1983_v11, %v2003_v13  ;;  %v1322_v20 = vsel %vm305_vm5, %v1984_v10, %v2004_v12 }
 0x794   :  { %v1989_v0 = vunpack.i.h.bf16 %v1987_v36  ;;  %v1988_v1 = vunpack.i.l.bf16 %v1987_v36  ;;  %v2007_v2 = vpop.permute.xlu0 %2006  ;;  %1447 = vmatprep.subr.bf16.mxu0 %v1310_v37  ;;  %v1326_v21 = vpack.c.bf16 %v1324_v19, %v1323_v18  ;;  %v1325_v25 = vpack.c.bf16 %v1322_v20, %v1321_v5 }
 0x795   :  { %v2009_v3 = vunpack.i.h.bf16 %v2007_v2  ;;  %v2008_v4 = vunpack.i.l.bf16 %v2007_v2 }
 0x797   :  { %v1992_v22 = vpop.permute.xlu1 %1991  ;;  %1448 = vmatpush1.bf16.msra.mxu0 %v1309_v9  ;;  %v1339_v23 = vsel %vm322_vm6, %v2008_v4, %v1988_v1  ;;  %v1340_v34 = vsel %vm322_vm6, %v2009_v3, %v1989_v0  ;;  %v1337_v28 = vsel %vm322_vm6, %v1988_v1, %v2008_v4  ;;  %v1338_v7 = vsel %vm322_vm6, %v1989_v0, %v2009_v3 }
 0x798   :  { %v1994_v44 = vunpack.i.h.bf16 %v1992_v22  ;;  %v1993_v37 = vunpack.i.l.bf16 %v1992_v22  ;;  %v2012_v24 = vpop.permute.xlu0 %2011  ;;  %1449 = vmatprep.subr.bf16.mxu0 %v1326_v21  ;;  %v1342_v32 = vpack.c.bf16 %v1340_v34, %v1339_v23  ;;  %v1341_v45 = vpack.c.bf16 %v1338_v7, %v1337_v28 }
 0x799   :  { %v2014_v26 = vunpack.i.h.bf16 %v2012_v24  ;;  %v2013_v27 = vunpack.i.l.bf16 %v2012_v24 }
 0x79b   :  { %v1997_v9 = vpop.permute.xlu1 %1996  ;;  %1450 = vmatpush1.bf16.msra.mxu0 %v1325_v25  ;;  %v1355_v30 = vsel %vm339_vm7, %v2013_v27, %v1993_v37  ;;  %v1356_v31 = vsel %vm339_vm7, %v2014_v26, %v1994_v44  ;;  %v1353_v48 = vsel %vm339_vm7, %v1993_v37, %v2013_v27  ;;  %v1354_v49 = vsel %vm339_vm7, %v1994_v44, %v2014_v26 }
 0x79c   :  { %v1999_v8 = vunpack.i.h.bf16 %v1997_v9  ;;  %v1998_v38 = vunpack.i.l.bf16 %v1997_v9  ;;  %v2017_v41 = vpop.permute.xlu0 %2016  ;;  %1451 = vmatprep.subr.bf16.mxu0 %v1342_v32  ;;  %v1358_v50 = vpack.c.bf16 %v1356_v31, %v1355_v30  ;;  %v1357_v53 = vpack.c.bf16 %v1354_v49, %v1353_v48 }
 0x79d   :  { %v2019_v46 = vunpack.i.h.bf16 %v2017_v41  ;;  %v2018_v47 = vunpack.i.l.bf16 %v2017_v41 }
 0x79f   :  { %1452 = vmatpush1.bf16.msra.mxu0 %v1341_v45  ;;  %v1371_v51 = vsel %vm356_vm8, %v2018_v47, %v1998_v38  ;;  %v1372_v52 = vsel %vm356_vm8, %v2019_v46, %v1999_v8  ;;  %v1369_v54 = vsel %vm356_vm8, %v1998_v38, %v2018_v47  ;;  %v1370_v55 = vsel %vm356_vm8, %v1999_v8, %v2019_v46 }
 0x7a0   :  { %1453 = vmatprep.subr.bf16.mxu0 %v1358_v50  ;;  %v1374_v56 = vpack.c.bf16 %v1372_v52, %v1371_v51  ;;  %v1373_v57 = vpack.c.bf16 %v1370_v55, %v1369_v54 }
 0x7a3   :  { %1454 = vmatpush1.bf16.msra.mxu0 %v1357_v53 }
 0x7a4   :  { %1455 = vmatprep.subr.bf16.mxu0 %v1374_v56 }
 0x7a7   :  { %1456 = vmatpush1.bf16.msra.mxu0 %v1373_v57 }
 0x7aa   :  { %1472 = vmatmul.mubr.bf16.vlgmr.msra.gmra.mrb[4].mxu0 %v2036_v58 }
 0x7ab   :  { %1586 = vmatprep.mubr.msk.bf16.mxu0 %vm402_vm0, %v2037_v59 }
 0x7ac   :  { %v1398_v61 = vpop.permute.xlu1 %1397 }
 0x7ad   :  { %v1403_v35 = vpop.permute.xlu0 %1402 }
 0x7b0   :  { %v1408_v12 = vpop.permute.xlu1 %1407 }
 0x7b1   :  { %v1413_v0 = vpop.permute.xlu0 %1412 }
 0x7b2   :  { %1482 = vmatmul.mubr.bf16.gmra.mrb[8].mxu0 %v2039_v60 }
 0x87d   :  { %v1473_v62 = vpop.f32.mrb[4].mxu0 }
 0x87e   :  { %v1474_v63 = vadd.f32 %v1473_v62, %v1398_v61  ;;  %v1475_v14 = vpop.f32.mrb[5].mxu0 }
 0x87f   :  { %v1476_v42 = vadd.f32 %v1475_v14, %v1398_v61  ;;  %v1477_v15 = vpop.f32.mrb[6].mxu0 }
 0x880   :  { %v1492_v6 = vmul.f32 %v1474_v63, %v2758_v29  ;;  %v1478_v39 = vadd.f32 %v1477_v15, %v1403_v35  ;;  %v1479_v40 = vpop.f32.mrb[7].mxu0 }
 0x881   :  { %v1493_v43 = vmul.f32 %v1476_v42, %v2760_v33  ;;  %v1480_v10 = vadd.f32 %v1479_v40, %v1403_v35 }
 0x882   :  { %v1494_v11 = vmul.f32 %v1478_v39, %v2758_v29 }
 0x883   :  { %v1591_v16 = vpack.c.bf16 %v1493_v43, %v1492_v6  ;;  %v1495_v17 = vmul.f32 %v1480_v10, %v2760_v33 }
 0x885   :  { %1524 = vst [vmem:[#allocation23] sm:$0xff] %v1591_v16  ;;  %v1592_v13 = vpack.c.bf16 %v1495_v17, %v1494_v11  ;;  %v1483_v36 = vpop.f32.mrb[8].mxu0 }
 0x886   :  { %v1484_v18 = vadd.f32 %v1483_v36, %v1408_v12  ;;  %v1485_v19 = vpop.f32.mrb[9].mxu0 }
 0x887   :  { %1525 = vst [vmem:[#allocation23 + $0x8] sm:$0xff] %v1592_v13  ;;  %v1486_v1 = vadd.f32 %v1485_v19, %v1408_v12  ;;  %v1487_v2 = vpop.f32.mrb[10].mxu0 }
 0x888   :  { %v1496_v3 = vmul.f32 %v1484_v18, %v2758_v29  ;;  %v1488_v4 = vadd.f32 %v1487_v2, %v1413_v0  ;;  %v1489_v5 = vpop.f32.mrb[11].mxu0 }
 0x889   :  { %v1497_v20 = vmul.f32 %v1486_v1, %v2760_v33  ;;  %v1490_v21 = vadd.f32 %v1489_v5, %v1413_v0 }
 0x88a   :  { %v1498_v22 = vmul.f32 %v1488_v4, %v2758_v29 }
 0x88b   :  { %v1593_v23 = vpack.c.bf16 %v1497_v20, %v1496_v3  ;;  %v1499_v34 = vmul.f32 %v1490_v21, %v2760_v33 }
 0x88d   :  { %1526 = vst [vmem:[#allocation23 + $0x10] sm:$0xff] %v1593_v23  ;;  %v1594_v44 = vpack.c.bf16 %v1499_v34, %v1498_v22 }
 0x88f   :  { %1527 = vst [vmem:[#allocation23 + $0x18] sm:$0xff] %v1594_v44 }
 0x890   :  { %2347 = shalt.err (!%p2344_p2)
}
 0x891   :  { %s2348_s24 = scalar_lea.hbm %s3232_s12, 512 }
 0x892   :  { %p2349_p3 = scmp.ne.s32.totalorder %s3232_s12, %s2348_s24  ;;  %p2352_p4 = scmp.lt.u32.totalorder %s2348_s24, %s3232_s12 }
 0x894   :  { %p2354_p5 = pnand %p2352_p4, %p2349_p3 }
 0x896   :  { %2357 = shalt.err (!%p2354_p5)
}
 0x897   :  { %1539 = dma.vmem_to_hbm [thread:$0]  %s1534_s23, 512, %s3232_s12, [#allocation5], %s2377_s22, %s2377_s22, %s2378_s27  }
 0x898   :  { %2372 = dma.done.wait [#allocation5], 512  }
 0x899   :  { %2373 = vsyncadd [#allocation5], 4294966784 }
 0x89a   :  { %1543 = vsyncpa [#allocation4], 1 }
 0x89b   :  { %1544 = vsyncpa [#allocation7], 1 }
 0x89c   :  { %1545 = vsyncpa [#allocation10], 1 }
 0x89d   :  { %1546 = vsyncpa [#allocation13], 1 }
 0x89e   :  { %1547 = vsyncpa [#allocation16], 1 }
 0x89f   :  { %1548 = vsyncpa [#allocation19], 1 }
 0x8a0   :  { %1549 = vsyncpa [#allocation22], 1 }
 0x8a1   :  { %1550 = vsyncpa [#allocation5], 1 }

// kernel: a_call__.9
= control target key start
LH: loop header
LB: loop body
LE: loop exit
PB: predicated region body
PF: predicated region fallthrough
CT: control target
= control target key end

     0   :  { %10 = vsyncpa [#allocation3], 0  ;;  %s698_s0 = inlined_call_operand.hbm [shape: bf16[8,128], index: 0, kind: input, shape index: {}]   ;;  %s699_s1 = inlined_call_operand.hbm [shape: bf16[128,128], index: 1, kind: input, shape index: {}]   ;;  %s700_s2 = inlined_call_operand.hbm [shape: f32[1,128], index: 2, kind: input, shape index: {}]   ;;  %s701_s3 = inlined_call_operand.hbm [shape: bf16[128,128], index: 3, kind: input, shape index: {}]   ;;  %s702_s4 = inlined_call_operand.hbm [shape: f32[1,128], index: 4, kind: input, shape index: {}]   ;;  %s703_s5 = inlined_call_operand.hbm [shape: f32[8,128], index: 5, kind: output, shape index: {}]  }
   0x1   :  { %11 = vsyncpa [#allocation6], 0 }
   0x2   :  { %12 = vsyncpa [#allocation9], 0 }
   0x3   :  { %13 = vsyncpa [#allocation4], 0  ;;  %s586_s18 = smov [#allocation5]   ;;  %s446_s22 = scalar_lea.hbm %s699_s1, 1024 }
   0x4   :  { %s29_s19 = sshll.u32 %s586_s18, 4  ;;  %p447_p0 = scmp.ne.s32.totalorder %s699_s1, %s446_s22  ;;  %s30_s19 = int_to_ptr.vmem [resolvable:$true] %s29_s19 }
   0x5   :  { %p450_p1 = scmp.lt.u32.totalorder %s446_s22, %s699_s1 }
   0x7   :  { %p452_p2 = pnand %p450_p1, %p447_p0 }
   0x9   :  { %455 = shalt.err (!%p452_p2)
}
   0xa   :  { %s456_s27 = scalar_lea.vmem %s30_s19, 1024  ;;  %p461_p4 = scmp.lt.s32.totalorder %s30_s19, %s30_s19 }
   0xb   :  { %p457_p3 = scmp.ne.s32.totalorder %s30_s19, %s456_s27  ;;  %p462_p5 = scmp.lt.s32.totalorder %s456_s27, %s456_s27 }
   0xd   :  { %p463_p6 = por %p462_p5, %p461_p4 }
   0xf   :  { %p464_p7 = pnand %p463_p6, %p457_p3 }
  0x11   :  { %467 = shalt.err (!%p464_p7)
}
  0x12   :  { %s587_s28 = smov 64   ;;  %s588_s29 = smov 4  }
  0x13   :  { %35 = dma.hbm_to_vmem [thread:$0]  %s699_s1, 1024, %s30_s19, [#allocation6], %s587_s28, %s587_s28, %s588_s29  }
  0x14   :  { %s589_s7 = smov [#allocation8]   ;;  %s590_s9 = smov [#allocation2]  }
  0x15   :  { %s51_s8 = sshll.u32 %s589_s7, 4  ;;  %s20_s10 = sshll.u32 %s590_s9, 4  ;;  %s52_s8 = int_to_ptr.vmem [resolvable:$true] %s51_s8  ;;  %s21_s10 = int_to_ptr.vmem [resolvable:$true] %s20_s10 }
  0x16   :  { %s468_s13 = scalar_lea.hbm %s701_s3, 1024 }
  0x17   :  { %p469_p8 = scmp.ne.s32.totalorder %s701_s3, %s468_s13  ;;  %p472_p9 = scmp.lt.u32.totalorder %s468_s13, %s701_s3 }
  0x19   :  { %p474_p10 = pnand %p472_p9, %p469_p8 }
  0x1b   :  { %477 = shalt.err (!%p474_p10)
}
  0x1c   :  { %s478_s1 = scalar_lea.vmem %s52_s8, 1024  ;;  %p483_p12 = scmp.lt.s32.totalorder %s52_s8, %s52_s8 }
  0x1d   :  { %p479_p11 = scmp.ne.s32.totalorder %s52_s8, %s478_s1  ;;  %p484_p13 = scmp.lt.s32.totalorder %s478_s1, %s478_s1 }
  0x1f   :  { %p485_p0 = por %p484_p13, %p483_p12 }
  0x21   :  { %p486_p1 = pnand %p485_p0, %p479_p11 }
  0x23   :  { %489 = shalt.err (!%p486_p1)
}
  0x24   :  { %57 = dma.hbm_to_vmem [thread:$0]  %s701_s3, 1024, %s52_s8, [#allocation9], %s587_s28, %s587_s28, %s588_s29  }
  0x25   :  { %s490_s22 = scalar_lea.hbm %s698_s0, 64 }
  0x26   :  { %p491_p2 = scmp.ne.s32.totalorder %s698_s0, %s490_s22  ;;  %p494_p3 = scmp.lt.u32.totalorder %s490_s22, %s698_s0 }
  0x28   :  { %p496_p4 = pnand %p494_p3, %p491_p2 }
  0x2a   :  { %499 = shalt.err (!%p496_p4)
}
  0x2b   :  { %s500_s27 = scalar_lea.vmem %s21_s10, 64  ;;  %p505_p6 = scmp.lt.s32.totalorder %s21_s10, %s21_s10 }
  0x2c   :  { %p501_p5 = scmp.ne.s32.totalorder %s21_s10, %s500_s27  ;;  %p506_p7 = scmp.lt.s32.totalorder %s500_s27, %s500_s27 }
  0x2e   :  { %p507_p8 = por %p506_p7, %p505_p6 }
  0x30   :  { %p508_p9 = pnand %p507_p8, %p501_p5 }
  0x32   :  { %511 = shalt.err (!%p508_p9)
}
  0x33   :  { %23 = dma.hbm_to_vmem [thread:$0]  %s698_s0, 64, %s21_s10, [#allocation3]  }
  0x34   :  { %s591_s29 = smov [#allocation7]   ;;  %s592_s6 = smov [#allocation10]  }
  0x35   :  { %s42_s30 = sshll.u32 %s591_s29, 4  ;;  %s64_s7 = sshll.u32 %s592_s6, 4  ;;  %s43_s30 = int_to_ptr.vmem [resolvable:$true] %s42_s30  ;;  %s65_s7 = int_to_ptr.vmem [resolvable:$true] %s64_s7 }
  0x36   :  { %s512_s11 = scalar_lea.hbm %s700_s2, 16 }
  0x37   :  { %p513_p10 = scmp.ne.s32.totalorder %s700_s2, %s512_s11  ;;  %p516_p11 = scmp.lt.u32.totalorder %s512_s11, %s700_s2 }
  0x39   :  { %p518_p12 = pnand %p516_p11, %p513_p10 }
  0x3b   :  { %521 = shalt.err (!%p518_p12)
}
  0x3c   :  { %s522_s0 = scalar_lea.vmem %s43_s30, 16  ;;  %s526_s10 = scalar_lea.vmem %s43_s30, 32 }
  0x3d   :  { %p523_p13 = scmp.ne.s32.totalorder %s43_s30, %s522_s0  ;;  %p527_p0 = scmp.lt.s32.totalorder %s43_s30, %s43_s30 }
  0x3e   :  { %p528_p1 = scmp.lt.s32.totalorder %s526_s10, %s522_s0 }
  0x40   :  { %p529_p2 = por %p528_p1, %p527_p0 }
  0x42   :  { %p530_p3 = pnand %p529_p2, %p523_p13 }
  0x44   :  { %533 = shalt.err (!%p530_p3)
}
  0x45   :  { %45 = dma.hbm_to_vmem [thread:$0]  %s700_s2, 16, %s43_s30, [#allocation6]  }
  0x46   :  { %s534_s19 = scalar_lea.hbm %s702_s4, 16 }
  0x47   :  { %p535_p4 = scmp.ne.s32.totalorder %s702_s4, %s534_s19  ;;  %p538_p5 = scmp.lt.u32.totalorder %s534_s19, %s702_s4 }
  0x49   :  { %p540_p6 = pnand %p538_p5, %p535_p4 }
  0x4b   :  { %543 = shalt.err (!%p540_p6)
}
  0x4c   :  { %s544_s24 = scalar_lea.vmem %s65_s7, 16  ;;  %s548_s25 = scalar_lea.vmem %s65_s7, 32 }
  0x4d   :  { %p545_p7 = scmp.ne.s32.totalorder %s65_s7, %s544_s24  ;;  %p549_p8 = scmp.lt.s32.totalorder %s65_s7, %s65_s7 }
  0x4e   :  { %p550_p9 = scmp.lt.s32.totalorder %s548_s25, %s544_s24 }
  0x50   :  { %p551_p10 = por %p550_p9, %p549_p8 }
  0x52   :  { %p552_p11 = pnand %p551_p10, %p545_p7 }
  0x54   :  { %555 = shalt.err (!%p552_p11)
}
  0x55   :  { %67 = dma.hbm_to_vmem [thread:$0]  %s702_s4, 16, %s65_s7, [#allocation9]  }
  0x56   :  { %578 = dma.done.wait [#allocation3], 64  }
  0x57   :  { %579 = vsyncadd [#allocation3], 4294967232 }
  0x58   :  { %580 = dma.done.wait [#allocation6], 1040  }
  0x59   :  { %581 = vsyncadd [#allocation6], 4294966256 }
  0x5a   :  { %582 = dma.done.wait [#allocation9], 1040  }
  0x5b   :  { %583 = vsyncadd [#allocation9], 4294966256  ;;  %v593_v0 = vmov 0.0   ;;  %vm594_vm0 = vmmov 0   ;;  %v426_v1 = vld [vmem:[#allocation5] sm:$0xff]   ;;  %v427_v2 = vld [vmem:[#allocation5 + $0x8] sm:$0xff]  }
  0x5c   :  { %376 = vmatprep.subr.bf16.mxu0 %v593_v0  ;;  %392 = vmatprep.mubr.msk.bf16.mxu0 %vm594_vm0, %v593_v0  ;;  %v428_v3 = vld [vmem:[#allocation5 + $0x10] sm:$0xff]   ;;  %v434_v4 = vld [vmem:[#allocation8] sm:$0xff]   ;;  %v429_v5 = vld [vmem:[#allocation5 + $0x18] sm:$0xff]   ;;  %s595_s4 = smov [#allocation11]  }
  0x5d   :  { %396 = vmatprep.subr.bf16.mxu1 %v593_v0  ;;  %412 = vmatprep.mubr.msk.bf16.mxu1 %vm594_vm0, %v593_v0  ;;  %v435_v6 = vld [vmem:[#allocation8 + $0x8] sm:$0xff]   ;;  %v430_v7 = vld [vmem:[#allocation5 + $0x20] sm:$0xff]   ;;  %v433_v10 = vld [vmem:[#allocation5 + $0x38] sm:$0xff]   ;;  %s327_s27 = sshll.u32 %s595_s4, 4  ;;  %s328_s27 = int_to_ptr.vmem [resolvable:$true] %s327_s27 }
  0x5e   :  { %377 = vmatpush3.bf16.msra.mxu0 %v426_v1  ;;  %397 = vmatpush3.bf16.msra.mxu1 %v434_v4  ;;  %v431_v8 = vld [vmem:[#allocation5 + $0x28] sm:$0xff]   ;;  %v432_v9 = vld [vmem:[#allocation5 + $0x30] sm:$0xff]   ;;  %v84_v11 = vld [vmem:[#allocation2] sm:$0xf]  ;;  %s556_s3 = scalar_lea.vmem %s328_s27, 128  ;;  %p561_p13 = scmp.lt.s32.totalorder %s328_s27, %s328_s27 }
  0x5f   :  { %378 = vmatprep.subr.bf16.mxu0 %v593_v0  ;;  %398 = vmatprep.subr.bf16.mxu1 %v593_v0  ;;  %v436_v12 = vld [vmem:[#allocation8 + $0x10] sm:$0xff]   ;;  %v437_v13 = vld [vmem:[#allocation8 + $0x18] sm:$0xff]   ;;  %v438_v14 = vld [vmem:[#allocation8 + $0x20] sm:$0xff]   ;;  %p557_p12 = scmp.ne.s32.totalorder %s328_s27, %s556_s3  ;;  %p562_p0 = scmp.lt.s32.totalorder %s556_s3, %s556_s3 }
  0x60   :  { %v439_v15 = vld [vmem:[#allocation8 + $0x28] sm:$0xff]   ;;  %v440_v16 = vld [vmem:[#allocation8 + $0x30] sm:$0xff]   ;;  %v441_v17 = vld [vmem:[#allocation8 + $0x38] sm:$0xff]  }
  0x61   :  { %v338_v18 = vld [vmem:[#allocation7] ss:$0 sm:$0xff]  ;;  %v348_v30 = vld [vmem:[#allocation10] ss:$0 sm:$0xff]  ;;  %p563_p1 = por %p562_p0, %p561_p13 }
  0x62   :  { %379 = vmatpush3.bf16.msra.mxu0 %v427_v2  ;;  %399 = vmatpush3.bf16.msra.mxu1 %v435_v6 }
  0x63   :  { %380 = vmatprep.subr.bf16.mxu0 %v593_v0  ;;  %400 = vmatprep.subr.bf16.mxu1 %v593_v0  ;;  %p564_p2 = pnand %p563_p1, %p557_p12 }
  0x66   :  { %381 = vmatpush3.bf16.msra.mxu0 %v428_v3  ;;  %401 = vmatpush3.bf16.msra.mxu1 %v436_v12 }
  0x67   :  { %382 = vmatprep.subr.bf16.mxu0 %v593_v0  ;;  %402 = vmatprep.subr.bf16.mxu1 %v593_v0 }
  0x6a   :  { %383 = vmatpush3.bf16.msra.mxu0 %v429_v5  ;;  %403 = vmatpush3.bf16.msra.mxu1 %v437_v13 }
  0x6b   :  { %384 = vmatprep.subr.bf16.mxu0 %v593_v0  ;;  %404 = vmatprep.subr.bf16.mxu1 %v593_v0 }
  0x6e   :  { %385 = vmatpush3.bf16.msra.mxu0 %v430_v7  ;;  %405 = vmatpush3.bf16.msra.mxu1 %v438_v14 }
  0x6f   :  { %386 = vmatprep.subr.bf16.mxu0 %v593_v0  ;;  %406 = vmatprep.subr.bf16.mxu1 %v593_v0 }
  0x72   :  { %387 = vmatpush3.bf16.msra.mxu0 %v431_v8  ;;  %407 = vmatpush3.bf16.msra.mxu1 %v439_v15 }
  0x73   :  { %388 = vmatprep.subr.bf16.mxu0 %v593_v0  ;;  %408 = vmatprep.subr.bf16.mxu1 %v593_v0 }
  0x76   :  { %389 = vmatpush3.bf16.msra.mxu0 %v432_v9  ;;  %409 = vmatpush3.bf16.msra.mxu1 %v440_v16 }
  0x77   :  { %390 = vmatprep.subr.bf16.mxu0 %v593_v0  ;;  %410 = vmatprep.subr.bf16.mxu1 %v593_v0 }
  0x7a   :  { %391 = vmatpush3.bf16.msra.mxu0 %v433_v10  ;;  %411 = vmatpush3.bf16.msra.mxu1 %v441_v17 }
  0x7d   :  { %393 = vmatmul.mubr.bf16.vlgmr.msra.gmra.mrb[0].mxu0 %v84_v11 }
 0x150   :  { %v190_v19 = vpop.f32.mrb[0].mxu0 }
 0x151   :  { %v191_v20 = vadd.f32 %v338_v18, %v190_v19  ;;  %v394_v21 = vpop.f32.mrb[1].mxu0 }
 0x152   :  { %v193_v22 = vpop.f32.mrb[2].mxu0 }
 0x153   :  { %v197_v23 = vmin.f32 %v191_v20, 0.0  ;;  %v395_v24 = vpop.f32.mrb[3].mxu0  ;;  %vm196_vm1 = vcmp.gt.f32.partialorder %v191_v20, 0.0 }
 0x155   :  { %v198_v25 = vmul.f32 1.442695, %v197_v23 }
 0x157   :  { %442 = vpow2.f32 %v198_v25 }
 0x161   :  { %v443_v26 = vpop.eup %442 }
 0x162   :  { %v347_v27 = vadd.f32 -1.0, %v443_v26 }
 0x164   :  { %v201_v28 = vsel %vm196_vm1, %v191_v20, %v347_v27 }
 0x165   :  { %v219_v29 = vpack.c.bf16 %v201_v28, %v201_v28 }
 0x167   :  { %413 = vmatmul.mubr.bf16.vlgmr.msra.gmra.mrb[0].mxu1 %v219_v29 }
 0x23a   :  { %v308_v31 = vpop.f32.mrb[0].mxu1 }
 0x23b   :  { %v309_v32 = vadd.f32 %v348_v30, %v308_v31  ;;  %v414_v33 = vpop.f32.mrb[1].mxu1 }
 0x23c   :  { %v311_v34 = vpop.f32.mrb[2].mxu1 }
 0x23d   :  { %v315_v35 = vmin.f32 %v309_v32, 0.0  ;;  %v415_v36 = vpop.f32.mrb[3].mxu1  ;;  %vm314_vm2 = vcmp.gt.f32.partialorder %v309_v32, 0.0 }
 0x23f   :  { %v316_v37 = vmul.f32 1.442695, %v315_v35 }
 0x241   :  { %444 = vpow2.f32 %v316_v37 }
 0x24b   :  { %v445_v38 = vpop.eup %444 }
 0x24c   :  { %v357_v39 = vadd.f32 -1.0, %v445_v38 }
 0x24e   :  { %v319_v40 = vsel %vm314_vm2, %v309_v32, %v357_v39 }
 0x24f   :  { %320 = vst [vmem:[#allocation11] sm:$0xff] %v319_v40 }
 0x250   :  { %567 = shalt.err (!%p564_p2)
}
 0x251   :  { %s568_s30 = scalar_lea.hbm %s703_s5, 128 }
 0x252   :  { %p569_p3 = scmp.ne.s32.totalorder %s703_s5, %s568_s30  ;;  %p572_p4 = scmp.lt.u32.totalorder %s568_s30, %s703_s5 }
 0x254   :  { %p574_p5 = pnand %p572_p4, %p569_p3 }
 0x256   :  { %577 = shalt.err (!%p574_p5)
}
 0x257   :  { %330 = dma.vmem_to_hbm [thread:$0]  %s328_s27, 128, %s703_s5, [#allocation4]  }
 0x258   :  { %584 = dma.done.wait [#allocation4], 128  }
 0x259   :  { %585 = vsyncadd [#allocation4], 4294967168 }
 0x25a   :  { %334 = vsyncpa [#allocation3], 1 }
 0x25b   :  { %335 = vsyncpa [#allocation6], 1 }
 0x25c   :  { %336 = vsyncpa [#allocation9], 1 }
 0x25d   :  { %337 = vsyncpa [#allocation4], 1 }

// kernel: a_call__.7
= control target key start
LH: loop header
LB: loop body
LE: loop exit
PB: predicated region body
PF: predicated region fallthrough
CT: control target
= control target key end

     0   :  { %17 = vsyncpa [#allocation4], 0  ;;  %s3368_s0 = inlined_call_operand.hbm [shape: bf16[32,128], index: 0, kind: input, shape index: {}]   ;;  %s3369_s1 = inlined_call_operand.hbm [shape: f32[1,128], index: 1, kind: input, shape index: {}]   ;;  %s3370_s2 = inlined_call_operand.hbm [shape: bf16[32,288], index: 2, kind: input, shape index: {}]   ;;  %s3371_s3 = inlined_call_operand.hbm [shape: f32[32,1], index: 3, kind: input, shape index: {}]   ;;  %s3372_s4 = inlined_call_operand.hbm [shape: bf16[32,288], index: 4, kind: input, shape index: {}]   ;;  %s3373_s5 = inlined_call_operand.hbm [shape: f32[32,1], index: 5, kind: input, shape index: {}]   ;;  %s3374_s6 = inlined_call_operand.hbm [shape: bf16[32,288], index: 6, kind: input, shape index: {}]   ;;  %s3375_s7 = inlined_call_operand.hbm [shape: f32[32,1], index: 7, kind: input, shape index: {}]   ;;  %s3376_s8 = inlined_call_operand.hbm [shape: bf16[32,288], index: 8, kind: input, shape index: {}]   ;;  %s3377_s9 = inlined_call_operand.hbm [shape: f32[32,1], index: 9, kind: input, shape index: {}]   ;;  %s3378_s10 = inlined_call_operand.hbm [shape: bf16[32,288], index: 10, kind: input, shape index: {}]   ;;  %s3379_s11 = inlined_call_operand.hbm [shape: f32[32,1], index: 11, kind: input, shape index: {}]   ;;  %s3380_s12 = inlined_call_operand.hbm [shape: bf16[32,128], index: 12, kind: output, shape index: {}]  }
   0x1   :  { %18 = vsyncpa [#allocation7], 0 }
   0x2   :  { %19 = vsyncpa [#allocation10], 0 }
   0x3   :  { %20 = vsyncpa [#allocation13], 0 }
   0x4   :  { %21 = vsyncpa [#allocation16], 0 }
   0x5   :  { %22 = vsyncpa [#allocation19], 0 }
   0x6   :  { %23 = vsyncpa [#allocation22], 0 }
   0x7   :  { %24 = vsyncpa [#allocation5], 0  ;;  %s2903_s21 = smov [#allocation6]   ;;  %s2904_s23 = smov [#allocation9]  }
   0x8   :  { %s43_s22 = sshll.u32 %s2903_s21, 4  ;;  %s64_s24 = sshll.u32 %s2904_s23, 4  ;;  %s44_s22 = int_to_ptr.vmem [resolvable:$true] %s43_s22  ;;  %s2995_s24 = int_to_ptr.vmem [resolvable:$true] %s64_s24 }
   0x9   :  { %s2601_s27 = scalar_lea.hbm %s3369_s1, 16 }
   0xa   :  { %p2602_p0 = scmp.ne.s32.totalorder %s3369_s1, %s2601_s27  ;;  %p2605_p1 = scmp.lt.u32.totalorder %s2601_s27, %s3369_s1 }
   0xc   :  { %p2607_p2 = pnand %p2605_p1, %p2602_p0 }
   0xe   :  { %2610 = shalt.err (!%p2607_p2)
}
   0xf   :  { %s2611_s14 = scalar_lea.vmem %s44_s22, 16  ;;  %s2615_s15 = scalar_lea.vmem %s44_s22, 32 }
  0x10   :  { %p2612_p3 = scmp.ne.s32.totalorder %s44_s22, %s2611_s14  ;;  %p2616_p4 = scmp.lt.s32.totalorder %s44_s22, %s44_s22 }
  0x11   :  { %p2617_p5 = scmp.lt.s32.totalorder %s2615_s15, %s2611_s14 }
  0x13   :  { %p2618_p6 = por %p2617_p5, %p2616_p4 }
  0x15   :  { %p2619_p7 = pnand %p2618_p6, %p2612_p3 }
  0x17   :  { %2622 = shalt.err (!%p2619_p7)
}
  0x18   :  { %46 = dma.hbm_to_vmem [thread:$0]  %s3369_s1, 16, %s44_s22, [#allocation7]  }
  0x19   :  { %s2623_s20 = scalar_lea.hbm %s3371_s3, 512 }
  0x1a   :  { %p2624_p8 = scmp.ne.s32.totalorder %s3371_s3, %s2623_s20  ;;  %p2627_p9 = scmp.lt.u32.totalorder %s2623_s20, %s3371_s3 }
  0x1c   :  { %p2629_p10 = pnand %p2627_p9, %p2624_p8 }
  0x1e   :  { %2632 = shalt.err (!%p2629_p10)
}
  0x1f   :  { %s2633_s27 = scalar_lea.vmem %s2995_s24, 512  ;;  %p2638_p12 = scmp.lt.s32.totalorder %s2995_s24, %s2995_s24 }
  0x20   :  { %p2634_p11 = scmp.ne.s32.totalorder %s2995_s24, %s2633_s27  ;;  %p2639_p13 = scmp.lt.s32.totalorder %s2633_s27, %s2633_s27 }
  0x22   :  { %p2640_p0 = por %p2639_p13, %p2638_p12 }
  0x24   :  { %p2641_p1 = pnand %p2640_p0, %p2634_p11 }
  0x26   :  { %2644 = shalt.err (!%p2641_p1)
}
  0x27   :  { %s2905_s1 = smov 128   ;;  %s2906_s22 = smov 8  }
  0x28   :  { %70 = dma.hbm_to_vmem [thread:$0]  %s3371_s3, 512, %s2995_s24, [#allocation10], %s2905_s1, %s2905_s1, %s2906_s22  }
  0x29   :  { %s2907_s30 = smov [#allocation12]   ;;  %s2908_s14 = smov [#allocation15]  }
  0x2a   :  { %s88_s13 = sshll.u32 %s2907_s30, 4  ;;  %s112_s15 = sshll.u32 %s2908_s14, 4  ;;  %s89_s13 = int_to_ptr.vmem [resolvable:$true] %s88_s13  ;;  %s3029_s15 = int_to_ptr.vmem [resolvable:$true] %s112_s15 }
  0x2b   :  { %s2645_s18 = scalar_lea.hbm %s3373_s5, 512 }
  0x2c   :  { %p2646_p2 = scmp.ne.s32.totalorder %s3373_s5, %s2645_s18  ;;  %p2649_p3 = scmp.lt.u32.totalorder %s2645_s18, %s3373_s5 }
  0x2e   :  { %p2651_p4 = pnand %p2649_p3, %p2646_p2 }
  0x30   :  { %2654 = shalt.err (!%p2651_p4)
}
  0x31   :  { %s2655_s3 = scalar_lea.vmem %s89_s13, 512  ;;  %p2660_p6 = scmp.lt.s32.totalorder %s89_s13, %s89_s13 }
  0x32   :  { %p2656_p5 = scmp.ne.s32.totalorder %s89_s13, %s2655_s3  ;;  %p2661_p7 = scmp.lt.s32.totalorder %s2655_s3, %s2655_s3 }
  0x34   :  { %p2662_p8 = por %p2661_p7, %p2660_p6 }
  0x36   :  { %p2663_p9 = pnand %p2662_p8, %p2656_p5 }
  0x38   :  { %2666 = shalt.err (!%p2663_p9)
}
  0x39   :  { %94 = dma.hbm_to_vmem [thread:$0]  %s3373_s5, 512, %s89_s13, [#allocation13], %s2905_s1, %s2905_s1, %s2906_s22  }
  0x3a   :  { %s2667_s28 = scalar_lea.hbm %s3375_s7, 512 }
  0x3b   :  { %p2668_p10 = scmp.ne.s32.totalorder %s3375_s7, %s2667_s28  ;;  %p2671_p11 = scmp.lt.u32.totalorder %s2667_s28, %s3375_s7 }
  0x3d   :  { %p2673_p12 = pnand %p2671_p11, %p2668_p10 }
  0x3f   :  { %2676 = shalt.err (!%p2673_p12)
}
  0x40   :  { %s2677_s17 = scalar_lea.vmem %s3029_s15, 512  ;;  %p2682_p0 = scmp.lt.s32.totalorder %s3029_s15, %s3029_s15 }
  0x41   :  { %p2678_p13 = scmp.ne.s32.totalorder %s3029_s15, %s2677_s17  ;;  %p2683_p1 = scmp.lt.s32.totalorder %s2677_s17, %s2677_s17 }
  0x43   :  { %p2684_p2 = por %p2683_p1, %p2682_p0 }
  0x45   :  { %p2685_p3 = pnand %p2684_p2, %p2678_p13 }
  0x47   :  { %2688 = shalt.err (!%p2685_p3)
}
  0x48   :  { %118 = dma.hbm_to_vmem [thread:$0]  %s3375_s7, 512, %s3029_s15, [#allocation16], %s2905_s1, %s2905_s1, %s2906_s22  }
  0x49   :  { %s2909_s18 = smov [#allocation18]   ;;  %s2910_s20 = smov [#allocation3]  }
  0x4a   :  { %s136_s19 = sshll.u32 %s2909_s18, 4  ;;  %s30_s21 = sshll.u32 %s2910_s20, 4  ;;  %s137_s19 = int_to_ptr.vmem [resolvable:$true] %s136_s19  ;;  %s3066_s21 = int_to_ptr.vmem [resolvable:$true] %s30_s21 }
  0x4b   :  { %s2689_s24 = scalar_lea.hbm %s3377_s9, 512 }
  0x4c   :  { %p2690_p4 = scmp.ne.s32.totalorder %s3377_s9, %s2689_s24  ;;  %p2693_p5 = scmp.lt.u32.totalorder %s2689_s24, %s3377_s9 }
  0x4e   :  { %p2695_p6 = pnand %p2693_p5, %p2690_p4 }
  0x50   :  { %2698 = shalt.err (!%p2695_p6)
}
  0x51   :  { %s2699_s7 = scalar_lea.vmem %s137_s19, 512  ;;  %p2704_p8 = scmp.lt.s32.totalorder %s137_s19, %s137_s19 }
  0x52   :  { %p2700_p7 = scmp.ne.s32.totalorder %s137_s19, %s2699_s7  ;;  %p2705_p9 = scmp.lt.s32.totalorder %s2699_s7, %s2699_s7 }
  0x54   :  { %p2706_p10 = por %p2705_p9, %p2704_p8 }
  0x56   :  { %p2707_p11 = pnand %p2706_p10, %p2700_p7 }
  0x58   :  { %2710 = shalt.err (!%p2707_p11)
}
  0x59   :  { %142 = dma.hbm_to_vmem [thread:$0]  %s3377_s9, 512, %s137_s19, [#allocation19], %s2905_s1, %s2905_s1, %s2906_s22  }
  0x5a   :  { %s2711_s16 = scalar_lea.hbm %s3368_s0, 256 }
  0x5b   :  { %p2712_p12 = scmp.ne.s32.totalorder %s3368_s0, %s2711_s16  ;;  %p2715_p13 = scmp.lt.u32.totalorder %s2711_s16, %s3368_s0 }
  0x5d   :  { %p2717_p0 = pnand %p2715_p13, %p2712_p12 }
  0x5f   :  { %2720 = shalt.err (!%p2717_p0)
}
  0x60   :  { %s2721_s20 = scalar_lea.vmem %s3066_s21, 256  ;;  %p2726_p2 = scmp.lt.s32.totalorder %s3066_s21, %s3066_s21 }
  0x61   :  { %p2722_p1 = scmp.ne.s32.totalorder %s3066_s21, %s2721_s20  ;;  %p2727_p3 = scmp.lt.s32.totalorder %s2721_s20, %s2721_s20 }
  0x63   :  { %p2728_p4 = por %p2727_p3, %p2726_p2 }
  0x65   :  { %p2729_p5 = pnand %p2728_p4, %p2722_p1 }
  0x67   :  { %2732 = shalt.err (!%p2729_p5)
}
  0x68   :  { %s2911_s9 = smov 64   ;;  %s2912_s19 = smov 4  }
  0x69   :  { %36 = dma.hbm_to_vmem [thread:$0]  %s3368_s0, 256, %s3066_s21, [#allocation4], %s2911_s9, %s2911_s9, %s2912_s19  }
  0x6a   :  { %s2913_s24 = smov [#allocation8]   ;;  %s2733_s28 = scalar_lea.hbm %s3370_s2, 768 }
  0x6b   :  { %s52_s25 = sshll.u32 %s2913_s24, 4  ;;  %p2734_p6 = scmp.ne.s32.totalorder %s3370_s2, %s2733_s28  ;;  %s53_s25 = int_to_ptr.vmem [resolvable:$true] %s52_s25 }
  0x6c   :  { %p2737_p7 = scmp.lt.u32.totalorder %s2733_s28, %s3370_s2 }
  0x6e   :  { %p2739_p8 = pnand %p2737_p7, %p2734_p6 }
  0x70   :  { %2742 = shalt.err (!%p2739_p8)
}
  0x71   :  { %s2743_s14 = scalar_lea.vmem %s53_s25, 768  ;;  %p2748_p10 = scmp.lt.s32.totalorder %s53_s25, %s53_s25 }
  0x72   :  { %p2744_p9 = scmp.ne.s32.totalorder %s53_s25, %s2743_s14  ;;  %p2749_p11 = scmp.lt.s32.totalorder %s2743_s14, %s2743_s14 }
  0x74   :  { %p2750_p12 = por %p2749_p11, %p2748_p10 }
  0x76   :  { %p2751_p13 = pnand %p2750_p12, %p2744_p9 }
  0x78   :  { %2754 = shalt.err (!%p2751_p13)
}
  0x79   :  { %s2914_s0 = smov 192   ;;  %s2915_s21 = smov 12  }
  0x7a   :  { %58 = dma.hbm_to_vmem [thread:$0]  %s3370_s2, 768, %s53_s25, [#allocation7], %s2914_s0, %s2914_s0, %s2915_s21  }
  0x7b   :  { %s2916_s5 = smov [#allocation11]   ;;  %s2917_s18 = smov [#allocation14]  }
  0x7c   :  { %s76_s13 = sshll.u32 %s2916_s5, 4  ;;  %s100_s20 = sshll.u32 %s2917_s18, 4  ;;  %s77_s13 = int_to_ptr.vmem [resolvable:$true] %s76_s13  ;;  %s101_s20 = int_to_ptr.vmem [resolvable:$true] %s100_s20 }
  0x7d   :  { %s2755_s24 = scalar_lea.hbm %s3372_s4, 768 }
  0x7e   :  { %p2756_p0 = scmp.ne.s32.totalorder %s3372_s4, %s2755_s24  ;;  %p2759_p1 = scmp.lt.u32.totalorder %s2755_s24, %s3372_s4 }
  0x80   :  { %p2761_p2 = pnand %p2759_p1, %p2756_p0 }
  0x82   :  { %2764 = shalt.err (!%p2761_p2)
}
  0x83   :  { %s2765_s2 = scalar_lea.vmem %s77_s13, 768  ;;  %p2770_p4 = scmp.lt.s32.totalorder %s77_s13, %s77_s13 }
  0x84   :  { %p2766_p3 = scmp.ne.s32.totalorder %s77_s13, %s2765_s2  ;;  %p2771_p5 = scmp.lt.s32.totalorder %s2765_s2, %s2765_s2 }
  0x86   :  { %p2772_p6 = por %p2771_p5, %p2770_p4 }
  0x88   :  { %p2773_p7 = pnand %p2772_p6, %p2766_p3 }
  0x8a   :  { %2776 = shalt.err (!%p2773_p7)
}
  0x8b   :  { %82 = dma.hbm_to_vmem [thread:$0]  %s3372_s4, 768, %s77_s13, [#allocation10], %s2914_s0, %s2914_s0, %s2915_s21  }
  0x8c   :  { %s2777_s14 = scalar_lea.hbm %s3374_s6, 768 }
  0x8d   :  { %p2778_p8 = scmp.ne.s32.totalorder %s3374_s6, %s2777_s14  ;;  %p2781_p9 = scmp.lt.u32.totalorder %s2777_s14, %s3374_s6 }
  0x8f   :  { %p2783_p10 = pnand %p2781_p9, %p2778_p8 }
  0x91   :  { %2786 = shalt.err (!%p2783_p10)
}
  0x92   :  { %s2787_s23 = scalar_lea.vmem %s101_s20, 768  ;;  %p2792_p12 = scmp.lt.s32.totalorder %s101_s20, %s101_s20 }
  0x93   :  { %p2788_p11 = scmp.ne.s32.totalorder %s101_s20, %s2787_s23  ;;  %p2793_p13 = scmp.lt.s32.totalorder %s2787_s23, %s2787_s23 }
  0x95   :  { %p2794_p0 = por %p2793_p13, %p2792_p12 }
  0x97   :  { %p2795_p1 = pnand %p2794_p0, %p2788_p11 }
  0x99   :  { %2798 = shalt.err (!%p2795_p1)
}
  0x9a   :  { %106 = dma.hbm_to_vmem [thread:$0]  %s3374_s6, 768, %s101_s20, [#allocation13], %s2914_s0, %s2914_s0, %s2915_s21  }
  0x9b   :  { %s2918_s3 = smov [#allocation17]   ;;  %s2919_s26 = smov [#allocation20]  }
  0x9c   :  { %s124_s24 = sshll.u32 %s2918_s3, 4  ;;  %s148_s27 = sshll.u32 %s2919_s26, 4  ;;  %s125_s24 = int_to_ptr.vmem [resolvable:$true] %s124_s24  ;;  %s149_s27 = int_to_ptr.vmem [resolvable:$true] %s148_s27 }
  0x9d   :  { %s2799_s2 = scalar_lea.hbm %s3376_s8, 768 }
  0x9e   :  { %p2800_p2 = scmp.ne.s32.totalorder %s3376_s8, %s2799_s2  ;;  %p2803_p3 = scmp.lt.u32.totalorder %s2799_s2, %s3376_s8 }
  0xa0   :  { %p2805_p4 = pnand %p2803_p3, %p2800_p2 }
  0xa2   :  { %2808 = shalt.err (!%p2805_p4)
}
  0xa3   :  { %s2809_s6 = scalar_lea.vmem %s125_s24, 768  ;;  %p2814_p6 = scmp.lt.s32.totalorder %s125_s24, %s125_s24 }
  0xa4   :  { %p2810_p5 = scmp.ne.s32.totalorder %s125_s24, %s2809_s6  ;;  %p2815_p7 = scmp.lt.s32.totalorder %s2809_s6, %s2809_s6 }
  0xa6   :  { %p2816_p8 = por %p2815_p7, %p2814_p6 }
  0xa8   :  { %p2817_p9 = pnand %p2816_p8, %p2810_p5 }
  0xaa   :  { %2820 = shalt.err (!%p2817_p9)
}
  0xab   :  { %130 = dma.hbm_to_vmem [thread:$0]  %s3376_s8, 768, %s125_s24, [#allocation16], %s2914_s0, %s2914_s0, %s2915_s21  }
  0xac   :  { %s2821_s5 = scalar_lea.hbm %s3378_s10, 768 }
  0xad   :  { %p2822_p10 = scmp.ne.s32.totalorder %s3378_s10, %s2821_s5  ;;  %p2825_p11 = scmp.lt.u32.totalorder %s2821_s5, %s3378_s10 }
  0xaf   :  { %p2827_p12 = pnand %p2825_p11, %p2822_p10 }
  0xb1   :  { %2830 = shalt.err (!%p2827_p12)
}
  0xb2   :  { %s2831_s3 = scalar_lea.vmem %s149_s27, 768  ;;  %p2836_p0 = scmp.lt.s32.totalorder %s149_s27, %s149_s27 }
  0xb3   :  { %p2832_p13 = scmp.ne.s32.totalorder %s149_s27, %s2831_s3  ;;  %p2837_p1 = scmp.lt.s32.totalorder %s2831_s3, %s2831_s3 }
  0xb5   :  { %p2838_p2 = por %p2837_p1, %p2836_p0 }
  0xb7   :  { %p2839_p3 = pnand %p2838_p2, %p2832_p13 }
  0xb9   :  { %2842 = shalt.err (!%p2839_p3)
}
  0xba   :  { %154 = dma.hbm_to_vmem [thread:$0]  %s3378_s10, 768, %s149_s27, [#allocation19], %s2914_s0, %s2914_s0, %s2915_s21  }
  0xbb   :  { %s2920_s26 = smov [#allocation21]   ;;  %s2843_s25 = scalar_lea.hbm %s3379_s11, 512 }
  0xbc   :  { %s160_s28 = sshll.u32 %s2920_s26, 4  ;;  %p2844_p4 = scmp.ne.s32.totalorder %s3379_s11, %s2843_s25  ;;  %s161_s28 = int_to_ptr.vmem [resolvable:$true] %s160_s28 }
  0xbd   :  { %p2847_p5 = scmp.lt.u32.totalorder %s2843_s25, %s3379_s11 }
  0xbf   :  { %p2849_p6 = pnand %p2847_p5, %p2844_p4 }
  0xc1   :  { %2852 = shalt.err (!%p2849_p6)
}
  0xc2   :  { %s2853_s20 = scalar_lea.vmem %s161_s28, 512  ;;  %p2858_p8 = scmp.lt.s32.totalorder %s161_s28, %s161_s28 }
  0xc3   :  { %p2854_p7 = scmp.ne.s32.totalorder %s161_s28, %s2853_s20  ;;  %p2859_p9 = scmp.lt.s32.totalorder %s2853_s20, %s2853_s20 }
  0xc5   :  { %p2860_p10 = por %p2859_p9, %p2858_p8 }
  0xc7   :  { %p2861_p11 = pnand %p2860_p10, %p2854_p7 }
  0xc9   :  { %2864 = shalt.err (!%p2861_p11)
}
  0xca   :  { %166 = dma.hbm_to_vmem [thread:$0]  %s3379_s11, 512, %s161_s28, [#allocation22], %s2905_s1, %s2905_s1, %s2906_s22  }
  0xcb   :  { %2887 = dma.done.wait [#allocation4], 256  }
  0xcc   :  { %2888 = vsyncadd [#allocation4], 4294967040 }
  0xcd   :  { %2889 = dma.done.wait [#allocation7], 784  }
  0xce   :  { %2890 = vsyncadd [#allocation7], 4294966512 }
  0xcf   :  { %2891 = dma.done.wait [#allocation10], 1280  }
  0xd0   :  { %2892 = vsyncadd [#allocation10], 4294966016 }
  0xd1   :  { %2893 = dma.done.wait [#allocation13], 1280  }
  0xd2   :  { %2894 = vsyncadd [#allocation13], 4294966016 }
  0xd3   :  { %2895 = dma.done.wait [#allocation16], 1280  }
  0xd4   :  { %2896 = vsyncadd [#allocation16], 4294966016 }
  0xd5   :  { %2897 = dma.done.wait [#allocation19], 1280  }
  0xd6   :  { %2898 = vsyncadd [#allocation19], 4294966016 }
  0xd7   :  { %2899 = dma.done.wait [#allocation22], 512  }
  0xd8   :  { %2900 = vsyncadd [#allocation22], 4294966784  ;;  %v3193_v0 = vld [vmem:[#allocation3] sm:$0xff]   ;;  %v3195_v1 = vld [vmem:[#allocation3 + $0x8] sm:$0xff]   ;;  %s2921_s11 = smov 6   ;;  %s2922_s1 = smov 127  }
  0xd9   :  { %v209_v2 = vunpack.c.l.bf16 %v3193_v0  ;;  %v210_v3 = vunpack.c.h.bf16 %v3193_v0  ;;  %v211_v4 = vunpack.c.l.bf16 %v3195_v1  ;;  %v212_v5 = vunpack.c.h.bf16 %v3195_v1  ;;  %1895 = vmatprep.subr.bf16.mxu0 %v3193_v0  ;;  %s2923_s22 = smov 5   ;;  %s2924_s21 = smov 124   ;;  %v2528_v8 = vld [vmem:[#allocation8 + $0x4] ss:$12 sps:$4 sm:$0xff]   ;;  %v2529_v9 = vld [vmem:[#allocation8 + $0x8] ss:$12 sps:$4 sm:$0xff]  }
  0xda   :  { %s2925_s27 = smov 123   ;;  %s2926_s14 = smov 1   ;;  %442 = vmatprep.mubr.bf16.mxu0 %v2528_v8  ;;  %vm403_vm0 = vcmask 261120   ;;  %v221_v10 = vld [vmem:[#allocation9] sm:$0xff]  ;;  %v222_v11 = vld [vmem:[#allocation9 + $0x8] sm:$0xff]  ;;  %v2928_v12 = vmov 0  }
  0xdb   :  { %v2122_v6 = vpack.i.bf16 %v210_v3, %v209_v2  ;;  %v2127_v7 = vpack.i.bf16 %v212_v5, %v211_v4  ;;  %2059 = vmatprep.mubr.msk.bf16.mxu1 %vm403_vm0, %v2529_v9  ;;  %s2927_s16 = smov 122   ;;  %2202 = vset.pattern.permute.xlu0 %v2928_v12  ;;  %v223_v13 = vld [vmem:[#allocation9 + $0x10] sm:$0xff]  ;;  %v224_v14 = vld [vmem:[#allocation9 + $0x18] sm:$0xff]  ;;  %s2929_s17 = smov [#allocation23]  }
  0xdc   :  { %2203 = vset.pattern.permute.xlu1 %v2928_v12  ;;  %v2544_v0 = vld [vmem:[#allocation14 + $0x4] ss:$12 sps:$4 sm:$0xff]   ;;  %s1799_s5 = sshll.u32 %s2929_s17, 4  ;;  %s1800_s5 = int_to_ptr.vmem [resolvable:$true] %s1799_s5 }
  0xdd   :  { %2123 = vrot.lane.b32.xlu0 %v2122_v6, %s2921_s11  ;;  %2133 = vrot.lane.b32.xlu1 %v2122_v6, %s2922_s1  ;;  %s2865_s18 = scalar_lea.vmem %s1800_s5, 256  ;;  %p2870_p13 = scmp.lt.s32.totalorder %s1800_s5, %s1800_s5 }
  0xde   :  { %p2866_p12 = scmp.ne.s32.totalorder %s1800_s5, %s2865_s18  ;;  %p2871_p0 = scmp.lt.s32.totalorder %s2865_s18, %s2865_s18 }
  0xe0   :  { %p2872_p1 = por %p2871_p0, %p2870_p13 }
  0xe1   :  { %2128 = vrot.lane.b32.xlu0 %v2127_v7, %s2921_s11  ;;  %2138 = vrot.lane.b32.xlu1 %v2122_v6, %s2923_s22 }
  0xe2   :  { %p2873_p2 = pnand %p2872_p1, %p2866_p12 }
  0xe5   :  { %2143 = vrot.lane.b32.xlu0 %v2127_v7, %s2922_s1  ;;  %2148 = vrot.lane.b32.xlu1 %v2127_v7, %s2923_s22 }
  0xe9   :  { %2153 = vrot.lane.b32.xlu0 %v2122_v6, %s2924_s21  ;;  %2158 = vrot.lane.b32.xlu1 %v2122_v6, %s2912_s19 }
  0xed   :  { %2163 = vrot.lane.b32.xlu0 %v2127_v7, %s2924_s21  ;;  %2168 = vrot.lane.b32.xlu1 %v2127_v7, %s2912_s19 }
  0xf1   :  { %2173 = vrot.lane.b32.xlu0 %v2122_v6, %s2925_s27  ;;  %2178 = vrot.lane.b32.xlu1 %v2122_v6, %s2926_s14 }
  0xf5   :  { %2183 = vrot.lane.b32.xlu0 %v2127_v7, %s2925_s27  ;;  %2188 = vrot.lane.b32.xlu1 %v2127_v7, %s2926_s14 }
  0xf9   :  { %2193 = vrot.lane.b32.xlu0 %v2122_v6, %s2927_s16  ;;  %2198 = vrot.lane.b32.xlu1 %v2127_v7, %s2927_s16 }
  0xfd   :  { %355 = vperm.xlu0 %2202, %v221_v10   ;;  %360 = vperm.xlu1 %2203, %v222_v11  }
 0x101   :  { %365 = vperm.xlu1 %2203, %v223_v13   ;;  %370 = vperm.xlu0 %2202, %v224_v14  }
 0x14f   :  { %v2124_v15 = vpop.permute.xlu0 %2123  ;;  %v2134_v16 = vpop.permute.xlu1 %2133 }
 0x150   :  { %v2126_v17 = vunpack.i.h.bf16 %v2124_v15  ;;  %v2125_v18 = vunpack.i.l.bf16 %v2124_v15  ;;  %v2136_v19 = vunpack.i.h.bf16 %v2134_v16  ;;  %v2135_v20 = vunpack.i.l.bf16 %v2134_v16 }
 0x152   :  { %v233_v21 = vpack.c.bf16 %v2126_v17, %v2125_v18  ;;  %v295_v28 = vpack.c.bf16 %v2136_v19, %v2135_v20 }
 0x153   :  { %v2129_v22 = vpop.permute.xlu0 %2128  ;;  %v2139_v23 = vpop.permute.xlu1 %2138 }
 0x154   :  { %v2131_v24 = vunpack.i.h.bf16 %v2129_v22  ;;  %v2130_v25 = vunpack.i.l.bf16 %v2129_v22  ;;  %1896 = vmatpush3.bf16.msra.mxu0 %v233_v21  ;;  %v2141_v26 = vunpack.i.h.bf16 %v2139_v23  ;;  %v2140_v27 = vunpack.i.l.bf16 %v2139_v23  ;;  %v2526_v21 = vld [vmem:[#allocation8] ss:$12 sps:$4 sm:$0xff]   ;;  %v2531_v22 = vld [vmem:[#allocation8 + $0x1c] ss:$12 sps:$4 sm:$0xff]  }
 0x155   :  { %1897 = vmatprep.subr.bf16.mxu0 %v3195_v1  ;;  %v2530_v23 = vld [vmem:[#allocation8 + $0x20] ss:$12 sps:$4 sm:$0xff]   ;;  %v2545_v1 = vld [vmem:[#allocation14 + $0x8] ss:$12 sps:$4 sm:$0xff]  }
 0x156   :  { %v234_v29 = vpack.c.bf16 %v2131_v24, %v2130_v25  ;;  %v245_v30 = vpack.c.bf16 %v2141_v26, %v2140_v27  ;;  %v2533_v24 = vld [vmem:[#allocation8 + $0x18] ss:$12 sps:$4 sm:$0xff]  }
 0x157   :  { %v2144_v31 = vpop.permute.xlu0 %2143  ;;  %v2149_v32 = vpop.permute.xlu1 %2148 }
 0x158   :  { %v2146_v33 = vunpack.i.h.bf16 %v2144_v31  ;;  %v2145_v34 = vunpack.i.l.bf16 %v2144_v31  ;;  %1898 = vmatpush3.bf16.msra.mxu0 %v234_v29  ;;  %v2151_v35 = vunpack.i.h.bf16 %v2149_v32  ;;  %v2150_v36 = vunpack.i.l.bf16 %v2149_v32 }
 0x159   :  { %1899 = vmatprep.subr.bf16.mxu0 %v295_v28 }
 0x15a   :  { %v296_v37 = vpack.c.bf16 %v2146_v33, %v2145_v34  ;;  %v246_v38 = vpack.c.bf16 %v2151_v35, %v2150_v36 }
 0x15b   :  { %v2154_v39 = vpop.permute.xlu0 %2153  ;;  %v2159_v40 = vpop.permute.xlu1 %2158 }
 0x15c   :  { %v2156_v41 = vunpack.i.h.bf16 %v2154_v39  ;;  %v2155_v42 = vunpack.i.l.bf16 %v2154_v39  ;;  %1900 = vmatpush3.bf16.msra.mxu0 %v245_v30  ;;  %v2161_v43 = vunpack.i.h.bf16 %v2159_v40  ;;  %v2160_v44 = vunpack.i.l.bf16 %v2159_v40 }
 0x15d   :  { %1901 = vmatprep.subr.bf16.mxu0 %v296_v37 }
 0x15e   :  { %v307_v45 = vpack.c.bf16 %v2156_v41, %v2155_v42  ;;  %v257_v46 = vpack.c.bf16 %v2161_v43, %v2160_v44 }
 0x15f   :  { %v2164_v47 = vpop.permute.xlu0 %2163  ;;  %v2169_v48 = vpop.permute.xlu1 %2168 }
 0x160   :  { %v2166_v49 = vunpack.i.h.bf16 %v2164_v47  ;;  %v2165_v50 = vunpack.i.l.bf16 %v2164_v47  ;;  %1902 = vmatpush3.bf16.msra.mxu0 %v246_v38  ;;  %v2171_v51 = vunpack.i.h.bf16 %v2169_v48  ;;  %v2170_v52 = vunpack.i.l.bf16 %v2169_v48 }
 0x161   :  { %1903 = vmatprep.subr.bf16.mxu0 %v307_v45 }
 0x162   :  { %v308_v53 = vpack.c.bf16 %v2166_v49, %v2165_v50  ;;  %v258_v54 = vpack.c.bf16 %v2171_v51, %v2170_v52 }
 0x163   :  { %v2174_v55 = vpop.permute.xlu0 %2173  ;;  %v2179_v56 = vpop.permute.xlu1 %2178 }
 0x164   :  { %v2176_v57 = vunpack.i.h.bf16 %v2174_v55  ;;  %v2175_v58 = vunpack.i.l.bf16 %v2174_v55  ;;  %1904 = vmatpush3.bf16.msra.mxu0 %v257_v46  ;;  %v2181_v59 = vunpack.i.h.bf16 %v2179_v56  ;;  %v2180_v60 = vunpack.i.l.bf16 %v2179_v56 }
 0x165   :  { %1905 = vmatprep.subr.bf16.mxu0 %v308_v53 }
 0x166   :  { %v319_v61 = vpack.c.bf16 %v2176_v57, %v2175_v58  ;;  %v269_v62 = vpack.c.bf16 %v2181_v59, %v2180_v60 }
 0x167   :  { %v2184_v63 = vpop.permute.xlu0 %2183  ;;  %v2189_v6 = vpop.permute.xlu1 %2188 }
 0x168   :  { %v2186_v7 = vunpack.i.h.bf16 %v2184_v63  ;;  %v2185_v8 = vunpack.i.l.bf16 %v2184_v63  ;;  %1906 = vmatpush3.bf16.msra.mxu0 %v258_v54  ;;  %v2191_v9 = vunpack.i.h.bf16 %v2189_v6  ;;  %v2190_v10 = vunpack.i.l.bf16 %v2189_v6  ;;  %v3229_v6 = vld [vmem:[#allocation6] ss:$0 sm:$0xff] }
 0x169   :  { %1907 = vmatprep.subr.bf16.mxu0 %v319_v61 }
 0x16a   :  { %v320_v11 = vpack.c.bf16 %v2186_v7, %v2185_v8  ;;  %v270_v12 = vpack.c.bf16 %v2191_v9, %v2190_v10 }
 0x16b   :  { %v2194_v13 = vpop.permute.xlu0 %2193  ;;  %v2199_v14 = vpop.permute.xlu1 %2198 }
 0x16c   :  { %v2196_v15 = vunpack.i.h.bf16 %v2194_v13  ;;  %v2195_v16 = vunpack.i.l.bf16 %v2194_v13  ;;  %1908 = vmatpush3.bf16.msra.mxu0 %v269_v62  ;;  %v2201_v17 = vunpack.i.h.bf16 %v2199_v14  ;;  %v2200_v18 = vunpack.i.l.bf16 %v2199_v14 }
 0x16d   :  { %1909 = vmatprep.subr.bf16.mxu0 %v320_v11 }
 0x16e   :  { %v332_v19 = vpack.c.bf16 %v2201_v17, %v2200_v18  ;;  %v331_v20 = vpack.c.bf16 %v2196_v15, %v2195_v16 }
 0x170   :  { %1910 = vmatpush3.bf16.msra.mxu0 %v270_v12  ;;  %2055 = vmatprep.subr.bf16.mxu1 %v331_v20 }
 0x171   :  { %2056 = vmatpush3.bf16.msra.mxu1 %v331_v20 }
 0x172   :  { %2057 = vmatprep.subr.bf16.mxu1 %v332_v19 }
 0x173   :  { %443 = vmatmul.mubr.bf16.vlgmr.msra.gmra.mrb[0].mxu0 %v2526_v21 }
 0x174   :  { %450 = vmatprep.mubr.bf16.mxu0 %v2531_v22 }
 0x175   :  { %2058 = vmatpush3.bf16.msra.mxu1 %v332_v19 }
 0x178   :  { %2060 = vmatmul.mubr.msk.bf16.vlgmr.msra.gmra.mrb[0].mxu1 %vm403_vm0, %v2530_v23 }
 0x17b   :  { %451 = vmatmul.mubr.bf16.gmra.mrb[4].mxu0 %v2533_v24  ;;  %v2536_v24 = vld [vmem:[#allocation11 + $0x4] ss:$12 sps:$4 sm:$0xff]  }
 0x17c   :  { %v356_v27 = vpop.permute.xlu0 %355  ;;  %v361_v31 = vpop.permute.xlu1 %360  ;;  %760 = vmatprep.mubr.bf16.mxu1 %v2536_v24  ;;  %2075 = vmatprep.mubr.msk.bf16.mxu0 %vm403_vm0, %v2545_v1 }
 0x180   :  { %v366_v48 = vpop.permute.xlu1 %365  ;;  %v371_v53 = vpop.permute.xlu0 %370 }
 0x246   :  { %v1911_v25 = vpop.f32.mrb[0].mxu0 }
 0x247   :  { %v1912_v26 = vpop.f32.mrb[1].mxu0 }
 0x248   :  { %v1913_v28 = vadd.f32 %v1912_v26, %v1911_v25  ;;  %v1914_v29 = vpop.f32.mrb[2].mxu0  ;;  %v550_v25 = vld [vmem:[#allocation12] sm:$0xff]  ;;  %v552_v26 = vld [vmem:[#allocation12 + $0x10] sm:$0xff] }
 0x249   :  { %v1915_v30 = vpop.f32.mrb[3].mxu0 }
 0x24a   :  { %v445_v32 = vadd.f32 %v1913_v28, %v356_v27  ;;  %v1916_v33 = vadd.f32 %v1915_v30, %v1914_v29  ;;  %v551_v27 = vld [vmem:[#allocation12 + $0x8] sm:$0xff]  ;;  %v553_v28 = vld [vmem:[#allocation12 + $0x18] sm:$0xff] }
 0x24b   :  { %v2061_v34 = vpop.f32.mrb[0].mxu1 }
 0x24c   :  { %v448_v35 = vadd.f32 %v1916_v33, %v361_v31  ;;  %v493_v36 = vpop.f32.mrb[1].mxu1 }
 0x24d   :  { %v494_v37 = vadd.f32 %v493_v36, %v445_v32  ;;  %v2062_v38 = vpop.f32.mrb[2].mxu1 }
 0x24e   :  { %v1917_v39 = vpop.f32.mrb[4].mxu0  ;;  %v496_v40 = vpop.f32.mrb[3].mxu1 }
 0x24f   :  { %v512_v41 = vmin.f32 %v494_v37, 0.0  ;;  %v497_v42 = vadd.f32 %v496_v40, %v448_v35  ;;  %v1918_v43 = vpop.f32.mrb[5].mxu0  ;;  %vm508_vm1 = vcmp.gt.f32.partialorder %v494_v37, 0.0 }
 0x250   :  { %v1919_v44 = vadd.f32 %v1918_v43, %v1917_v39  ;;  %v1920_v45 = vpop.f32.mrb[6].mxu0 }
 0x251   :  { %v516_v46 = vmul.f32 1.442695, %v512_v41  ;;  %v513_v47 = vmin.f32 %v497_v42, 0.0  ;;  %v1921_v49 = vpop.f32.mrb[7].mxu0  ;;  %vm509_vm2 = vcmp.gt.f32.partialorder %v497_v42, 0.0 }
 0x252   :  { %v453_v50 = vadd.f32 %v1919_v44, %v366_v48  ;;  %v1922_v51 = vadd.f32 %v1921_v49, %v1920_v45 }
 0x253   :  { %2568 = vpow2.f32 %v516_v46  ;;  %v518_v52 = vmul.f32 1.442695, %v513_v47 }
 0x254   :  { %v502_v54 = vadd.f32 %v2061_v34, %v453_v50  ;;  %v456_v55 = vadd.f32 %v1922_v51, %v371_v53 }
 0x255   :  { %2570 = vpow2.f32 %v518_v52 }
 0x256   :  { %v514_v56 = vmin.f32 %v502_v54, 0.0  ;;  %v505_v57 = vadd.f32 %v2062_v38, %v456_v55  ;;  %vm510_vm3 = vcmp.gt.f32.partialorder %v502_v54, 0.0 }
 0x258   :  { %v520_v58 = vmul.f32 1.442695, %v514_v56  ;;  %v515_v59 = vmin.f32 %v505_v57, 0.0  ;;  %vm511_vm4 = vcmp.gt.f32.partialorder %v505_v57, 0.0 }
 0x25a   :  { %2572 = vpow2.f32 %v520_v58  ;;  %v522_v60 = vmul.f32 1.442695, %v515_v59 }
 0x25c   :  { %2574 = vpow2.f32 %v522_v60 }
 0x25d   :  { %v2569_v61 = vpop.eup %2568 }
 0x25e   :  { %v1827_v62 = vadd.f32 -1.0, %v2569_v61 }
 0x25f   :  { %v2571_v63 = vpop.eup %2570 }
 0x260   :  { %v528_v7 = vsel %vm508_vm1, %v494_v37, %v1827_v62  ;;  %v1828_v8 = vadd.f32 -1.0, %v2571_v63 }
 0x261   :  { %v538_v10 = vmul.f32 %v3229_v6, %v528_v7 }
 0x262   :  { %v529_v9 = vsel %vm509_vm2, %v497_v42, %v1828_v8 }
 0x263   :  { %v539_v11 = vmul.f32 %v3229_v6, %v529_v9 }
 0x264   :  { %v2573_v12 = vpop.eup %2572 }
 0x265   :  { %v1829_v13 = vadd.f32 -1.0, %v2573_v12  ;;  %v2204_v14 = vpack.i.bf16 %v539_v11, %v538_v10  ;;  %v602_v15 = vpack.c.bf16 %v539_v11, %v538_v10 }
 0x266   :  { %v2575_v16 = vpop.eup %2574 }
 0x267   :  { %v530_v17 = vsel %vm510_vm3, %v502_v54, %v1829_v13  ;;  %v1830_v18 = vadd.f32 -1.0, %v2575_v16  ;;  %2205 = vrot.lane.b32.xlu1 %v2204_v14, %s2921_s11  ;;  %1927 = vmatprep.subr.bf16.mxu1 %v602_v15 }
 0x268   :  { %v540_v20 = vmul.f32 %v3229_v6, %v530_v17 }
 0x269   :  { %v531_v19 = vsel %vm511_vm4, %v505_v57, %v1830_v18 }
 0x26a   :  { %v541_v21 = vmul.f32 %v3229_v6, %v531_v19 }
 0x26b   :  { %2210 = vrot.lane.b32.xlu1 %v2204_v14, %s2922_s1 }
 0x26c   :  { %v2214_v22 = vpack.i.bf16 %v541_v21, %v540_v20  ;;  %v603_v23 = vpack.c.bf16 %v541_v21, %v540_v20 }
 0x26e   :  { %2215 = vrot.lane.b32.xlu0 %v2214_v22, %s2921_s11 }
 0x26f   :  { %2225 = vrot.lane.b32.xlu1 %v2214_v22, %s2922_s1 }
 0x272   :  { %2220 = vrot.lane.b32.xlu0 %v2204_v14, %s2923_s22 }
 0x273   :  { %2230 = vrot.lane.b32.xlu1 %v2204_v14, %s2924_s21 }
 0x276   :  { %2235 = vrot.lane.b32.xlu0 %v2214_v22, %s2923_s22 }
 0x277   :  { %2245 = vrot.lane.b32.xlu1 %v2214_v22, %s2924_s21 }
 0x27a   :  { %2240 = vrot.lane.b32.xlu0 %v2204_v14, %s2912_s19 }
 0x27b   :  { %2250 = vrot.lane.b32.xlu1 %v2204_v14, %s2925_s27 }
 0x27e   :  { %2255 = vrot.lane.b32.xlu0 %v2214_v22, %s2912_s19 }
 0x27f   :  { %2265 = vrot.lane.b32.xlu1 %v2214_v22, %s2925_s27 }
 0x282   :  { %2260 = vrot.lane.b32.xlu0 %v2204_v14, %s2926_s14 }
 0x283   :  { %2275 = vrot.lane.b32.xlu1 %v2204_v14, %s2927_s16 }
 0x286   :  { %2270 = vrot.lane.b32.xlu0 %v2214_v22, %s2926_s14 }
 0x287   :  { %674 = vperm.xlu1 %2203, %v550_v25  }
 0x28a   :  { %2280 = vrot.lane.b32.xlu0 %v2214_v22, %s2927_s16 }
 0x28b   :  { %684 = vperm.xlu1 %2203, %v552_v26  }
 0x28e   :  { %679 = vperm.xlu0 %2202, %v551_v27  }
 0x292   :  { %689 = vperm.xlu0 %2202, %v553_v28  }
 0x2d9   :  { %v2206_v29 = vpop.permute.xlu1 %2205 }
 0x2da   :  { %v2208_v30 = vunpack.i.h.bf16 %v2206_v29  ;;  %v2207_v31 = vunpack.i.l.bf16 %v2206_v29 }
 0x2dc   :  { %v562_v32 = vpack.c.bf16 %v2208_v30, %v2207_v31 }
 0x2dd   :  { %v2211_v33 = vpop.permute.xlu1 %2210 }
 0x2de   :  { %1928 = vmatpush3.bf16.msra.mxu1 %v562_v32  ;;  %v2213_v34 = vunpack.i.h.bf16 %v2211_v33  ;;  %v2212_v35 = vunpack.i.l.bf16 %v2211_v33  ;;  %v2534_v33 = vld [vmem:[#allocation11] ss:$12 sps:$4 sm:$0xff]  }
 0x2df   :  { %1929 = vmatprep.subr.bf16.mxu1 %v603_v23 }
 0x2e0   :  { %v2216_v36 = vpop.permute.xlu0 %2215  ;;  %v614_v41 = vpack.c.bf16 %v2213_v34, %v2212_v35 }
 0x2e1   :  { %v2218_v37 = vunpack.i.h.bf16 %v2216_v36  ;;  %v2217_v38 = vunpack.i.l.bf16 %v2216_v36  ;;  %v2226_v39 = vpop.permute.xlu1 %2225  ;;  %v2537_v36 = vld [vmem:[#allocation11 + $0x1c] ss:$12 sps:$4 sm:$0xff]  }
 0x2e2   :  { %v2228_v42 = vunpack.i.h.bf16 %v2226_v39  ;;  %v2227_v43 = vunpack.i.l.bf16 %v2226_v39  ;;  %v2540_v39 = vld [vmem:[#allocation11 + $0x8] ss:$12 sps:$4 sm:$0xff]  }
 0x2e3   :  { %v563_v40 = vpack.c.bf16 %v2218_v37, %v2217_v38  ;;  %v2539_v38 = vld [vmem:[#allocation11 + $0x18] ss:$12 sps:$4 sm:$0xff]  }
 0x2e4   :  { %v2221_v44 = vpop.permute.xlu0 %2220  ;;  %v615_v49 = vpack.c.bf16 %v2228_v42, %v2227_v43 }
 0x2e5   :  { %v2223_v45 = vunpack.i.h.bf16 %v2221_v44  ;;  %v2222_v46 = vunpack.i.l.bf16 %v2221_v44  ;;  %v2231_v47 = vpop.permute.xlu1 %2230  ;;  %1930 = vmatpush3.bf16.msra.mxu1 %v563_v40  ;;  %v2541_v40 = vld [vmem:[#allocation11 + $0x20] ss:$12 sps:$4 sm:$0xff]  }
 0x2e6   :  { %1931 = vmatprep.subr.bf16.mxu1 %v614_v41  ;;  %v2233_v50 = vunpack.i.h.bf16 %v2231_v47  ;;  %v2232_v51 = vunpack.i.l.bf16 %v2231_v47 }
 0x2e7   :  { %v574_v48 = vpack.c.bf16 %v2223_v45, %v2222_v46 }
 0x2e8   :  { %v2236_v52 = vpop.permute.xlu0 %2235  ;;  %v626_v57 = vpack.c.bf16 %v2233_v50, %v2232_v51 }
 0x2e9   :  { %v2238_v53 = vunpack.i.h.bf16 %v2236_v52  ;;  %v2237_v54 = vunpack.i.l.bf16 %v2236_v52  ;;  %v2246_v55 = vpop.permute.xlu1 %2245  ;;  %1932 = vmatpush3.bf16.msra.mxu1 %v574_v48 }
 0x2ea   :  { %1933 = vmatprep.subr.bf16.mxu1 %v615_v49  ;;  %v2248_v58 = vunpack.i.h.bf16 %v2246_v55  ;;  %v2247_v59 = vunpack.i.l.bf16 %v2246_v55 }
 0x2eb   :  { %v575_v56 = vpack.c.bf16 %v2238_v53, %v2237_v54 }
 0x2ec   :  { %v2241_v60 = vpop.permute.xlu0 %2240  ;;  %v627_v8 = vpack.c.bf16 %v2248_v58, %v2247_v59 }
 0x2ed   :  { %v2243_v61 = vunpack.i.h.bf16 %v2241_v60  ;;  %v2242_v62 = vunpack.i.l.bf16 %v2241_v60  ;;  %v2251_v63 = vpop.permute.xlu1 %2250  ;;  %1934 = vmatpush3.bf16.msra.mxu1 %v575_v56 }
 0x2ee   :  { %1935 = vmatprep.subr.bf16.mxu1 %v626_v57  ;;  %v2253_v9 = vunpack.i.h.bf16 %v2251_v63  ;;  %v2252_v10 = vunpack.i.l.bf16 %v2251_v63 }
 0x2ef   :  { %v586_v7 = vpack.c.bf16 %v2243_v61, %v2242_v62 }
 0x2f0   :  { %v2256_v11 = vpop.permute.xlu0 %2255  ;;  %v638_v16 = vpack.c.bf16 %v2253_v9, %v2252_v10 }
 0x2f1   :  { %v2258_v12 = vunpack.i.h.bf16 %v2256_v11  ;;  %v2257_v13 = vunpack.i.l.bf16 %v2256_v11  ;;  %v2266_v14 = vpop.permute.xlu1 %2265  ;;  %1936 = vmatpush3.bf16.msra.mxu1 %v586_v7 }
 0x2f2   :  { %1937 = vmatprep.subr.bf16.mxu1 %v627_v8  ;;  %v2268_v17 = vunpack.i.h.bf16 %v2266_v14  ;;  %v2267_v18 = vunpack.i.l.bf16 %v2266_v14 }
 0x2f3   :  { %v587_v15 = vpack.c.bf16 %v2258_v12, %v2257_v13 }
 0x2f4   :  { %v2261_v19 = vpop.permute.xlu0 %2260  ;;  %v639_v24 = vpack.c.bf16 %v2268_v17, %v2267_v18 }
 0x2f5   :  { %v2263_v20 = vunpack.i.h.bf16 %v2261_v19  ;;  %v2262_v21 = vunpack.i.l.bf16 %v2261_v19  ;;  %v2276_v22 = vpop.permute.xlu1 %2275  ;;  %1938 = vmatpush3.bf16.msra.mxu1 %v587_v15 }
 0x2f6   :  { %1939 = vmatprep.subr.bf16.mxu1 %v638_v16  ;;  %v2278_v25 = vunpack.i.h.bf16 %v2276_v22  ;;  %v2277_v26 = vunpack.i.l.bf16 %v2276_v22 }
 0x2f7   :  { %v598_v23 = vpack.c.bf16 %v2263_v20, %v2262_v21 }
 0x2f8   :  { %v2271_v27 = vpop.permute.xlu0 %2270  ;;  %v650_v31 = vpack.c.bf16 %v2278_v25, %v2277_v26 }
 0x2f9   :  { %v2273_v28 = vunpack.i.h.bf16 %v2271_v27  ;;  %v2272_v29 = vunpack.i.l.bf16 %v2271_v27  ;;  %1940 = vmatpush3.bf16.msra.mxu1 %v598_v23 }
 0x2fa   :  { %1941 = vmatprep.subr.bf16.mxu1 %v639_v24 }
 0x2fb   :  { %v599_v30 = vpack.c.bf16 %v2273_v28, %v2272_v29 }
 0x2fc   :  { %v2281_v32 = vpop.permute.xlu0 %2280 }
 0x2fd   :  { %v2283_v34 = vunpack.i.h.bf16 %v2281_v32  ;;  %v2282_v35 = vunpack.i.l.bf16 %v2281_v32  ;;  %1942 = vmatpush3.bf16.msra.mxu1 %v599_v30 }
 0x2fe   :  { %2063 = vmatprep.subr.bf16.mxu1 %v650_v31 }
 0x2ff   :  { %v651_v37 = vpack.c.bf16 %v2283_v34, %v2282_v35 }
 0x300   :  { %761 = vmatmul.mubr.bf16.vlgmr.msra.gmra.mrb[4].mxu1 %v2534_v33 }
 0x301   :  { %2064 = vmatpush3.bf16.msra.mxu1 %v650_v31  ;;  %768 = vmatprep.mubr.bf16.mxu1 %v2537_v36 }
 0x302   :  { %2065 = vmatprep.subr.bf16.mxu1 %v651_v37 }
 0x305   :  { %2066 = vmatpush3.bf16.msra.mxu1 %v651_v37 }
 0x306   :  { %v675_v47 = vpop.permute.xlu1 %674 }
 0x308   :  { %769 = vmatmul.mubr.bf16.gmra.mrb[8].mxu1 %v2539_v38 }
 0x309   :  { %2067 = vmatprep.mubr.msk.bf16.mxu1 %vm403_vm0, %v2540_v39 }
 0x30a   :  { %v685_v55 = vpop.permute.xlu1 %684 }
 0x30d   :  { %v680_v50 = vpop.permute.xlu0 %679 }
 0x310   :  { %2068 = vmatmul.mubr.msk.bf16.vlgmr.msra.gmra.mrb[12].mxu1 %vm403_vm0, %v2541_v40 }
 0x311   :  { %v690_v57 = vpop.permute.xlu0 %689  ;;  %1076 = vmatprep.mubr.bf16.mxu1 %v2544_v0 }
 0x3d3   :  { %v1943_v41 = vpop.f32.mrb[4].mxu1 }
 0x3d4   :  { %v1944_v42 = vpop.f32.mrb[5].mxu1 }
 0x3d5   :  { %v1945_v43 = vadd.f32 %v1944_v42, %v1943_v41  ;;  %v1946_v44 = vpop.f32.mrb[6].mxu1  ;;  %v868_v42 = vld [vmem:[#allocation15 + $0x10] sm:$0xff] }
 0x3d6   :  { %v1947_v45 = vpop.f32.mrb[7].mxu1 }
 0x3d7   :  { %v1948_v46 = vadd.f32 %v1947_v45, %v1946_v44  ;;  %v763_v59 = vadd.f32 %v1945_v43, %v675_v47 }
 0x3d9   :  { %v766_v8 = vadd.f32 %v1948_v46, %v680_v50 }
 0x3db   :  { %v1949_v48 = vpop.f32.mrb[8].mxu1 }
 0x3dc   :  { %v1950_v49 = vpop.f32.mrb[9].mxu1 }
 0x3dd   :  { %v1951_v51 = vadd.f32 %v1950_v49, %v1949_v48  ;;  %v1952_v52 = vpop.f32.mrb[10].mxu1 }
 0x3de   :  { %v1953_v53 = vpop.f32.mrb[11].mxu1 }
 0x3df   :  { %v1954_v54 = vadd.f32 %v1953_v53, %v1952_v52  ;;  %v771_v56 = vadd.f32 %v1951_v51, %v685_v55 }
 0x3e1   :  { %v774_v62 = vadd.f32 %v1954_v54, %v690_v57 }
 0x3e3   :  { %v2069_v58 = vpop.f32.mrb[12].mxu1 }
 0x3e4   :  { %v820_v60 = vadd.f32 %v2069_v58, %v771_v56  ;;  %v811_v61 = vpop.f32.mrb[13].mxu1 }
 0x3e5   :  { %v812_v63 = vadd.f32 %v811_v61, %v763_v59  ;;  %v2070_v7 = vpop.f32.mrb[14].mxu1 }
 0x3e6   :  { %v832_v9 = vmin.f32 %v820_v60, 0.0  ;;  %v823_v10 = vadd.f32 %v2070_v7, %v774_v62  ;;  %v814_v11 = vpop.f32.mrb[15].mxu1  ;;  %vm828_vm5 = vcmp.gt.f32.partialorder %v820_v60, 0.0 }
 0x3e7   :  { %v830_v12 = vmin.f32 %v812_v63, 0.0  ;;  %v815_v13 = vadd.f32 %v814_v11, %v766_v8  ;;  %vm826_vm6 = vcmp.gt.f32.partialorder %v812_v63, 0.0 }
 0x3e8   :  { %v838_v14 = vmul.f32 1.442695, %v832_v9  ;;  %v833_v15 = vmin.f32 %v823_v10, 0.0  ;;  %vm829_vm7 = vcmp.gt.f32.partialorder %v823_v10, 0.0 }
 0x3e9   :  { %v834_v16 = vmul.f32 1.442695, %v830_v12  ;;  %v831_v17 = vmin.f32 %v815_v13, 0.0  ;;  %vm827_vm8 = vcmp.gt.f32.partialorder %v815_v13, 0.0 }
 0x3ea   :  { %2576 = vpow2.f32 %v838_v14  ;;  %v840_v18 = vmul.f32 1.442695, %v833_v15 }
 0x3eb   :  { %2578 = vpow2.f32 %v834_v16  ;;  %v836_v19 = vmul.f32 1.442695, %v831_v17 }
 0x3ec   :  { %2580 = vpow2.f32 %v840_v18 }
 0x3ed   :  { %2582 = vpow2.f32 %v836_v19 }
 0x3f4   :  { %v2577_v20 = vpop.eup %2576 }
 0x3f5   :  { %v2579_v21 = vpop.eup %2578  ;;  %v1842_v22 = vadd.f32 -1.0, %v2577_v20 }
 0x3f6   :  { %v2581_v23 = vpop.eup %2580  ;;  %v1840_v24 = vadd.f32 -1.0, %v2579_v21 }
 0x3f7   :  { %v2583_v25 = vpop.eup %2582  ;;  %v848_v26 = vsel %vm828_vm5, %v820_v60, %v1842_v22  ;;  %v1843_v27 = vadd.f32 -1.0, %v2581_v23 }
 0x3f8   :  { %v852_v28 = vmul.f32 %v3229_v6, %v848_v26  ;;  %v846_v29 = vsel %vm826_vm6, %v812_v63, %v1840_v24  ;;  %v1841_v30 = vadd.f32 -1.0, %v2583_v25 }
 0x3f9   :  { %v850_v31 = vmul.f32 %v3229_v6, %v846_v29  ;;  %v849_v32 = vsel %vm829_vm7, %v823_v10, %v1843_v27 }
 0x3fa   :  { %v853_v33 = vmul.f32 %v3229_v6, %v849_v32  ;;  %v847_v34 = vsel %vm827_vm8, %v815_v13, %v1841_v30  ;;  %v3259_v36 = vadd.f32 %v852_v28, %v211_v4 }
 0x3fb   :  { %v851_v35 = vmul.f32 %v3229_v6, %v847_v34  ;;  %v3267_v38 = vadd.f32 %v850_v31, %v209_v2  ;;  %v867_v2 = vld [vmem:[#allocation15 + $0x8] sm:$0xff] }
 0x3fc   :  { %v3263_v37 = vadd.f32 %v853_v33, %v212_v5  ;;  %v869_v5 = vld [vmem:[#allocation15 + $0x18] sm:$0xff] }
 0x3fd   :  { %v3271_v39 = vadd.f32 %v851_v35, %v210_v3  ;;  %v866_v3 = vld [vmem:[#allocation15] sm:$0xff] }
 0x3fe   :  { %v2289_v40 = vpack.i.bf16 %v3263_v37, %v3259_v36  ;;  %v919_v52 = vpack.c.bf16 %v3263_v37, %v3259_v36 }
 0x3ff   :  { %v2284_v41 = vpack.i.bf16 %v3271_v39, %v3267_v38  ;;  %v918_v4 = vpack.c.bf16 %v3271_v39, %v3267_v38 }
 0x400   :  { %2290 = vrot.lane.b32.xlu0 %v2289_v40, %s2921_s11 }
 0x401   :  { %2285 = vrot.lane.b32.xlu1 %v2284_v41, %s2921_s11  ;;  %1959 = vmatprep.subr.bf16.mxu1 %v918_v4 }
 0x404   :  { %2305 = vrot.lane.b32.xlu0 %v2284_v41, %s2923_s22 }
 0x405   :  { %2295 = vrot.lane.b32.xlu1 %v2284_v41, %s2922_s1 }
 0x408   :  { %2310 = vrot.lane.b32.xlu0 %v2289_v40, %s2923_s22 }
 0x409   :  { %2300 = vrot.lane.b32.xlu1 %v2289_v40, %s2922_s1 }
 0x40c   :  { %2325 = vrot.lane.b32.xlu0 %v2284_v41, %s2912_s19 }
 0x40d   :  { %2315 = vrot.lane.b32.xlu1 %v2284_v41, %s2924_s21 }
 0x410   :  { %2330 = vrot.lane.b32.xlu0 %v2289_v40, %s2912_s19 }
 0x411   :  { %2320 = vrot.lane.b32.xlu1 %v2289_v40, %s2924_s21 }
 0x414   :  { %2345 = vrot.lane.b32.xlu0 %v2284_v41, %s2926_s14 }
 0x415   :  { %2335 = vrot.lane.b32.xlu1 %v2284_v41, %s2925_s27 }
 0x418   :  { %2350 = vrot.lane.b32.xlu0 %v2289_v40, %s2926_s14 }
 0x419   :  { %2340 = vrot.lane.b32.xlu1 %v2289_v40, %s2925_s27 }
 0x41c   :  { %2360 = vrot.lane.b32.xlu0 %v2289_v40, %s2927_s16 }
 0x41d   :  { %2355 = vrot.lane.b32.xlu1 %v2284_v41, %s2927_s16 }
 0x420   :  { %995 = vperm.xlu0 %2202, %v867_v2  }
 0x421   :  { %990 = vperm.xlu1 %2203, %v866_v3  }
 0x424   :  { %1005 = vperm.xlu0 %2202, %v869_v5  }
 0x425   :  { %1000 = vperm.xlu1 %2203, %v868_v42  }
 0x472   :  { %v2291_v43 = vpop.permute.xlu0 %2290 }
 0x473   :  { %v2286_v44 = vpop.permute.xlu1 %2285  ;;  %v2293_v47 = vunpack.i.h.bf16 %v2291_v43  ;;  %v2292_v48 = vunpack.i.l.bf16 %v2291_v43 }
 0x474   :  { %v2288_v45 = vunpack.i.h.bf16 %v2286_v44  ;;  %v2287_v46 = vunpack.i.l.bf16 %v2286_v44 }
 0x475   :  { %v879_v55 = vpack.c.bf16 %v2293_v47, %v2292_v48  ;;  %v2542_v48 = vld [vmem:[#allocation14] ss:$12 sps:$4 sm:$0xff]  }
 0x476   :  { %v878_v49 = vpack.c.bf16 %v2288_v45, %v2287_v46  ;;  %v2306_v50 = vpop.permute.xlu0 %2305 }
 0x477   :  { %v2296_v51 = vpop.permute.xlu1 %2295  ;;  %v2308_v56 = vunpack.i.h.bf16 %v2306_v50  ;;  %v2307_v57 = vunpack.i.l.bf16 %v2306_v50  ;;  %v2547_v50 = vld [vmem:[#allocation14 + $0x1c] ss:$12 sps:$4 sm:$0xff]  }
 0x478   :  { %v2298_v53 = vunpack.i.h.bf16 %v2296_v51  ;;  %v2297_v54 = vunpack.i.l.bf16 %v2296_v51  ;;  %1960 = vmatpush3.bf16.msra.mxu1 %v878_v49  ;;  %v2546_v51 = vld [vmem:[#allocation14 + $0x20] ss:$12 sps:$4 sm:$0xff]  }
 0x479   :  { %1961 = vmatprep.subr.bf16.mxu1 %v919_v52  ;;  %v890_v63 = vpack.c.bf16 %v2308_v56, %v2307_v57  ;;  %v2549_v52 = vld [vmem:[#allocation14 + $0x18] ss:$12 sps:$4 sm:$0xff]  }
 0x47a   :  { %v930_v58 = vpack.c.bf16 %v2298_v53, %v2297_v54  ;;  %v2311_v59 = vpop.permute.xlu0 %2310 }
 0x47b   :  { %v2301_v60 = vpop.permute.xlu1 %2300  ;;  %v2313_v7 = vunpack.i.h.bf16 %v2311_v59  ;;  %v2312_v8 = vunpack.i.l.bf16 %v2311_v59 }
 0x47c   :  { %v2303_v61 = vunpack.i.h.bf16 %v2301_v60  ;;  %v2302_v62 = vunpack.i.l.bf16 %v2301_v60  ;;  %1962 = vmatpush3.bf16.msra.mxu1 %v879_v55 }
 0x47d   :  { %1963 = vmatprep.subr.bf16.mxu1 %v930_v58  ;;  %v891_v14 = vpack.c.bf16 %v2313_v7, %v2312_v8 }
 0x47e   :  { %v931_v9 = vpack.c.bf16 %v2303_v61, %v2302_v62  ;;  %v2326_v10 = vpop.permute.xlu0 %2325 }
 0x47f   :  { %v2316_v11 = vpop.permute.xlu1 %2315  ;;  %v2328_v15 = vunpack.i.h.bf16 %v2326_v10  ;;  %v2327_v16 = vunpack.i.l.bf16 %v2326_v10 }
 0x480   :  { %v2318_v12 = vunpack.i.h.bf16 %v2316_v11  ;;  %v2317_v13 = vunpack.i.l.bf16 %v2316_v11  ;;  %1964 = vmatpush3.bf16.msra.mxu1 %v890_v63 }
 0x481   :  { %1965 = vmatprep.subr.bf16.mxu1 %v931_v9  ;;  %v902_v22 = vpack.c.bf16 %v2328_v15, %v2327_v16 }
 0x482   :  { %v942_v17 = vpack.c.bf16 %v2318_v12, %v2317_v13  ;;  %v2331_v18 = vpop.permute.xlu0 %2330 }
 0x483   :  { %v2321_v19 = vpop.permute.xlu1 %2320  ;;  %v2333_v23 = vunpack.i.h.bf16 %v2331_v18  ;;  %v2332_v24 = vunpack.i.l.bf16 %v2331_v18 }
 0x484   :  { %v2323_v20 = vunpack.i.h.bf16 %v2321_v19  ;;  %v2322_v21 = vunpack.i.l.bf16 %v2321_v19  ;;  %1966 = vmatpush3.bf16.msra.mxu1 %v891_v14 }
 0x485   :  { %1967 = vmatprep.subr.bf16.mxu1 %v942_v17  ;;  %v903_v30 = vpack.c.bf16 %v2333_v23, %v2332_v24 }
 0x486   :  { %v943_v25 = vpack.c.bf16 %v2323_v20, %v2322_v21  ;;  %v2346_v26 = vpop.permute.xlu0 %2345 }
 0x487   :  { %v2336_v27 = vpop.permute.xlu1 %2335  ;;  %v2348_v31 = vunpack.i.h.bf16 %v2346_v26  ;;  %v2347_v32 = vunpack.i.l.bf16 %v2346_v26 }
 0x488   :  { %v2338_v28 = vunpack.i.h.bf16 %v2336_v27  ;;  %v2337_v29 = vunpack.i.l.bf16 %v2336_v27  ;;  %1968 = vmatpush3.bf16.msra.mxu1 %v902_v22 }
 0x489   :  { %1969 = vmatprep.subr.bf16.mxu1 %v943_v25  ;;  %v914_v4 = vpack.c.bf16 %v2348_v31, %v2347_v32 }
 0x48a   :  { %v954_v33 = vpack.c.bf16 %v2338_v28, %v2337_v29  ;;  %v2351_v34 = vpop.permute.xlu0 %2350 }
 0x48b   :  { %v2341_v35 = vpop.permute.xlu1 %2340  ;;  %v2353_v0 = vunpack.i.h.bf16 %v2351_v34  ;;  %v2352_v1 = vunpack.i.l.bf16 %v2351_v34 }
 0x48c   :  { %v2343_v40 = vunpack.i.h.bf16 %v2341_v35  ;;  %v2342_v41 = vunpack.i.l.bf16 %v2341_v35  ;;  %1970 = vmatpush3.bf16.msra.mxu1 %v903_v30 }
 0x48d   :  { %1971 = vmatprep.subr.bf16.mxu1 %v954_v33  ;;  %v915_v46 = vpack.c.bf16 %v2353_v0, %v2352_v1 }
 0x48e   :  { %v955_v2 = vpack.c.bf16 %v2343_v40, %v2342_v41  ;;  %v2361_v3 = vpop.permute.xlu0 %2360 }
 0x48f   :  { %v2356_v5 = vpop.permute.xlu1 %2355  ;;  %v2363_v42 = vunpack.i.h.bf16 %v2361_v3  ;;  %v2362_v43 = vunpack.i.l.bf16 %v2361_v3 }
 0x490   :  { %v2358_v44 = vunpack.i.h.bf16 %v2356_v5  ;;  %v2357_v45 = vunpack.i.l.bf16 %v2356_v5  ;;  %1972 = vmatpush3.bf16.msra.mxu1 %v914_v4 }
 0x491   :  { %1973 = vmatprep.subr.bf16.mxu1 %v955_v2  ;;  %v967_v49 = vpack.c.bf16 %v2363_v42, %v2362_v43 }
 0x492   :  { %v966_v47 = vpack.c.bf16 %v2358_v44, %v2357_v45 }
 0x494   :  { %1974 = vmatpush3.bf16.msra.mxu1 %v915_v46  ;;  %2071 = vmatprep.subr.bf16.mxu0 %v966_v47 }
 0x495   :  { %2072 = vmatpush3.bf16.msra.mxu0 %v966_v47 }
 0x496   :  { %2073 = vmatprep.subr.bf16.mxu0 %v967_v49 }
 0x497   :  { %1077 = vmatmul.mubr.bf16.vlgmr.msra.gmra.mrb[16].mxu1 %v2542_v48 }
 0x498   :  { %1084 = vmatprep.mubr.bf16.mxu1 %v2547_v50  ;;  %v2553_v50 = vld [vmem:[#allocation17 + $0x8] ss:$12 sps:$4 sm:$0xff]  }
 0x499   :  { %2074 = vmatpush3.bf16.msra.mxu0 %v967_v49 }
 0x49c   :  { %2076 = vmatmul.mubr.msk.bf16.vlgmr.msra.gmra.mrb[8].mxu0 %vm403_vm0, %v2546_v51  ;;  %v1178_v51 = vld [vmem:[#allocation18] sm:$0xff] }
 0x49f   :  { %1085 = vmatmul.mubr.bf16.gmra.mrb[20].mxu1 %v2549_v52  ;;  %v996_v61 = vpop.permute.xlu0 %995  ;;  %v1180_v52 = vld [vmem:[#allocation18 + $0x10] sm:$0xff] }
 0x4a0   :  { %v991_v57 = vpop.permute.xlu1 %990  ;;  %2083 = vmatprep.mubr.msk.bf16.mxu1 %vm403_vm0, %v2553_v50 }
 0x4a3   :  { %v1006_v23 = vpop.permute.xlu0 %1005 }
 0x4a4   :  { %v1001_v17 = vpop.permute.xlu1 %1000 }
 0x56a   :  { %v1975_v53 = vpop.f32.mrb[16].mxu1 }
 0x56b   :  { %v1976_v54 = vpop.f32.mrb[17].mxu1 }
 0x56c   :  { %v1977_v55 = vadd.f32 %v1976_v54, %v1975_v53  ;;  %v1978_v56 = vpop.f32.mrb[18].mxu1  ;;  %v1179_v53 = vld [vmem:[#allocation18 + $0x8] sm:$0xff]  ;;  %v1181_v54 = vld [vmem:[#allocation18 + $0x18] sm:$0xff] }
 0x56d   :  { %v1979_v58 = vpop.f32.mrb[19].mxu1 }
 0x56e   :  { %v1980_v59 = vadd.f32 %v1979_v58, %v1978_v56  ;;  %v1079_v60 = vadd.f32 %v1977_v55, %v991_v57 }
 0x56f   :  { %v2077_v62 = vpop.f32.mrb[8].mxu0 }
 0x570   :  { %v1127_v63 = vpop.f32.mrb[9].mxu0  ;;  %v1082_v7 = vadd.f32 %v1980_v59, %v996_v61 }
 0x571   :  { %v1128_v8 = vadd.f32 %v1127_v63, %v1079_v60  ;;  %v2078_v9 = vpop.f32.mrb[10].mxu0 }
 0x572   :  { %v1981_v10 = vpop.f32.mrb[20].mxu1  ;;  %v1130_v11 = vpop.f32.mrb[11].mxu0 }
 0x573   :  { %v1146_v12 = vmin.f32 %v1128_v8, 0.0  ;;  %v1131_v13 = vadd.f32 %v1130_v11, %v1082_v7  ;;  %v1982_v14 = vpop.f32.mrb[21].mxu1  ;;  %vm1142_vm9 = vcmp.gt.f32.partialorder %v1128_v8, 0.0 }
 0x574   :  { %v1983_v15 = vadd.f32 %v1982_v14, %v1981_v10  ;;  %v1984_v16 = vpop.f32.mrb[22].mxu1 }
 0x575   :  { %v1150_v18 = vmul.f32 1.442695, %v1146_v12  ;;  %v1147_v19 = vmin.f32 %v1131_v13, 0.0  ;;  %v1985_v20 = vpop.f32.mrb[23].mxu1  ;;  %vm1143_vm10 = vcmp.gt.f32.partialorder %v1131_v13, 0.0 }
 0x576   :  { %v1087_v21 = vadd.f32 %v1983_v15, %v1001_v17  ;;  %v1986_v22 = vadd.f32 %v1985_v20, %v1984_v16 }
 0x577   :  { %2584 = vpow2.f32 %v1150_v18  ;;  %v1152_v24 = vmul.f32 1.442695, %v1147_v19 }
 0x578   :  { %v1136_v25 = vadd.f32 %v2077_v62, %v1087_v21  ;;  %v1090_v26 = vadd.f32 %v1986_v22, %v1006_v23 }
 0x579   :  { %2586 = vpow2.f32 %v1152_v24 }
 0x57a   :  { %v1148_v27 = vmin.f32 %v1136_v25, 0.0  ;;  %v1139_v28 = vadd.f32 %v2078_v9, %v1090_v26  ;;  %vm1144_vm11 = vcmp.gt.f32.partialorder %v1136_v25, 0.0 }
 0x57c   :  { %v1154_v29 = vmul.f32 1.442695, %v1148_v27  ;;  %v1149_v30 = vmin.f32 %v1139_v28, 0.0  ;;  %vm1145_vm12 = vcmp.gt.f32.partialorder %v1139_v28, 0.0 }
 0x57e   :  { %2588 = vpow2.f32 %v1154_v29  ;;  %v1156_v31 = vmul.f32 1.442695, %v1149_v30 }
 0x580   :  { %2590 = vpow2.f32 %v1156_v31 }
 0x581   :  { %v2585_v32 = vpop.eup %2584 }
 0x582   :  { %v1852_v33 = vadd.f32 -1.0, %v2585_v32 }
 0x583   :  { %v2587_v34 = vpop.eup %2586 }
 0x584   :  { %v1162_v35 = vsel %vm1142_vm9, %v1128_v8, %v1852_v33  ;;  %v1853_v40 = vadd.f32 -1.0, %v2587_v34 }
 0x585   :  { %v1166_v4 = vmul.f32 %v3229_v6, %v1162_v35 }
 0x586   :  { %v1163_v41 = vsel %vm1143_vm10, %v1131_v13, %v1853_v40 }
 0x587   :  { %v1167_v0 = vmul.f32 %v3229_v6, %v1163_v41 }
 0x588   :  { %v2589_v1 = vpop.eup %2588 }
 0x589   :  { %v1854_v2 = vadd.f32 -1.0, %v2589_v1  ;;  %v2364_v3 = vpack.i.bf16 %v1167_v0, %v1166_v4  ;;  %v1230_v5 = vpack.c.bf16 %v1167_v0, %v1166_v4 }
 0x58a   :  { %v2591_v42 = vpop.eup %2590 }
 0x58b   :  { %v1164_v43 = vsel %vm1144_vm11, %v1136_v25, %v1854_v2  ;;  %v1855_v44 = vadd.f32 -1.0, %v2591_v42  ;;  %2365 = vrot.lane.b32.xlu1 %v2364_v3, %s2921_s11  ;;  %1991 = vmatprep.subr.bf16.mxu0 %v1230_v5 }
 0x58c   :  { %v1168_v46 = vmul.f32 %v3229_v6, %v1164_v43 }
 0x58d   :  { %v1165_v45 = vsel %vm1145_vm12, %v1139_v28, %v1855_v44 }
 0x58e   :  { %v1169_v47 = vmul.f32 %v3229_v6, %v1165_v45  ;;  %v2552_v6 = vld [vmem:[#allocation17 + $0x4] ss:$12 sps:$4 sm:$0xff]  }
 0x58f   :  { %2370 = vrot.lane.b32.xlu1 %v2364_v3, %s2922_s1  ;;  %1388 = vmatprep.mubr.bf16.mxu0 %v2552_v6 }
 0x590   :  { %v2374_v48 = vpack.i.bf16 %v1169_v47, %v1168_v46  ;;  %v1231_v49 = vpack.c.bf16 %v1169_v47, %v1168_v46 }
 0x592   :  { %2375 = vrot.lane.b32.xlu0 %v2374_v48, %s2921_s11 }
 0x593   :  { %2385 = vrot.lane.b32.xlu1 %v2374_v48, %s2922_s1 }
 0x596   :  { %2380 = vrot.lane.b32.xlu0 %v2364_v3, %s2923_s22 }
 0x597   :  { %2390 = vrot.lane.b32.xlu1 %v2364_v3, %s2924_s21 }
 0x59a   :  { %2395 = vrot.lane.b32.xlu0 %v2374_v48, %s2923_s22 }
 0x59b   :  { %2405 = vrot.lane.b32.xlu1 %v2374_v48, %s2924_s21 }
 0x59e   :  { %2400 = vrot.lane.b32.xlu0 %v2364_v3, %s2912_s19 }
 0x59f   :  { %2410 = vrot.lane.b32.xlu1 %v2364_v3, %s2925_s27 }
 0x5a2   :  { %2415 = vrot.lane.b32.xlu0 %v2374_v48, %s2912_s19 }
 0x5a3   :  { %2425 = vrot.lane.b32.xlu1 %v2374_v48, %s2925_s27 }
 0x5a6   :  { %2420 = vrot.lane.b32.xlu0 %v2364_v3, %s2926_s14 }
 0x5a7   :  { %2435 = vrot.lane.b32.xlu1 %v2364_v3, %s2927_s16 }
 0x5aa   :  { %2430 = vrot.lane.b32.xlu0 %v2374_v48, %s2926_s14 }
 0x5ab   :  { %1302 = vperm.xlu1 %2203, %v1178_v51  }
 0x5ae   :  { %2440 = vrot.lane.b32.xlu0 %v2374_v48, %s2927_s16 }
 0x5af   :  { %1312 = vperm.xlu1 %2203, %v1180_v52  }
 0x5b2   :  { %1307 = vperm.xlu0 %2202, %v1179_v53  }
 0x5b6   :  { %1317 = vperm.xlu0 %2202, %v1181_v54  }
 0x5fd   :  { %v2366_v55 = vpop.permute.xlu1 %2365 }
 0x5fe   :  { %v2368_v56 = vunpack.i.h.bf16 %v2366_v55  ;;  %v2367_v57 = vunpack.i.l.bf16 %v2366_v55 }
 0x600   :  { %v1190_v58 = vpack.c.bf16 %v2368_v56, %v2367_v57  ;;  %v2550_v56 = vld [vmem:[#allocation17] ss:$12 sps:$4 sm:$0xff]  }
 0x601   :  { %v2371_v59 = vpop.permute.xlu1 %2370 }
 0x602   :  { %1992 = vmatpush3.bf16.msra.mxu0 %v1190_v58  ;;  %v2373_v60 = vunpack.i.h.bf16 %v2371_v59  ;;  %v2372_v61 = vunpack.i.l.bf16 %v2371_v59  ;;  %v2555_v59 = vld [vmem:[#allocation17 + $0x1c] ss:$12 sps:$4 sm:$0xff]  }
 0x603   :  { %1993 = vmatprep.subr.bf16.mxu0 %v1231_v49 }
 0x604   :  { %v2376_v62 = vpop.permute.xlu0 %2375  ;;  %v1242_v10 = vpack.c.bf16 %v2373_v60, %v2372_v61  ;;  %v2554_v61 = vld [vmem:[#allocation17 + $0x20] ss:$12 sps:$4 sm:$0xff]  }
 0x605   :  { %v2378_v63 = vunpack.i.h.bf16 %v2376_v62  ;;  %v2377_v7 = vunpack.i.l.bf16 %v2376_v62  ;;  %v2386_v8 = vpop.permute.xlu1 %2385  ;;  %v2557_v62 = vld [vmem:[#allocation17 + $0x18] ss:$12 sps:$4 sm:$0xff]  }
 0x606   :  { %v2388_v11 = vunpack.i.h.bf16 %v2386_v8  ;;  %v2387_v12 = vunpack.i.l.bf16 %v2386_v8 }
 0x607   :  { %v1191_v9 = vpack.c.bf16 %v2378_v63, %v2377_v7 }
 0x608   :  { %v2381_v13 = vpop.permute.xlu0 %2380  ;;  %v1243_v18 = vpack.c.bf16 %v2388_v11, %v2387_v12 }
 0x609   :  { %v2383_v14 = vunpack.i.h.bf16 %v2381_v13  ;;  %v2382_v15 = vunpack.i.l.bf16 %v2381_v13  ;;  %v2391_v16 = vpop.permute.xlu1 %2390  ;;  %1994 = vmatpush3.bf16.msra.mxu0 %v1191_v9 }
 0x60a   :  { %1995 = vmatprep.subr.bf16.mxu0 %v1242_v10  ;;  %v2393_v19 = vunpack.i.h.bf16 %v2391_v16  ;;  %v2392_v20 = vunpack.i.l.bf16 %v2391_v16 }
 0x60b   :  { %v1202_v17 = vpack.c.bf16 %v2383_v14, %v2382_v15 }
 0x60c   :  { %v2396_v21 = vpop.permute.xlu0 %2395  ;;  %v1254_v26 = vpack.c.bf16 %v2393_v19, %v2392_v20 }
 0x60d   :  { %v2398_v22 = vunpack.i.h.bf16 %v2396_v21  ;;  %v2397_v23 = vunpack.i.l.bf16 %v2396_v21  ;;  %v2406_v24 = vpop.permute.xlu1 %2405  ;;  %1996 = vmatpush3.bf16.msra.mxu0 %v1202_v17 }
 0x60e   :  { %1997 = vmatprep.subr.bf16.mxu0 %v1243_v18  ;;  %v2408_v27 = vunpack.i.h.bf16 %v2406_v24  ;;  %v2407_v28 = vunpack.i.l.bf16 %v2406_v24 }
 0x60f   :  { %v1203_v25 = vpack.c.bf16 %v2398_v22, %v2397_v23 }
 0x610   :  { %v2401_v29 = vpop.permute.xlu0 %2400  ;;  %v1255_v34 = vpack.c.bf16 %v2408_v27, %v2407_v28 }
 0x611   :  { %v2403_v30 = vunpack.i.h.bf16 %v2401_v29  ;;  %v2402_v31 = vunpack.i.l.bf16 %v2401_v29  ;;  %v2411_v32 = vpop.permute.xlu1 %2410  ;;  %1998 = vmatpush3.bf16.msra.mxu0 %v1203_v25 }
 0x612   :  { %1999 = vmatprep.subr.bf16.mxu0 %v1254_v26  ;;  %v2413_v35 = vunpack.i.h.bf16 %v2411_v32  ;;  %v2412_v40 = vunpack.i.l.bf16 %v2411_v32 }
 0x613   :  { %v1214_v33 = vpack.c.bf16 %v2403_v30, %v2402_v31 }
 0x614   :  { %v2416_v41 = vpop.permute.xlu0 %2415  ;;  %v1266_v3 = vpack.c.bf16 %v2413_v35, %v2412_v40 }
 0x615   :  { %v2418_v4 = vunpack.i.h.bf16 %v2416_v41  ;;  %v2417_v0 = vunpack.i.l.bf16 %v2416_v41  ;;  %v2426_v1 = vpop.permute.xlu1 %2425  ;;  %2000 = vmatpush3.bf16.msra.mxu0 %v1214_v33 }
 0x616   :  { %2001 = vmatprep.subr.bf16.mxu0 %v1255_v34  ;;  %v2428_v5 = vunpack.i.h.bf16 %v2426_v1  ;;  %v2427_v42 = vunpack.i.l.bf16 %v2426_v1 }
 0x617   :  { %v1215_v2 = vpack.c.bf16 %v2418_v4, %v2417_v0 }
 0x618   :  { %v2421_v43 = vpop.permute.xlu0 %2420  ;;  %v1267_v6 = vpack.c.bf16 %v2428_v5, %v2427_v42 }
 0x619   :  { %v2423_v44 = vunpack.i.h.bf16 %v2421_v43  ;;  %v2422_v45 = vunpack.i.l.bf16 %v2421_v43  ;;  %v2436_v46 = vpop.permute.xlu1 %2435  ;;  %2002 = vmatpush3.bf16.msra.mxu0 %v1215_v2 }
 0x61a   :  { %v2438_v47 = vunpack.i.h.bf16 %v2436_v46  ;;  %v2437_v48 = vunpack.i.l.bf16 %v2436_v46  ;;  %2003 = vmatprep.subr.bf16.mxu0 %v1266_v3 }
 0x61b   :  { %v1226_v49 = vpack.c.bf16 %v2423_v44, %v2422_v45  ;;  %v3321_v45 = vld [vmem:[#allocation6] ss:$0 sm:$0xff] }
 0x61c   :  { %v1278_v50 = vpack.c.bf16 %v2438_v47, %v2437_v48  ;;  %v2431_v51 = vpop.permute.xlu0 %2430 }
 0x61d   :  { %v2433_v52 = vunpack.i.h.bf16 %v2431_v51  ;;  %v2432_v53 = vunpack.i.l.bf16 %v2431_v51  ;;  %2004 = vmatpush3.bf16.msra.mxu0 %v1226_v49 }
 0x61e   :  { %2005 = vmatprep.subr.bf16.mxu0 %v1267_v6  ;;  %2079 = vmatprep.subr.bf16.mxu1 %v1278_v50 }
 0x61f   :  { %v1227_v54 = vpack.c.bf16 %v2433_v52, %v2432_v53  ;;  %2080 = vmatpush3.bf16.msra.mxu1 %v1278_v50 }
 0x620   :  { %v2441_v55 = vpop.permute.xlu0 %2440 }
 0x621   :  { %v2443_v57 = vunpack.i.h.bf16 %v2441_v55  ;;  %v2442_v58 = vunpack.i.l.bf16 %v2441_v55  ;;  %2006 = vmatpush3.bf16.msra.mxu0 %v1227_v54 }
 0x623   :  { %v1279_v60 = vpack.c.bf16 %v2443_v57, %v2442_v58 }
 0x624   :  { %1389 = vmatmul.mubr.bf16.vlgmr.msra.gmra.mrb[12].mxu0 %v2550_v56 }
 0x625   :  { %2081 = vmatprep.subr.bf16.mxu1 %v1279_v60  ;;  %1396 = vmatprep.mubr.bf16.mxu0 %v2555_v59 }
 0x626   :  { %2082 = vmatpush3.bf16.msra.mxu1 %v1279_v60 }
 0x629   :  { %2084 = vmatmul.mubr.msk.bf16.vlgmr.msra.gmra.mrb[24].mxu1 %vm403_vm0, %v2554_v61 }
 0x62a   :  { %v1303_v10 = vpop.permute.xlu1 %1302 }
 0x62c   :  { %1397 = vmatmul.mubr.bf16.gmra.mrb[16].mxu0 %v2557_v62  ;;  %v1494_v62 = vld [vmem:[#allocation21] sm:$0xff] }
 0x62e   :  { %v1313_v27 = vpop.permute.xlu1 %1312 }
 0x631   :  { %v1308_v14 = vpop.permute.xlu0 %1307 }
 0x635   :  { %v1318_v33 = vpop.permute.xlu0 %1317 }
 0x6f7   :  { %v2007_v63 = vpop.f32.mrb[12].mxu0 }
 0x6f8   :  { %v2008_v7 = vpop.f32.mrb[13].mxu0 }
 0x6f9   :  { %v2009_v8 = vadd.f32 %v2008_v7, %v2007_v63  ;;  %v2010_v9 = vpop.f32.mrb[14].mxu0  ;;  %v1496_v63 = vld [vmem:[#allocation21 + $0x10] sm:$0xff]  ;;  %v1495_v7 = vld [vmem:[#allocation21 + $0x8] sm:$0xff] }
 0x6fa   :  { %v2011_v11 = vpop.f32.mrb[15].mxu0 }
 0x6fb   :  { %v2012_v12 = vadd.f32 %v2011_v11, %v2010_v9  ;;  %v1391_v13 = vadd.f32 %v2009_v8, %v1303_v10  ;;  %v1497_v8 = vld [vmem:[#allocation21 + $0x18] sm:$0xff] }
 0x6fc   :  { %v2085_v15 = vpop.f32.mrb[24].mxu1 }
 0x6fd   :  { %v1439_v16 = vpop.f32.mrb[25].mxu1  ;;  %v1394_v17 = vadd.f32 %v2012_v12, %v1308_v14 }
 0x6fe   :  { %v1440_v18 = vadd.f32 %v1439_v16, %v1391_v13  ;;  %v2086_v19 = vpop.f32.mrb[26].mxu1 }
 0x6ff   :  { %v2013_v20 = vpop.f32.mrb[16].mxu0  ;;  %v1442_v21 = vpop.f32.mrb[27].mxu1 }
 0x700   :  { %v1458_v22 = vmin.f32 %v1440_v18, 0.0  ;;  %v1443_v23 = vadd.f32 %v1442_v21, %v1394_v17  ;;  %v2014_v24 = vpop.f32.mrb[17].mxu0  ;;  %vm1454_vm13 = vcmp.gt.f32.partialorder %v1440_v18, 0.0 }
 0x701   :  { %v2015_v25 = vadd.f32 %v2014_v24, %v2013_v20  ;;  %v2016_v26 = vpop.f32.mrb[18].mxu0 }
 0x702   :  { %v1462_v28 = vmul.f32 1.442695, %v1458_v22  ;;  %v1459_v29 = vmin.f32 %v1443_v23, 0.0  ;;  %v2017_v30 = vpop.f32.mrb[19].mxu0  ;;  %vm1455_vm14 = vcmp.gt.f32.partialorder %v1443_v23, 0.0 }
 0x703   :  { %v1399_v31 = vadd.f32 %v2015_v25, %v1313_v27  ;;  %v2018_v32 = vadd.f32 %v2017_v30, %v2016_v26 }
 0x704   :  { %2592 = vpow2.f32 %v1462_v28  ;;  %v1464_v34 = vmul.f32 1.442695, %v1459_v29 }
 0x705   :  { %v1448_v35 = vadd.f32 %v2085_v15, %v1399_v31  ;;  %v1402_v40 = vadd.f32 %v2018_v32, %v1318_v33 }
 0x706   :  { %2594 = vpow2.f32 %v1464_v34 }
 0x707   :  { %v1460_v41 = vmin.f32 %v1448_v35, 0.0  ;;  %v1451_v4 = vadd.f32 %v2086_v19, %v1402_v40  ;;  %vm1456_vm15 = vcmp.gt.f32.partialorder %v1448_v35, 0.0 }
 0x709   :  { %v1466_v0 = vmul.f32 1.442695, %v1460_v41  ;;  %v1461_v1 = vmin.f32 %v1451_v4, 0.0  ;;  %vm1457_vm1 = vcmp.gt.f32.partialorder %v1451_v4, 0.0 }
 0x70b   :  { %2596 = vpow2.f32 %v1466_v0  ;;  %v1468_v2 = vmul.f32 1.442695, %v1461_v1 }
 0x70d   :  { %2598 = vpow2.f32 %v1468_v2 }
 0x70e   :  { %v2593_v3 = vpop.eup %2592 }
 0x70f   :  { %v1864_v5 = vadd.f32 -1.0, %v2593_v3 }
 0x710   :  { %v2595_v42 = vpop.eup %2594 }
 0x711   :  { %v1474_v43 = vsel %vm1454_vm13, %v1440_v18, %v1864_v5  ;;  %v1865_v44 = vadd.f32 -1.0, %v2595_v42 }
 0x712   :  { %v1478_v46 = vmul.f32 %v3321_v45, %v1474_v43 }
 0x713   :  { %v1475_v47 = vsel %vm1455_vm14, %v1443_v23, %v1865_v44 }
 0x714   :  { %v1479_v48 = vmul.f32 %v3321_v45, %v1475_v47  ;;  %v1482_v6 = vadd.f32 %v1478_v46, %v3267_v38 }
 0x715   :  { %v2597_v49 = vpop.eup %2596 }
 0x716   :  { %v1483_v50 = vadd.f32 %v1479_v48, %v3271_v39  ;;  %v1866_v51 = vadd.f32 -1.0, %v2597_v49 }
 0x717   :  { %v2599_v52 = vpop.eup %2598 }
 0x718   :  { %v1476_v53 = vsel %vm1456_vm15, %v1448_v35, %v1866_v51  ;;  %v1867_v54 = vadd.f32 -1.0, %v2599_v52  ;;  %v2444_v55 = vpack.i.bf16 %v1483_v50, %v1482_v6  ;;  %v1546_v56 = vpack.c.bf16 %v1483_v50, %v1482_v6 }
 0x719   :  { %v1480_v57 = vmul.f32 %v3321_v45, %v1476_v53 }
 0x71a   :  { %v1477_v58 = vsel %vm1457_vm1, %v1451_v4, %v1867_v54  ;;  %2445 = vrot.lane.b32.xlu1 %v2444_v55, %s2921_s11  ;;  %2023 = vmatprep.subr.bf16.mxu0 %v1546_v56 }
 0x71b   :  { %v1481_v59 = vmul.f32 %v3321_v45, %v1477_v58  ;;  %v1484_v38 = vadd.f32 %v1480_v57, %v3259_v36  ;;  %v2560_v36 = vld [vmem:[#allocation20 + $0x4] ss:$12 sps:$4 sm:$0xff]  }
 0x71c   :  { %1704 = vmatprep.mubr.bf16.mxu0 %v2560_v36 }
 0x71d   :  { %v1485_v39 = vadd.f32 %v1481_v59, %v3263_v37  ;;  %v2561_v37 = vld [vmem:[#allocation20 + $0x8] ss:$12 sps:$4 sm:$0xff]  }
 0x71e   :  { %2450 = vrot.lane.b32.xlu1 %v2444_v55, %s2922_s1  ;;  %2091 = vmatprep.mubr.msk.bf16.mxu1 %vm403_vm0, %v2561_v37 }
 0x71f   :  { %v2454_v60 = vpack.i.bf16 %v1485_v39, %v1484_v38  ;;  %v1547_v61 = vpack.c.bf16 %v1485_v39, %v1484_v38 }
 0x721   :  { %2455 = vrot.lane.b32.xlu0 %v2454_v60, %s2921_s11 }
 0x722   :  { %2465 = vrot.lane.b32.xlu1 %v2454_v60, %s2922_s1 }
 0x725   :  { %2460 = vrot.lane.b32.xlu0 %v2444_v55, %s2923_s22 }
 0x726   :  { %2470 = vrot.lane.b32.xlu1 %v2444_v55, %s2924_s21 }
 0x729   :  { %2475 = vrot.lane.b32.xlu0 %v2454_v60, %s2923_s22 }
 0x72a   :  { %2485 = vrot.lane.b32.xlu1 %v2454_v60, %s2924_s21 }
 0x72d   :  { %2480 = vrot.lane.b32.xlu0 %v2444_v55, %s2912_s19 }
 0x72e   :  { %2490 = vrot.lane.b32.xlu1 %v2444_v55, %s2925_s27 }
 0x731   :  { %2495 = vrot.lane.b32.xlu0 %v2454_v60, %s2912_s19 }
 0x732   :  { %2505 = vrot.lane.b32.xlu1 %v2454_v60, %s2925_s27 }
 0x735   :  { %2500 = vrot.lane.b32.xlu0 %v2444_v55, %s2926_s14 }
 0x736   :  { %2515 = vrot.lane.b32.xlu1 %v2444_v55, %s2927_s16 }
 0x739   :  { %2510 = vrot.lane.b32.xlu0 %v2454_v60, %s2926_s14 }
 0x73a   :  { %1618 = vperm.xlu1 %2203, %v1494_v62  }
 0x73d   :  { %2520 = vrot.lane.b32.xlu0 %v2454_v60, %s2927_s16 }
 0x73e   :  { %1628 = vperm.xlu1 %2203, %v1496_v63  }
 0x741   :  { %1623 = vperm.xlu0 %2202, %v1495_v7   ;;  %v2558_v7 = vld [vmem:[#allocation20] ss:$12 sps:$4 sm:$0xff]  }
 0x745   :  { %1633 = vperm.xlu0 %2202, %v1497_v8  }
 0x78c   :  { %v2446_v9 = vpop.permute.xlu1 %2445 }
 0x78d   :  { %v2448_v10 = vunpack.i.h.bf16 %v2446_v9  ;;  %v2447_v11 = vunpack.i.l.bf16 %v2446_v9 }
 0x78f   :  { %v1506_v12 = vpack.c.bf16 %v2448_v10, %v2447_v11  ;;  %v2563_v10 = vld [vmem:[#allocation20 + $0x1c] ss:$12 sps:$4 sm:$0xff]  }
 0x790   :  { %v2451_v13 = vpop.permute.xlu1 %2450 }
 0x791   :  { %2024 = vmatpush3.bf16.msra.mxu0 %v1506_v12  ;;  %v2453_v14 = vunpack.i.h.bf16 %v2451_v13  ;;  %v2452_v15 = vunpack.i.l.bf16 %v2451_v13  ;;  %v2562_v12 = vld [vmem:[#allocation20 + $0x20] ss:$12 sps:$4 sm:$0xff]   ;;  %v2565_v13 = vld [vmem:[#allocation20 + $0x18] ss:$12 sps:$4 sm:$0xff]  }
 0x792   :  { %2025 = vmatprep.subr.bf16.mxu0 %v1547_v61 }
 0x793   :  { %v2456_v16 = vpop.permute.xlu0 %2455  ;;  %v1558_v21 = vpack.c.bf16 %v2453_v14, %v2452_v15 }
 0x794   :  { %v2458_v17 = vunpack.i.h.bf16 %v2456_v16  ;;  %v2457_v18 = vunpack.i.l.bf16 %v2456_v16  ;;  %v2466_v19 = vpop.permute.xlu1 %2465 }
 0x795   :  { %v2468_v22 = vunpack.i.h.bf16 %v2466_v19  ;;  %v2467_v23 = vunpack.i.l.bf16 %v2466_v19 }
 0x796   :  { %v1507_v20 = vpack.c.bf16 %v2458_v17, %v2457_v18 }
 0x797   :  { %v2461_v24 = vpop.permute.xlu0 %2460  ;;  %v1559_v29 = vpack.c.bf16 %v2468_v22, %v2467_v23 }
 0x798   :  { %v2463_v25 = vunpack.i.h.bf16 %v2461_v24  ;;  %v2462_v26 = vunpack.i.l.bf16 %v2461_v24  ;;  %v2471_v27 = vpop.permute.xlu1 %2470  ;;  %2026 = vmatpush3.bf16.msra.mxu0 %v1507_v20 }
 0x799   :  { %2027 = vmatprep.subr.bf16.mxu0 %v1558_v21  ;;  %v2473_v30 = vunpack.i.h.bf16 %v2471_v27  ;;  %v2472_v31 = vunpack.i.l.bf16 %v2471_v27 }
 0x79a   :  { %v1518_v28 = vpack.c.bf16 %v2463_v25, %v2462_v26 }
 0x79b   :  { %v2476_v32 = vpop.permute.xlu0 %2475  ;;  %v1570_v41 = vpack.c.bf16 %v2473_v30, %v2472_v31 }
 0x79c   :  { %v2478_v33 = vunpack.i.h.bf16 %v2476_v32  ;;  %v2477_v34 = vunpack.i.l.bf16 %v2476_v32  ;;  %v2486_v35 = vpop.permute.xlu1 %2485  ;;  %2028 = vmatpush3.bf16.msra.mxu0 %v1518_v28 }
 0x79d   :  { %2029 = vmatprep.subr.bf16.mxu0 %v1559_v29  ;;  %v2488_v4 = vunpack.i.h.bf16 %v2486_v35  ;;  %v2487_v0 = vunpack.i.l.bf16 %v2486_v35 }
 0x79e   :  { %v1519_v40 = vpack.c.bf16 %v2478_v33, %v2477_v34 }
 0x79f   :  { %v2481_v1 = vpop.permute.xlu0 %2480  ;;  %v1571_v43 = vpack.c.bf16 %v2488_v4, %v2487_v0 }
 0x7a0   :  { %v2483_v2 = vunpack.i.h.bf16 %v2481_v1  ;;  %v2482_v3 = vunpack.i.l.bf16 %v2481_v1  ;;  %v2491_v5 = vpop.permute.xlu1 %2490  ;;  %2030 = vmatpush3.bf16.msra.mxu0 %v1519_v40 }
 0x7a1   :  { %2031 = vmatprep.subr.bf16.mxu0 %v1570_v41  ;;  %v2493_v44 = vunpack.i.h.bf16 %v2491_v5  ;;  %v2492_v46 = vunpack.i.l.bf16 %v2491_v5 }
 0x7a2   :  { %v1530_v42 = vpack.c.bf16 %v2483_v2, %v2482_v3 }
 0x7a3   :  { %v2496_v47 = vpop.permute.xlu0 %2495  ;;  %v1582_v51 = vpack.c.bf16 %v2493_v44, %v2492_v46 }
 0x7a4   :  { %v2498_v48 = vunpack.i.h.bf16 %v2496_v47  ;;  %v2497_v49 = vunpack.i.l.bf16 %v2496_v47  ;;  %v2506_v6 = vpop.permute.xlu1 %2505  ;;  %2032 = vmatpush3.bf16.msra.mxu0 %v1530_v42 }
 0x7a5   :  { %2033 = vmatprep.subr.bf16.mxu0 %v1571_v43  ;;  %v2508_v52 = vunpack.i.h.bf16 %v2506_v6  ;;  %v2507_v53 = vunpack.i.l.bf16 %v2506_v6 }
 0x7a6   :  { %v1531_v50 = vpack.c.bf16 %v2498_v48, %v2497_v49 }
 0x7a7   :  { %v2501_v54 = vpop.permute.xlu0 %2500  ;;  %v1583_v39 = vpack.c.bf16 %v2508_v52, %v2507_v53 }
 0x7a8   :  { %v2503_v55 = vunpack.i.h.bf16 %v2501_v54  ;;  %v2502_v56 = vunpack.i.l.bf16 %v2501_v54  ;;  %v2516_v57 = vpop.permute.xlu1 %2515  ;;  %2034 = vmatpush3.bf16.msra.mxu0 %v1531_v50 }
 0x7a9   :  { %v2518_v58 = vunpack.i.h.bf16 %v2516_v57  ;;  %v2517_v59 = vunpack.i.l.bf16 %v2516_v57  ;;  %2035 = vmatprep.subr.bf16.mxu0 %v1582_v51 }
 0x7aa   :  { %v1542_v38 = vpack.c.bf16 %v2503_v55, %v2502_v56 }
 0x7ab   :  { %v1594_v60 = vpack.c.bf16 %v2518_v58, %v2517_v59  ;;  %v2511_v61 = vpop.permute.xlu0 %2510 }
 0x7ac   :  { %v2513_v36 = vunpack.i.h.bf16 %v2511_v61  ;;  %v2512_v37 = vunpack.i.l.bf16 %v2511_v61  ;;  %2036 = vmatpush3.bf16.msra.mxu0 %v1542_v38 }
 0x7ad   :  { %2037 = vmatprep.subr.bf16.mxu0 %v1583_v39  ;;  %2087 = vmatprep.subr.bf16.mxu1 %v1594_v60 }
 0x7ae   :  { %v1543_v62 = vpack.c.bf16 %v2513_v36, %v2512_v37  ;;  %2088 = vmatpush3.bf16.msra.mxu1 %v1594_v60 }
 0x7af   :  { %v2521_v63 = vpop.permute.xlu0 %2520 }
 0x7b0   :  { %v2523_v8 = vunpack.i.h.bf16 %v2521_v63  ;;  %v2522_v9 = vunpack.i.l.bf16 %v2521_v63  ;;  %2038 = vmatpush3.bf16.msra.mxu0 %v1543_v62 }
 0x7b2   :  { %v1595_v11 = vpack.c.bf16 %v2523_v8, %v2522_v9 }
 0x7b3   :  { %1705 = vmatmul.mubr.bf16.vlgmr.msra.gmra.mrb[20].mxu0 %v2558_v7 }
 0x7b4   :  { %2089 = vmatprep.subr.bf16.mxu1 %v1595_v11  ;;  %1712 = vmatprep.mubr.bf16.mxu0 %v2563_v10 }
 0x7b5   :  { %2090 = vmatpush3.bf16.msra.mxu1 %v1595_v11 }
 0x7b8   :  { %2092 = vmatmul.mubr.msk.bf16.vlgmr.msra.gmra.mrb[28].mxu1 %vm403_vm0, %v2562_v12 }
 0x7b9   :  { %v1619_v18 = vpop.permute.xlu1 %1618 }
 0x7bb   :  { %1713 = vmatmul.mubr.bf16.gmra.mrb[24].mxu0 %v2565_v13 }
 0x7bd   :  { %v1629_v34 = vpop.permute.xlu1 %1628 }
 0x7c0   :  { %v1624_v22 = vpop.permute.xlu0 %1623 }
 0x7c4   :  { %v1634_v1 = vpop.permute.xlu0 %1633 }
 0x886   :  { %v2039_v14 = vpop.f32.mrb[20].mxu0 }
 0x887   :  { %v2040_v15 = vpop.f32.mrb[21].mxu0 }
 0x888   :  { %v2041_v16 = vadd.f32 %v2040_v15, %v2039_v14  ;;  %v2042_v17 = vpop.f32.mrb[22].mxu0 }
 0x889   :  { %v2043_v19 = vpop.f32.mrb[23].mxu0 }
 0x88a   :  { %v2044_v20 = vadd.f32 %v2043_v19, %v2042_v17  ;;  %v1707_v21 = vadd.f32 %v2041_v16, %v1619_v18 }
 0x88b   :  { %v2093_v23 = vpop.f32.mrb[28].mxu1 }
 0x88c   :  { %v1755_v24 = vpop.f32.mrb[29].mxu1  ;;  %v1710_v25 = vadd.f32 %v2044_v20, %v1624_v22 }
 0x88d   :  { %v1756_v26 = vadd.f32 %v1755_v24, %v1707_v21  ;;  %v2094_v27 = vpop.f32.mrb[30].mxu1 }
 0x88e   :  { %v2045_v28 = vpop.f32.mrb[24].mxu0  ;;  %v1758_v29 = vpop.f32.mrb[31].mxu1 }
 0x88f   :  { %v1759_v30 = vadd.f32 %v1758_v29, %v1710_v25  ;;  %v2046_v31 = vpop.f32.mrb[25].mxu0  ;;  %v1770_v35 = vmul.f32 %v3321_v45, %v1756_v26 }
 0x890   :  { %v2047_v32 = vadd.f32 %v2046_v31, %v2045_v28  ;;  %v2048_v33 = vpop.f32.mrb[26].mxu0 }
 0x891   :  { %v1771_v40 = vmul.f32 %v3321_v45, %v1759_v30  ;;  %v2049_v41 = vpop.f32.mrb[27].mxu0 }
 0x892   :  { %v1715_v4 = vadd.f32 %v2047_v32, %v1629_v34  ;;  %v2050_v0 = vadd.f32 %v2049_v41, %v2048_v33 }
 0x893   :  { %v1887_v2 = vpack.c.bf16 %v1771_v40, %v1770_v35 }
 0x894   :  { %v1764_v3 = vadd.f32 %v2093_v23, %v1715_v4  ;;  %v1718_v5 = vadd.f32 %v2050_v0, %v1634_v1 }
 0x895   :  { %1888 = vst [vmem:[#allocation23] sm:$0xff] %v1887_v2  }
 0x896   :  { %v1767_v42 = vadd.f32 %v2094_v27, %v1718_v5  ;;  %v1772_v43 = vmul.f32 %v3321_v45, %v1764_v3 }
 0x898   :  { %v1773_v44 = vmul.f32 %v3321_v45, %v1767_v42 }
 0x89a   :  { %v1892_v46 = vpack.c.bf16 %v1773_v44, %v1772_v43 }
 0x89c   :  { %1894 = vst [vmem:[#allocation23 + $0x8] sm:$0xff] %v1892_v46  }
 0x89d   :  { %2876 = shalt.err (!%p2873_p2)
}
 0x89e   :  { %s2877_s13 = scalar_lea.hbm %s3380_s12, 256 }
 0x89f   :  { %p2878_p3 = scmp.ne.s32.totalorder %s3380_s12, %s2877_s13  ;;  %p2881_p4 = scmp.lt.u32.totalorder %s2877_s13, %s3380_s12 }
 0x8a1   :  { %p2883_p5 = pnand %p2881_p4, %p2878_p3 }
 0x8a3   :  { %2886 = shalt.err (!%p2883_p5)
}
 0x8a4   :  { %1805 = dma.vmem_to_hbm [thread:$0]  %s1800_s5, 256, %s3380_s12, [#allocation5], %s2911_s9, %s2911_s9, %s2912_s19  }
 0x8a5   :  { %2901 = dma.done.wait [#allocation5], 256  }
 0x8a6   :  { %2902 = vsyncadd [#allocation5], 4294967040 }
 0x8a7   :  { %1809 = vsyncpa [#allocation4], 1 }
 0x8a8   :  { %1810 = vsyncpa [#allocation7], 1 }
 0x8a9   :  { %1811 = vsyncpa [#allocation10], 1 }
 0x8aa   :  { %1812 = vsyncpa [#allocation13], 1 }
 0x8ab   :  { %1813 = vsyncpa [#allocation16], 1 }
 0x8ac   :  { %1814 = vsyncpa [#allocation19], 1 }
 0x8ad   :  { %1815 = vsyncpa [#allocation22], 1 }
 0x8ae   :  { %1816 = vsyncpa [#allocation5], 1 }

// kernel: a_call__.8
= control target key start
LH: loop header
LB: loop body
LE: loop exit
PB: predicated region body
PF: predicated region fallthrough
CT: control target
= control target key end

     0   :  { %15 = vsyncpa [#allocation4], 0  ;;  %s2799_s0 = inlined_call_operand.hbm [shape: bf16[32,128], index: 0, kind: input, shape index: {}]   ;;  %s2800_s1 = inlined_call_operand.hbm [shape: f32[1,128], index: 1, kind: input, shape index: {}]   ;;  %s2801_s2 = inlined_call_operand.hbm [shape: bf16[32,288], index: 2, kind: input, shape index: {}]   ;;  %s2802_s3 = inlined_call_operand.hbm [shape: f32[32,1], index: 3, kind: input, shape index: {}]   ;;  %s2803_s4 = inlined_call_operand.hbm [shape: bf16[32,288], index: 4, kind: input, shape index: {}]   ;;  %s2804_s5 = inlined_call_operand.hbm [shape: f32[32,1], index: 5, kind: input, shape index: {}]   ;;  %s2805_s6 = inlined_call_operand.hbm [shape: bf16[32,288], index: 6, kind: input, shape index: {}]   ;;  %s2806_s7 = inlined_call_operand.hbm [shape: f32[32,1], index: 7, kind: input, shape index: {}]   ;;  %s2807_s8 = inlined_call_operand.hbm [shape: bf16[32,288], index: 8, kind: input, shape index: {}]   ;;  %s2808_s9 = inlined_call_operand.hbm [shape: f32[32,1], index: 9, kind: input, shape index: {}]   ;;  %s2809_s10 = inlined_call_operand.hbm [shape: bf16[32,128], index: 10, kind: output, shape index: {}]  }
   0x1   :  { %16 = vsyncpa [#allocation7], 0 }
   0x2   :  { %17 = vsyncpa [#allocation10], 0 }
   0x3   :  { %18 = vsyncpa [#allocation13], 0 }
   0x4   :  { %19 = vsyncpa [#allocation16], 0 }
   0x5   :  { %20 = vsyncpa [#allocation19], 0 }
   0x6   :  { %21 = vsyncpa [#allocation5], 0  ;;  %s2397_s13 = smov [#allocation6]   ;;  %s2398_s15 = smov [#allocation9]  }
   0x7   :  { %s40_s14 = sshll.u32 %s2397_s13, 4  ;;  %s61_s16 = sshll.u32 %s2398_s15, 4  ;;  %s41_s14 = int_to_ptr.vmem [resolvable:$true] %s40_s14  ;;  %s2477_s16 = int_to_ptr.vmem [resolvable:$true] %s61_s16 }
   0x8   :  { %s2141_s19 = scalar_lea.hbm %s2800_s1, 16 }
   0x9   :  { %p2142_p0 = scmp.ne.s32.totalorder %s2800_s1, %s2141_s19  ;;  %p2145_p1 = scmp.lt.u32.totalorder %s2141_s19, %s2800_s1 }
   0xb   :  { %p2147_p2 = pnand %p2145_p1, %p2142_p0 }
   0xd   :  { %2150 = shalt.err (!%p2147_p2)
}
   0xe   :  { %s2151_s24 = scalar_lea.vmem %s41_s14, 16  ;;  %s2155_s25 = scalar_lea.vmem %s41_s14, 32 }
   0xf   :  { %p2152_p3 = scmp.ne.s32.totalorder %s41_s14, %s2151_s24  ;;  %p2156_p4 = scmp.lt.s32.totalorder %s41_s14, %s41_s14 }
  0x10   :  { %p2157_p5 = scmp.lt.s32.totalorder %s2155_s25, %s2151_s24 }
  0x12   :  { %p2158_p6 = por %p2157_p5, %p2156_p4 }
  0x14   :  { %p2159_p7 = pnand %p2158_p6, %p2152_p3 }
  0x16   :  { %2162 = shalt.err (!%p2159_p7)
}
  0x17   :  { %43 = dma.hbm_to_vmem [thread:$0]  %s2800_s1, 16, %s41_s14, [#allocation7]  }
  0x18   :  { %s2163_s30 = scalar_lea.hbm %s2802_s3, 512 }
  0x19   :  { %p2164_p8 = scmp.ne.s32.totalorder %s2802_s3, %s2163_s30  ;;  %p2167_p9 = scmp.lt.u32.totalorder %s2163_s30, %s2802_s3 }
  0x1b   :  { %p2169_p10 = pnand %p2167_p9, %p2164_p8 }
  0x1d   :  { %2172 = shalt.err (!%p2169_p10)
}
  0x1e   :  { %s2173_s17 = scalar_lea.vmem %s2477_s16, 512  ;;  %p2178_p12 = scmp.lt.s32.totalorder %s2477_s16, %s2477_s16 }
  0x1f   :  { %p2174_p11 = scmp.ne.s32.totalorder %s2477_s16, %s2173_s17  ;;  %p2179_p13 = scmp.lt.s32.totalorder %s2173_s17, %s2173_s17 }
  0x21   :  { %p2180_p0 = por %p2179_p13, %p2178_p12 }
  0x23   :  { %p2181_p1 = pnand %p2180_p0, %p2174_p11 }
  0x25   :  { %2184 = shalt.err (!%p2181_p1)
}
  0x26   :  { %s2399_s1 = smov 128   ;;  %s2400_s14 = smov 8  }
  0x27   :  { %67 = dma.hbm_to_vmem [thread:$0]  %s2802_s3, 512, %s2477_s16, [#allocation10], %s2399_s1, %s2399_s1, %s2400_s14  }
  0x28   :  { %s2401_s20 = smov [#allocation12]   ;;  %s2402_s22 = smov [#allocation15]  }
  0x29   :  { %s85_s21 = sshll.u32 %s2401_s20, 4  ;;  %s109_s23 = sshll.u32 %s2402_s22, 4  ;;  %s86_s21 = int_to_ptr.vmem [resolvable:$true] %s85_s21  ;;  %s2511_s23 = int_to_ptr.vmem [resolvable:$true] %s109_s23 }
  0x2a   :  { %s2185_s26 = scalar_lea.hbm %s2804_s5, 512 }
  0x2b   :  { %p2186_p2 = scmp.ne.s32.totalorder %s2804_s5, %s2185_s26  ;;  %p2189_p3 = scmp.lt.u32.totalorder %s2185_s26, %s2804_s5 }
  0x2d   :  { %p2191_p4 = pnand %p2189_p3, %p2186_p2 }
  0x2f   :  { %2194 = shalt.err (!%p2191_p4)
}
  0x30   :  { %s2195_s3 = scalar_lea.vmem %s86_s21, 512  ;;  %p2200_p6 = scmp.lt.s32.totalorder %s86_s21, %s86_s21 }
  0x31   :  { %p2196_p5 = scmp.ne.s32.totalorder %s86_s21, %s2195_s3  ;;  %p2201_p7 = scmp.lt.s32.totalorder %s2195_s3, %s2195_s3 }
  0x33   :  { %p2202_p8 = por %p2201_p7, %p2200_p6 }
  0x35   :  { %p2203_p9 = pnand %p2202_p8, %p2196_p5 }
  0x37   :  { %2206 = shalt.err (!%p2203_p9)
}
  0x38   :  { %91 = dma.hbm_to_vmem [thread:$0]  %s2804_s5, 512, %s86_s21, [#allocation13], %s2399_s1, %s2399_s1, %s2400_s14  }
  0x39   :  { %s2207_s15 = scalar_lea.hbm %s2806_s7, 512 }
  0x3a   :  { %p2208_p10 = scmp.ne.s32.totalorder %s2806_s7, %s2207_s15  ;;  %p2211_p11 = scmp.lt.u32.totalorder %s2207_s15, %s2806_s7 }
  0x3c   :  { %p2213_p12 = pnand %p2211_p11, %p2208_p10 }
  0x3e   :  { %2216 = shalt.err (!%p2213_p12)
}
  0x3f   :  { %s2217_s22 = scalar_lea.vmem %s2511_s23, 512  ;;  %p2222_p0 = scmp.lt.s32.totalorder %s2511_s23, %s2511_s23 }
  0x40   :  { %p2218_p13 = scmp.ne.s32.totalorder %s2511_s23, %s2217_s22  ;;  %p2223_p1 = scmp.lt.s32.totalorder %s2217_s22, %s2217_s22 }
  0x42   :  { %p2224_p2 = por %p2223_p1, %p2222_p0 }
  0x44   :  { %p2225_p3 = pnand %p2224_p2, %p2218_p13 }
  0x46   :  { %2228 = shalt.err (!%p2225_p3)
}
  0x47   :  { %115 = dma.hbm_to_vmem [thread:$0]  %s2806_s7, 512, %s2511_s23, [#allocation16], %s2399_s1, %s2399_s1, %s2400_s14  }
  0x48   :  { %s2403_s24 = smov [#allocation3]   ;;  %s2229_s28 = scalar_lea.hbm %s2799_s0, 256 }
  0x49   :  { %s27_s25 = sshll.u32 %s2403_s24, 4  ;;  %p2230_p4 = scmp.ne.s32.totalorder %s2799_s0, %s2229_s28  ;;  %s28_s25 = int_to_ptr.vmem [resolvable:$true] %s27_s25 }
  0x4a   :  { %p2233_p5 = scmp.lt.u32.totalorder %s2229_s28, %s2799_s0 }
  0x4c   :  { %p2235_p6 = pnand %p2233_p5, %p2230_p4 }
  0x4e   :  { %2238 = shalt.err (!%p2235_p6)
}
  0x4f   :  { %s2239_s11 = scalar_lea.vmem %s28_s25, 256  ;;  %p2244_p8 = scmp.lt.s32.totalorder %s28_s25, %s28_s25 }
  0x50   :  { %p2240_p7 = scmp.ne.s32.totalorder %s28_s25, %s2239_s11  ;;  %p2245_p9 = scmp.lt.s32.totalorder %s2239_s11, %s2239_s11 }
  0x52   :  { %p2246_p10 = por %p2245_p9, %p2244_p8 }
  0x54   :  { %p2247_p11 = pnand %p2246_p10, %p2240_p7 }
  0x56   :  { %2250 = shalt.err (!%p2247_p11)
}
  0x57   :  { %s2404_s7 = smov 64   ;;  %s2405_s23 = smov 4  }
  0x58   :  { %33 = dma.hbm_to_vmem [thread:$0]  %s2799_s0, 256, %s28_s25, [#allocation4], %s2404_s7, %s2404_s7, %s2405_s23  }
  0x59   :  { %s2406_s15 = smov [#allocation8]   ;;  %s2251_s20 = scalar_lea.hbm %s2801_s2, 768 }
  0x5a   :  { %s49_s17 = sshll.u32 %s2406_s15, 4  ;;  %p2252_p12 = scmp.ne.s32.totalorder %s2801_s2, %s2251_s20  ;;  %s50_s17 = int_to_ptr.vmem [resolvable:$true] %s49_s17 }
  0x5b   :  { %p2255_p13 = scmp.lt.u32.totalorder %s2251_s20, %s2801_s2 }
  0x5d   :  { %p2257_p0 = pnand %p2255_p13, %p2252_p12 }
  0x5f   :  { %2260 = shalt.err (!%p2257_p0)
}
  0x60   :  { %s2261_s26 = scalar_lea.vmem %s50_s17, 768  ;;  %p2266_p2 = scmp.lt.s32.totalorder %s50_s17, %s50_s17 }
  0x61   :  { %p2262_p1 = scmp.ne.s32.totalorder %s50_s17, %s2261_s26  ;;  %p2267_p3 = scmp.lt.s32.totalorder %s2261_s26, %s2261_s26 }
  0x63   :  { %p2268_p4 = por %p2267_p3, %p2266_p2 }
  0x65   :  { %p2269_p5 = pnand %p2268_p4, %p2262_p1 }
  0x67   :  { %2272 = shalt.err (!%p2269_p5)
}
  0x68   :  { %s2407_s0 = smov 192   ;;  %s2408_s25 = smov 12  }
  0x69   :  { %55 = dma.hbm_to_vmem [thread:$0]  %s2801_s2, 768, %s50_s17, [#allocation7], %s2407_s0, %s2407_s0, %s2408_s25  }
  0x6a   :  { %s2409_s29 = smov [#allocation11]   ;;  %s2410_s3 = smov [#allocation14]  }
  0x6b   :  { %s73_s30 = sshll.u32 %s2409_s29, 4  ;;  %s97_s16 = sshll.u32 %s2410_s3, 4  ;;  %s74_s30 = int_to_ptr.vmem [resolvable:$true] %s73_s30  ;;  %s2578_s16 = int_to_ptr.vmem [resolvable:$true] %s97_s16 }
  0x6c   :  { %s2273_s13 = scalar_lea.hbm %s2803_s4, 768 }
  0x6d   :  { %p2274_p6 = scmp.ne.s32.totalorder %s2803_s4, %s2273_s13  ;;  %p2277_p7 = scmp.lt.u32.totalorder %s2273_s13, %s2803_s4 }
  0x6f   :  { %p2279_p8 = pnand %p2277_p7, %p2274_p6 }
  0x71   :  { %2282 = shalt.err (!%p2279_p8)
}
  0x72   :  { %s2283_s2 = scalar_lea.vmem %s74_s30, 768  ;;  %p2288_p10 = scmp.lt.s32.totalorder %s74_s30, %s74_s30 }
  0x73   :  { %p2284_p9 = scmp.ne.s32.totalorder %s74_s30, %s2283_s2  ;;  %p2289_p11 = scmp.lt.s32.totalorder %s2283_s2, %s2283_s2 }
  0x75   :  { %p2290_p12 = por %p2289_p11, %p2288_p10 }
  0x77   :  { %p2291_p13 = pnand %p2290_p12, %p2284_p9 }
  0x79   :  { %2294 = shalt.err (!%p2291_p13)
}
  0x7a   :  { %79 = dma.hbm_to_vmem [thread:$0]  %s2803_s4, 768, %s74_s30, [#allocation10], %s2407_s0, %s2407_s0, %s2408_s25  }
  0x7b   :  { %s2295_s24 = scalar_lea.hbm %s2805_s6, 768 }
  0x7c   :  { %p2296_p0 = scmp.ne.s32.totalorder %s2805_s6, %s2295_s24  ;;  %p2299_p1 = scmp.lt.u32.totalorder %s2295_s24, %s2805_s6 }
  0x7e   :  { %p2301_p2 = pnand %p2299_p1, %p2296_p0 }
  0x80   :  { %2304 = shalt.err (!%p2301_p2)
}
  0x81   :  { %s2305_s3 = scalar_lea.vmem %s2578_s16, 768  ;;  %p2310_p4 = scmp.lt.s32.totalorder %s2578_s16, %s2578_s16 }
  0x82   :  { %p2306_p3 = scmp.ne.s32.totalorder %s2578_s16, %s2305_s3  ;;  %p2311_p5 = scmp.lt.s32.totalorder %s2305_s3, %s2305_s3 }
  0x84   :  { %p2312_p6 = por %p2311_p5, %p2310_p4 }
  0x86   :  { %p2313_p7 = pnand %p2312_p6, %p2306_p3 }
  0x88   :  { %2316 = shalt.err (!%p2313_p7)
}
  0x89   :  { %103 = dma.hbm_to_vmem [thread:$0]  %s2805_s6, 768, %s2578_s16, [#allocation13], %s2407_s0, %s2407_s0, %s2408_s25  }
  0x8a   :  { %s2411_s11 = smov [#allocation17]   ;;  %s2412_s13 = smov [#allocation18]  }
  0x8b   :  { %s121_s12 = sshll.u32 %s2411_s11, 4  ;;  %s133_s15 = sshll.u32 %s2412_s13, 4  ;;  %s122_s12 = int_to_ptr.vmem [resolvable:$true] %s121_s12  ;;  %s2615_s15 = int_to_ptr.vmem [resolvable:$true] %s133_s15 }
  0x8c   :  { %s2317_s20 = scalar_lea.hbm %s2807_s8, 768 }
  0x8d   :  { %p2318_p8 = scmp.ne.s32.totalorder %s2807_s8, %s2317_s20  ;;  %p2321_p9 = scmp.lt.u32.totalorder %s2317_s20, %s2807_s8 }
  0x8f   :  { %p2323_p10 = pnand %p2321_p9, %p2318_p8 }
  0x91   :  { %2326 = shalt.err (!%p2323_p10)
}
  0x92   :  { %s2327_s6 = scalar_lea.vmem %s122_s12, 768  ;;  %p2332_p12 = scmp.lt.s32.totalorder %s122_s12, %s122_s12 }
  0x93   :  { %p2328_p11 = scmp.ne.s32.totalorder %s122_s12, %s2327_s6  ;;  %p2333_p13 = scmp.lt.s32.totalorder %s2327_s6, %s2327_s6 }
  0x95   :  { %p2334_p0 = por %p2333_p13, %p2332_p12 }
  0x97   :  { %p2335_p1 = pnand %p2334_p0, %p2328_p11 }
  0x99   :  { %2338 = shalt.err (!%p2335_p1)
}
  0x9a   :  { %127 = dma.hbm_to_vmem [thread:$0]  %s2807_s8, 768, %s122_s12, [#allocation16], %s2407_s0, %s2407_s0, %s2408_s25  }
  0x9b   :  { %s2339_s27 = scalar_lea.hbm %s2808_s9, 512 }
  0x9c   :  { %p2340_p2 = scmp.ne.s32.totalorder %s2808_s9, %s2339_s27  ;;  %p2343_p3 = scmp.lt.u32.totalorder %s2339_s27, %s2808_s9 }
  0x9e   :  { %p2345_p4 = pnand %p2343_p3, %p2340_p2 }
  0xa0   :  { %2348 = shalt.err (!%p2345_p4)
}
  0xa1   :  { %s2349_s30 = scalar_lea.vmem %s2615_s15, 512  ;;  %p2354_p6 = scmp.lt.s32.totalorder %s2615_s15, %s2615_s15 }
  0xa2   :  { %p2350_p5 = scmp.ne.s32.totalorder %s2615_s15, %s2349_s30  ;;  %p2355_p7 = scmp.lt.s32.totalorder %s2349_s30, %s2349_s30 }
  0xa4   :  { %p2356_p8 = por %p2355_p7, %p2354_p6 }
  0xa6   :  { %p2357_p9 = pnand %p2356_p8, %p2350_p5 }
  0xa8   :  { %2360 = shalt.err (!%p2357_p9)
}
  0xa9   :  { %139 = dma.hbm_to_vmem [thread:$0]  %s2808_s9, 512, %s2615_s15, [#allocation19], %s2399_s1, %s2399_s1, %s2400_s14  }
  0xaa   :  { %2383 = dma.done.wait [#allocation4], 256  }
  0xab   :  { %2384 = vsyncadd [#allocation4], 4294967040 }
  0xac   :  { %2385 = dma.done.wait [#allocation7], 784  }
  0xad   :  { %2386 = vsyncadd [#allocation7], 4294966512 }
  0xae   :  { %2387 = dma.done.wait [#allocation10], 1280  }
  0xaf   :  { %2388 = vsyncadd [#allocation10], 4294966016 }
  0xb0   :  { %2389 = dma.done.wait [#allocation13], 1280  }
  0xb1   :  { %2390 = vsyncadd [#allocation13], 4294966016 }
  0xb2   :  { %2391 = dma.done.wait [#allocation16], 1280  }
  0xb3   :  { %2392 = vsyncadd [#allocation16], 4294966016 }
  0xb4   :  { %2393 = dma.done.wait [#allocation19], 512  }
  0xb5   :  { %2394 = vsyncadd [#allocation19], 4294966784  ;;  %v2652_v0 = vld [vmem:[#allocation3] sm:$0xff]   ;;  %v2654_v1 = vld [vmem:[#allocation3 + $0x8] sm:$0xff]   ;;  %s2413_s9 = smov 127   ;;  %s2414_s1 = smov 3  }
  0xb6   :  { %v176_v2 = vunpack.c.l.bf16 %v2652_v0  ;;  %v177_v3 = vunpack.c.h.bf16 %v2652_v0  ;;  %v178_v4 = vunpack.c.l.bf16 %v2654_v1  ;;  %v179_v5 = vunpack.c.h.bf16 %v2654_v1  ;;  %1565 = vmatprep.subr.bf16.mxu0 %v2652_v0  ;;  %s2415_s14 = smov 126   ;;  %s2416_s25 = smov 2   ;;  %v2076_v8 = vld [vmem:[#allocation8 + $0x4] ss:$12 sps:$4 sm:$0xff]   ;;  %v2077_v9 = vld [vmem:[#allocation8 + $0x8] ss:$12 sps:$4 sm:$0xff]  }
  0xb7   :  { %s2417_s11 = smov 125   ;;  %s2418_s12 = smov 1   ;;  %409 = vmatprep.mubr.bf16.mxu0 %v2076_v8  ;;  %vm370_vm0 = vcmask 261120   ;;  %v189_v10 = vld [vmem:[#allocation9 + $0x8] sm:$0xff]  ;;  %v188_v11 = vld [vmem:[#allocation9] sm:$0xff]  ;;  %v2420_v12 = vmov 0  }
  0xb8   :  { %v1750_v6 = vpack.i.bf16 %v177_v3, %v176_v2  ;;  %v1755_v7 = vpack.i.bf16 %v179_v5, %v178_v4  ;;  %1697 = vmatprep.mubr.msk.bf16.mxu1 %vm370_vm0, %v2077_v9  ;;  %s2419_s13 = smov 124   ;;  %1831 = vset.pattern.permute.xlu1 %v2420_v12  ;;  %v190_v13 = vld [vmem:[#allocation9 + $0x10] sm:$0xff]  ;;  %v191_v14 = vld [vmem:[#allocation9 + $0x18] sm:$0xff]  ;;  %s2421_s15 = smov [#allocation20]  }
  0xb9   :  { %1830 = vset.pattern.permute.xlu0 %v2420_v12  ;;  %s1478_s18 = sshll.u32 %s2421_s15, 4  ;;  %s1479_s18 = int_to_ptr.vmem [resolvable:$true] %s1478_s18 }
  0xba   :  { %1751 = vrot.lane.b32.xlu0 %v1750_v6, %s2405_s23  ;;  %1761 = vrot.lane.b32.xlu1 %v1750_v6, %s2413_s9  ;;  %s2361_s19 = scalar_lea.vmem %s1479_s18, 256  ;;  %p2366_p11 = scmp.lt.s32.totalorder %s1479_s18, %s1479_s18 }
  0xbb   :  { %p2362_p10 = scmp.ne.s32.totalorder %s1479_s18, %s2361_s19  ;;  %p2367_p12 = scmp.lt.s32.totalorder %s2361_s19, %s2361_s19 }
  0xbd   :  { %p2368_p13 = por %p2367_p12, %p2366_p11 }
  0xbe   :  { %1756 = vrot.lane.b32.xlu0 %v1755_v7, %s2405_s23  ;;  %1766 = vrot.lane.b32.xlu1 %v1750_v6, %s2414_s1 }
  0xbf   :  { %p2369_p0 = pnand %p2368_p13, %p2362_p10 }
  0xc2   :  { %1771 = vrot.lane.b32.xlu0 %v1755_v7, %s2413_s9  ;;  %1776 = vrot.lane.b32.xlu1 %v1755_v7, %s2414_s1 }
  0xc6   :  { %1781 = vrot.lane.b32.xlu0 %v1750_v6, %s2415_s14  ;;  %1786 = vrot.lane.b32.xlu1 %v1750_v6, %s2416_s25 }
  0xca   :  { %1791 = vrot.lane.b32.xlu0 %v1755_v7, %s2415_s14  ;;  %1796 = vrot.lane.b32.xlu1 %v1755_v7, %s2416_s25 }
  0xce   :  { %1801 = vrot.lane.b32.xlu0 %v1750_v6, %s2417_s11  ;;  %1806 = vrot.lane.b32.xlu1 %v1750_v6, %s2418_s12 }
  0xd2   :  { %1811 = vrot.lane.b32.xlu0 %v1755_v7, %s2417_s11  ;;  %1816 = vrot.lane.b32.xlu1 %v1755_v7, %s2418_s12 }
  0xd6   :  { %1821 = vrot.lane.b32.xlu0 %v1750_v6, %s2419_s13  ;;  %1826 = vrot.lane.b32.xlu1 %v1755_v7, %s2419_s13 }
  0xda   :  { %327 = vperm.xlu1 %1831, %v189_v10   ;;  %322 = vperm.xlu0 %1830, %v188_v11  }
  0xde   :  { %332 = vperm.xlu1 %1831, %v190_v13   ;;  %337 = vperm.xlu0 %1830, %v191_v14  }
 0x12c   :  { %v1752_v15 = vpop.permute.xlu0 %1751  ;;  %v1762_v16 = vpop.permute.xlu1 %1761 }
 0x12d   :  { %v1754_v17 = vunpack.i.h.bf16 %v1752_v15  ;;  %v1753_v18 = vunpack.i.l.bf16 %v1752_v15  ;;  %v1764_v19 = vunpack.i.h.bf16 %v1762_v16  ;;  %v1763_v20 = vunpack.i.l.bf16 %v1762_v16 }
 0x12f   :  { %v200_v21 = vpack.c.bf16 %v1754_v17, %v1753_v18  ;;  %v262_v28 = vpack.c.bf16 %v1764_v19, %v1763_v20 }
 0x130   :  { %v1757_v22 = vpop.permute.xlu0 %1756  ;;  %v1767_v23 = vpop.permute.xlu1 %1766 }
 0x131   :  { %v1759_v24 = vunpack.i.h.bf16 %v1757_v22  ;;  %v1758_v25 = vunpack.i.l.bf16 %v1757_v22  ;;  %1566 = vmatpush3.bf16.msra.mxu0 %v200_v21  ;;  %v1769_v26 = vunpack.i.h.bf16 %v1767_v23  ;;  %v1768_v27 = vunpack.i.l.bf16 %v1767_v23  ;;  %v2074_v21 = vld [vmem:[#allocation8] ss:$12 sps:$4 sm:$0xff]   ;;  %v2079_v22 = vld [vmem:[#allocation8 + $0x1c] ss:$12 sps:$4 sm:$0xff]  }
 0x132   :  { %1567 = vmatprep.subr.bf16.mxu0 %v2654_v1  ;;  %v2078_v23 = vld [vmem:[#allocation8 + $0x20] ss:$12 sps:$4 sm:$0xff]   ;;  %v2092_v1 = vld [vmem:[#allocation14 + $0x4] ss:$12 sps:$4 sm:$0xff]  }
 0x133   :  { %v201_v29 = vpack.c.bf16 %v1759_v24, %v1758_v25  ;;  %v212_v30 = vpack.c.bf16 %v1769_v26, %v1768_v27  ;;  %v2081_v24 = vld [vmem:[#allocation8 + $0x18] ss:$12 sps:$4 sm:$0xff]  }
 0x134   :  { %v1772_v31 = vpop.permute.xlu0 %1771  ;;  %v1777_v32 = vpop.permute.xlu1 %1776 }
 0x135   :  { %v1774_v33 = vunpack.i.h.bf16 %v1772_v31  ;;  %v1773_v34 = vunpack.i.l.bf16 %v1772_v31  ;;  %1568 = vmatpush3.bf16.msra.mxu0 %v201_v29  ;;  %v1779_v35 = vunpack.i.h.bf16 %v1777_v32  ;;  %v1778_v36 = vunpack.i.l.bf16 %v1777_v32 }
 0x136   :  { %1569 = vmatprep.subr.bf16.mxu0 %v262_v28 }
 0x137   :  { %v263_v37 = vpack.c.bf16 %v1774_v33, %v1773_v34  ;;  %v213_v38 = vpack.c.bf16 %v1779_v35, %v1778_v36 }
 0x138   :  { %v1782_v39 = vpop.permute.xlu0 %1781  ;;  %v1787_v40 = vpop.permute.xlu1 %1786 }
 0x139   :  { %v1784_v41 = vunpack.i.h.bf16 %v1782_v39  ;;  %v1783_v42 = vunpack.i.l.bf16 %v1782_v39  ;;  %1570 = vmatpush3.bf16.msra.mxu0 %v212_v30  ;;  %v1789_v43 = vunpack.i.h.bf16 %v1787_v40  ;;  %v1788_v44 = vunpack.i.l.bf16 %v1787_v40 }
 0x13a   :  { %1571 = vmatprep.subr.bf16.mxu0 %v263_v37 }
 0x13b   :  { %v274_v45 = vpack.c.bf16 %v1784_v41, %v1783_v42  ;;  %v224_v46 = vpack.c.bf16 %v1789_v43, %v1788_v44 }
 0x13c   :  { %v1792_v47 = vpop.permute.xlu0 %1791  ;;  %v1797_v48 = vpop.permute.xlu1 %1796 }
 0x13d   :  { %v1794_v49 = vunpack.i.h.bf16 %v1792_v47  ;;  %v1793_v50 = vunpack.i.l.bf16 %v1792_v47  ;;  %1572 = vmatpush3.bf16.msra.mxu0 %v213_v38  ;;  %v1799_v51 = vunpack.i.h.bf16 %v1797_v48  ;;  %v1798_v52 = vunpack.i.l.bf16 %v1797_v48 }
 0x13e   :  { %1573 = vmatprep.subr.bf16.mxu0 %v274_v45 }
 0x13f   :  { %v275_v53 = vpack.c.bf16 %v1794_v49, %v1793_v50  ;;  %v225_v54 = vpack.c.bf16 %v1799_v51, %v1798_v52 }
 0x140   :  { %v1802_v55 = vpop.permute.xlu0 %1801  ;;  %v1807_v56 = vpop.permute.xlu1 %1806 }
 0x141   :  { %v1804_v57 = vunpack.i.h.bf16 %v1802_v55  ;;  %v1803_v58 = vunpack.i.l.bf16 %v1802_v55  ;;  %1574 = vmatpush3.bf16.msra.mxu0 %v224_v46  ;;  %v1809_v59 = vunpack.i.h.bf16 %v1807_v56  ;;  %v1808_v60 = vunpack.i.l.bf16 %v1807_v56 }
 0x142   :  { %1575 = vmatprep.subr.bf16.mxu0 %v275_v53 }
 0x143   :  { %v286_v61 = vpack.c.bf16 %v1804_v57, %v1803_v58  ;;  %v236_v62 = vpack.c.bf16 %v1809_v59, %v1808_v60 }
 0x144   :  { %v1812_v63 = vpop.permute.xlu0 %1811  ;;  %v1817_v6 = vpop.permute.xlu1 %1816 }
 0x145   :  { %v1814_v7 = vunpack.i.h.bf16 %v1812_v63  ;;  %v1813_v8 = vunpack.i.l.bf16 %v1812_v63  ;;  %1576 = vmatpush3.bf16.msra.mxu0 %v225_v54  ;;  %v1819_v9 = vunpack.i.h.bf16 %v1817_v6  ;;  %v1818_v10 = vunpack.i.l.bf16 %v1817_v6  ;;  %v2688_v6 = vld [vmem:[#allocation6] ss:$0 sm:$0xff] }
 0x146   :  { %1577 = vmatprep.subr.bf16.mxu0 %v286_v61 }
 0x147   :  { %v287_v11 = vpack.c.bf16 %v1814_v7, %v1813_v8  ;;  %v237_v12 = vpack.c.bf16 %v1819_v9, %v1818_v10 }
 0x148   :  { %v1822_v13 = vpop.permute.xlu0 %1821  ;;  %v1827_v14 = vpop.permute.xlu1 %1826 }
 0x149   :  { %v1824_v15 = vunpack.i.h.bf16 %v1822_v13  ;;  %v1823_v16 = vunpack.i.l.bf16 %v1822_v13  ;;  %1578 = vmatpush3.bf16.msra.mxu0 %v236_v62  ;;  %v1829_v17 = vunpack.i.h.bf16 %v1827_v14  ;;  %v1828_v18 = vunpack.i.l.bf16 %v1827_v14 }
 0x14a   :  { %1579 = vmatprep.subr.bf16.mxu0 %v287_v11 }
 0x14b   :  { %v299_v19 = vpack.c.bf16 %v1829_v17, %v1828_v18  ;;  %v298_v20 = vpack.c.bf16 %v1824_v15, %v1823_v16 }
 0x14d   :  { %1580 = vmatpush3.bf16.msra.mxu0 %v237_v12  ;;  %1693 = vmatprep.subr.bf16.mxu1 %v298_v20 }
 0x14e   :  { %1694 = vmatpush3.bf16.msra.mxu1 %v298_v20 }
 0x14f   :  { %1695 = vmatprep.subr.bf16.mxu1 %v299_v19 }
 0x150   :  { %410 = vmatmul.mubr.bf16.vlgmr.msra.gmra.mrb[0].mxu0 %v2074_v21 }
 0x151   :  { %417 = vmatprep.mubr.bf16.mxu0 %v2079_v22 }
 0x152   :  { %1696 = vmatpush3.bf16.msra.mxu1 %v299_v19 }
 0x155   :  { %1698 = vmatmul.mubr.msk.bf16.vlgmr.msra.gmra.mrb[0].mxu1 %vm370_vm0, %v2078_v23 }
 0x158   :  { %418 = vmatmul.mubr.bf16.gmra.mrb[4].mxu0 %v2081_v24  ;;  %v2084_v24 = vld [vmem:[#allocation11 + $0x4] ss:$12 sps:$4 sm:$0xff]  }
 0x159   :  { %v323_v27 = vpop.permute.xlu0 %322  ;;  %v328_v30 = vpop.permute.xlu1 %327  ;;  %727 = vmatprep.mubr.bf16.mxu1 %v2084_v24 }
 0x15d   :  { %v333_v46 = vpop.permute.xlu1 %332  ;;  %v338_v52 = vpop.permute.xlu0 %337 }
 0x223   :  { %v1581_v25 = vpop.f32.mrb[0].mxu0 }
 0x224   :  { %v1582_v26 = vpop.f32.mrb[1].mxu0 }
 0x225   :  { %v1583_v28 = vadd.f32 %v1582_v26, %v1581_v25  ;;  %v1584_v29 = vpop.f32.mrb[2].mxu0  ;;  %v2085_v25 = vld [vmem:[#allocation11 + $0x8] ss:$12 sps:$4 sm:$0xff]  }
 0x226   :  { %v1585_v31 = vpop.f32.mrb[3].mxu0  ;;  %v517_v26 = vld [vmem:[#allocation12] sm:$0xff]  ;;  %1705 = vmatprep.mubr.msk.bf16.mxu0 %vm370_vm0, %v2085_v25 }
 0x227   :  { %v412_v32 = vadd.f32 %v1583_v28, %v323_v27  ;;  %v1586_v33 = vadd.f32 %v1585_v31, %v1584_v29  ;;  %v519_v27 = vld [vmem:[#allocation12 + $0x10] sm:$0xff]  ;;  %v518_v28 = vld [vmem:[#allocation12 + $0x8] sm:$0xff]  ;;  %v520_v29 = vld [vmem:[#allocation12 + $0x18] sm:$0xff] }
 0x228   :  { %v1699_v34 = vpop.f32.mrb[0].mxu1 }
 0x229   :  { %v460_v35 = vpop.f32.mrb[1].mxu1  ;;  %v415_v36 = vadd.f32 %v1586_v33, %v328_v30 }
 0x22a   :  { %v461_v37 = vadd.f32 %v460_v35, %v412_v32  ;;  %v1700_v38 = vpop.f32.mrb[2].mxu1 }
 0x22b   :  { %v1587_v39 = vpop.f32.mrb[4].mxu0  ;;  %v463_v40 = vpop.f32.mrb[3].mxu1 }
 0x22c   :  { %v479_v41 = vmin.f32 %v461_v37, 0.0  ;;  %v464_v42 = vadd.f32 %v463_v40, %v415_v36  ;;  %v1588_v43 = vpop.f32.mrb[5].mxu0  ;;  %vm475_vm1 = vcmp.gt.f32.partialorder %v461_v37, 0.0 }
 0x22d   :  { %v1589_v44 = vadd.f32 %v1588_v43, %v1587_v39  ;;  %v1590_v45 = vpop.f32.mrb[6].mxu0 }
 0x22e   :  { %v483_v47 = vmul.f32 1.442695, %v479_v41  ;;  %v480_v48 = vmin.f32 %v464_v42, 0.0  ;;  %v1591_v49 = vpop.f32.mrb[7].mxu0  ;;  %vm476_vm2 = vcmp.gt.f32.partialorder %v464_v42, 0.0 }
 0x22f   :  { %v420_v50 = vadd.f32 %v1589_v44, %v333_v46  ;;  %v1592_v51 = vadd.f32 %v1591_v49, %v1590_v45 }
 0x230   :  { %2108 = vpow2.f32 %v483_v47  ;;  %v485_v53 = vmul.f32 1.442695, %v480_v48 }
 0x231   :  { %v469_v54 = vadd.f32 %v1699_v34, %v420_v50  ;;  %v423_v55 = vadd.f32 %v1592_v51, %v338_v52 }
 0x232   :  { %2110 = vpow2.f32 %v485_v53 }
 0x233   :  { %v481_v56 = vmin.f32 %v469_v54, 0.0  ;;  %v472_v57 = vadd.f32 %v1700_v38, %v423_v55  ;;  %vm477_vm3 = vcmp.gt.f32.partialorder %v469_v54, 0.0 }
 0x235   :  { %v487_v58 = vmul.f32 1.442695, %v481_v56  ;;  %v482_v59 = vmin.f32 %v472_v57, 0.0  ;;  %vm478_vm4 = vcmp.gt.f32.partialorder %v472_v57, 0.0 }
 0x237   :  { %2112 = vpow2.f32 %v487_v58  ;;  %v489_v60 = vmul.f32 1.442695, %v482_v59 }
 0x239   :  { %2114 = vpow2.f32 %v489_v60 }
 0x23a   :  { %v2109_v61 = vpop.eup %2108 }
 0x23b   :  { %v1505_v62 = vadd.f32 -1.0, %v2109_v61 }
 0x23c   :  { %v2111_v63 = vpop.eup %2110 }
 0x23d   :  { %v495_v7 = vsel %vm475_vm1, %v461_v37, %v1505_v62  ;;  %v1506_v8 = vadd.f32 -1.0, %v2111_v63 }
 0x23e   :  { %v505_v10 = vmul.f32 %v2688_v6, %v495_v7 }
 0x23f   :  { %v496_v9 = vsel %vm476_vm2, %v464_v42, %v1506_v8 }
 0x240   :  { %v506_v11 = vmul.f32 %v2688_v6, %v496_v9 }
 0x241   :  { %v2113_v12 = vpop.eup %2112 }
 0x242   :  { %v1507_v13 = vadd.f32 -1.0, %v2113_v12  ;;  %v1832_v14 = vpack.i.bf16 %v506_v11, %v505_v10  ;;  %v569_v15 = vpack.c.bf16 %v506_v11, %v505_v10 }
 0x243   :  { %v2115_v16 = vpop.eup %2114 }
 0x244   :  { %v497_v17 = vsel %vm477_vm3, %v469_v54, %v1507_v13  ;;  %v1508_v18 = vadd.f32 -1.0, %v2115_v16  ;;  %1833 = vrot.lane.b32.xlu1 %v1832_v14, %s2405_s23  ;;  %1597 = vmatprep.subr.bf16.mxu1 %v569_v15 }
 0x245   :  { %v507_v20 = vmul.f32 %v2688_v6, %v497_v17 }
 0x246   :  { %v498_v19 = vsel %vm478_vm4, %v472_v57, %v1508_v18 }
 0x247   :  { %v508_v21 = vmul.f32 %v2688_v6, %v498_v19 }
 0x248   :  { %1838 = vrot.lane.b32.xlu1 %v1832_v14, %s2413_s9 }
 0x249   :  { %v1842_v22 = vpack.i.bf16 %v508_v21, %v507_v20  ;;  %v570_v23 = vpack.c.bf16 %v508_v21, %v507_v20 }
 0x24b   :  { %1843 = vrot.lane.b32.xlu0 %v1842_v22, %s2405_s23 }
 0x24c   :  { %1853 = vrot.lane.b32.xlu1 %v1842_v22, %s2413_s9 }
 0x24f   :  { %1848 = vrot.lane.b32.xlu0 %v1832_v14, %s2414_s1 }
 0x250   :  { %1858 = vrot.lane.b32.xlu1 %v1832_v14, %s2415_s14 }
 0x253   :  { %1863 = vrot.lane.b32.xlu0 %v1842_v22, %s2414_s1 }
 0x254   :  { %1873 = vrot.lane.b32.xlu1 %v1842_v22, %s2415_s14 }
 0x257   :  { %1868 = vrot.lane.b32.xlu0 %v1832_v14, %s2416_s25 }
 0x258   :  { %1878 = vrot.lane.b32.xlu1 %v1832_v14, %s2417_s11 }
 0x25b   :  { %1883 = vrot.lane.b32.xlu0 %v1842_v22, %s2416_s25 }
 0x25c   :  { %1893 = vrot.lane.b32.xlu1 %v1842_v22, %s2417_s11 }
 0x25f   :  { %1888 = vrot.lane.b32.xlu0 %v1832_v14, %s2418_s12 }
 0x260   :  { %1903 = vrot.lane.b32.xlu1 %v1832_v14, %s2419_s13 }
 0x263   :  { %1898 = vrot.lane.b32.xlu0 %v1842_v22, %s2418_s12 }
 0x264   :  { %641 = vperm.xlu1 %1831, %v517_v26  }
 0x267   :  { %1908 = vrot.lane.b32.xlu0 %v1842_v22, %s2419_s13 }
 0x268   :  { %651 = vperm.xlu1 %1831, %v519_v27  }
 0x26b   :  { %646 = vperm.xlu0 %1830, %v518_v28  }
 0x26f   :  { %656 = vperm.xlu0 %1830, %v520_v29  }
 0x2b6   :  { %v1834_v30 = vpop.permute.xlu1 %1833 }
 0x2b7   :  { %v1836_v31 = vunpack.i.h.bf16 %v1834_v30  ;;  %v1835_v32 = vunpack.i.l.bf16 %v1834_v30 }
 0x2b9   :  { %v529_v33 = vpack.c.bf16 %v1836_v31, %v1835_v32 }
 0x2ba   :  { %v1839_v34 = vpop.permute.xlu1 %1838 }
 0x2bb   :  { %1598 = vmatpush3.bf16.msra.mxu1 %v529_v33  ;;  %v1841_v35 = vunpack.i.h.bf16 %v1839_v34  ;;  %v1840_v36 = vunpack.i.l.bf16 %v1839_v34  ;;  %v2082_v34 = vld [vmem:[#allocation11] ss:$12 sps:$4 sm:$0xff]  }
 0x2bc   :  { %1599 = vmatprep.subr.bf16.mxu1 %v570_v23 }
 0x2bd   :  { %v1844_v37 = vpop.permute.xlu0 %1843  ;;  %v581_v42 = vpack.c.bf16 %v1841_v35, %v1840_v36 }
 0x2be   :  { %v1846_v38 = vunpack.i.h.bf16 %v1844_v37  ;;  %v1845_v39 = vunpack.i.l.bf16 %v1844_v37  ;;  %v1854_v40 = vpop.permute.xlu1 %1853  ;;  %v2087_v37 = vld [vmem:[#allocation11 + $0x1c] ss:$12 sps:$4 sm:$0xff]  }
 0x2bf   :  { %v1856_v43 = vunpack.i.h.bf16 %v1854_v40  ;;  %v1855_v44 = vunpack.i.l.bf16 %v1854_v40  ;;  %v2089_v40 = vld [vmem:[#allocation11 + $0x18] ss:$12 sps:$4 sm:$0xff]  }
 0x2c0   :  { %v530_v41 = vpack.c.bf16 %v1846_v38, %v1845_v39  ;;  %v2086_v39 = vld [vmem:[#allocation11 + $0x20] ss:$12 sps:$4 sm:$0xff]  }
 0x2c1   :  { %v1849_v45 = vpop.permute.xlu0 %1848  ;;  %v582_v50 = vpack.c.bf16 %v1856_v43, %v1855_v44 }
 0x2c2   :  { %v1851_v46 = vunpack.i.h.bf16 %v1849_v45  ;;  %v1850_v47 = vunpack.i.l.bf16 %v1849_v45  ;;  %v1859_v48 = vpop.permute.xlu1 %1858  ;;  %1600 = vmatpush3.bf16.msra.mxu1 %v530_v41 }
 0x2c3   :  { %1601 = vmatprep.subr.bf16.mxu1 %v581_v42  ;;  %v1861_v51 = vunpack.i.h.bf16 %v1859_v48  ;;  %v1860_v52 = vunpack.i.l.bf16 %v1859_v48 }
 0x2c4   :  { %v541_v49 = vpack.c.bf16 %v1851_v46, %v1850_v47 }
 0x2c5   :  { %v1864_v53 = vpop.permute.xlu0 %1863  ;;  %v593_v58 = vpack.c.bf16 %v1861_v51, %v1860_v52 }
 0x2c6   :  { %v1866_v54 = vunpack.i.h.bf16 %v1864_v53  ;;  %v1865_v55 = vunpack.i.l.bf16 %v1864_v53  ;;  %v1874_v56 = vpop.permute.xlu1 %1873  ;;  %1602 = vmatpush3.bf16.msra.mxu1 %v541_v49 }
 0x2c7   :  { %1603 = vmatprep.subr.bf16.mxu1 %v582_v50  ;;  %v1876_v59 = vunpack.i.h.bf16 %v1874_v56  ;;  %v1875_v60 = vunpack.i.l.bf16 %v1874_v56 }
 0x2c8   :  { %v542_v57 = vpack.c.bf16 %v1866_v54, %v1865_v55 }
 0x2c9   :  { %v1869_v61 = vpop.permute.xlu0 %1868  ;;  %v594_v9 = vpack.c.bf16 %v1876_v59, %v1875_v60 }
 0x2ca   :  { %v1871_v62 = vunpack.i.h.bf16 %v1869_v61  ;;  %v1870_v63 = vunpack.i.l.bf16 %v1869_v61  ;;  %v1879_v7 = vpop.permute.xlu1 %1878  ;;  %1604 = vmatpush3.bf16.msra.mxu1 %v542_v57 }
 0x2cb   :  { %1605 = vmatprep.subr.bf16.mxu1 %v593_v58  ;;  %v1881_v10 = vunpack.i.h.bf16 %v1879_v7  ;;  %v1880_v11 = vunpack.i.l.bf16 %v1879_v7 }
 0x2cc   :  { %v553_v8 = vpack.c.bf16 %v1871_v62, %v1870_v63 }
 0x2cd   :  { %v1884_v12 = vpop.permute.xlu0 %1883  ;;  %v605_v17 = vpack.c.bf16 %v1881_v10, %v1880_v11 }
 0x2ce   :  { %v1886_v13 = vunpack.i.h.bf16 %v1884_v12  ;;  %v1885_v14 = vunpack.i.l.bf16 %v1884_v12  ;;  %v1894_v15 = vpop.permute.xlu1 %1893  ;;  %1606 = vmatpush3.bf16.msra.mxu1 %v553_v8 }
 0x2cf   :  { %1607 = vmatprep.subr.bf16.mxu1 %v594_v9  ;;  %v1896_v18 = vunpack.i.h.bf16 %v1894_v15  ;;  %v1895_v19 = vunpack.i.l.bf16 %v1894_v15 }
 0x2d0   :  { %v554_v16 = vpack.c.bf16 %v1886_v13, %v1885_v14 }
 0x2d1   :  { %v1889_v20 = vpop.permute.xlu0 %1888  ;;  %v606_v27 = vpack.c.bf16 %v1896_v18, %v1895_v19 }
 0x2d2   :  { %v1891_v21 = vunpack.i.h.bf16 %v1889_v20  ;;  %v1890_v22 = vunpack.i.l.bf16 %v1889_v20  ;;  %v1904_v23 = vpop.permute.xlu1 %1903  ;;  %1608 = vmatpush3.bf16.msra.mxu1 %v554_v16 }
 0x2d3   :  { %v1906_v24 = vunpack.i.h.bf16 %v1904_v23  ;;  %v1905_v25 = vunpack.i.l.bf16 %v1904_v23  ;;  %1609 = vmatprep.subr.bf16.mxu1 %v605_v17 }
 0x2d4   :  { %v565_v26 = vpack.c.bf16 %v1891_v21, %v1890_v22 }
 0x2d5   :  { %v617_v28 = vpack.c.bf16 %v1906_v24, %v1905_v25  ;;  %v1899_v29 = vpop.permute.xlu0 %1898 }
 0x2d6   :  { %v1901_v30 = vunpack.i.h.bf16 %v1899_v29  ;;  %v1900_v31 = vunpack.i.l.bf16 %v1899_v29  ;;  %1610 = vmatpush3.bf16.msra.mxu1 %v565_v26 }
 0x2d7   :  { %1611 = vmatprep.subr.bf16.mxu1 %v606_v27  ;;  %1701 = vmatprep.subr.bf16.mxu0 %v617_v28 }
 0x2d8   :  { %v566_v32 = vpack.c.bf16 %v1901_v30, %v1900_v31  ;;  %1702 = vmatpush3.bf16.msra.mxu0 %v617_v28 }
 0x2d9   :  { %v1909_v33 = vpop.permute.xlu0 %1908 }
 0x2da   :  { %v1911_v35 = vunpack.i.h.bf16 %v1909_v33  ;;  %v1910_v36 = vunpack.i.l.bf16 %v1909_v33  ;;  %1612 = vmatpush3.bf16.msra.mxu1 %v566_v32 }
 0x2dc   :  { %v618_v38 = vpack.c.bf16 %v1911_v35, %v1910_v36 }
 0x2dd   :  { %728 = vmatmul.mubr.bf16.vlgmr.msra.gmra.mrb[4].mxu1 %v2082_v34 }
 0x2de   :  { %1703 = vmatprep.subr.bf16.mxu0 %v618_v38  ;;  %735 = vmatprep.mubr.bf16.mxu1 %v2087_v37 }
 0x2df   :  { %1704 = vmatpush3.bf16.msra.mxu0 %v618_v38 }
 0x2e2   :  { %1706 = vmatmul.mubr.msk.bf16.vlgmr.msra.gmra.mrb[8].mxu0 %vm370_vm0, %v2086_v39 }
 0x2e3   :  { %v642_v45 = vpop.permute.xlu1 %641 }
 0x2e5   :  { %736 = vmatmul.mubr.bf16.gmra.mrb[8].mxu1 %v2089_v40  ;;  %v835_v40 = vld [vmem:[#allocation15 + $0x10] sm:$0xff] }
 0x2e6   :  { %1043 = vmatprep.mubr.bf16.mxu1 %v2092_v1 }
 0x2e7   :  { %v652_v62 = vpop.permute.xlu1 %651 }
 0x2ea   :  { %v647_v49 = vpop.permute.xlu0 %646 }
 0x2ee   :  { %v657_v11 = vpop.permute.xlu0 %656 }
 0x3b0   :  { %v1613_v41 = vpop.f32.mrb[4].mxu1 }
 0x3b1   :  { %v1614_v42 = vpop.f32.mrb[5].mxu1 }
 0x3b2   :  { %v1615_v43 = vadd.f32 %v1614_v42, %v1613_v41  ;;  %v1616_v44 = vpop.f32.mrb[6].mxu1  ;;  %v834_v41 = vld [vmem:[#allocation15 + $0x8] sm:$0xff]  ;;  %v836_v42 = vld [vmem:[#allocation15 + $0x18] sm:$0xff] }
 0x3b3   :  { %v1617_v46 = vpop.f32.mrb[7].mxu1 }
 0x3b4   :  { %v1618_v47 = vadd.f32 %v1617_v46, %v1616_v44  ;;  %v730_v48 = vadd.f32 %v1615_v43, %v642_v45 }
 0x3b5   :  { %v1707_v50 = vpop.f32.mrb[8].mxu0 }
 0x3b6   :  { %v778_v51 = vpop.f32.mrb[9].mxu0  ;;  %v733_v52 = vadd.f32 %v1618_v47, %v647_v49 }
 0x3b7   :  { %v779_v53 = vadd.f32 %v778_v51, %v730_v48  ;;  %v1708_v54 = vpop.f32.mrb[10].mxu0 }
 0x3b8   :  { %v1619_v55 = vpop.f32.mrb[8].mxu1  ;;  %v781_v56 = vpop.f32.mrb[11].mxu0 }
 0x3b9   :  { %v797_v57 = vmin.f32 %v779_v53, 0.0  ;;  %v782_v58 = vadd.f32 %v781_v56, %v733_v52  ;;  %v1620_v59 = vpop.f32.mrb[9].mxu1  ;;  %vm793_vm5 = vcmp.gt.f32.partialorder %v779_v53, 0.0 }
 0x3ba   :  { %v1621_v60 = vadd.f32 %v1620_v59, %v1619_v55  ;;  %v1622_v61 = vpop.f32.mrb[10].mxu1 }
 0x3bb   :  { %v801_v63 = vmul.f32 1.442695, %v797_v57  ;;  %v798_v7 = vmin.f32 %v782_v58, 0.0  ;;  %v1623_v8 = vpop.f32.mrb[11].mxu1  ;;  %vm794_vm6 = vcmp.gt.f32.partialorder %v782_v58, 0.0 }
 0x3bc   :  { %v738_v9 = vadd.f32 %v1621_v60, %v652_v62  ;;  %v1624_v10 = vadd.f32 %v1623_v8, %v1622_v61 }
 0x3bd   :  { %2116 = vpow2.f32 %v801_v63  ;;  %v803_v12 = vmul.f32 1.442695, %v798_v7 }
 0x3be   :  { %v787_v13 = vadd.f32 %v1707_v50, %v738_v9  ;;  %v741_v14 = vadd.f32 %v1624_v10, %v657_v11 }
 0x3bf   :  { %2118 = vpow2.f32 %v803_v12 }
 0x3c0   :  { %v799_v15 = vmin.f32 %v787_v13, 0.0  ;;  %v790_v16 = vadd.f32 %v1708_v54, %v741_v14  ;;  %vm795_vm7 = vcmp.gt.f32.partialorder %v787_v13, 0.0 }
 0x3c2   :  { %v805_v17 = vmul.f32 1.442695, %v799_v15  ;;  %v800_v18 = vmin.f32 %v790_v16, 0.0  ;;  %vm796_vm8 = vcmp.gt.f32.partialorder %v790_v16, 0.0 }
 0x3c4   :  { %2120 = vpow2.f32 %v805_v17  ;;  %v807_v19 = vmul.f32 1.442695, %v800_v18 }
 0x3c6   :  { %2122 = vpow2.f32 %v807_v19 }
 0x3c7   :  { %v2117_v20 = vpop.eup %2116 }
 0x3c8   :  { %v1518_v21 = vadd.f32 -1.0, %v2117_v20 }
 0x3c9   :  { %v2119_v22 = vpop.eup %2118 }
 0x3ca   :  { %v813_v23 = vsel %vm793_vm5, %v779_v53, %v1518_v21  ;;  %v1519_v24 = vadd.f32 -1.0, %v2119_v22 }
 0x3cb   :  { %v817_v25 = vmul.f32 %v2688_v6, %v813_v23 }
 0x3cc   :  { %v814_v26 = vsel %vm794_vm6, %v782_v58, %v1519_v24 }
 0x3cd   :  { %v818_v27 = vmul.f32 %v2688_v6, %v814_v26  ;;  %v2716_v29 = vadd.f32 %v817_v25, %v176_v2 }
 0x3ce   :  { %v2121_v28 = vpop.eup %2120 }
 0x3cf   :  { %v2720_v30 = vadd.f32 %v818_v27, %v177_v3  ;;  %v1520_v31 = vadd.f32 -1.0, %v2121_v28 }
 0x3d0   :  { %v2123_v32 = vpop.eup %2122 }
 0x3d1   :  { %v815_v33 = vsel %vm795_vm7, %v787_v13, %v1520_v31  ;;  %v1521_v34 = vadd.f32 -1.0, %v2123_v32  ;;  %v1912_v35 = vpack.i.bf16 %v2720_v30, %v2716_v29  ;;  %v885_v36 = vpack.c.bf16 %v2720_v30, %v2716_v29 }
 0x3d2   :  { %v819_v37 = vmul.f32 %v2688_v6, %v815_v33 }
 0x3d3   :  { %v816_v2 = vsel %vm796_vm8, %v790_v16, %v1521_v34  ;;  %1913 = vrot.lane.b32.xlu1 %v1912_v35, %s2405_s23  ;;  %1629 = vmatprep.subr.bf16.mxu1 %v885_v36 }
 0x3d4   :  { %v820_v0 = vmul.f32 %v2688_v6, %v816_v2  ;;  %v2731_v3 = vadd.f32 %v819_v37, %v178_v4  ;;  %v2093_v4 = vld [vmem:[#allocation14 + $0x8] ss:$12 sps:$4 sm:$0xff]  }
 0x3d5   :  { %1713 = vmatprep.mubr.msk.bf16.mxu0 %vm370_vm0, %v2093_v4 }
 0x3d6   :  { %v2735_v38 = vadd.f32 %v820_v0, %v179_v5  ;;  %v833_v5 = vld [vmem:[#allocation15] sm:$0xff] }
 0x3d7   :  { %1918 = vrot.lane.b32.xlu1 %v1912_v35, %s2413_s9 }
 0x3d8   :  { %v1922_v39 = vpack.i.bf16 %v2735_v38, %v2731_v3  ;;  %v886_v48 = vpack.c.bf16 %v2735_v38, %v2731_v3 }
 0x3da   :  { %1923 = vrot.lane.b32.xlu0 %v1922_v39, %s2405_s23 }
 0x3db   :  { %1933 = vrot.lane.b32.xlu1 %v1922_v39, %s2413_s9 }
 0x3de   :  { %1928 = vrot.lane.b32.xlu0 %v1912_v35, %s2414_s1 }
 0x3df   :  { %1938 = vrot.lane.b32.xlu1 %v1912_v35, %s2415_s14 }
 0x3e2   :  { %1943 = vrot.lane.b32.xlu0 %v1922_v39, %s2414_s1 }
 0x3e3   :  { %1953 = vrot.lane.b32.xlu1 %v1922_v39, %s2415_s14 }
 0x3e6   :  { %1948 = vrot.lane.b32.xlu0 %v1912_v35, %s2416_s25 }
 0x3e7   :  { %1958 = vrot.lane.b32.xlu1 %v1912_v35, %s2417_s11 }
 0x3ea   :  { %1963 = vrot.lane.b32.xlu0 %v1922_v39, %s2416_s25 }
 0x3eb   :  { %1973 = vrot.lane.b32.xlu1 %v1922_v39, %s2417_s11 }
 0x3ee   :  { %1968 = vrot.lane.b32.xlu0 %v1912_v35, %s2418_s12 }
 0x3ef   :  { %1983 = vrot.lane.b32.xlu1 %v1912_v35, %s2419_s13 }
 0x3f2   :  { %1978 = vrot.lane.b32.xlu0 %v1922_v39, %s2418_s12 }
 0x3f3   :  { %957 = vperm.xlu1 %1831, %v833_v5  }
 0x3f6   :  { %1988 = vrot.lane.b32.xlu0 %v1922_v39, %s2419_s13 }
 0x3f7   :  { %967 = vperm.xlu1 %1831, %v835_v40  }
 0x3fa   :  { %962 = vperm.xlu0 %1830, %v834_v41  }
 0x3fe   :  { %972 = vperm.xlu0 %1830, %v836_v42  }
 0x445   :  { %v1914_v43 = vpop.permute.xlu1 %1913 }
 0x446   :  { %v1916_v44 = vunpack.i.h.bf16 %v1914_v43  ;;  %v1915_v45 = vunpack.i.l.bf16 %v1914_v43 }
 0x448   :  { %v845_v46 = vpack.c.bf16 %v1916_v44, %v1915_v45 }
 0x449   :  { %v1919_v47 = vpop.permute.xlu1 %1918 }
 0x44a   :  { %1630 = vmatpush3.bf16.msra.mxu1 %v845_v46  ;;  %v1921_v49 = vunpack.i.h.bf16 %v1919_v47  ;;  %v1920_v50 = vunpack.i.l.bf16 %v1919_v47  ;;  %v2090_v46 = vld [vmem:[#allocation14] ss:$12 sps:$4 sm:$0xff]  }
 0x44b   :  { %1631 = vmatprep.subr.bf16.mxu1 %v886_v48 }
 0x44c   :  { %v1924_v51 = vpop.permute.xlu0 %1923  ;;  %v897_v56 = vpack.c.bf16 %v1921_v49, %v1920_v50  ;;  %v2095_v49 = vld [vmem:[#allocation14 + $0x1c] ss:$12 sps:$4 sm:$0xff]  }
 0x44d   :  { %v1926_v52 = vunpack.i.h.bf16 %v1924_v51  ;;  %v1925_v53 = vunpack.i.l.bf16 %v1924_v51  ;;  %v1934_v54 = vpop.permute.xlu1 %1933  ;;  %v2094_v51 = vld [vmem:[#allocation14 + $0x20] ss:$12 sps:$4 sm:$0xff]  }
 0x44e   :  { %v1936_v57 = vunpack.i.h.bf16 %v1934_v54  ;;  %v1935_v58 = vunpack.i.l.bf16 %v1934_v54 }
 0x44f   :  { %v846_v55 = vpack.c.bf16 %v1926_v52, %v1925_v53  ;;  %v2097_v52 = vld [vmem:[#allocation14 + $0x18] ss:$12 sps:$4 sm:$0xff]  }
 0x450   :  { %v1929_v59 = vpop.permute.xlu0 %1928  ;;  %v898_v7 = vpack.c.bf16 %v1936_v57, %v1935_v58 }
 0x451   :  { %v1931_v60 = vunpack.i.h.bf16 %v1929_v59  ;;  %v1930_v61 = vunpack.i.l.bf16 %v1929_v59  ;;  %v1939_v62 = vpop.permute.xlu1 %1938  ;;  %1632 = vmatpush3.bf16.msra.mxu1 %v846_v55 }
 0x452   :  { %1633 = vmatprep.subr.bf16.mxu1 %v897_v56  ;;  %v1941_v8 = vunpack.i.h.bf16 %v1939_v62  ;;  %v1940_v9 = vunpack.i.l.bf16 %v1939_v62 }
 0x453   :  { %v857_v63 = vpack.c.bf16 %v1931_v60, %v1930_v61 }
 0x454   :  { %v1944_v10 = vpop.permute.xlu0 %1943  ;;  %v909_v15 = vpack.c.bf16 %v1941_v8, %v1940_v9 }
 0x455   :  { %v1946_v11 = vunpack.i.h.bf16 %v1944_v10  ;;  %v1945_v12 = vunpack.i.l.bf16 %v1944_v10  ;;  %v1954_v13 = vpop.permute.xlu1 %1953  ;;  %1634 = vmatpush3.bf16.msra.mxu1 %v857_v63 }
 0x456   :  { %1635 = vmatprep.subr.bf16.mxu1 %v898_v7  ;;  %v1956_v16 = vunpack.i.h.bf16 %v1954_v13  ;;  %v1955_v17 = vunpack.i.l.bf16 %v1954_v13 }
 0x457   :  { %v858_v14 = vpack.c.bf16 %v1946_v11, %v1945_v12 }
 0x458   :  { %v1949_v18 = vpop.permute.xlu0 %1948  ;;  %v910_v23 = vpack.c.bf16 %v1956_v16, %v1955_v17 }
 0x459   :  { %v1951_v19 = vunpack.i.h.bf16 %v1949_v18  ;;  %v1950_v20 = vunpack.i.l.bf16 %v1949_v18  ;;  %v1959_v21 = vpop.permute.xlu1 %1958  ;;  %1636 = vmatpush3.bf16.msra.mxu1 %v858_v14 }
 0x45a   :  { %1637 = vmatprep.subr.bf16.mxu1 %v909_v15  ;;  %v1961_v24 = vunpack.i.h.bf16 %v1959_v21  ;;  %v1960_v25 = vunpack.i.l.bf16 %v1959_v21 }
 0x45b   :  { %v869_v22 = vpack.c.bf16 %v1951_v19, %v1950_v20 }
 0x45c   :  { %v1964_v26 = vpop.permute.xlu0 %1963  ;;  %v921_v33 = vpack.c.bf16 %v1961_v24, %v1960_v25 }
 0x45d   :  { %v1966_v27 = vunpack.i.h.bf16 %v1964_v26  ;;  %v1965_v28 = vunpack.i.l.bf16 %v1964_v26  ;;  %v1974_v31 = vpop.permute.xlu1 %1973  ;;  %1638 = vmatpush3.bf16.msra.mxu1 %v869_v22 }
 0x45e   :  { %1639 = vmatprep.subr.bf16.mxu1 %v910_v23  ;;  %v1976_v34 = vunpack.i.h.bf16 %v1974_v31  ;;  %v1975_v35 = vunpack.i.l.bf16 %v1974_v31 }
 0x45f   :  { %v870_v32 = vpack.c.bf16 %v1966_v27, %v1965_v28 }
 0x460   :  { %v1969_v36 = vpop.permute.xlu0 %1968  ;;  %v922_v5 = vpack.c.bf16 %v1976_v34, %v1975_v35 }
 0x461   :  { %v1971_v37 = vunpack.i.h.bf16 %v1969_v36  ;;  %v1970_v2 = vunpack.i.l.bf16 %v1969_v36  ;;  %v1984_v0 = vpop.permute.xlu1 %1983  ;;  %1640 = vmatpush3.bf16.msra.mxu1 %v870_v32 }
 0x462   :  { %v1986_v39 = vunpack.i.h.bf16 %v1984_v0  ;;  %v1985_v1 = vunpack.i.l.bf16 %v1984_v0  ;;  %1641 = vmatprep.subr.bf16.mxu1 %v921_v33 }
 0x463   :  { %v881_v4 = vpack.c.bf16 %v1971_v37, %v1970_v2 }
 0x464   :  { %v933_v40 = vpack.c.bf16 %v1986_v39, %v1985_v1  ;;  %v1979_v41 = vpop.permute.xlu0 %1978 }
 0x465   :  { %v1981_v42 = vunpack.i.h.bf16 %v1979_v41  ;;  %v1980_v43 = vunpack.i.l.bf16 %v1979_v41  ;;  %1642 = vmatpush3.bf16.msra.mxu1 %v881_v4 }
 0x466   :  { %1643 = vmatprep.subr.bf16.mxu1 %v922_v5  ;;  %1709 = vmatprep.subr.bf16.mxu0 %v933_v40 }
 0x467   :  { %v882_v44 = vpack.c.bf16 %v1981_v42, %v1980_v43  ;;  %1710 = vmatpush3.bf16.msra.mxu0 %v933_v40 }
 0x468   :  { %v1989_v45 = vpop.permute.xlu0 %1988 }
 0x469   :  { %v1991_v47 = vunpack.i.h.bf16 %v1989_v45  ;;  %v1990_v48 = vunpack.i.l.bf16 %v1989_v45  ;;  %1644 = vmatpush3.bf16.msra.mxu1 %v882_v44 }
 0x46b   :  { %v934_v50 = vpack.c.bf16 %v1991_v47, %v1990_v48 }
 0x46c   :  { %1044 = vmatmul.mubr.bf16.vlgmr.msra.gmra.mrb[12].mxu1 %v2090_v46 }
 0x46d   :  { %1711 = vmatprep.subr.bf16.mxu0 %v934_v50  ;;  %1051 = vmatprep.mubr.bf16.mxu1 %v2095_v49 }
 0x46e   :  { %1712 = vmatpush3.bf16.msra.mxu0 %v934_v50  ;;  %v2101_v50 = vld [vmem:[#allocation17 + $0x8] ss:$12 sps:$4 sm:$0xff]  }
 0x471   :  { %1714 = vmatmul.mubr.msk.bf16.vlgmr.msra.gmra.mrb[12].mxu0 %vm370_vm0, %v2094_v51  ;;  %v1145_v51 = vld [vmem:[#allocation18] sm:$0xff] }
 0x472   :  { %v958_v57 = vpop.permute.xlu1 %957 }
 0x474   :  { %1052 = vmatmul.mubr.bf16.gmra.mrb[16].mxu1 %v2097_v52  ;;  %v1147_v52 = vld [vmem:[#allocation18 + $0x10] sm:$0xff] }
 0x475   :  { %1721 = vmatprep.mubr.msk.bf16.mxu1 %vm370_vm0, %v2101_v50 }
 0x476   :  { %v968_v17 = vpop.permute.xlu1 %967 }
 0x479   :  { %v963_v61 = vpop.permute.xlu0 %962 }
 0x47d   :  { %v973_v23 = vpop.permute.xlu0 %972 }
 0x53f   :  { %v1645_v53 = vpop.f32.mrb[12].mxu1 }
 0x540   :  { %v1646_v54 = vpop.f32.mrb[13].mxu1 }
 0x541   :  { %v1647_v55 = vadd.f32 %v1646_v54, %v1645_v53  ;;  %v1648_v56 = vpop.f32.mrb[14].mxu1  ;;  %v1146_v53 = vld [vmem:[#allocation18 + $0x8] sm:$0xff]  ;;  %v1148_v54 = vld [vmem:[#allocation18 + $0x18] sm:$0xff] }
 0x542   :  { %v1649_v58 = vpop.f32.mrb[15].mxu1 }
 0x543   :  { %v1650_v59 = vadd.f32 %v1649_v58, %v1648_v56  ;;  %v1046_v60 = vadd.f32 %v1647_v55, %v958_v57 }
 0x544   :  { %v1715_v62 = vpop.f32.mrb[12].mxu0 }
 0x545   :  { %v1094_v63 = vpop.f32.mrb[13].mxu0  ;;  %v1049_v7 = vadd.f32 %v1650_v59, %v963_v61 }
 0x546   :  { %v1095_v8 = vadd.f32 %v1094_v63, %v1046_v60  ;;  %v1716_v9 = vpop.f32.mrb[14].mxu0 }
 0x547   :  { %v1651_v10 = vpop.f32.mrb[16].mxu1  ;;  %v1097_v11 = vpop.f32.mrb[15].mxu0 }
 0x548   :  { %v1113_v12 = vmin.f32 %v1095_v8, 0.0  ;;  %v1098_v13 = vadd.f32 %v1097_v11, %v1049_v7  ;;  %v1652_v14 = vpop.f32.mrb[17].mxu1  ;;  %vm1109_vm9 = vcmp.gt.f32.partialorder %v1095_v8, 0.0 }
 0x549   :  { %v1653_v15 = vadd.f32 %v1652_v14, %v1651_v10  ;;  %v1654_v16 = vpop.f32.mrb[18].mxu1 }
 0x54a   :  { %v1117_v18 = vmul.f32 1.442695, %v1113_v12  ;;  %v1114_v19 = vmin.f32 %v1098_v13, 0.0  ;;  %v1655_v20 = vpop.f32.mrb[19].mxu1  ;;  %vm1110_vm10 = vcmp.gt.f32.partialorder %v1098_v13, 0.0 }
 0x54b   :  { %v1054_v21 = vadd.f32 %v1653_v15, %v968_v17  ;;  %v1656_v22 = vadd.f32 %v1655_v20, %v1654_v16 }
 0x54c   :  { %2124 = vpow2.f32 %v1117_v18  ;;  %v1119_v24 = vmul.f32 1.442695, %v1114_v19 }
 0x54d   :  { %v1103_v25 = vadd.f32 %v1715_v62, %v1054_v21  ;;  %v1057_v26 = vadd.f32 %v1656_v22, %v973_v23 }
 0x54e   :  { %2126 = vpow2.f32 %v1119_v24 }
 0x54f   :  { %v1115_v27 = vmin.f32 %v1103_v25, 0.0  ;;  %v1106_v28 = vadd.f32 %v1716_v9, %v1057_v26  ;;  %vm1111_vm11 = vcmp.gt.f32.partialorder %v1103_v25, 0.0 }
 0x551   :  { %v1121_v31 = vmul.f32 1.442695, %v1115_v27  ;;  %v1116_v32 = vmin.f32 %v1106_v28, 0.0  ;;  %vm1112_vm12 = vcmp.gt.f32.partialorder %v1106_v28, 0.0 }
 0x553   :  { %2128 = vpow2.f32 %v1121_v31  ;;  %v1123_v33 = vmul.f32 1.442695, %v1116_v32 }
 0x555   :  { %2130 = vpow2.f32 %v1123_v33 }
 0x556   :  { %v2125_v34 = vpop.eup %2124 }
 0x557   :  { %v1530_v35 = vadd.f32 -1.0, %v2125_v34 }
 0x558   :  { %v2127_v36 = vpop.eup %2126 }
 0x559   :  { %v1129_v37 = vsel %vm1109_vm9, %v1095_v8, %v1530_v35  ;;  %v1531_v2 = vadd.f32 -1.0, %v2127_v36 }
 0x55a   :  { %v1133_v39 = vmul.f32 %v2688_v6, %v1129_v37 }
 0x55b   :  { %v1130_v0 = vsel %vm1110_vm10, %v1098_v13, %v1531_v2 }
 0x55c   :  { %v1134_v1 = vmul.f32 %v2688_v6, %v1130_v0 }
 0x55d   :  { %v2129_v4 = vpop.eup %2128 }
 0x55e   :  { %v1532_v5 = vadd.f32 -1.0, %v2129_v4  ;;  %v1992_v40 = vpack.i.bf16 %v1134_v1, %v1133_v39  ;;  %v1197_v41 = vpack.c.bf16 %v1134_v1, %v1133_v39 }
 0x55f   :  { %v2131_v42 = vpop.eup %2130 }
 0x560   :  { %v1131_v43 = vsel %vm1111_vm11, %v1103_v25, %v1532_v5  ;;  %v1533_v44 = vadd.f32 -1.0, %v2131_v42  ;;  %1993 = vrot.lane.b32.xlu1 %v1992_v40, %s2405_s23  ;;  %1661 = vmatprep.subr.bf16.mxu0 %v1197_v41 }
 0x561   :  { %v1135_v46 = vmul.f32 %v2688_v6, %v1131_v43 }
 0x562   :  { %v1132_v45 = vsel %vm1112_vm12, %v1106_v28, %v1533_v44 }
 0x563   :  { %v1136_v47 = vmul.f32 %v2688_v6, %v1132_v45  ;;  %v2100_v6 = vld [vmem:[#allocation17 + $0x4] ss:$12 sps:$4 sm:$0xff]  }
 0x564   :  { %1998 = vrot.lane.b32.xlu1 %v1992_v40, %s2413_s9  ;;  %1355 = vmatprep.mubr.bf16.mxu0 %v2100_v6 }
 0x565   :  { %v2002_v48 = vpack.i.bf16 %v1136_v47, %v1135_v46  ;;  %v1198_v49 = vpack.c.bf16 %v1136_v47, %v1135_v46 }
 0x567   :  { %2003 = vrot.lane.b32.xlu0 %v2002_v48, %s2405_s23 }
 0x568   :  { %2013 = vrot.lane.b32.xlu1 %v2002_v48, %s2413_s9 }
 0x56b   :  { %2008 = vrot.lane.b32.xlu0 %v1992_v40, %s2414_s1 }
 0x56c   :  { %2018 = vrot.lane.b32.xlu1 %v1992_v40, %s2415_s14 }
 0x56f   :  { %2023 = vrot.lane.b32.xlu0 %v2002_v48, %s2414_s1 }
 0x570   :  { %2033 = vrot.lane.b32.xlu1 %v2002_v48, %s2415_s14 }
 0x573   :  { %2028 = vrot.lane.b32.xlu0 %v1992_v40, %s2416_s25 }
 0x574   :  { %2038 = vrot.lane.b32.xlu1 %v1992_v40, %s2417_s11 }
 0x577   :  { %2043 = vrot.lane.b32.xlu0 %v2002_v48, %s2416_s25 }
 0x578   :  { %2053 = vrot.lane.b32.xlu1 %v2002_v48, %s2417_s11 }
 0x57b   :  { %2048 = vrot.lane.b32.xlu0 %v1992_v40, %s2418_s12 }
 0x57c   :  { %2063 = vrot.lane.b32.xlu1 %v1992_v40, %s2419_s13 }
 0x57f   :  { %2058 = vrot.lane.b32.xlu0 %v2002_v48, %s2418_s12 }
 0x580   :  { %1269 = vperm.xlu1 %1831, %v1145_v51  }
 0x583   :  { %2068 = vrot.lane.b32.xlu0 %v2002_v48, %s2419_s13 }
 0x584   :  { %1279 = vperm.xlu1 %1831, %v1147_v52  }
 0x587   :  { %1274 = vperm.xlu0 %1830, %v1146_v53  }
 0x58b   :  { %1284 = vperm.xlu0 %1830, %v1148_v54  }
 0x5d2   :  { %v1994_v55 = vpop.permute.xlu1 %1993 }
 0x5d3   :  { %v1996_v56 = vunpack.i.h.bf16 %v1994_v55  ;;  %v1995_v57 = vunpack.i.l.bf16 %v1994_v55 }
 0x5d5   :  { %v1157_v58 = vpack.c.bf16 %v1996_v56, %v1995_v57  ;;  %v2098_v56 = vld [vmem:[#allocation17] ss:$12 sps:$4 sm:$0xff]  }
 0x5d6   :  { %v1999_v59 = vpop.permute.xlu1 %1998 }
 0x5d7   :  { %1662 = vmatpush3.bf16.msra.mxu0 %v1157_v58  ;;  %v2001_v60 = vunpack.i.h.bf16 %v1999_v59  ;;  %v2000_v61 = vunpack.i.l.bf16 %v1999_v59  ;;  %v2103_v59 = vld [vmem:[#allocation17 + $0x1c] ss:$12 sps:$4 sm:$0xff]  }
 0x5d8   :  { %1663 = vmatprep.subr.bf16.mxu0 %v1198_v49 }
 0x5d9   :  { %v2004_v62 = vpop.permute.xlu0 %2003  ;;  %v1209_v10 = vpack.c.bf16 %v2001_v60, %v2000_v61  ;;  %v2102_v61 = vld [vmem:[#allocation17 + $0x20] ss:$12 sps:$4 sm:$0xff]  }
 0x5da   :  { %v2006_v63 = vunpack.i.h.bf16 %v2004_v62  ;;  %v2005_v7 = vunpack.i.l.bf16 %v2004_v62  ;;  %v2014_v8 = vpop.permute.xlu1 %2013  ;;  %v2105_v62 = vld [vmem:[#allocation17 + $0x18] ss:$12 sps:$4 sm:$0xff]  }
 0x5db   :  { %v2016_v11 = vunpack.i.h.bf16 %v2014_v8  ;;  %v2015_v12 = vunpack.i.l.bf16 %v2014_v8 }
 0x5dc   :  { %v1158_v9 = vpack.c.bf16 %v2006_v63, %v2005_v7 }
 0x5dd   :  { %v2009_v13 = vpop.permute.xlu0 %2008  ;;  %v1210_v18 = vpack.c.bf16 %v2016_v11, %v2015_v12 }
 0x5de   :  { %v2011_v14 = vunpack.i.h.bf16 %v2009_v13  ;;  %v2010_v15 = vunpack.i.l.bf16 %v2009_v13  ;;  %v2019_v16 = vpop.permute.xlu1 %2018  ;;  %1664 = vmatpush3.bf16.msra.mxu0 %v1158_v9 }
 0x5df   :  { %1665 = vmatprep.subr.bf16.mxu0 %v1209_v10  ;;  %v2021_v19 = vunpack.i.h.bf16 %v2019_v16  ;;  %v2020_v20 = vunpack.i.l.bf16 %v2019_v16 }
 0x5e0   :  { %v1169_v17 = vpack.c.bf16 %v2011_v14, %v2010_v15 }
 0x5e1   :  { %v2024_v21 = vpop.permute.xlu0 %2023  ;;  %v1221_v26 = vpack.c.bf16 %v2021_v19, %v2020_v20 }
 0x5e2   :  { %v2026_v22 = vunpack.i.h.bf16 %v2024_v21  ;;  %v2025_v23 = vunpack.i.l.bf16 %v2024_v21  ;;  %v2034_v24 = vpop.permute.xlu1 %2033  ;;  %1666 = vmatpush3.bf16.msra.mxu0 %v1169_v17 }
 0x5e3   :  { %1667 = vmatprep.subr.bf16.mxu0 %v1210_v18  ;;  %v2036_v27 = vunpack.i.h.bf16 %v2034_v24  ;;  %v2035_v28 = vunpack.i.l.bf16 %v2034_v24 }
 0x5e4   :  { %v1170_v25 = vpack.c.bf16 %v2026_v22, %v2025_v23 }
 0x5e5   :  { %v2029_v31 = vpop.permute.xlu0 %2028  ;;  %v1222_v36 = vpack.c.bf16 %v2036_v27, %v2035_v28 }
 0x5e6   :  { %v2031_v32 = vunpack.i.h.bf16 %v2029_v31  ;;  %v2030_v33 = vunpack.i.l.bf16 %v2029_v31  ;;  %v2039_v34 = vpop.permute.xlu1 %2038  ;;  %1668 = vmatpush3.bf16.msra.mxu0 %v1170_v25 }
 0x5e7   :  { %1669 = vmatprep.subr.bf16.mxu0 %v1221_v26  ;;  %v2041_v37 = vunpack.i.h.bf16 %v2039_v34  ;;  %v2040_v2 = vunpack.i.l.bf16 %v2039_v34 }
 0x5e8   :  { %v1181_v35 = vpack.c.bf16 %v2031_v32, %v2030_v33 }
 0x5e9   :  { %v2044_v0 = vpop.permute.xlu0 %2043  ;;  %v1233_v40 = vpack.c.bf16 %v2041_v37, %v2040_v2 }
 0x5ea   :  { %v2046_v39 = vunpack.i.h.bf16 %v2044_v0  ;;  %v2045_v1 = vunpack.i.l.bf16 %v2044_v0  ;;  %v2054_v4 = vpop.permute.xlu1 %2053  ;;  %1670 = vmatpush3.bf16.msra.mxu0 %v1181_v35 }
 0x5eb   :  { %1671 = vmatprep.subr.bf16.mxu0 %v1222_v36  ;;  %v2056_v41 = vunpack.i.h.bf16 %v2054_v4  ;;  %v2055_v42 = vunpack.i.l.bf16 %v2054_v4 }
 0x5ec   :  { %v1182_v5 = vpack.c.bf16 %v2046_v39, %v2045_v1 }
 0x5ed   :  { %v2049_v43 = vpop.permute.xlu0 %2048  ;;  %v1234_v6 = vpack.c.bf16 %v2056_v41, %v2055_v42 }
 0x5ee   :  { %v2051_v44 = vunpack.i.h.bf16 %v2049_v43  ;;  %v2050_v45 = vunpack.i.l.bf16 %v2049_v43  ;;  %v2064_v46 = vpop.permute.xlu1 %2063  ;;  %1672 = vmatpush3.bf16.msra.mxu0 %v1182_v5 }
 0x5ef   :  { %v2066_v47 = vunpack.i.h.bf16 %v2064_v46  ;;  %v2065_v48 = vunpack.i.l.bf16 %v2064_v46  ;;  %1673 = vmatprep.subr.bf16.mxu0 %v1233_v40 }
 0x5f0   :  { %v1193_v49 = vpack.c.bf16 %v2051_v44, %v2050_v45  ;;  %v2140_v45 = vld [vmem:[#allocation6] ss:$0 sm:$0xff] }
 0x5f1   :  { %v1245_v50 = vpack.c.bf16 %v2066_v47, %v2065_v48  ;;  %v2059_v51 = vpop.permute.xlu0 %2058 }
 0x5f2   :  { %v2061_v52 = vunpack.i.h.bf16 %v2059_v51  ;;  %v2060_v53 = vunpack.i.l.bf16 %v2059_v51  ;;  %1674 = vmatpush3.bf16.msra.mxu0 %v1193_v49 }
 0x5f3   :  { %1675 = vmatprep.subr.bf16.mxu0 %v1234_v6  ;;  %1717 = vmatprep.subr.bf16.mxu1 %v1245_v50 }
 0x5f4   :  { %v1194_v54 = vpack.c.bf16 %v2061_v52, %v2060_v53  ;;  %1718 = vmatpush3.bf16.msra.mxu1 %v1245_v50 }
 0x5f5   :  { %v2069_v55 = vpop.permute.xlu0 %2068 }
 0x5f6   :  { %v2071_v57 = vunpack.i.h.bf16 %v2069_v55  ;;  %v2070_v58 = vunpack.i.l.bf16 %v2069_v55  ;;  %1676 = vmatpush3.bf16.msra.mxu0 %v1194_v54 }
 0x5f8   :  { %v1246_v60 = vpack.c.bf16 %v2071_v57, %v2070_v58 }
 0x5f9   :  { %1356 = vmatmul.mubr.bf16.vlgmr.msra.gmra.mrb[16].mxu0 %v2098_v56 }
 0x5fa   :  { %1719 = vmatprep.subr.bf16.mxu1 %v1246_v60  ;;  %1363 = vmatprep.mubr.bf16.mxu0 %v2103_v59 }
 0x5fb   :  { %1720 = vmatpush3.bf16.msra.mxu1 %v1246_v60 }
 0x5fe   :  { %1722 = vmatmul.mubr.msk.bf16.vlgmr.msra.gmra.mrb[20].mxu1 %vm370_vm0, %v2102_v61 }
 0x5ff   :  { %v1270_v10 = vpop.permute.xlu1 %1269 }
 0x601   :  { %1364 = vmatmul.mubr.bf16.gmra.mrb[20].mxu0 %v2105_v62 }
 0x603   :  { %v1280_v27 = vpop.permute.xlu1 %1279 }
 0x606   :  { %v1275_v14 = vpop.permute.xlu0 %1274 }
 0x60a   :  { %v1285_v35 = vpop.permute.xlu0 %1284 }
 0x6cc   :  { %v1677_v63 = vpop.f32.mrb[16].mxu0 }
 0x6cd   :  { %v1678_v7 = vpop.f32.mrb[17].mxu0 }
 0x6ce   :  { %v1679_v8 = vadd.f32 %v1678_v7, %v1677_v63  ;;  %v1680_v9 = vpop.f32.mrb[18].mxu0 }
 0x6cf   :  { %v1681_v11 = vpop.f32.mrb[19].mxu0 }
 0x6d0   :  { %v1682_v12 = vadd.f32 %v1681_v11, %v1680_v9  ;;  %v1358_v13 = vadd.f32 %v1679_v8, %v1270_v10 }
 0x6d1   :  { %v1723_v15 = vpop.f32.mrb[20].mxu1 }
 0x6d2   :  { %v1406_v16 = vpop.f32.mrb[21].mxu1  ;;  %v1361_v17 = vadd.f32 %v1682_v12, %v1275_v14 }
 0x6d3   :  { %v1407_v18 = vadd.f32 %v1406_v16, %v1358_v13  ;;  %v1724_v19 = vpop.f32.mrb[22].mxu1 }
 0x6d4   :  { %v1683_v20 = vpop.f32.mrb[20].mxu0  ;;  %v1409_v21 = vpop.f32.mrb[23].mxu1 }
 0x6d5   :  { %v1425_v22 = vmin.f32 %v1407_v18, 0.0  ;;  %v1410_v23 = vadd.f32 %v1409_v21, %v1361_v17  ;;  %v1684_v24 = vpop.f32.mrb[21].mxu0  ;;  %vm1421_vm13 = vcmp.gt.f32.partialorder %v1407_v18, 0.0 }
 0x6d6   :  { %v1685_v25 = vadd.f32 %v1684_v24, %v1683_v20  ;;  %v1686_v26 = vpop.f32.mrb[22].mxu0 }
 0x6d7   :  { %v1429_v28 = vmul.f32 1.442695, %v1425_v22  ;;  %v1426_v31 = vmin.f32 %v1410_v23, 0.0  ;;  %v1687_v32 = vpop.f32.mrb[23].mxu0  ;;  %vm1422_vm14 = vcmp.gt.f32.partialorder %v1410_v23, 0.0 }
 0x6d8   :  { %v1366_v33 = vadd.f32 %v1685_v25, %v1280_v27  ;;  %v1688_v34 = vadd.f32 %v1687_v32, %v1686_v26 }
 0x6d9   :  { %2132 = vpow2.f32 %v1429_v28  ;;  %v1431_v36 = vmul.f32 1.442695, %v1426_v31 }
 0x6da   :  { %v1415_v37 = vadd.f32 %v1723_v15, %v1366_v33  ;;  %v1369_v2 = vadd.f32 %v1688_v34, %v1285_v35 }
 0x6db   :  { %2134 = vpow2.f32 %v1431_v36 }
 0x6dc   :  { %v1427_v0 = vmin.f32 %v1415_v37, 0.0  ;;  %v1418_v39 = vadd.f32 %v1724_v19, %v1369_v2  ;;  %vm1423_vm15 = vcmp.gt.f32.partialorder %v1415_v37, 0.0 }
 0x6de   :  { %v1433_v1 = vmul.f32 1.442695, %v1427_v0  ;;  %v1428_v4 = vmin.f32 %v1418_v39, 0.0  ;;  %vm1424_vm0 = vcmp.gt.f32.partialorder %v1418_v39, 0.0 }
 0x6e0   :  { %2136 = vpow2.f32 %v1433_v1  ;;  %v1435_v5 = vmul.f32 1.442695, %v1428_v4 }
 0x6e2   :  { %2138 = vpow2.f32 %v1435_v5 }
 0x6e3   :  { %v2133_v40 = vpop.eup %2132 }
 0x6e4   :  { %v1542_v41 = vadd.f32 -1.0, %v2133_v40 }
 0x6e5   :  { %v2135_v42 = vpop.eup %2134 }
 0x6e6   :  { %v1441_v43 = vsel %vm1421_vm13, %v1407_v18, %v1542_v41  ;;  %v1543_v44 = vadd.f32 -1.0, %v2135_v42 }
 0x6e7   :  { %v1445_v46 = vmul.f32 %v2140_v45, %v1441_v43 }
 0x6e8   :  { %v1442_v47 = vsel %vm1422_vm14, %v1410_v23, %v1543_v44 }
 0x6e9   :  { %v1446_v48 = vmul.f32 %v2140_v45, %v1442_v47  ;;  %v1449_v50 = vadd.f32 %v1445_v46, %v2716_v29 }
 0x6ea   :  { %v2137_v49 = vpop.eup %2136 }
 0x6eb   :  { %v1544_v6 = vadd.f32 -1.0, %v2137_v49  ;;  %v1450_v51 = vadd.f32 %v1446_v48, %v2720_v30 }
 0x6ec   :  { %v2139_v52 = vpop.eup %2138 }
 0x6ed   :  { %v1443_v53 = vsel %vm1423_vm15, %v1415_v37, %v1544_v6  ;;  %v1545_v54 = vadd.f32 -1.0, %v2139_v52  ;;  %v1557_v55 = vpack.c.bf16 %v1450_v51, %v1449_v50 }
 0x6ee   :  { %v1447_v56 = vmul.f32 %v2140_v45, %v1443_v53 }
 0x6ef   :  { %v1444_v57 = vsel %vm1424_vm0, %v1418_v39, %v1545_v54  ;;  %1558 = vst [vmem:[#allocation20] sm:$0xff] %v1557_v55  }
 0x6f0   :  { %v1448_v58 = vmul.f32 %v2140_v45, %v1444_v57  ;;  %v1451_v59 = vadd.f32 %v1447_v56, %v2731_v3 }
 0x6f2   :  { %v1452_v60 = vadd.f32 %v1448_v58, %v2735_v38 }
 0x6f4   :  { %v1562_v61 = vpack.c.bf16 %v1452_v60, %v1451_v59 }
 0x6f6   :  { %1564 = vst [vmem:[#allocation20 + $0x8] sm:$0xff] %v1562_v61  }
 0x6f7   :  { %2372 = shalt.err (!%p2369_p0)
}
 0x6f8   :  { %s2373_s17 = scalar_lea.hbm %s2809_s10, 256 }
 0x6f9   :  { %p2374_p1 = scmp.ne.s32.totalorder %s2809_s10, %s2373_s17  ;;  %p2377_p2 = scmp.lt.u32.totalorder %s2373_s17, %s2809_s10 }
 0x6fb   :  { %p2379_p3 = pnand %p2377_p2, %p2374_p1 }
 0x6fd   :  { %2382 = shalt.err (!%p2379_p3)
}
 0x6fe   :  { %1484 = dma.vmem_to_hbm [thread:$0]  %s1479_s18, 256, %s2809_s10, [#allocation5], %s2404_s7, %s2404_s7, %s2405_s23  }
 0x6ff   :  { %2395 = dma.done.wait [#allocation5], 256  }
 0x700   :  { %2396 = vsyncadd [#allocation5], 4294967040 }
 0x701   :  { %1488 = vsyncpa [#allocation4], 1 }
 0x702   :  { %1489 = vsyncpa [#allocation7], 1 }
 0x703   :  { %1490 = vsyncpa [#allocation10], 1 }
 0x704   :  { %1491 = vsyncpa [#allocation13], 1 }
 0x705   :  { %1492 = vsyncpa [#allocation16], 1 }
 0x706   :  { %1493 = vsyncpa [#allocation19], 1 }
 0x707   :  { %1494 = vsyncpa [#allocation5], 1 }

</bundles_post_ra>
